<compile_context>
chip_gen: v6e
topology: v6e:2x2x1
jax: 0.10.0
libtpu: 0.0.40
codegen_flags: <defaults>
</compile_context>

<pallas_src>
import functools

import jax
import jax.numpy as jnp
from jax.experimental import pallas as pl
from jax.experimental.pallas import tpu as pltpu


def _relu_conv3x3_kernel(x_ref, w_ref, o_ref, xr_ref, *, H, W):
    """One C_out tile of the fused ReLU + 3x3 'same' conv.

    x_ref : (1, H+2, W+2, C_in) f32  zero-padded, pre-ReLU input (same block every step)
    w_ref : (3, 3, C_in, TC)    bf16 weight tile for this grid step (double-buffered)
    o_ref : (1, H, W, TC)       f32  output tile
    xr_ref: (H+2, W+2, C_in)    bf16 VMEM scratch: ReLU'd + cast input
    """
    # ReLU + bf16 cast into VMEM scratch.  Recomputed each grid step (trivial VPU
    # work, ~40K elements) so the kernel stays correct when the "parallel" C_out
    # axis is sharded across TensorCores on v7x (a program_id==0-only init would
    # never run on the second core).
    xr_ref[...] = jnp.maximum(x_ref[0], 0.0).astype(jnp.bfloat16)

    # 3x3 conv as 9 statically unrolled MXU matmuls: bf16 x bf16 -> f32 accumulate.
    # TODO(synk): 6 of 9 taps use sublane-offset W slices; a pltpu.roll-based
    # pre-shift could shave a few XLU/copy cycles, but DMA/MXU dominate here.
    acc = None
    for kh in range(3):
        for kw in range(3):
            patch = xr_ref[kh:kh + H, kw:kw + W, :]          # (H, W, C_in) bf16
            tap = jax.lax.dot_general(
                patch, w_ref[kh, kw],
                dimension_numbers=(((2,), (0,)), ((), ())),  # contract C_in
                preferred_element_type=jnp.float32)
            acc = tap if acc is None else acc + tap
    o_ref[...] = acc[None].astype(o_ref.dtype)


def prepare_weight(w_oihw):
    """One-time weight prep: OIHW -> HWIO layout + bf16 cast (off the hot path)."""
    return jnp.transpose(w_oihw, (2, 3, 1, 0)).astype(jnp.bfloat16)


@jax.jit
def relu_conv2d(x_nchw, w_hwio_bf16):
    """Fused ReLU + 3x3 same-padding conv (stride 1, no bias). NCHW in / NCHW out."""
    N, C_in, H, W = x_nchw.shape
    KH, KW, C_in_w, C_out = w_hwio_bf16.shape
    assert N == 1 and C_in_w == C_in and (KH, KW) == (3, 3)

    block_cout = 128 if C_out % 128 == 0 else C_out
    n_blocks = C_out // block_cout

    x_nhwc = jnp.transpose(x_nchw, (0, 2, 3, 1))                 # NCHW -> NHWC
    x_pad = jnp.pad(x_nhwc, ((0, 0), (1, 1), (1, 1), (0, 0)))    # 'same' zero padding

    kernel = functools.partial(_relu_conv3x3_kernel, H=H, W=W)

    out_nhwc = pl.pallas_call(
        kernel,
        out_shape=jax.ShapeDtypeStruct((1, H, W, C_out), x_nchw.dtype),
        grid_spec=pltpu.PrefetchScalarGridSpec(
            num_scalar_prefetch=0,
            grid=(n_blocks,),
            in_specs=[
                # Full padded activation, resident across all C_out steps.
                pl.BlockSpec((1, H + 2, W + 2, C_in), lambda j: (0, 0, 0, 0)),
                # One (3,3,C_in,block_cout) bf16 weight tile per step, streamed
                # (double-buffered) by the Pallas pipeline.
                pl.BlockSpec((3, 3, C_in, block_cout), lambda j: (0, 0, 0, j)),
            ],
            out_specs=pl.BlockSpec((1, H, W, block_cout), lambda j: (0, 0, 0, j)),
            scratch_shapes=[pltpu.VMEM((H + 2, W + 2, C_in), jnp.bfloat16)],
        ),
        compiler_params=pltpu.CompilerParams(
            # C_out tiles are independent -> shard across both TensorCores on v7x.
            dimension_semantics=("parallel",),
        ),
    )(x_pad, w_hwio_bf16)

    return jnp.transpose(out_nhwc, (0, 3, 1, 2))                 # NHWC -> NCHW


if __name__ == "__main__":
    key = jax.random.PRNGKey(0)
    kx, kw = jax.random.split(key)

    # Input matches the module: torch.randn([1, 512, 7, 7]) (NCHW, float32).
    x = jax.random.normal(kx, (1, 512, 7, 7), dtype=jnp.float32)

    # Conv2d(512, 512, 3, bias=False) weight in PyTorch layout (Cout, Cin, KH, KW),
    # deterministic Kaiming-style init.
    fan_in = 512 * 3 * 3
    w = jax.random.normal(kw, (512, 512, 3, 3), dtype=jnp.float32) * (2.0 / fan_in) ** 0.5

    # Weight layout/dtype conversion happens once, outside the per-call hot path.
    w_hwio = prepare_weight(w)

    y = relu_conv2d(x, w_hwio)
    jax.block_until_ready(y)

    # Reference: ReLU + f32 conv via lax (same semantics as the PyTorch module).
    y_ref = jax.lax.conv_general_dilated(
        jnp.maximum(x, 0.0), w,
        window_strides=(1, 1), padding=((1, 1), (1, 1)),
        dimension_numbers=("NCHW", "OIHW", "NCHW"))

    assert y.shape == (1, 512, 7, 7) and y.dtype == jnp.float32
    # bf16 MXU operands with f32 accumulation: ~1e-2 worst-case abs error vs f32 ref.
    assert jnp.allclose(y, y_ref, rtol=2e-2, atol=2e-2), "mismatch vs reference conv"

    print("KERNEL_OK")
</pallas_src>

<mosaic_0001>
module attributes {stable_mosaic.version = 11 : i64} {
  func.func @_relu_conv3x3_kernel(%arg0: i32, %arg1: memref<1x9x9x512xf32, #tpu.memory_space<vmem>>, %arg2: memref<3x3x512x128xbf16, #tpu.memory_space<vmem>>, %arg3: memref<1x7x7x128xf32, #tpu.memory_space<vmem>>, %arg4: memref<9x9x512xbf16, #tpu.memory_space<vmem>>) attributes {dimension_semantics = [#tpu.dimension_semantics<parallel>], iteration_bounds = array<i64: 4>, scalar_prefetch = 0 : i64, scratch_operands = 1 : i64, tpu.core_type = #tpu.core_type<tc>, window_params = [{pipeline_mode = #tpu.pipeline_mode<synchronous>, transform_indices = @transform_0, window_bounds = array<i64: 1, 9, 9, 512>}, {transform_indices = @transform_1, window_bounds = array<i64: 3, 3, 512, 128>}, {transform_indices = @transform_2, window_bounds = array<i64: 1, 7, 7, 128>}]} {
    %c0 = arith.constant 0 : index
    %c0_0 = arith.constant 0 : index
    %c0_1 = arith.constant 0 : index
    %c0_2 = arith.constant 0 : index
    %0 = vector.load %arg1[%c0, %c0_0, %c0_1, %c0_2] : memref<1x9x9x512xf32, #tpu.memory_space<vmem>>, vector<1x9x9x512xf32>
    %1 = vector.shape_cast %0 : vector<1x9x9x512xf32> to vector<9x9x512xf32>
    %cst = arith.constant 0.000000e+00 : f32
    %2 = vector.broadcast %cst : f32 to vector<9x9x512xf32>
    %3 = arith.maximumf %1, %2 : vector<9x9x512xf32>
    %4 = arith.truncf %3 : vector<9x9x512xf32> to vector<9x9x512xbf16>
    %c0_3 = arith.constant 0 : index
    %c0_4 = arith.constant 0 : index
    %c0_5 = arith.constant 0 : index
    %5 = vector.load %arg4[%c0_3, %c0_4, %c0_5] : memref<9x9x512xbf16, #tpu.memory_space<vmem>>, vector<9x9x512xbf16>
    tpu.vector_store %arg4[%c0_3, %c0_4, %c0_5], %4 {strides = array<i32>} : memref<9x9x512xbf16, #tpu.memory_space<vmem>>, vector<9x9x512xbf16>,
    %c0_6 = arith.constant 0 : index
    %c0_7 = arith.constant 0 : index
    %c0_8 = arith.constant 0 : index
    %6 = vector.load %arg4[%c0_6, %c0_7, %c0_8] : memref<9x9x512xbf16, #tpu.memory_space<vmem>>, vector<7x7x512xbf16>
    %c0_9 = arith.constant 0 : index
    %c0_10 = arith.constant 0 : index
    %c0_11 = arith.constant 0 : index
    %c0_12 = arith.constant 0 : index
    %7 = vector.load %arg2[%c0_9, %c0_10, %c0_11, %c0_12] : memref<3x3x512x128xbf16, #tpu.memory_space<vmem>>, vector<1x1x512x128xbf16>
    %8 = vector.shape_cast %7 : vector<1x1x512x128xbf16> to vector<512x128xbf16>
    %cst_13 = arith.constant dense<0.000000e+00> : vector<7x7x128xf32>
    %9 = tpu.matmul %6, %8, %cst_13 {dimension_numbers = #tpu.dot_dimension_numbers<[2], [0], [0, 1], [1], [0, 0, 0, 1, 1, 1], [], []>} : vector<7x7x512xbf16>, vector<512x128xbf16>, vector<7x7x128xf32> -> vector<7x7x128xf32>
    %c0_14 = arith.constant 0 : index
    %c1 = arith.constant 1 : index
    %c0_15 = arith.constant 0 : index
    %10 = vector.load %arg4[%c0_14, %c1, %c0_15] : memref<9x9x512xbf16, #tpu.memory_space<vmem>>, vector<7x7x512xbf16>
    %c0_16 = arith.constant 0 : index
    %c1_17 = arith.constant 1 : index
    %c0_18 = arith.constant 0 : index
    %c0_19 = arith.constant 0 : index
    %11 = vector.load %arg2[%c0_16, %c1_17, %c0_18, %c0_19] : memref<3x3x512x128xbf16, #tpu.memory_space<vmem>>, vector<1x1x512x128xbf16>
    %12 = vector.shape_cast %11 : vector<1x1x512x128xbf16> to vector<512x128xbf16>
    %cst_20 = arith.constant dense<0.000000e+00> : vector<7x7x128xf32>
    %13 = tpu.matmul %10, %12, %cst_20 {dimension_numbers = #tpu.dot_dimension_numbers<[2], [0], [0, 1], [1], [0, 0, 0, 1, 1, 1], [], []>} : vector<7x7x512xbf16>, vector<512x128xbf16>, vector<7x7x128xf32> -> vector<7x7x128xf32>
    %14 = arith.addf %9, %13 : vector<7x7x128xf32>
    %c0_21 = arith.constant 0 : index
    %c2 = arith.constant 2 : index
    %c0_22 = arith.constant 0 : index
    %15 = vector.load %arg4[%c0_21, %c2, %c0_22] : memref<9x9x512xbf16, #tpu.memory_space<vmem>>, vector<7x7x512xbf16>
    %c0_23 = arith.constant 0 : index
    %c2_24 = arith.constant 2 : index
    %c0_25 = arith.constant 0 : index
    %c0_26 = arith.constant 0 : index
    %16 = vector.load %arg2[%c0_23, %c2_24, %c0_25, %c0_26] : memref<3x3x512x128xbf16, #tpu.memory_space<vmem>>, vector<1x1x512x128xbf16>
    %17 = vector.shape_cast %16 : vector<1x1x512x128xbf16> to vector<512x128xbf16>
    %cst_27 = arith.constant dense<0.000000e+00> : vector<7x7x128xf32>
    %18 = tpu.matmul %15, %17, %cst_27 {dimension_numbers = #tpu.dot_dimension_numbers<[2], [0], [0, 1], [1], [0, 0, 0, 1, 1, 1], [], []>} : vector<7x7x512xbf16>, vector<512x128xbf16>, vector<7x7x128xf32> -> vector<7x7x128xf32>
    %19 = arith.addf %14, %18 : vector<7x7x128xf32>
    %c1_28 = arith.constant 1 : index
    %c0_29 = arith.constant 0 : index
    %c0_30 = arith.constant 0 : index
    %20 = vector.load %arg4[%c1_28, %c0_29, %c0_30] : memref<9x9x512xbf16, #tpu.memory_space<vmem>>, vector<7x7x512xbf16>
    %c1_31 = arith.constant 1 : index
    %c0_32 = arith.constant 0 : index
    %c0_33 = arith.constant 0 : index
    %c0_34 = arith.constant 0 : index
    %21 = vector.load %arg2[%c1_31, %c0_32, %c0_33, %c0_34] : memref<3x3x512x128xbf16, #tpu.memory_space<vmem>>, vector<1x1x512x128xbf16>
    %22 = vector.shape_cast %21 : vector<1x1x512x128xbf16> to vector<512x128xbf16>
    %cst_35 = arith.constant dense<0.000000e+00> : vector<7x7x128xf32>
    %23 = tpu.matmul %20, %22, %cst_35 {dimension_numbers = #tpu.dot_dimension_numbers<[2], [0], [0, 1], [1], [0, 0, 0, 1, 1, 1], [], []>} : vector<7x7x512xbf16>, vector<512x128xbf16>, vector<7x7x128xf32> -> vector<7x7x128xf32>
    %24 = arith.addf %19, %23 : vector<7x7x128xf32>
    %c1_36 = arith.constant 1 : index
    %c1_37 = arith.constant 1 : index
    %c0_38 = arith.constant 0 : index
    %25 = vector.load %arg4[%c1_36, %c1_37, %c0_38] : memref<9x9x512xbf16, #tpu.memory_space<vmem>>, vector<7x7x512xbf16>
    %c1_39 = arith.constant 1 : index
    %c1_40 = arith.constant 1 : index
    %c0_41 = arith.constant 0 : index
    %c0_42 = arith.constant 0 : index
    %26 = vector.load %arg2[%c1_39, %c1_40, %c0_41, %c0_42] : memref<3x3x512x128xbf16, #tpu.memory_space<vmem>>, vector<1x1x512x128xbf16>
    %27 = vector.shape_cast %26 : vector<1x1x512x128xbf16> to vector<512x128xbf16>
    %cst_43 = arith.constant dense<0.000000e+00> : vector<7x7x128xf32>
    %28 = tpu.matmul %25, %27, %cst_43 {dimension_numbers = #tpu.dot_dimension_numbers<[2], [0], [0, 1], [1], [0, 0, 0, 1, 1, 1], [], []>} : vector<7x7x512xbf16>, vector<512x128xbf16>, vector<7x7x128xf32> -> vector<7x7x128xf32>
    %29 = arith.addf %24, %28 : vector<7x7x128xf32>
    %c1_44 = arith.constant 1 : index
    %c2_45 = arith.constant 2 : index
    %c0_46 = arith.constant 0 : index
    %30 = vector.load %arg4[%c1_44, %c2_45, %c0_46] : memref<9x9x512xbf16, #tpu.memory_space<vmem>>, vector<7x7x512xbf16>
    %c1_47 = arith.constant 1 : index
    %c2_48 = arith.constant 2 : index
    %c0_49 = arith.constant 0 : index
    %c0_50 = arith.constant 0 : index
    %31 = vector.load %arg2[%c1_47, %c2_48, %c0_49, %c0_50] : memref<3x3x512x128xbf16, #tpu.memory_space<vmem>>, vector<1x1x512x128xbf16>
    %32 = vector.shape_cast %31 : vector<1x1x512x128xbf16> to vector<512x128xbf16>
    %cst_51 = arith.constant dense<0.000000e+00> : vector<7x7x128xf32>
    %33 = tpu.matmul %30, %32, %cst_51 {dimension_numbers = #tpu.dot_dimension_numbers<[2], [0], [0, 1], [1], [0, 0, 0, 1, 1, 1], [], []>} : vector<7x7x512xbf16>, vector<512x128xbf16>, vector<7x7x128xf32> -> vector<7x7x128xf32>
    %34 = arith.addf %29, %33 : vector<7x7x128xf32>
    %c2_52 = arith.constant 2 : index
    %c0_53 = arith.constant 0 : index
    %c0_54 = arith.constant 0 : index
    %35 = vector.load %arg4[%c2_52, %c0_53, %c0_54] : memref<9x9x512xbf16, #tpu.memory_space<vmem>>, vector<7x7x512xbf16>
    %c2_55 = arith.constant 2 : index
    %c0_56 = arith.constant 0 : index
    %c0_57 = arith.constant 0 : index
    %c0_58 = arith.constant 0 : index
    %36 = vector.load %arg2[%c2_55, %c0_56, %c0_57, %c0_58] : memref<3x3x512x128xbf16, #tpu.memory_space<vmem>>, vector<1x1x512x128xbf16>
    %37 = vector.shape_cast %36 : vector<1x1x512x128xbf16> to vector<512x128xbf16>
    %cst_59 = arith.constant dense<0.000000e+00> : vector<7x7x128xf32>
    %38 = tpu.matmul %35, %37, %cst_59 {dimension_numbers = #tpu.dot_dimension_numbers<[2], [0], [0, 1], [1], [0, 0, 0, 1, 1, 1], [], []>} : vector<7x7x512xbf16>, vector<512x128xbf16>, vector<7x7x128xf32> -> vector<7x7x128xf32>
    %39 = arith.addf %34, %38 : vector<7x7x128xf32>
    %c2_60 = arith.constant 2 : index
    %c1_61 = arith.constant 1 : index
    %c0_62 = arith.constant 0 : index
    %40 = vector.load %arg4[%c2_60, %c1_61, %c0_62] : memref<9x9x512xbf16, #tpu.memory_space<vmem>>, vector<7x7x512xbf16>
    %c2_63 = arith.constant 2 : index
    %c1_64 = arith.constant 1 : index
    %c0_65 = arith.constant 0 : index
    %c0_66 = arith.constant 0 : index
    %41 = vector.load %arg2[%c2_63, %c1_64, %c0_65, %c0_66] : memref<3x3x512x128xbf16, #tpu.memory_space<vmem>>, vector<1x1x512x128xbf16>
    %42 = vector.shape_cast %41 : vector<1x1x512x128xbf16> to vector<512x128xbf16>
    %cst_67 = arith.constant dense<0.000000e+00> : vector<7x7x128xf32>
    %43 = tpu.matmul %40, %42, %cst_67 {dimension_numbers = #tpu.dot_dimension_numbers<[2], [0], [0, 1], [1], [0, 0, 0, 1, 1, 1], [], []>} : vector<7x7x512xbf16>, vector<512x128xbf16>, vector<7x7x128xf32> -> vector<7x7x128xf32>
    %44 = arith.addf %39, %43 : vector<7x7x128xf32>
    %c2_68 = arith.constant 2 : index
    %c2_69 = arith.constant 2 : index
    %c0_70 = arith.constant 0 : index
    %45 = vector.load %arg4[%c2_68, %c2_69, %c0_70] : memref<9x9x512xbf16, #tpu.memory_space<vmem>>, vector<7x7x512xbf16>
    %c2_71 = arith.constant 2 : index
    %c2_72 = arith.constant 2 : index
    %c0_73 = arith.constant 0 : index
    %c0_74 = arith.constant 0 : index
    %46 = vector.load %arg2[%c2_71, %c2_72, %c0_73, %c0_74] : memref<3x3x512x128xbf16, #tpu.memory_space<vmem>>, vector<1x1x512x128xbf16>
    %47 = vector.shape_cast %46 : vector<1x1x512x128xbf16> to vector<512x128xbf16>
    %cst_75 = arith.constant dense<0.000000e+00> : vector<7x7x128xf32>
    %48 = tpu.matmul %45, %47, %cst_75 {dimension_numbers = #tpu.dot_dimension_numbers<[2], [0], [0, 1], [1], [0, 0, 0, 1, 1, 1], [], []>} : vector<7x7x512xbf16>, vector<512x128xbf16>, vector<7x7x128xf32> -> vector<7x7x128xf32>
    %49 = arith.addf %44, %48 : vector<7x7x128xf32>
    %50 = vector.shape_cast %49 : vector<7x7x128xf32> to vector<1x7x7x128xf32>
    %c0_76 = arith.constant 0 : index
    %c0_77 = arith.constant 0 : index
    %c0_78 = arith.constant 0 : index
    %c0_79 = arith.constant 0 : index
    %51 = vector.load %arg3[%c0_76, %c0_77, %c0_78, %c0_79] : memref<1x7x7x128xf32, #tpu.memory_space<vmem>>, vector<1x7x7x128xf32>
    tpu.vector_store %arg3[%c0_76, %c0_77, %c0_78, %c0_79], %50 {strides = array<i32>} : memref<1x7x7x128xf32, #tpu.memory_space<vmem>>, vector<1x7x7x128xf32>,
    return
  }
  func.func @transform_0(%arg0: i32) -> (i32, i32, i32, i32) {
    %c0_i32 = arith.constant 0 : i32
    %c0_i32_0 = arith.constant 0 : i32
    %c0_i32_1 = arith.constant 0 : i32
    %c0_i32_2 = arith.constant 0 : i32
    %c0_i32_3 = arith.constant 0 : i32
    return %c0_i32, %c0_i32_0, %c0_i32_1, %c0_i32_2 : i32, i32, i32, i32
  }
  func.func @transform_1(%arg0: i32) -> (i32, i32, i32, i32) {
    %c0_i32 = arith.constant 0 : i32
    %c0_i32_0 = arith.constant 0 : i32
    %c0_i32_1 = arith.constant 0 : i32
    %c0_i32_2 = arith.constant 0 : i32
    return %c0_i32, %c0_i32_0, %c0_i32_1, %arg0 : i32, i32, i32, i32
  }
  func.func @transform_2(%arg0: i32) -> (i32, i32, i32, i32) {
    %c0_i32 = arith.constant 0 : i32
    %c0_i32_0 = arith.constant 0 : i32
    %c0_i32_1 = arith.constant 0 : i32
    %c0_i32_2 = arith.constant 0 : i32
    return %c0_i32, %c0_i32_0, %c0_i32_1, %arg0 : i32, i32, i32, i32
  }
}

</mosaic_0001>

<bundles_post_ra>
// kernel: relu_conv2d.1
= control target key start
LH: loop header
LB: loop body
LE: loop exit
PB: predicated region body
PF: predicated region fallthrough
CT: control target
= control target key end

     0   :  { %7 = vsyncpa [#allocation4], 0  ;;  %s19606_s0 = inlined_call_operand.vmem [shape: f32[1,9,9,512], index: 0, kind: input, shape index: {}]   ;;  %s19607_s1 = inlined_call_operand.hbm [shape: bf16[3,3,512,512], index: 1, kind: input, shape index: {}]   ;;  %s19608_s2 = inlined_call_operand.vmem [shape: f32[1,7,7,512], index: 2, kind: output, shape index: {}]  }
   0x1   :  { %9 = vsyncpa [#allocation4 + $0x1], 0  ;;  %s15516_s9 = smov 0   ;;  %s15518_s10 = smov 0  }
   0x2   :  { %s15520_s11 = smov 0   ;;  %s15522_s12 = smov 0  }
   0x3 LB: > { %s15535_s13 = sadd.s32 4294967295, %s15494_s12   ;;  %s15538_s14 = sadd.s32 1, %s15494_s12   ;;  %s15494_s12 = sphi %s15522_s12, %s20147_s12   ;;  %s15490_s11 = sphi %s15520_s11, %s20146_s11   ;;  %s15486_s10 = sphi %s15518_s10, %s20145_s10   ;;  %s15482_s9 = sphi %s15516_s9, %s20144_s9  }
   0x4   : > { %s40_s15 = ssub.s32 %s15494_s12, %s15538_s14  ;;  %s43_s16 = sadd.s32 1, %s15490_s11 }
   0x5   : > { %p41_p0 = scmp.eq.s32.totalorder %s40_s15, 0  ;;  %p50_p1 = scmp.ne.s32.totalorder %s15490_s11, %s15486_s10 }
   0x6   : > { %p51_p2 = scmp.eq.s32.totalorder %s15494_s12, 0  ;;  %p56_p3 = scmp.ne.s32.totalorder %s15486_s10, %s15482_s9 }
   0x7   : > { %s15548_s17 = scalar_select %p41_p0, %s15490_s11, %s43_s16  }
   0x8   : > { %p52_p4 = por %p51_p2, %p50_p1  ;;  %p57_p5 = scmp.eq.s32.totalorder %s15535_s13, 0 }
   0x9   : > { %p80_p6 = scmp.eq.s32.totalorder %s15535_s13, 3  ;;  %p15107_p8 = scmp.lt.s32.totalorder %s15494_s12, 4 }
   0xa   : > { %p15552_p7 = por %p57_p5, %p56_p3  ;;  %s109_s20 = sand.u32 1, %s15490_s11  }
   0xb   : > { %p15557_p9 = por %p80_p6, %p50_p1  ;;  %s15098_s21 = smul.u32 2304, %s109_s20 }
   0xc   : > { %s19629_s18 = scalar_select %p15552_p7, 1, 0 }
   0xd   : > { %s19630_s19 = scalar_select %p15557_p9, 1, 0 }
   0xe   : > { %s13230_s22 = sshll.u32 %s15494_s12, 6  ;;  %p15563_p10 = pnand %p15107_p8, %p52_p4 }
   0xf   : > { %s15570_s26 = scalar_lea.hbm %s19607_s1, %s13230_s22  ;;  %s113_s27 = scalar_lea.vmem [#allocation3], %s15098_s21 }
  0x10   : > { %s119_s28 = sshll.u32 %s113_s27, 4  ;;  %s15574_s29 = scalar_lea.sflag [#allocation4], %s109_s20  ;;  %s15572_s28 = int_to_ptr.vmem [resolvable:$true] %s119_s28 }
  0x11   : > { %s15432_s30 = scalar_lea.hbm %s15570_s26, 36864  ;;  %p15434_p12 = pneg %p15563_p10 }
  0x12   : > { %p15433_p11 = scmp.ne.s32.totalorder %s15570_s26, %s15432_s30  ;;  %s15437_s5 = scalar_lea.hbm %s19607_s1, 147456 }
  0x13   : > { %p15438_p1 = scmp.lt.s32.totalorder %s15570_s26, %s19607_s1  ;;  %p15439_p2 = scmp.lt.s32.totalorder %s15437_s5, %s15432_s30 }
  0x14   : > { %p15435_p13 = pnand %p15434_p12, %p15433_p11 }
  0x15   : > { %p15440_p3 = por %p15439_p2, %p15438_p1 }
  0x16   : > { %p15436_p0 = pneg %p15435_p13 }
  0x18   : > { %p15441_p4 = pnand %p15440_p3, %p15436_p0 }
  0x1a   : > { %15444 = shalt.err (!%p15441_p4)
}
  0x1b   : > { %s15445_s8 = scalar_lea.vmem %s15572_s28, 36864  ;;  %s15496_s9 = smov [#allocation3]  }
  0x1c   : > { %p15446_p5 = scmp.ne.s32.totalorder %s15572_s28, %s15445_s8  ;;  %s15450_s15 = sshll.u32 %s15496_s9, 4  ;;  %s15451_s15 = int_to_ptr.vmem [resolvable:$false] %s15450_s15 }
  0x1d   : > { %s15452_s16 = scalar_lea.vmem %s15451_s15, 73728  ;;  %p15453_p11 = scmp.lt.s32.totalorder %s15572_s28, %s15451_s15 }
  0x1e   : > { %p15448_p6 = pnand %p15446_p5, %p15434_p12  ;;  %p15454_p13 = scmp.lt.s32.totalorder %s15452_s16, %s15445_s8 }
  0x20   : > { %p15449_p8 = pneg %p15448_p6  ;;  %p15455_p9 = por %p15454_p13, %p15453_p11 }
  0x22   : > { %p15456_p7 = pnand %p15455_p9, %p15449_p8 }
  0x24   : > { %15459 = shalt.err (!%p15456_p7)
}
  0x25   : > { %s15497_s20 = smov 256   ;;  %s15498_s21 = smov 64  }
  0x26   : > { %s15499_s22 = smov 4   ;;  %p13231_p12 = scmp.ge.s32.totalorder %s15494_s12, 1 }
  0x27   : > { %15106 = dma.hbm_to_vmem [thread:$0]  (!%p15563_p10), %s15570_s26, 36864, %s15572_s28, %s15574_s29, %s15497_s20, %s15498_s21, %s15499_s22  }
  0x28   : > { %p127_p0 = scmp.lt.s32.totalorder %s15494_s12, 5 }
  0x2a   : > { %p128_p1 = pnand %p13231_p12, %p127_p0 }
  0x2c   : > { %131 = sbr.rel (%p128_p1) target bundleno = 783 (0x30f), region = 28 }
  0x31   : > { %s15598_s24 = sand.u32 1, %s15486_s10   ;;  %p19632_p7 = scmp.ne.s32.totalorder %s19629_s18, 0 }
  0x32   : > { %s15099_s25 = smul.u32 2304, %s15598_s24  ;;  %s134_s27 = scalar_lea.sflag [#allocation4], %s15598_s24 }
  0x34   : > { %s15602_s30 = scalar_lea.vmem [#allocation3], %s15099_s25 }
  0x35   : > { %15477 = dma.done.wait (%p19632_p7), %s134_s27, 36864  }
  0x36   : > { %15479 = vsyncadd (%p19632_p7), %s134_s27, 4294930432  ;;  %v15144_v0 = vld [vmem:[%s15602_s30 + $0x178] sm:$0xff]   ;;  %v15148_v4 = vld [vmem:[%s15602_s30 + $0x170] sm:$0xff]   ;;  %v773_v41 = vlaneseq  ;;  %v15500_v48 = vmov 1966171168   ;;  %vm520_vm1 = vcmask 1040384  }
  0x37   : > { %v15145_v1 = vld [vmem:[%s15602_s30 + $0x1f8] sm:$0xff]   ;;  %14378 = vmatprep.subr.bf16.mxu0 %v15144_v0  ;;  %v15149_v5 = vld [vmem:[%s15602_s30 + $0x1f0] sm:$0xff]   ;;  %v15152_v8 = vld [vmem:[%s15602_s30 + $0x168] sm:$0xff]   ;;  %v771_v49 = vunpack.c.l.s4 %v15500_v48  ;;  %vm521_vm0 = vsmask.f32 256  ;;  %vm523_vm2 = vcmask 1044484  }
  0x38   : > { %v15146_v2 = vld [vmem:[%s15602_s30 + $0x138] sm:$0xff]   ;;  %14418 = vmatprep.subr.bf16.mxu1 %v15145_v1  ;;  %v15150_v6 = vld [vmem:[%s15602_s30 + $0x130] sm:$0xff]   ;;  %v15153_v9 = vld [vmem:[%s15602_s30 + $0x1e8] sm:$0xff]   ;;  %vm524_vm3 = vsmask.f32 4352  ;;  %s15100_s26 = smul.u32 56, %s15598_s24 }
  0x39   : > { %v15147_v3 = vld [vmem:[%s15602_s30 + $0x1b8] sm:$0xff]   ;;  %14379 = vmatpush3.bf16.msra.mxu0 %v15146_v2  ;;  %v15151_v7 = vld [vmem:[%s15602_s30 + $0x1b0] sm:$0xff]   ;;  %v15154_v10 = vld [vmem:[%s15602_s30 + $0x128] sm:$0xff]   ;;  %p20143_p9 = scmp.ne.s32.totalorder %s19630_s19, 0 }
  0x3a   : > { %14419 = vmatpush3.bf16.msra.mxu1 %v15147_v3  ;;  %14380 = vmatprep.subr.bf16.mxu0 %v15148_v4  ;;  %v15155_v11 = vld [vmem:[%s15602_s30 + $0x1a8] sm:$0xff]   ;;  %v15156_v12 = vld [vmem:[%s15602_s30 + $0x160] sm:$0xff]   ;;  %v15160_v16 = vld [vmem:[%s15602_s30 + $0x158] sm:$0xff]   ;;  %v772_v3 = vunpack.c.0.s8 %v771_v49  ;;  %v774_v4 = vshrl.u32 %v773_v41, 7  ;;  %s19469_s28 = scalar_lea.vmem [#allocation5], %s15100_s26  ;;  %s14339_s24 = sshll.u32 (%p20143_p9), %s15535_s13, 3 }
  0x3b   : > { %14420 = vmatprep.subr.bf16.mxu1 %v15149_v5  ;;  %v15157_v13 = vld [vmem:[%s15602_s30 + $0x1e0] sm:$0xff]   ;;  %v15161_v17 = vld [vmem:[%s15602_s30 + $0x1d8] sm:$0xff]   ;;  %v15164_v20 = vld [vmem:[%s15602_s30 + $0x150] sm:$0xff]   ;;  %s13107_s4 = scalar_lea.vmem (%p20143_p9), %s19608_s2, %s14339_s24 }
  0x3c   : > { %v15158_v14 = vld [vmem:[%s15602_s30 + $0x120] sm:$0xff]   ;;  %v15162_v18 = vld [vmem:[%s15602_s30 + $0x118] sm:$0xff]   ;;  %v15165_v21 = vld [vmem:[%s15602_s30 + $0x1d0] sm:$0xff]  }
  0x3d   : > { %14381 = vmatpush3.bf16.msra.mxu0 %v15150_v6  ;;  %v15159_v15 = vld [vmem:[%s15602_s30 + $0x1a0] sm:$0xff]   ;;  %v15163_v19 = vld [vmem:[%s15602_s30 + $0x198] sm:$0xff]   ;;  %v15166_v22 = vld [vmem:[%s15602_s30 + $0x110] sm:$0xff]   ;;  %v15678_v6 = vsub.s32 %v772_v3, %v774_v4 }
  0x3e   : > { %14421 = vmatpush3.bf16.msra.mxu1 %v15151_v7  ;;  %14382 = vmatprep.subr.bf16.mxu0 %v15152_v8  ;;  %v15167_v23 = vld [vmem:[%s15602_s30 + $0x190] sm:$0xff]   ;;  %v15168_v24 = vld [vmem:[%s15602_s30 + $0x148] sm:$0xff]   ;;  %v15172_v28 = vld [vmem:[%s15602_s30 + $0x140] sm:$0xff]  }
  0x3f   : > { %14422 = vmatprep.subr.bf16.mxu1 %v15153_v9  ;;  %v15169_v25 = vld [vmem:[%s15602_s30 + $0x1c8] sm:$0xff]   ;;  %v15173_v29 = vld [vmem:[%s15602_s30 + $0x1c0] sm:$0xff]   ;;  %v160_v34 = vld [vmem:[%s19606_s0 + $0x10] sm:$0xff] }
  0x40   : > { %v15170_v26 = vld [vmem:[%s15602_s30 + $0x108] sm:$0xff]   ;;  %v15174_v30 = vld [vmem:[%s15602_s30 + $0x100] sm:$0xff]   ;;  %v161_v35 = vld [vmem:[%s19606_s0 + $0x18] sm:$0xff]  ;;  %v232_v40 = vmax.f32 %v160_v34, 0.0 }
  0x41   : > { %14383 = vmatpush3.bf16.msra.mxu0 %v15154_v10  ;;  %v15171_v27 = vld [vmem:[%s15602_s30 + $0x188] sm:$0xff]   ;;  %v15175_v31 = vld [vmem:[%s15602_s30 + $0x180] sm:$0xff]   ;;  %v168_v42 = vld [vmem:[%s19606_s0 + $0x50] sm:$0xff]  ;;  %v233_v45 = vmax.f32 %v161_v35, 0.0 }
  0x42   : > { %14423 = vmatpush3.bf16.msra.mxu1 %v15155_v11  ;;  %14384 = vmatprep.subr.bf16.mxu0 %v15156_v12  ;;  %v158_v32 = vld [vmem:[%s19606_s0] sm:$0xff]  ;;  %v159_v33 = vld [vmem:[%s19606_s0 + $0x8] sm:$0xff]  ;;  %v169_v43 = vld [vmem:[%s19606_s0 + $0x58] sm:$0xff]  ;;  %v240_v53 = vmax.f32 %v168_v42, 0.0 }
  0x43   : > { %14424 = vmatprep.subr.bf16.mxu1 %v15157_v13  ;;  %v166_v36 = vld [vmem:[%s19606_s0 + $0x40] sm:$0xff]  ;;  %v167_v37 = vld [vmem:[%s19606_s0 + $0x48] sm:$0xff]  ;;  %v230_v38 = vmax.f32 %v158_v32, 0.0  ;;  %v231_v39 = vmax.f32 %v159_v33, 0.0  ;;  %v176_v51 = vld [vmem:[%s19606_s0 + $0x90] sm:$0xff]  ;;  %v241_v54 = vmax.f32 %v169_v43, 0.0  ;;  %v14343_v60 = vpack.c.bf16 %v233_v45, %v232_v40 }
  0x44   : > { %v174_v44 = vld [vmem:[%s19606_s0 + $0x80] sm:$0xff]  ;;  %v238_v46 = vmax.f32 %v166_v36, 0.0  ;;  %v239_v47 = vmax.f32 %v167_v37, 0.0  ;;  %v175_v50 = vld [vmem:[%s19606_s0 + $0x88] sm:$0xff]  ;;  %v177_v52 = vld [vmem:[%s19606_s0 + $0x98] sm:$0xff]  ;;  %v248_v58 = vmax.f32 %v176_v51, 0.0 }
  0x45   : > { %14385 = vmatpush3.bf16.msra.mxu0 %v15158_v14  ;;  %v246_v55 = vmax.f32 %v174_v44, 0.0  ;;  %v14342_v56 = vpack.c.bf16 %v231_v39, %v230_v38  ;;  %v247_v57 = vmax.f32 %v175_v50, 0.0  ;;  %v249_v59 = vmax.f32 %v177_v52, 0.0  ;;  %v15176_v61 = vld [vmem:[%s15602_s30 + $0x78] sm:$0xff]   ;;  %519 = vst [vmem:[#allocation2 + $0x8] sm:$0xff] %v14343_v60  ;;  %v182_v8 = vld [vmem:[%s19606_s0 + $0xc0] sm:$0xff]  ;;  %vm16031_vm4 = vmand %vm520_vm1, %vm521_vm0 }
  0x46   : > { %14425 = vmatpush3.bf16.msra.mxu1 %v15159_v15  ;;  %14386 = vmatprep.subr.bf16.mxu0 %v15160_v16  ;;  %v14346_v62 = vpack.c.bf16 %v239_v47, %v238_v46  ;;  %v14347_v63 = vpack.c.bf16 %v241_v54, %v240_v53  ;;  %v15177_v2 = vld [vmem:[%s15602_s30 + $0xf8] sm:$0xff]   ;;  %v183_v9 = vld [vmem:[%s19606_s0 + $0xc8] sm:$0xff]  ;;  %v190_v36 = vld [vmem:[%s19606_s0 + $0x100] sm:$0xff] }
  0x47   : > { %14426 = vmatprep.subr.bf16.mxu1 %v15161_v17  ;;  %518 = vst [vmem:[#allocation2] sm:$0xff] %v14342_v56  ;;  %v14350_v0 = vpack.c.bf16 %v247_v57, %v246_v55  ;;  %v14351_v1 = vpack.c.bf16 %v249_v59, %v248_v58  ;;  %v191_v41 = vld [vmem:[%s19606_s0 + $0x108] sm:$0xff]  ;;  %v192_v45 = vld [vmem:[%s19606_s0 + $0x110] sm:$0xff]  ;;  %v193_v50 = vld [vmem:[%s19606_s0 + $0x118] sm:$0xff]  ;;  %v262_v54 = vmax.f32 %v190_v36, 0.0 }
  0x48   : > { %533 = vst [vmem:[#allocation2 + $0x20] sm:$0xff] %v14346_v62  ;;  %534 = vst [vmem:[#allocation2 + $0x28] sm:$0xff] %v14347_v63  ;;  %v263_v57 = vmax.f32 %v191_v41, 0.0  ;;  %v264_v58 = vmax.f32 %v192_v45, 0.0  ;;  %v265_v60 = vmax.f32 %v193_v50, 0.0  ;;  %v198_v3 = vld [vmem:[%s19606_s0 + $0x140] sm:$0xff] }
  0x49   : > { %14387 = vmatpush3.bf16.msra.mxu0 %v15162_v18  ;;  %541 = vst [vmem:[#allocation2 + $0x40] sm:$0xff] %v14350_v0  ;;  %542 = vst [vmem:[#allocation2 + $0x48] sm:$0xff] %v14351_v1  ;;  %v199_v4 = vld [vmem:[%s19606_s0 + $0x148] sm:$0xff]  ;;  %v15178_v36 = vld [vmem:[%s15602_s30 + $0x38] sm:$0xff]  }
  0x4a   : > { %14427 = vmatpush3.bf16.msra.mxu1 %v15163_v19  ;;  %14388 = vmatprep.subr.bf16.mxu0 %v15164_v20  ;;  %v14358_v1 = vpack.c.bf16 %v263_v57, %v262_v54  ;;  %v15182_v54 = vld [vmem:[%s15602_s30 + $0x30] sm:$0xff]   ;;  %vm16047_vm5 = vmand %vm523_vm2, %vm524_vm3 }
  0x4b   : > { %14428 = vmatprep.subr.bf16.mxu1 %v15165_v21  ;;  %vm16098_vm6 = vmor %vm16047_vm5, %vm16031_vm4 }
  0x4c   : > { %v13333_v7 = vld.sshfl [vmem:[#allocation2 + $0x8] sm:$0xff pattern:$0x75316420]  ;;  %557 = vst [vmem:[#allocation2 + $0x80] sm:$0xff] %v14358_v1 }
  0x4d   : > { %14389 = vmatpush3.bf16.msra.mxu0 %v15166_v22  ;;  %v15184_v1 = vld [vmem:[%s15602_s30 + $0x68] sm:$0xff]  }
  0x4e   : > { %14429 = vmatpush3.bf16.msra.mxu1 %v15167_v23  ;;  %14390 = vmatprep.subr.bf16.mxu0 %v15168_v24  ;;  %v13332_v5 = vld.sshfl [vmem:[#allocation2] sm:$0xff pattern:$0x75316420]  ;;  %v184_v24 = vld [vmem:[%s19606_s0 + $0xd0] sm:$0xff] }
  0x4f   : > { %14430 = vmatprep.subr.bf16.mxu1 %v15169_v25  ;;  %v13334_v10 = vld.sshfl [vmem:[#allocation2 + $0x20] sm:$0xff pattern:$0x75316420]  ;;  %v13335_v11 = vld.sshfl [vmem:[#allocation2 + $0x28] sm:$0xff pattern:$0x75316420]  ;;  %v768_v12 = vcombine.low %v13332_v5, %v13333_v7  ;;  %v769_v13 = vcombine.high %v13332_v5, %v13333_v7  ;;  %v14359_v5 = vpack.c.bf16 %v265_v60, %v264_v58 }
  0x50   : > { %v13336_v14 = vld.sshfl [vmem:[#allocation2 + $0x40] sm:$0xff pattern:$0x75316420]  ;;  %v13337_v15 = vld.sshfl [vmem:[#allocation2 + $0x48] sm:$0xff pattern:$0x75316420]  ;;  %v800_v16 = vcombine.low %v13334_v10, %v13335_v11  ;;  %v801_v17 = vcombine.high %v13334_v10, %v13335_v11 }
  0x51   : > { %14391 = vmatpush3.bf16.msra.mxu0 %v15170_v26  ;;  %v15687_v18 = vrot.slane %v768_v12, %v15678_v6  ;;  %v15690_v19 = vrot.slane %v769_v13, %v15678_v6  ;;  %v832_v20 = vcombine.low %v13336_v14, %v13337_v15  ;;  %v833_v21 = vcombine.high %v13336_v14, %v13337_v15  ;;  %v201_v10 = vld [vmem:[%s19606_s0 + $0x158] sm:$0xff]  ;;  %v206_v11 = vld [vmem:[%s19606_s0 + $0x180] sm:$0xff] }
  0x52   : > { %14431 = vmatpush3.bf16.msra.mxu1 %v15171_v27  ;;  %14392 = vmatprep.subr.bf16.mxu0 %v15172_v28  ;;  %v15693_v22 = vrot.slane %v800_v16, %v15678_v6  ;;  %v15696_v23 = vrot.slane %v801_v17, %v15678_v6  ;;  %v254_v25 = vmax.f32 %v182_v8, 0.0  ;;  %v255_v26 = vmax.f32 %v183_v9, 0.0  ;;  %v200_v9 = vld [vmem:[%s19606_s0 + $0x150] sm:$0xff]  ;;  %v207_v16 = vld [vmem:[%s19606_s0 + $0x188] sm:$0xff]  ;;  %558 = vst [vmem:[#allocation2 + $0x88] sm:$0xff] %v14359_v5 }
  0x53   : > { %14432 = vmatprep.subr.bf16.mxu1 %v15173_v29  ;;  %v15703_v27 = vcombine.high %v15687_v18, %v15687_v18  ;;  %v15707_v28 = vcombine.high %v15690_v19, %v15690_v19  ;;  %v15710_v29 = vrot.slane %v832_v20, %v15678_v6  ;;  %v978_v34 = vunpack.i.h.s16 %v15687_v18  ;;  %v208_v17 = vld [vmem:[%s19606_s0 + $0x190] sm:$0xff] }
  0x54   : > { %v15720_v32 = vcombine.high %v15693_v22, %v15693_v22  ;;  %v15724_v33 = vcombine.high %v15696_v23, %v15696_v23  ;;  %v980_v35 = vunpack.i.h.s16 %v15690_v19  ;;  %v985_v39 = vunpack.i.h.s16 %v15693_v22 }
  0x55   : > { %14393 = vmatpush3.bf16.msra.mxu0 %v15174_v30  ;;  %v15713_v30 = vrot.slane %v833_v21, %v15678_v6  ;;  %v982_v37 = vunpack.i.h.s16 %v15703_v27  ;;  %v984_v38 = vunpack.i.h.s16 %v15707_v28  ;;  %v992_v40 = vunpack.i.h.s16 %v15710_v29 }
  0x56   : > { %14433 = vmatpush3.bf16.msra.mxu1 %v15175_v31  ;;  %14458 = vmatprep.subr.bf16.mxu0 %v15176_v61  ;;  %v185_v31 = vld [vmem:[%s19606_s0 + $0xd8] sm:$0xff]  ;;  %v13346_v42 = vpack.i.b16 %v15690_v19, %v978_v34  ;;  %v13347_v43 = vpack.i.b16 %v15703_v27, %v980_v35  ;;  %v1054_v44 = vcombine.low %v15696_v23, %v15720_v32  ;;  %v256_v46 = vmax.f32 %v184_v24, 0.0 }
  0x57   : > { %14498 = vmatprep.subr.bf16.mxu1 %v15177_v2  ;;  %v13348_v47 = vpack.i.b16 %v15707_v28, %v982_v37  ;;  %v1030_v48 = vpack.i.b16 %v985_v39, %v984_v38  ;;  %v13349_v49 = vpack.i.b16 %v15713_v30, %v992_v40  ;;  %v257_v51 = vmax.f32 %v185_v31, 0.0  ;;  %v209_v37 = vld [vmem:[%s19606_s0 + $0x198] sm:$0xff] }
  0x58   : > { %v1052_v52 = vcombine.low %v13346_v42, %v13347_v43  ;;  %v1076_v53 = vrot.slane %v1054_v44, %v15678_v6  ;;  %v14354_v61 = vpack.c.bf16 %v255_v26, %v254_v25  ;;  %v15759_v2 = vcombine.high %v15710_v29, %v15710_v29  ;;  %v15179_v38 = vld [vmem:[%s15602_s30 + $0xb8] sm:$0xff]  }
  0x59   : > { %v1053_v55 = vcombine.low %v13348_v47, %v1030_v48  ;;  %v1055_v56 = vcombine.low %v15724_v33, %v13349_v49  ;;  %v14355_v62 = vpack.c.bf16 %v257_v51, %v256_v46  ;;  %v15769_v7 = vcombine.high %v15713_v30, %v15713_v30  ;;  %v15180_v48 = vld [vmem:[%s15602_s30 + $0x70] sm:$0xff]  }
  0x5a   : > { %v1062_v59 = vrot.slane %v1052_v52, %v15678_v6  ;;  %549 = vst [vmem:[#allocation2 + $0x60] sm:$0xff] %v14354_v61  ;;  %v994_v8 = vunpack.i.h.s16 %v15713_v30  ;;  %v996_v20 = vunpack.i.h.s16 %v15759_v2  ;;  %v270_v24 = vmax.f32 %v198_v3, 0.0  ;;  %v15181_v49 = vld [vmem:[%s15602_s30 + $0xf0] sm:$0xff]   ;;  %v13340_v61 = vld.sshfl [vmem:[#allocation2 + $0x80] sm:$0xff pattern:$0x75316420] }
  0x5b   : > { %v1069_v63 = vrot.slane %v1053_v55, %v15678_v6  ;;  %v1083_v0 = vrot.slane %v1055_v56, %v15678_v6  ;;  %550 = vst [vmem:[#allocation2 + $0x68] sm:$0xff] %v14355_v62  ;;  %v271_v25 = vmax.f32 %v199_v4, 0.0  ;;  %v272_v41 = vmax.f32 %v200_v9, 0.0  ;;  %v15183_v55 = vld [vmem:[%s15602_s30 + $0xb0] sm:$0xff]   ;;  %v15185_v4 = vld [vmem:[%s15602_s30 + $0xe8] sm:$0xff]  }
  0x5c   : > { %v15789_v21 = vpack.i.b16 %v15759_v2, %v994_v8  ;;  %v13351_v40 = vpack.i.b16 %v15769_v7, %v996_v20  ;;  %v273_v42 = vmax.f32 %v201_v10, 0.0  ;;  %v278_v43 = vmax.f32 %v206_v11, 0.0  ;;  %v13341_v3 = vld.sshfl [vmem:[#allocation2 + $0x88] sm:$0xff pattern:$0x75316420] }
  0x5d   : > { %v1085_v12 = vcombine.high %v1062_v59, %v1069_v63  ;;  %v1087_v13 = vcombine.high %v1076_v53, %v1083_v0  ;;  %v1084_v14 = vcombine.low %v1062_v59, %v1069_v63  ;;  %v1086_v15 = vcombine.low %v1076_v53, %v1083_v0 }
  0x5e   : > { %v279_v50 = vmax.f32 %v207_v16, 0.0  ;;  %v280_v51 = vmax.f32 %v208_v17, 0.0  ;;  %v281_v52 = vmax.f32 %v209_v37, 0.0  ;;  %v989_v53 = vunpack.i.h.s16 %v15720_v32  ;;  %v15186_v16 = vld [vmem:[%s15602_s30 + $0x28] sm:$0xff]  }
  0x5f   : > { %v1101_v26 = vrot.slane %v1085_v12, %v15678_v6  ;;  %v1115_v31 = vrot.slane %v1087_v13, %v15678_v6  ;;  %v1094_v34 = vrot.slane %v1084_v14, %v15678_v6  ;;  %v1108_v35 = vrot.slane %v1086_v15, %v15678_v6 }
  0x60   : > { %v14362_v58 = vpack.c.bf16 %v271_v25, %v270_v24  ;;  %v14363_v59 = vpack.c.bf16 %v273_v42, %v272_v41  ;;  %v987_v60 = vunpack.i.h.s16 %v15696_v23  ;;  %v1120_v0 = vcombine.low %v15789_v21, %v13351_v40 }
  0x61   : > { %v1118_v44 = vcombine.low %v1101_v26, %v1115_v31  ;;  %v1119_v45 = vcombine.high %v1101_v26, %v1115_v31  ;;  %v1116_v46 = vcombine.low %v1094_v34, %v1108_v35  ;;  %v1117_v47 = vcombine.high %v1094_v34, %v1108_v35  ;;  %v13338_v56 = vld.sshfl [vmem:[#allocation2 + $0x60] sm:$0xff pattern:$0x75316420] }
  0x62   : > { %v13339_v57 = vld.sshfl [vmem:[#allocation2 + $0x68] sm:$0xff pattern:$0x75316420]  ;;  %v14366_v5 = vpack.c.bf16 %v279_v50, %v278_v43  ;;  %v14367_v8 = vpack.c.bf16 %v281_v52, %v280_v51  ;;  %565 = vst [vmem:[#allocation2 + $0xa0] sm:$0xff] %v14362_v58  ;;  %566 = vst [vmem:[#allocation2 + $0xa8] sm:$0xff] %v14363_v59  ;;  %v13391_v9 = vpack.i.b16 %v15693_v22, %v15707_v28  ;;  %v998_v13 = vunpack.i.h.s16 %v15769_v7  ;;  %v15189_v31 = vld [vmem:[%s15602_s30 + $0xe0] sm:$0xff]  }
  0x63   : > { %1520 = vmatprep.mubr.bf16.mxu0 %v1118_v44  ;;  %1584 = vmatprep.mubr.bf16.mxu1 %v1119_v45  ;;  %v864_v62 = vcombine.low %v13338_v56, %v13339_v57  ;;  %v865_v63 = vcombine.high %v13338_v56, %v13339_v57  ;;  %v896_v12 = vcombine.low %v13340_v61, %v13341_v3  ;;  %v15190_v35 = vld [vmem:[%s15602_s30 + $0x20] sm:$0xff]  }
  0x64   : > { %1521 = vmatmul.mubr.bf16.vlgmr.msra.gmra.mxu0 %v1116_v46  ;;  %1585 = vmatmul.mubr.bf16.vlgmr.msra.gmra.mxu1 %v1117_v47  ;;  %v15820_v14 = vpack.i.b16 %v15724_v33, %v989_v53  ;;  %v897_v15 = vcombine.high %v13340_v61, %v13341_v3  ;;  %573 = vst [vmem:[#allocation2 + $0xc0] sm:$0xff] %v14366_v5  ;;  %574 = vst [vmem:[#allocation2 + $0xc8] sm:$0xff] %v14367_v8  ;;  %v15187_v33 = vld [vmem:[%s15602_s30 + $0xa8] sm:$0xff]  }
  0x65   : > { %14459 = vmatpush3.bf16.msra.mxu0 %v15178_v36  ;;  %14499 = vmatpush3.bf16.msra.mxu1 %v15179_v38  ;;  %v15813_v10 = vrot.slane %v864_v62, %v15678_v6  ;;  %v15816_v11 = vrot.slane %v865_v63, %v15678_v6  ;;  %v15826_v28 = vpack.i.b16 %v15696_v23, %v985_v39 }
  0x66   : > { %14460 = vmatprep.subr.bf16.mxu0 %v15180_v48  ;;  %14500 = vmatprep.subr.bf16.mxu1 %v15181_v49  ;;  %v15829_v17 = vpack.i.b16 %v15720_v32, %v987_v60  ;;  %v15832_v20 = vrot.slane %v896_v12, %v15678_v6  ;;  %v1648_v24 = vcombine.low %v15687_v18, %v15690_v19  ;;  %v15188_v32 = vld [vmem:[%s15602_s30 + $0x60] sm:$0xff]   ;;  %v15192_v49 = vld [vmem:[%s15602_s30 + $0x58] sm:$0xff]  }
  0x67   : > { %v999_v21 = vunpack.i.h.s16 %v15813_v10  ;;  %v15839_v22 = vrot.slane %v897_v15, %v15678_v6  ;;  %v1130_v23 = vrot.slane %v1120_v0, %v15678_v6  ;;  %v1649_v39 = vcombine.low %v15703_v27, %v13391_v9  ;;  %v15191_v27 = vld [vmem:[%s15602_s30 + $0xa0] sm:$0xff]   ;;  %v15193_v60 = vld [vmem:[%s15602_s30 + $0xd8] sm:$0xff]  }
  0x68   : > { %v15846_v25 = vcombine.high %v15832_v20, %v15832_v20  ;;  %v1006_v26 = vunpack.i.h.s16 %v15832_v20  ;;  %v13358_v19 = vcombine.high %v15813_v10, %v15816_v11  ;;  %v1650_v37 = vcombine.low %v15826_v28, %v15829_v17  ;;  %v15195_v9 = vld [vmem:[%s15602_s30 + $0x98] sm:$0xff]   ;;  %v15204_v17 = vld [vmem:[%s15602_s30 + $0x40] sm:$0xff]  }
  0x69   : > { %14461 = vmatpush3.bf16.msra.mxu0 %v15182_v54  ;;  %14501 = vmatpush3.bf16.msra.mxu1 %v15183_v55  ;;  %v1037_v18 = vpack.i.b16 %v999_v21, %v998_v13  ;;  %v1008_v34 = vunpack.i.h.s16 %v15839_v22  ;;  %v15859_v36 = vcombine.high %v15839_v22, %v15839_v22  ;;  %v1651_v38 = vcombine.low %v15820_v14, %v15710_v29  ;;  %v13342_v42 = vld.sshfl [vmem:[#allocation2 + $0xa0] sm:$0xff pattern:$0x75316420]  ;;  %v13343_v43 = vld.sshfl [vmem:[#allocation2 + $0xa8] sm:$0xff pattern:$0x75316420] }
  0x6a   : > { %14462 = vmatprep.subr.bf16.mxu0 %v15184_v1  ;;  %14502 = vmatprep.subr.bf16.mxu1 %v15185_v4  ;;  %v13352_v40 = vpack.i.b16 %v15839_v22, %v1006_v26  ;;  %v1010_v44 = vunpack.i.h.s16 %v15846_v25  ;;  %v15869_v45 = vrot.slane %v1648_v24, %v15678_v6  ;;  %v928_v47 = vcombine.low %v13342_v42, %v13343_v43  ;;  %v15194_v1 = vld [vmem:[%s15602_s30 + $0x18] sm:$0xff]   ;;  %v15197_v26 = vld [vmem:[%s15602_s30 + $0xd0] sm:$0xff]  }
  0x6b   : > { %v1121_v41 = vcombine.low %v1037_v18, %v15816_v11  ;;  %v13353_v46 = vpack.i.b16 %v15846_v25, %v1008_v34  ;;  %v929_v48 = vcombine.high %v13342_v42, %v13343_v43  ;;  %v1144_v51 = vrot.slane %v13358_v19, %v15678_v6  ;;  %v13344_v52 = vld.sshfl [vmem:[#allocation2 + $0xc0] sm:$0xff pattern:$0x75316420]  ;;  %v13345_v53 = vld.sshfl [vmem:[#allocation2 + $0xc8] sm:$0xff pattern:$0x75316420] }
  0x6c   : > { %v1012_v54 = vunpack.i.h.s16 %v15859_v36  ;;  %v15877_v55 = vrot.slane %v1649_v39, %v15678_v6  ;;  %v15880_v57 = vrot.slane %v928_v47, %v15678_v6  ;;  %v960_v59 = vcombine.low %v13344_v52, %v13345_v53  ;;  %v15198_v42 = vld [vmem:[%s15602_s30 + $0x10] sm:$0xff]  }
  0x6d   : > { %14463 = vmatpush3.bf16.msra.mxu0 %v15186_v16  ;;  %14503 = vmatpush3.bf16.msra.mxu1 %v15187_v33  ;;  %v1137_v50 = vrot.slane %v1121_v41, %v15678_v6  ;;  %v1123_v56 = vcombine.low %v13352_v40, %v13353_v46  ;;  %v15883_v58 = vrot.slane %v929_v48, %v15678_v6  ;;  %v15196_v33 = vld [vmem:[%s15602_s30 + $0x50] sm:$0xff]  }
  0x6e   : > { %14464 = vmatprep.subr.bf16.mxu0 %v15188_v32  ;;  %14504 = vmatprep.subr.bf16.mxu1 %v15189_v31  ;;  %v961_v63 = vcombine.high %v13344_v52, %v13345_v53  ;;  %v13354_v0 = vpack.i.b16 %v15859_v36, %v1010_v44  ;;  %v15891_v4 = vcombine.high %v15880_v57, %v15880_v57  ;;  %v1013_v8 = vunpack.i.h.s16 %v15880_v57  ;;  %v15199_v47 = vld [vmem:[%s15602_s30 + $0x90] sm:$0xff]   ;;  %v15200_v53 = vld [vmem:[%s15602_s30 + $0x48] sm:$0xff]  }
  0x6f   : > { %v1153_v61 = vcombine.high %v1130_v23, %v1137_v50  ;;  %v1152_v62 = vcombine.low %v1130_v23, %v1137_v50  ;;  %v1151_v3 = vrot.slane %v1123_v56, %v15678_v6  ;;  %v15895_v5 = vcombine.high %v15883_v58, %v15883_v58 }
  0x70   : > { %v15902_v15 = vrot.slane %v960_v59, %v15678_v6  ;;  %v15905_v16 = vrot.slane %v961_v63, %v15678_v6  ;;  %v1044_v32 = vpack.i.b16 %v1013_v8, %v1012_v54  ;;  %v1189_v39 = vcombine.low %v15883_v58, %v15891_v4 }
  0x71   : > { %14465 = vmatpush3.bf16.msra.mxu0 %v15190_v35  ;;  %14505 = vmatpush3.bf16.msra.mxu1 %v15191_v27  ;;  %v1169_v12 = vrot.slane %v1153_v61, %v15678_v6  ;;  %v1162_v13 = vrot.slane %v1152_v62, %v15678_v6  ;;  %v1155_v24 = vcombine.high %v1144_v51, %v1151_v3  ;;  %v15201_v61 = vld [vmem:[%s15602_s30 + $0xc8] sm:$0xff]  }
  0x72   : > { %14466 = vmatprep.subr.bf16.mxu0 %v15192_v49  ;;  %v1154_v23 = vcombine.low %v1144_v51, %v1151_v3  ;;  %14506 = vmatprep.subr.bf16.mxu1 %v15193_v60  ;;  %v15915_v18 = vcombine.high %v15902_v15, %v15902_v15  ;;  %v15919_v19 = vcombine.high %v15905_v16, %v15905_v16  ;;  %v1020_v31 = vunpack.i.h.s16 %v15902_v15  ;;  %v15202_v62 = vld [vmem:[%s15602_s30 + $0x8] sm:$0xff]  }
  0x73   : > { %v1022_v34 = vunpack.i.h.s16 %v15905_v16  ;;  %v1183_v35 = vrot.slane %v1155_v24, %v15678_v6  ;;  %v1188_v40 = vcombine.low %v13354_v0, %v1044_v32  ;;  %v1205_v41 = vrot.slane %v1189_v39, %v15678_v6 }
  0x74   : > { %v1176_v27 = vrot.slane %v1154_v23, %v15678_v6  ;;  %v1024_v43 = vunpack.i.h.s16 %v15915_v18  ;;  %v13355_v44 = vpack.i.b16 %v15905_v16, %v1020_v31  ;;  %v1026_v48 = vunpack.i.h.s16 %v15919_v19 }
  0x75   : > { %14467 = vmatpush3.bf16.msra.mxu0 %v15194_v1  ;;  %v13356_v46 = vpack.i.b16 %v15915_v18, %v1022_v34  ;;  %14507 = vmatpush3.bf16.msra.mxu1 %v15195_v9  ;;  %v1186_v49 = vcombine.low %v1169_v12, %v1183_v35  ;;  %v1187_v50 = vcombine.high %v1169_v12, %v1183_v35  ;;  %v15203_v12 = vld [vmem:[%s15602_s30 + $0x88] sm:$0xff]   ;;  %v15207_v34 = vld [vmem:[%s15602_s30 + $0x80] sm:$0xff]  }
  0x76   : > { %14468 = vmatprep.subr.bf16.mxu0 %v15196_v33  ;;  %v1184_v51 = vcombine.low %v1162_v13, %v1176_v27  ;;  %v1185_v52 = vcombine.high %v1162_v13, %v1176_v27  ;;  %14508 = vmatprep.subr.bf16.mxu1 %v15197_v26  ;;  %v13357_v54 = vpack.i.b16 %v15919_v19, %v1024_v43  ;;  %v15206_v26 = vld [vmem:[%s15602_s30] sm:$0xff]  }
  0x77   : > { %v1190_v56 = vcombine.low %v15895_v5, %v13355_v44  ;;  %v1198_v59 = vrot.slane %v1188_v40, %v15678_v6  ;;  %v1262_v60 = vrot.slane %v1026_v48, %v15678_v6  ;;  %1528 = vmatprep.mubr.bf16.mxu0 %v1186_v49  ;;  %1592 = vmatprep.mubr.bf16.mxu1 %v1187_v50  ;;  %v1001_v40 = vunpack.i.h.s16 %v15816_v11 }
  0x78   : > { %v15943_v63 = vrot.slane %v1650_v37, %v15678_v6  ;;  %v15949_v0 = vrot.slane %v1651_v38, %v15678_v6  ;;  %1529 = vmatmul.mubr.bf16.gmra.mxu0 %v1184_v51  ;;  %1593 = vmatmul.mubr.bf16.gmra.mxu1 %v1185_v52  ;;  %v1191_v1 = vcombine.low %v13356_v46, %v13357_v54  ;;  %v15205_v37 = vld [vmem:[%s15602_s30 + $0xc0] sm:$0xff]   ;;  %v1015_v44 = vunpack.i.h.s16 %v15883_v58  ;;  %v15208_v54 = vld [vmem:[%s15602_s30 + $0x278] sm:$0xff]  }
  0x79   : > { %v1212_v3 = vrot.slane %v1190_v56, %v15678_v6  ;;  %v1221_v9 = vcombine.high %v1198_v59, %v1205_v41  ;;  %v1220_v13 = vcombine.low %v1198_v59, %v1205_v41  ;;  %14469 = vmatpush3.bf16.msra.mxu0 %v15198_v42  ;;  %14509 = vmatpush3.bf16.msra.mxu1 %v15199_v47  ;;  %v15209_v56 = vld [vmem:[%s15602_s30 + $0x2f8] sm:$0xff]  }
  0x7a   : > { %v1263_v28 = vcombine.high %v1262_v60, %v1262_v60  ;;  %v1681_v29 = vcombine.high %v15869_v45, %v15877_v55  ;;  %v1219_v14 = vrot.slane %v1191_v1, %v15678_v6  ;;  %14470 = vmatprep.subr.bf16.mxu0 %v15200_v53  ;;  %14510 = vmatprep.subr.bf16.mxu1 %v15201_v61 }
  0x7b   : > { %v1683_v33 = vcombine.high %v15943_v63, %v15949_v0  ;;  %v1237_v23 = vrot.slane %v1221_v9, %v15678_v6  ;;  %v1230_v39 = vrot.slane %v1220_v13, %v15678_v6  ;;  %v15965_v31 = vrot.slane %v1262_v60, %v15678_v6 }
  0x7c   : > { %v1277_v38 = vrot.slane %v1263_v28, %v15678_v6  ;;  %v1223_v24 = vcombine.high %v1212_v3, %v1219_v14  ;;  %v1222_v32 = vcombine.low %v1212_v3, %v1219_v14  ;;  %v15969_v35 = vrot.slane %v1681_v29, %v15678_v6 }
  0x7d   : > { %14471 = vmatpush3.bf16.msra.mxu0 %v15202_v62  ;;  %14511 = vmatpush3.bf16.msra.mxu1 %v15203_v12  ;;  %v880_v27 = vcombine.high %v15813_v10, %v15813_v10  ;;  %v881_v43 = vcombine.high %v15816_v11, %v15816_v11  ;;  %v1711_v47 = vrot.slane %v1683_v33, %v15678_v6  ;;  %v1017_v62 = vunpack.i.h.s16 %v15891_v4 }
  0x7e   : > { %v1251_v41 = vrot.slane %v1223_v24, %v15678_v6  ;;  %v1244_v42 = vrot.slane %v1222_v32, %v15678_v6  ;;  %14472 = vmatprep.subr.bf16.mxu0 %v15204_v17  ;;  %14512 = vmatprep.subr.bf16.mxu1 %v15205_v37  ;;  %v1279_v46 = vcombine.high %v1277_v38, %v1277_v38  ;;  %v1025_v37 = vunpack.i.l.s16 %v15919_v19  ;;  %v13504_v19 = vld.sshfl [vmem:[#allocation2 + $0x28] sm:$0xfa pattern:$0x75316420] }
  0x7f   : > { %v1003_v48 = vunpack.i.h.s16 %v880_v27  ;;  %v13395_v49 = vpack.i.b16 %v15813_v10, %v15769_v7  ;;  %v13396_v59 = vpack.i.b16 %v15816_v11, %v999_v21  ;;  %v13397_v60 = vpack.i.b16 %v880_v27, %v1001_v40  ;;  %v15213_v27 = vld [vmem:[%s15602_s30 + $0x2f0] sm:$0xff]   ;;  %v162_v40 = vld [vmem:[%s19606_s0 + $0x20] sm:$0x1] }
  0x80   : > { %v1254_v50 = vcombine.low %v1237_v23, %v1251_v41  ;;  %v1255_v51 = vcombine.high %v1237_v23, %v1251_v41  ;;  %v1252_v52 = vcombine.low %v1230_v39, %v1244_v42  ;;  %v1253_v53 = vcombine.high %v1230_v39, %v1244_v42  ;;  %v15210_v39 = vld [vmem:[%s15602_s30 + $0x238] sm:$0xff]  }
  0x81   : > { %14473 = vmatpush3.bf16.msra.mxu0 %v15206_v26  ;;  %14513 = vmatpush3.bf16.msra.mxu1 %v15207_v34  ;;  %v13398_v61 = vpack.i.b16 %v881_v43, %v1003_v48  ;;  %v1716_v7 = vcombine.low %v15713_v30, %v15759_v2  ;;  %v1719_v1 = vcombine.low %v15832_v20, %v15839_v22  ;;  %v15211_v26 = vld [vmem:[%s15602_s30 + $0x2b8] sm:$0xff]  }
  0x82   : > { %1536 = vmatprep.mubr.bf16.mxu0 %v1254_v50  ;;  %1600 = vmatprep.mubr.bf16.mxu1 %v1255_v51  ;;  %v13399_v3 = vpack.i.b16 %v15880_v57, %v15859_v36  ;;  %v1717_v10 = vcombine.low %v13395_v49, %v13396_v59  ;;  %v13400_v11 = vpack.i.b16 %v15883_v58, %v1013_v8  ;;  %v15215_v59 = vld [vmem:[%s15602_s30 + $0x2b0] sm:$0xff]  }
  0x83   : > { %1537 = vmatmul.mubr.bf16.gmra.mxu0 %v1252_v52  ;;  %1601 = vmatmul.mubr.bf16.gmra.mxu1 %v1253_v53  ;;  %v1718_v9 = vcombine.low %v13397_v60, %v13398_v61  ;;  %v1726_v21 = vrot.slane %v1716_v7, %v15678_v6  ;;  %v1747_v30 = vrot.slane %v1719_v1, %v15678_v6  ;;  %v170_v52 = vld [vmem:[%s19606_s0 + $0x60] sm:$0x1]  ;;  %v171_v53 = vld [vmem:[%s19606_s0 + $0x68] sm:$0x1]  ;;  %v173_v60 = vld [vmem:[%s19606_s0 + $0x78] sm:$0x1] }
  0x84   : > { %1544 = vmatprep.mubr.bf16.mxu0 %v1277_v38  ;;  %1608 = vmatprep.mubr.bf16.mxu1 %v1279_v46  ;;  %v13401_v2 = vpack.i.b16 %v15891_v4, %v1015_v44  ;;  %v1733_v20 = vrot.slane %v1717_v10, %v15678_v6  ;;  %v13402_v36 = vpack.i.b16 %v15895_v5, %v1017_v62  ;;  %v163_v44 = vld [vmem:[%s19606_s0 + $0x28] sm:$0x1]  ;;  %v164_v46 = vld [vmem:[%s19606_s0 + $0x30] sm:$0x1]  ;;  %v234_v61 = vmax.f32 %v162_v40, 0.0 }
  0x85   : > { %14538 = vmatprep.subr.bf16.mxu0 %v15208_v54  ;;  %14578 = vmatprep.subr.bf16.mxu1 %v15209_v56  ;;  %v1740_v22 = vrot.slane %v1718_v9, %v15678_v6  ;;  %v1680_v57 = vcombine.low %v15869_v45, %v15877_v55  ;;  %v1278_v58 = vcombine.high %v15965_v31, %v15965_v31  ;;  %v172_v54 = vld [vmem:[%s19606_s0 + $0x70] sm:$0x1]  ;;  %v235_v62 = vmax.f32 %v163_v44, 0.0  ;;  %v15217_v10 = vld [vmem:[%s15602_s30 + $0x2e8] sm:$0xff]   ;;  %v15223_v44 = vld [vmem:[%s15602_s30 + $0x2a0] sm:$0xff]  }
  0x86   : > { %v1682_v4 = vcombine.low %v15943_v63, %v15949_v0  ;;  %v1714_v8 = vcombine.low %v15969_v35, %v1711_v47  ;;  %v1784_v12 = vcombine.low %v15846_v25, %v13399_v3  ;;  %v1715_v13 = vcombine.high %v15969_v35, %v1711_v47  ;;  %v15212_v35 = vld [vmem:[%s15602_s30 + $0x270] sm:$0xff]   ;;  %v165_v47 = vld [vmem:[%s19606_s0 + $0x38] sm:$0x1]  ;;  %v15216_v3 = vld [vmem:[%s15602_s30 + $0x268] sm:$0xff]  }
  0x87   : > { %v1749_v28 = vcombine.high %v1726_v21, %v1733_v20  ;;  %v1785_v5 = vcombine.low %v13400_v11, %v13401_v2  ;;  %v1787_v17 = vcombine.low %v15905_v16, %v15915_v18  ;;  %v1751_v45 = vcombine.high %v1740_v22, %v1747_v30  ;;  %v15214_v56 = vld [vmem:[%s15602_s30 + $0x230] sm:$0xff]   ;;  %v13503_v38 = vld.sshfl [vmem:[#allocation2 + $0x20] sm:$0xfa pattern:$0x75316420] }
  0x88   : > { %v1748_v55 = vcombine.low %v1726_v21, %v1733_v20  ;;  %v1750_v29 = vcombine.low %v1740_v22, %v1747_v30  ;;  %v1786_v14 = vcombine.low %v13402_v36, %v15902_v15  ;;  %v1690_v63 = vrot.slane %v1680_v57, %v15678_v6  ;;  %v527_v20 = vld [vmem:[#allocation2 + $0x10] sm:$0x11] }
  0x89   : > { %v1704_v25 = vrot.slane %v1682_v4, %v15678_v6  ;;  %v16019_v0 = vrot.slane %v1784_v12, %v15678_v6  ;;  %v1765_v16 = vrot.slane %v1749_v28, %v15678_v6  ;;  %v16023_v15 = vrot.slane %v1785_v5, %v15678_v6  ;;  %v535_v4 = vld [vmem:[#allocation2 + $0x30] sm:$0x11]  ;;  %v13499_v5 = vld.sshfl [vmem:[#allocation2] sm:$0xfa pattern:$0x75316420] }
  0x8a   : > { %v16026_v18 = vrot.slane %v1787_v17, %v15678_v6  ;;  %v1779_v33 = vrot.slane %v1751_v45, %v15678_v6  ;;  %v16037_v24 = vrot.slane %v1748_v55, %v15678_v6  ;;  %v16040_v23 = vrot.slane %v1750_v29, %v15678_v6  ;;  %v13500_v29 = vld.sshfl [vmem:[#allocation2 + $0x8] sm:$0xfa pattern:$0x75316420] }
  0x8b   : > { %1545 = vmatmul.mubr.bf16.gmra.mxu0 %v15965_v31  ;;  %1609 = vmatmul.mubr.bf16.gmra.mxu1 %v1278_v58  ;;  %v16043_v32 = vrot.slane %v1786_v14, %v15678_v6  ;;  %v1712_v31 = vcombine.low %v1690_v63, %v1704_v25  ;;  %v1713_v34 = vcombine.high %v1690_v63, %v1704_v25  ;;  %v236_v7 = vmax.f32 %v164_v46, 0.0  ;;  %v530_v58 = vld [vmem:[#allocation2 + $0x18] sm:$0x11]  ;;  %v15218_v14 = vld [vmem:[%s15602_s30 + $0x228] sm:$0xff]  }
  0x8c   : > { %2116 = vmatprep.mubr.bf16.mxu0 %v1714_v8  ;;  %2180 = vmatprep.mubr.bf16.mxu1 %v1715_v13  ;;  %v1817_v41 = vcombine.high %v16019_v0, %v16023_v15  ;;  %v1816_v42 = vcombine.low %v16019_v0, %v16023_v15  ;;  %v16063_v43 = vrot.slane %v1025_v37, %v15678_v6  ;;  %v237_v1 = vmax.f32 %v165_v47, 0.0  ;;  %v538_v8 = vld [vmem:[#allocation2 + $0x38] sm:$0x11]  ;;  %v15219_v63 = vld [vmem:[%s15602_s30 + $0x2a8] sm:$0xff]  }
  0x8d   : > { %v1782_v48 = vcombine.low %v1765_v16, %v1779_v33  ;;  %v1783_v49 = vcombine.high %v1765_v16, %v1779_v33  ;;  %v1780_v50 = vcombine.low %v16037_v24, %v16040_v23  ;;  %v1819_v51 = vcombine.high %v16043_v32, %v16026_v18  ;;  %v15225_v0 = vld [vmem:[%s15602_s30 + $0x2d8] sm:$0xff]  }
  0x8e   : > { %v242_v9 = vmax.f32 %v170_v52, 0.0  ;;  %v243_v11 = vmax.f32 %v171_v53, 0.0  ;;  %v244_v21 = vmax.f32 %v172_v54, 0.0  ;;  %v245_v30 = vmax.f32 %v173_v60, 0.0  ;;  %v15226_v52 = vld [vmem:[%s15602_s30 + $0x218] sm:$0xff]  }
  0x8f   : > { %v19637_v2 = vmov 0  ;;  %v1781_v22 = vcombine.high %v16037_v24, %v16040_v23  ;;  %v14344_v36 = vpack.c.bf16 %v235_v62, %v234_v61  ;;  %v14345_v57 = vpack.c.bf16 %v237_v1, %v236_v7  ;;  %v15224_v24 = vld [vmem:[%s15602_s30 + $0x258] sm:$0xff]   ;;  %v15228_v7 = vld [vmem:[%s15602_s30 + $0x250] sm:$0xff]  }
  0x90   : > { %v19638_v2 = vsel %vm16098_vm6, 4294967295, %v19637_v2  ;;  %v1833_v12 = vrot.slane %v1817_v41, %v15678_v6  ;;  %v14348_v13 = vpack.c.bf16 %v243_v11, %v242_v9  ;;  %v14349_v28 = vpack.c.bf16 %v245_v30, %v244_v21  ;;  %v15227_v53 = vld [vmem:[%s15602_s30 + $0x298] sm:$0xff]   ;;  %v15229_v1 = vld [vmem:[%s15602_s30 + $0x2d0] sm:$0xff]  }
  0x91   : > { %19639 = vst [vmem:[#allocation7_spill] sm:$0xff] %v19638_v2  ;;  %v1847_v17 = vrot.slane %v1819_v51, %v15678_v6  ;;  %v528_v45 = vsel %vm16098_vm6, %v14344_v36, %v527_v20  ;;  %v531_v55 = vsel %vm16098_vm6, %v14345_v57, %v530_v58  ;;  %v1818_v25 = vcombine.low %v16043_v32, %v16026_v18  ;;  %v15220_v18 = vld [vmem:[%s15602_s30 + $0x260] sm:$0xff]   ;;  %v15230_v58 = vld [vmem:[%s15602_s30 + $0x210] sm:$0xff]  }
  0x92   : > { %529 = vst [vmem:[#allocation2 + $0x10] sm:$0x11] %v528_v45  ;;  %532 = vst [vmem:[#allocation2 + $0x18] sm:$0x11] %v531_v55  ;;  %v536_v16 = vsel %vm16098_vm6, %v14348_v13, %v535_v4  ;;  %v539_v37 = vsel %vm16098_vm6, %v14349_v28, %v538_v8  ;;  %v2711_v33 = vcombine.low %v13499_v5, %v13500_v29  ;;  %v15221_v32 = vld [vmem:[%s15602_s30 + $0x2e0] sm:$0xff]   ;;  %v15231_v4 = vld [vmem:[%s15602_s30 + $0x290] sm:$0xff]  }
  0x93   : > { %2117 = vmatmul.mubr.bf16.vlgmr.msra.gmra.mxu0 %v1712_v31  ;;  %2181 = vmatmul.mubr.bf16.vlgmr.msra.gmra.mxu1 %v1713_v34  ;;  %537 = vst [vmem:[#allocation2 + $0x30] sm:$0x11] %v536_v16  ;;  %540 = vst [vmem:[#allocation2 + $0x38] sm:$0x11] %v539_v37  ;;  %v2765_v31 = vcombine.low %v13503_v38, %v13504_v19  ;;  %v15222_v34 = vld [vmem:[%s15602_s30 + $0x220] sm:$0xff]   ;;  %v2712_v40 = vcombine.high %v13499_v5, %v13500_v29  ;;  %v15233_v45 = vld [vmem:[%s15602_s30 + $0x2c8] sm:$0xff]  }
  0x94   : > { %14539 = vmatpush3.bf16.msra.mxu0 %v15210_v39  ;;  %14579 = vmatpush3.bf16.msra.mxu1 %v15211_v26  ;;  %v1859_v39 = vcombine.high %v16063_v43, %v16063_v43  ;;  %v2719_v26 = vrot.slane %v2711_v33, %v15678_v6  ;;  %v2766_v41 = vcombine.high %v13503_v38, %v13504_v19  ;;  %v178_v29 = vld [vmem:[%s19606_s0 + $0xa0] sm:$0x1]  ;;  %v181_v33 = vld [vmem:[%s19606_s0 + $0xb8] sm:$0x1] }
  0x95   : > { %14540 = vmatprep.subr.bf16.mxu0 %v15212_v35  ;;  %14580 = vmatprep.subr.bf16.mxu1 %v15213_v27  ;;  %v1850_v35 = vcombine.low %v1833_v12, %v1847_v17  ;;  %v1851_v27 = vcombine.high %v1833_v12, %v1847_v17  ;;  %v1826_v46 = vrot.slane %v1816_v42, %v15678_v6  ;;  %v15232_v17 = vld [vmem:[%s15602_s30 + $0x248] sm:$0xff]   ;;  %v186_v19 = vld [vmem:[%s19606_s0 + $0xe0] sm:$0x1] }
  0x96   : > { %2124 = vmatprep.mubr.bf16.mxu0 %v1782_v48  ;;  %2188 = vmatprep.mubr.bf16.mxu1 %v1783_v49  ;;  %v1840_v47 = vrot.slane %v1818_v25, %v15678_v6  ;;  %v16133_v48 = vld.sshfl [vmem:[#allocation2 + $0x40] sm:$0xfa pattern:$0x75316420]  ;;  %v2773_v51 = vrot.slane %v2765_v31, %v15678_v6  ;;  %v16140_v23 = vrot.slane %v2766_v41, %v15678_v6  ;;  %v189_v31 = vld [vmem:[%s19606_s0 + $0xf8] sm:$0x1] }
  0x97   : > { %v16135_v49 = vld.sshfl [vmem:[#allocation2 + $0x48] sm:$0xfa pattern:$0x75316420]  ;;  %v16144_v15 = vrot.slane %v1859_v39, %v15678_v6  ;;  %v2727_v42 = vcombine.high %v2719_v26, %v2719_v26  ;;  %v188_v26 = vld [vmem:[%s19606_s0 + $0xf0] sm:$0x1] }
  0x98   : > { %14541 = vmatpush3.bf16.msra.mxu0 %v15214_v56  ;;  %14581 = vmatpush3.bf16.msra.mxu1 %v15215_v59  ;;  %v2726_v56 = vrot.slane %v2712_v40, %v15678_v6  ;;  %v2782_v59 = vcombine.high %v16140_v23, %v16140_v23  ;;  %v3083_v60 = vunpack.i.h.s16 %v16140_v23  ;;  %v1848_v61 = vcombine.low %v1826_v46, %v1840_v47  ;;  %v15235_v40 = vld [vmem:[%s15602_s30 + $0x288] sm:$0xff]  }
  0x99   : > { %14542 = vmatprep.subr.bf16.mxu0 %v15216_v3  ;;  %14582 = vmatprep.subr.bf16.mxu1 %v15217_v10  ;;  %v13501_v54 = vld.sshfl [vmem:[#allocation2 + $0x10] sm:$0x5 pattern:$0x75316420]  ;;  %v1849_v62 = vcombine.high %v1826_v46, %v1840_v47  ;;  %v16156_v3 = vrot.slane %v16063_v43, %v15678_v6  ;;  %v2820_v30 = vcombine.high %v16133_v48, %v16135_v49  ;;  %v253_v47 = vmax.f32 %v181_v33, 0.0 }
  0x9a   : > { %v13502_v10 = vld.sshfl [vmem:[#allocation2 + $0x18] sm:$0x5 pattern:$0x75316420]  ;;  %v3149_v57 = vcombine.low %v2726_v56, %v2727_v42  ;;  %v2728_v8 = vcombine.high %v2726_v56, %v2726_v56  ;;  %v3087_v28 = vunpack.i.h.s16 %v2782_v59  ;;  %v2819_v25 = vcombine.low %v16133_v48, %v16135_v49  ;;  %v15245_v48 = vld [vmem:[%s15602_s30 + $0x3f0] sm:$0xff]  }
  0x9b   : > { %2125 = vmatmul.mubr.bf16.gmra.mxu0 %v1780_v50  ;;  %2189 = vmatmul.mubr.bf16.gmra.mxu1 %v1781_v22  ;;  %v2781_v50 = vcombine.high %v2773_v51, %v2773_v51  ;;  %v13505_v11 = vld.sshfl [vmem:[#allocation2 + $0x30] sm:$0x5 pattern:$0x75316420]  ;;  %v2743_v21 = vcombine.low %v13501_v54, %v13502_v10  ;;  %v1875_v22 = vcombine.high %v16144_v15, %v16144_v15  ;;  %v258_v42 = vmax.f32 %v186_v19, 0.0 }
  0x9c   : > { %14543 = vmatpush3.bf16.msra.mxu0 %v15218_v14  ;;  %14583 = vmatpush3.bf16.msra.mxu1 %v15219_v63  ;;  %v13506_v43 = vld.sshfl [vmem:[#allocation2 + $0x38] sm:$0x5 pattern:$0x75316420]  ;;  %v1874_v5 = vcombine.high %v16156_v3, %v16156_v3  ;;  %v179_v14 = vld [vmem:[%s19606_s0 + $0xa8] sm:$0x1]  ;;  %v16182_v37 = vrot.slane %v2820_v30, %v15678_v6 }
  0x9d   : > { %14544 = vmatprep.subr.bf16.mxu0 %v15220_v18  ;;  %14584 = vmatprep.subr.bf16.mxu1 %v15221_v32  ;;  %v3085_v9 = vunpack.i.h.s16 %v2781_v50  ;;  %v13528_v20 = vpack.i.b16 %v2781_v50, %v3083_v60  ;;  %v2750_v12 = vrot.slane %v2743_v21, %v15678_v6  ;;  %v2797_v13 = vcombine.low %v13505_v11, %v13506_v43  ;;  %v180_v63 = vld [vmem:[%s19606_s0 + $0xb0] sm:$0x1]  ;;  %v187_v18 = vld [vmem:[%s19606_s0 + $0xe8] sm:$0x1]  ;;  %v554_v60 = vld [vmem:[#allocation2 + $0x78] sm:$0x11] }
  0x9e   : > { %2132 = vmatprep.mubr.bf16.mxu0 %v1850_v35  ;;  %2196 = vmatprep.mubr.bf16.mxu1 %v1851_v27  ;;  %v3159_v32 = vrot.slane %v3149_v57, %v15678_v6  ;;  %v251_v35 = vmax.f32 %v179_v14, 0.0  ;;  %v15234_v27 = vld [vmem:[%s15602_s30 + $0x208] sm:$0xff]   ;;  %v252_v46 = vmax.f32 %v180_v63, 0.0  ;;  %v543_v51 = vld [vmem:[#allocation2 + $0x50] sm:$0x11]  ;;  %v259_v50 = vmax.f32 %v187_v18, 0.0 }
  0x9f   : > { %v13529_v36 = vpack.i.b16 %v2782_v59, %v3085_v9  ;;  %v2804_v16 = vrot.slane %v2797_v13, %v15678_v6  ;;  %v13527_v38 = vpack.i.b16 %v16140_v23, %v2750_v12  ;;  %v15236_v23 = vld [vmem:[%s15602_s30 + $0x240] sm:$0xff]   ;;  %v551_v54 = vld [vmem:[#allocation2 + $0x70] sm:$0x11]  ;;  %v15242_v14 = vld [vmem:[%s15602_s30 + $0x338] sm:$0xff]  }
  0xa0   : > { %14545 = vmatpush3.bf16.msra.mxu0 %v15222_v34  ;;  %14585 = vmatpush3.bf16.msra.mxu1 %v15223_v44  ;;  %v250_v34 = vmax.f32 %v178_v29, 0.0  ;;  %v13512_v10 = vld.sshfl [vmem:[#allocation2 + $0x68] sm:$0xfa pattern:$0x75316420]  ;;  %v15238_v9 = vld [vmem:[%s15602_s30 + $0x200] sm:$0xff]  }
  0xa1   : > { %14546 = vmatprep.subr.bf16.mxu0 %v15224_v24  ;;  %14586 = vmatprep.subr.bf16.mxu1 %v15225_v0  ;;  %v3151_v55 = vcombine.low %v13528_v20, %v13529_v36  ;;  %v13530_v41 = vpack.i.b16 %v2804_v16, %v3087_v28  ;;  %v3150_v44 = vcombine.low %v2728_v8, %v13527_v38  ;;  %v546_v24 = vld [vmem:[#allocation2 + $0x58] sm:$0x11]  ;;  %v15237_v0 = vld [vmem:[%s15602_s30 + $0x2c0] sm:$0xff]  }
  0xa2   : > { %v14352_v59 = vpack.c.bf16 %v251_v35, %v250_v34  ;;  %v15239_v43 = vld [vmem:[%s15602_s30 + $0x280] sm:$0xff]   ;;  %v15240_v36 = vld [vmem:[%s15602_s30 + $0x378] sm:$0xff]   ;;  %v13516_v8 = vld.sshfl [vmem:[#allocation2 + $0x88] sm:$0xfa pattern:$0x75316420]  ;;  %v2827_v38 = vrot.slane %v2819_v25, %v15678_v6 }
  0xa3   : > { %2133 = vmatmul.mubr.bf16.gmra.mxu0 %v1848_v61  ;;  %2197 = vmatmul.mubr.bf16.gmra.mxu1 %v1849_v62  ;;  %v16196_v39 = vrot.slane %v3151_v55, %v15678_v6  ;;  %v3166_v56 = vrot.slane %v3150_v44, %v15678_v6  ;;  %v13511_v61 = vld.sshfl [vmem:[#allocation2 + $0x60] sm:$0xfa pattern:$0x75316420]  ;;  %v14353_v62 = vpack.c.bf16 %v253_v47, %v252_v46  ;;  %v15243_v16 = vld [vmem:[%s15602_s30 + $0x3b8] sm:$0xff]   ;;  %v15246_v25 = vld [vmem:[%s15602_s30 + $0x330] sm:$0xff]  }
  0xa4   : > { %14547 = vmatpush3.bf16.msra.mxu0 %v15226_v52  ;;  %14587 = vmatpush3.bf16.msra.mxu1 %v15227_v53  ;;  %v260_v52 = vmax.f32 %v188_v26, 0.0  ;;  %v261_v53 = vmax.f32 %v189_v31, 0.0  ;;  %v544_v20 = vsel %vm16098_vm6, %v14352_v59, %v543_v51  ;;  %v15244_v31 = vld [vmem:[%s15602_s30 + $0x370] sm:$0xff]   ;;  %v13539_v51 = vcombine.high %v2827_v38, %v16182_v37 }
  0xa5   : > { %14548 = vmatprep.subr.bf16.mxu0 %v15228_v7  ;;  %14588 = vmatprep.subr.bf16.mxu1 %v15229_v1  ;;  %v14356_v7 = vpack.c.bf16 %v259_v50, %v258_v42  ;;  %v3181_v21 = vcombine.low %v3159_v32, %v3166_v56  ;;  %v3182_v30 = vcombine.high %v3159_v32, %v3166_v56  ;;  %v15247_v35 = vld [vmem:[%s15602_s30 + $0x3b0] sm:$0xff]  }
  0xa6   : > { %2140 = vmatprep.mubr.bf16.mxu0 %v16144_v15  ;;  %2204 = vmatprep.mubr.bf16.mxu1 %v1875_v22  ;;  %v3152_v15 = vcombine.low %v13530_v41, %v16182_v37  ;;  %v14357_v1 = vpack.c.bf16 %v261_v53, %v260_v52  ;;  %v13515_v22 = vld.sshfl [vmem:[#allocation2 + $0x80] sm:$0xfa pattern:$0x75316420]  ;;  %545 = vst [vmem:[#allocation2 + $0x50] sm:$0x11] %v544_v20 }
  0xa7   : > { %v547_v57 = vsel %vm16098_vm6, %v14353_v62, %v546_v24  ;;  %v3198_v13 = vrot.slane %v3182_v30, %v15678_v6  ;;  %v3191_v28 = vrot.slane %v3181_v21, %v15678_v6  ;;  %v2927_v63 = vcombine.low %v13515_v22, %v13516_v8  ;;  %v15248_v24 = vld [vmem:[%s15602_s30 + $0x368] sm:$0xff]   ;;  %v194_v53 = vld [vmem:[%s19606_s0 + $0x120] sm:$0x1]  ;;  %v204_v20 = vld [vmem:[%s19606_s0 + $0x170] sm:$0x1] }
  0xa8   : > { %14549 = vmatpush3.bf16.msra.mxu0 %v15230_v58  ;;  %14589 = vmatpush3.bf16.msra.mxu1 %v15231_v4  ;;  %v3180_v11 = vrot.slane %v3152_v15, %v15678_v6  ;;  %v552_v58 = vsel %vm16098_vm6, %v14356_v7, %v551_v54  ;;  %v555_v4 = vsel %vm16098_vm6, %v14357_v1, %v554_v60  ;;  %v195_v37 = vld [vmem:[%s19606_s0 + $0x128] sm:$0x1]  ;;  %v196_v7 = vld [vmem:[%s19606_s0 + $0x130] sm:$0x1]  ;;  %v197_v1 = vld [vmem:[%s19606_s0 + $0x138] sm:$0x1] }
  0xa9   : > { %14550 = vmatprep.subr.bf16.mxu0 %v15232_v17  ;;  %14590 = vmatprep.subr.bf16.mxu1 %v15233_v45  ;;  %548 = vst [vmem:[#allocation2 + $0x58] sm:$0x11] %v547_v57  ;;  %553 = vst [vmem:[#allocation2 + $0x70] sm:$0x11] %v552_v58  ;;  %v2873_v17 = vcombine.low %v13511_v61, %v13512_v10  ;;  %v2874_v45 = vcombine.high %v13511_v61, %v13512_v10  ;;  %v15250_v61 = vld [vmem:[%s15602_s30 + $0x328] sm:$0xff]   ;;  %v15252_v21 = vld [vmem:[%s15602_s30 + $0x360] sm:$0xff]  }
  0xaa   : > { %v3184_v12 = vcombine.high %v16196_v39, %v3180_v11  ;;  %556 = vst [vmem:[#allocation2 + $0x78] sm:$0x11] %v555_v4  ;;  %v2928_v18 = vcombine.high %v13515_v22, %v13516_v8  ;;  %v2935_v41 = vrot.slane %v2927_v63, %v15678_v6  ;;  %v15251_v62 = vld [vmem:[%s15602_s30 + $0x3a8] sm:$0xff]   ;;  %v202_v10 = vld [vmem:[%s19606_s0 + $0x160] sm:$0x1]  ;;  %v266_v4 = vmax.f32 %v194_v53, 0.0 }
  0xab   : > { %2141 = vmatmul.mubr.bf16.gmra.mxu0 %v16156_v3  ;;  %2205 = vmatmul.mubr.bf16.gmra.mxu1 %v1874_v5  ;;  %v3183_v3 = vcombine.low %v16196_v39, %v3180_v11  ;;  %v15241_v5 = vld [vmem:[%s15602_s30 + $0x3f8] sm:$0xff]   ;;  %v2881_v33 = vrot.slane %v2873_v17, %v15678_v6  ;;  %v16239_v19 = vrot.slane %v2874_v45, %v15678_v6  ;;  %v203_v30 = vld [vmem:[%s19606_s0 + $0x168] sm:$0x1]  ;;  %v15253_v58 = vld [vmem:[%s15602_s30 + $0x3e0] sm:$0xff]   ;;  %v276_v63 = vmax.f32 %v204_v20, 0.0 }
  0xac   : > { %14551 = vmatpush3.bf16.msra.mxu0 %v15234_v27  ;;  %14591 = vmatpush3.bf16.msra.mxu1 %v15235_v40  ;;  %v3212_v55 = vrot.slane %v3184_v12, %v15678_v6  ;;  %v16250_v47 = vrot.slane %v2928_v18, %v15678_v6  ;;  %v2943_v50 = vcombine.high %v2935_v41, %v2935_v41  ;;  %v205_v22 = vld [vmem:[%s19606_s0 + $0x178] sm:$0x1]  ;;  %v559_v8 = vld [vmem:[#allocation2 + $0x90] sm:$0x11]  ;;  %v267_v12 = vmax.f32 %v195_v37, 0.0 }
  0xad   : > { %14552 = vmatprep.subr.bf16.mxu0 %v15236_v23  ;;  %14592 = vmatprep.subr.bf16.mxu1 %v15237_v0  ;;  %v3205_v29 = vrot.slane %v3183_v3, %v15678_v6  ;;  %v2889_v49 = vcombine.high %v2881_v33, %v2881_v33  ;;  %v13509_v27 = vld.sshfl [vmem:[#allocation2 + $0x50] sm:$0x5 pattern:$0x75316420]  ;;  %v2890_v40 = vcombine.high %v16239_v19, %v16239_v19  ;;  %v3097_v44 = vunpack.i.h.s16 %v16239_v19  ;;  %v15249_v23 = vld [vmem:[%s15602_s30 + $0x3e8] sm:$0xff]   ;;  %v15255_v33 = vld [vmem:[%s15602_s30 + $0x3a0] sm:$0xff]  }
  0xae   : > { %v3215_v32 = vcombine.low %v3198_v13, %v3212_v55  ;;  %v3216_v39 = vcombine.high %v3198_v13, %v3212_v55  ;;  %v16275_v11 = vrot.slane %v13539_v51, %v15678_v6  ;;  %v562_v3 = vld [vmem:[#allocation2 + $0x98] sm:$0x11]  ;;  %v268_v13 = vmax.f32 %v196_v7, 0.0  ;;  %v567_v17 = vld [vmem:[#allocation2 + $0xb0] sm:$0x11] }
  0xaf   : > { %v3213_v26 = vcombine.low %v3191_v28, %v3205_v29  ;;  %v3214_v34 = vcombine.high %v3191_v28, %v3205_v29  ;;  %v3099_v52 = vunpack.i.h.s16 %v2889_v49  ;;  %v3101_v59 = vunpack.i.h.s16 %v2890_v40  ;;  %v15254_v29 = vld [vmem:[%s15602_s30 + $0x320] sm:$0xff]   ;;  %v15262_v20 = vld [vmem:[%s15602_s30 + $0x310] sm:$0xff]  }
  0xb0   : > { %14553 = vmatpush3.bf16.msra.mxu0 %v15238_v9  ;;  %14593 = vmatpush3.bf16.msra.mxu1 %v15239_v43  ;;  %v13510_v46 = vld.sshfl [vmem:[#allocation2 + $0x58] sm:$0x5 pattern:$0x75316420]  ;;  %v13532_v60 = vpack.i.b16 %v2889_v49, %v3097_v44  ;;  %v3220_v9 = vcombine.low %v16250_v47, %v2943_v50  ;;  %v269_v28 = vmax.f32 %v197_v1, 0.0  ;;  %v14360_v18 = vpack.c.bf16 %v267_v12, %v266_v4 }
  0xb1   : > { %14618 = vmatprep.subr.bf16.mxu0 %v15240_v36  ;;  %14658 = vmatprep.subr.bf16.mxu1 %v15241_v5  ;;  %v13513_v0 = vld.sshfl [vmem:[#allocation2 + $0x70] sm:$0x5 pattern:$0x75316420]  ;;  %v2851_v42 = vcombine.low %v13509_v27, %v13510_v46  ;;  %v13533_v57 = vpack.i.b16 %v2890_v40, %v3099_v52  ;;  %v274_v5 = vmax.f32 %v202_v10, 0.0  ;;  %v15256_v49 = vld [vmem:[%s15602_s30 + $0x358] sm:$0xff]  }
  0xb2   : > { %3617 = vmatprep.mubr.bf16.mxu0 %v3215_v32  ;;  %3681 = vmatprep.mubr.bf16.mxu1 %v3216_v39  ;;  %v13514_v54 = vld.sshfl [vmem:[#allocation2 + $0x78] sm:$0x5 pattern:$0x75316420]  ;;  %v3248_v38 = vrot.slane %v3220_v9, %v15678_v6  ;;  %v14361_v32 = vpack.c.bf16 %v269_v28, %v268_v13  ;;  %v560_v27 = vsel %vm16098_vm6, %v14360_v18, %v559_v8  ;;  %v15261_v10 = vld [vmem:[%s15602_s30 + $0x3d0] sm:$0xff]  }
  0xb3   : > { %3618 = vmatmul.mubr.bf16.vlgmr.msra.gmra.mxu0 %v3213_v26  ;;  %3682 = vmatmul.mubr.bf16.vlgmr.msra.gmra.mxu1 %v3214_v34  ;;  %v2858_v15 = vrot.slane %v2851_v42, %v15678_v6  ;;  %v2905_v56 = vcombine.low %v13513_v0, %v13514_v54  ;;  %v13519_v39 = vld.sshfl [vmem:[#allocation2 + $0xa0] sm:$0xfa pattern:$0x75316420]  ;;  %561 = vst [vmem:[#allocation2 + $0x90] sm:$0x11] %v560_v27 }
  0xb4   : > { %14619 = vmatpush3.bf16.msra.mxu0 %v15242_v14  ;;  %14659 = vmatpush3.bf16.msra.mxu1 %v15243_v16  ;;  %v275_v14 = vmax.f32 %v203_v30, 0.0  ;;  %v570_v16 = vld [vmem:[#allocation2 + $0xb8] sm:$0x11]  ;;  %v563_v40 = vsel %vm16098_vm6, %v14361_v32, %v562_v3  ;;  %v210_v4 = vld [vmem:[%s19606_s0 + $0x1a0] sm:$0x1] }
  0xb5   : > { %14620 = vmatprep.subr.bf16.mxu0 %v15244_v31  ;;  %14660 = vmatprep.subr.bf16.mxu1 %v15245_v48  ;;  %v2912_v43 = vrot.slane %v2905_v56, %v15678_v6  ;;  %v13531_v36 = vpack.i.b16 %v16239_v19, %v2858_v15  ;;  %v277_v19 = vmax.f32 %v205_v22, 0.0  ;;  %v13520_v48 = vld.sshfl [vmem:[#allocation2 + $0xa8] sm:$0xfa pattern:$0x75316420]  ;;  %v15258_v0 = vld [vmem:[%s15602_s30 + $0x318] sm:$0xff]  }
  0xb6   : > { %v14364_v34 = vpack.c.bf16 %v275_v14, %v274_v5  ;;  %v13523_v41 = vld.sshfl [vmem:[#allocation2 + $0xc0] sm:$0xfa pattern:$0x75316420]  ;;  %564 = vst [vmem:[#allocation2 + $0x98] sm:$0x11] %v563_v40  ;;  %v2981_v50 = vcombine.low %v13519_v39, %v13520_v48  ;;  %v2982_v52 = vcombine.high %v13519_v39, %v13520_v48 }
  0xb7   : > { %v13534_v45 = vpack.i.b16 %v2912_v43, %v3101_v59  ;;  %v3218_v55 = vcombine.low %v13531_v36, %v13532_v60  ;;  %v15259_v56 = vld [vmem:[%s15602_s30 + $0x398] sm:$0xff]   ;;  %v211_v13 = vld [vmem:[%s19606_s0 + $0x1a8] sm:$0x1] }
  0xb8   : > { %14621 = vmatpush3.bf16.msra.mxu0 %v15246_v25  ;;  %14661 = vmatpush3.bf16.msra.mxu1 %v15247_v35  ;;  %v15257_v25 = vld [vmem:[%s15602_s30 + $0x3d8] sm:$0xff]   ;;  %v14365_v35 = vpack.c.bf16 %v277_v19, %v276_v63  ;;  %v2989_v59 = vrot.slane %v2981_v50, %v15678_v6  ;;  %v16313_v60 = vrot.slane %v2982_v52, %v15678_v6  ;;  %v282_v19 = vmax.f32 %v210_v4, 0.0  ;;  %v15268_v52 = vld [vmem:[%s15602_s30 + $0x340] sm:$0xff]  }
  0xb9   : > { %14622 = vmatprep.subr.bf16.mxu0 %v15248_v24  ;;  %14662 = vmatprep.subr.bf16.mxu1 %v15249_v23  ;;  %v3219_v26 = vcombine.low %v13533_v57, %v13534_v45  ;;  %v3234_v31 = vrot.slane %v3218_v55, %v15678_v6  ;;  %v568_v24 = vsel %vm16098_vm6, %v14364_v34, %v567_v17  ;;  %v13524_v23 = vld.sshfl [vmem:[#allocation2 + $0xc8] sm:$0xfa pattern:$0x75316420]  ;;  %v212_v17 = vld [vmem:[%s19606_s0 + $0x1b0] sm:$0x1] }
  0xba   : > { %569 = vst [vmem:[#allocation2 + $0xb0] sm:$0x11] %v568_v24  ;;  %v571_v42 = vsel %vm16098_vm6, %v14365_v35, %v570_v16  ;;  %v3035_v1 = vcombine.low %v13523_v41, %v13524_v23  ;;  %v2997_v9 = vcombine.high %v2989_v59, %v2989_v59  ;;  %v3111_v30 = vunpack.i.h.s16 %v16313_v60  ;;  %v13517_v8 = vld.sshfl [vmem:[#allocation2 + $0x90] sm:$0x5 pattern:$0x75316420] }
  0xbb   : > { %v3241_v44 = vrot.slane %v3219_v26, %v15678_v6  ;;  %v3250_v46 = vcombine.high %v16275_v11, %v3234_v31  ;;  %v3249_v51 = vcombine.low %v16275_v11, %v3234_v31  ;;  %572 = vst [vmem:[#allocation2 + $0xb8] sm:$0x11] %v571_v42  ;;  %v2998_v11 = vcombine.high %v16313_v60, %v16313_v60  ;;  %v213_v63 = vld [vmem:[%s19606_s0 + $0x1b8] sm:$0x1]  ;;  %v575_v34 = vld [vmem:[#allocation2 + $0xd0] sm:$0x11] }
  0xbc   : > { %14623 = vmatpush3.bf16.msra.mxu0 %v15250_v61  ;;  %14663 = vmatpush3.bf16.msra.mxu1 %v15251_v62  ;;  %v15260_v61 = vld [vmem:[%s15602_s30 + $0x350] sm:$0xff]   ;;  %v3113_v3 = vunpack.i.h.s16 %v2997_v9  ;;  %v13536_v12 = vpack.i.b16 %v2997_v9, %v3111_v30  ;;  %v3043_v5 = vrot.slane %v3035_v1, %v15678_v6  ;;  %v283_v18 = vmax.f32 %v211_v13, 0.0  ;;  %v578_v48 = vld [vmem:[#allocation2 + $0xd8] sm:$0x11]  ;;  %v15267_v42 = vld [vmem:[%s15602_s30 + $0x388] sm:$0xff]  }
  0xbd   : > { %14624 = vmatprep.subr.bf16.mxu0 %v15252_v21  ;;  %14664 = vmatprep.subr.bf16.mxu1 %v15253_v58  ;;  %v3252_v53 = vcombine.high %v3241_v44, %v3248_v38  ;;  %v3266_v54 = vrot.slane %v3250_v46, %v15678_v6  ;;  %v3251_v37 = vcombine.low %v3241_v44, %v3248_v38  ;;  %v15263_v58 = vld [vmem:[%s15602_s30 + $0x390] sm:$0xff]   ;;  %v13518_v28 = vld.sshfl [vmem:[#allocation2 + $0x98] sm:$0x5 pattern:$0x75316420]  ;;  %v284_v31 = vmax.f32 %v212_v17, 0.0 }
  0xbe   : > { %v3259_v15 = vrot.slane %v3249_v51, %v15678_v6  ;;  %v3036_v21 = vcombine.high %v13523_v41, %v13524_v23  ;;  %v2959_v55 = vcombine.low %v13517_v8, %v13518_v28  ;;  %v13537_v14 = vpack.i.b16 %v2998_v11, %v3113_v3  ;;  %v15266_v51 = vld [vmem:[%s15602_s30 + $0x308] sm:$0xff]   ;;  %v15272_v13 = vld [vmem:[%s15602_s30 + $0x478] sm:$0xff]  }
  0xbf   : > { %v3280_v62 = vrot.slane %v3252_v53, %v15678_v6  ;;  %v3273_v7 = vrot.slane %v3251_v37, %v15678_v6  ;;  %v2944_v38 = vcombine.high %v16250_v47, %v16250_v47  ;;  %v14368_v35 = vpack.c.bf16 %v283_v18, %v282_v19  ;;  %v15265_v47 = vld [vmem:[%s15602_s30 + $0x3c8] sm:$0xff]  }
  0xc0   : > { %14625 = vmatpush3.bf16.msra.mxu0 %v15254_v29  ;;  %14665 = vmatpush3.bf16.msra.mxu1 %v15255_v33  ;;  %v3050_v29 = vrot.slane %v3036_v21, %v15678_v6  ;;  %v3115_v33 = vunpack.i.h.s16 %v2998_v11  ;;  %v2966_v32 = vrot.slane %v2959_v55, %v15678_v6  ;;  %v3286_v26 = vcombine.low %v13536_v12, %v13537_v14  ;;  %v13638_v1 = vld.sshfl [vmem:[#allocation2 + $0x28] sm:$0xff pattern:$0x75316420] }
  0xc1   : > { %14626 = vmatprep.subr.bf16.mxu0 %v15256_v49  ;;  %14666 = vmatprep.subr.bf16.mxu1 %v15257_v25  ;;  %v3283_v22 = vcombine.low %v3266_v54, %v3280_v62  ;;  %v3284_v43 = vcombine.high %v3266_v54, %v3280_v62  ;;  %v3281_v36 = vcombine.low %v3259_v15, %v3273_v7  ;;  %v13521_v45 = vld.sshfl [vmem:[#allocation2 + $0xb0] sm:$0x5 pattern:$0x75316420]  ;;  %v15264_v49 = vld [vmem:[%s15602_s30 + $0x348] sm:$0xff]   ;;  %v285_v25 = vmax.f32 %v213_v63, 0.0 }
  0xc2   : > { %v3282_v57 = vcombine.high %v3259_v15, %v3273_v7  ;;  %v13522_v16 = vld.sshfl [vmem:[#allocation2 + $0xb8] sm:$0x5 pattern:$0x75316420]  ;;  %v13535_v40 = vpack.i.b16 %v16313_v60, %v2966_v32  ;;  %v13540_v41 = vcombine.high %v3043_v5, %v3050_v29  ;;  %v576_v46 = vsel %vm16098_vm6, %v14368_v35, %v575_v34  ;;  %v15269_v15 = vld [vmem:[%s15602_s30 + $0x3c0] sm:$0xff]  }
  0xc3   : > { %3625 = vmatprep.mubr.bf16.mxu0 %v3283_v22  ;;  %3689 = vmatprep.mubr.bf16.mxu1 %v3284_v43  ;;  %v3013_v39 = vcombine.low %v13521_v45, %v13522_v16  ;;  %v14369_v44 = vpack.c.bf16 %v285_v25, %v284_v31  ;;  %577 = vst [vmem:[#allocation2 + $0xd0] sm:$0x11] %v576_v46  ;;  %v15271_v62 = vld [vmem:[%s15602_s30 + $0x380] sm:$0xff]   ;;  %v13642_v12 = vld.sshfl [vmem:[#allocation2 + $0x68] sm:$0xff pattern:$0x75316420] }
  0xc4   : > { %14627 = vmatpush3.bf16.msra.mxu0 %v15258_v0  ;;  %14667 = vmatpush3.bf16.msra.mxu1 %v15259_v56  ;;  %v3285_v23 = vcombine.low %v2944_v38, %v13535_v40  ;;  %v3302_v0 = vrot.slane %v3286_v26, %v15678_v6  ;;  %v3316_v37 = vrot.slane %v13540_v41, %v15678_v6  ;;  %v15270_v56 = vld [vmem:[%s15602_s30 + $0x300] sm:$0xff]   ;;  %v15273_v38 = vld [vmem:[%s15602_s30 + $0x4f8] sm:$0xff]  }
  0xc5   : > { %14628 = vmatprep.subr.bf16.mxu0 %v15260_v61  ;;  %3626 = vmatmul.mubr.bf16.gmra.mxu0 %v3281_v36  ;;  %v3020_v27 = vrot.slane %v3013_v39, %v15678_v6  ;;  %v579_v50 = vsel %vm16098_vm6, %v14369_v44, %v578_v48  ;;  %v13637_v7 = vld.sshfl [vmem:[#allocation2 + $0x20] sm:$0xff pattern:$0x75316420] }
  0xc6   : > { %3690 = vmatmul.mubr.bf16.gmra.mxu1 %v3282_v57  ;;  %14668 = vmatprep.subr.bf16.mxu1 %v15261_v10  ;;  %v3295_v54 = vrot.slane %v3285_v23, %v15678_v6  ;;  %580 = vst [vmem:[#allocation2 + $0xd8] sm:$0x11] %v579_v50  ;;  %v13639_v10 = vld.sshfl [vmem:[#allocation2 + $0x40] sm:$0xff pattern:$0x75316420]  ;;  %v4234_v36 = vcombine.low %v13637_v7, %v13638_v1 }
  0xc7   : > { %v13538_v24 = vpack.i.b16 %v3020_v27, %v3115_v33  ;;  %v13641_v43 = vld.sshfl [vmem:[#allocation2 + $0x60] sm:$0xff pattern:$0x75316420]  ;;  %v4235_v57 = vcombine.high %v13637_v7, %v13638_v1 }
  0xc8   : > { %14629 = vmatpush3.bf16.msra.mxu0 %v15262_v20  ;;  %14669 = vmatpush3.bf16.msra.mxu1 %v15263_v58  ;;  %v3318_v60 = vcombine.high %v3295_v54, %v3302_v0  ;;  %v3317_v61 = vcombine.low %v3295_v54, %v3302_v0  ;;  %v13640_v20 = vld.sshfl [vmem:[#allocation2 + $0x48] sm:$0xff pattern:$0x75316420]  ;;  %v16365_v5 = vrot.slane %v4234_v36, %v15678_v6  ;;  %v13643_v0 = vld.sshfl [vmem:[#allocation2 + $0x80] sm:$0xff pattern:$0x75316420] }
  0xc9   : > { %14630 = vmatprep.subr.bf16.mxu0 %v15264_v49  ;;  %14670 = vmatprep.subr.bf16.mxu1 %v15265_v47  ;;  %v3287_v53 = vcombine.low %v13538_v24, %v3050_v29  ;;  %v4266_v58 = vcombine.low %v13639_v10, %v13640_v20  ;;  %v4267_v4 = vcombine.high %v13639_v10, %v13640_v20  ;;  %v13644_v54 = vld.sshfl [vmem:[#allocation2 + $0x88] sm:$0xff pattern:$0x75316420] }
  0xca   : > { %v3334_v11 = vrot.slane %v3318_v60, %v15678_v6  ;;  %v3327_v30 = vrot.slane %v3317_v61, %v15678_v6  ;;  %v13525_v22 = vld.sshfl [vmem:[#allocation2 + $0xd0] sm:$0x5 pattern:$0x75316420]  ;;  %v16368_v17 = vrot.slane %v4235_v57, %v15678_v6  ;;  %v16379_v19 = vcombine.high %v16365_v5, %v16365_v5 }
  0xcb   : > { %v3309_v59 = vrot.slane %v3287_v53, %v15678_v6  ;;  %v16371_v45 = vrot.slane %v4266_v58, %v15678_v6  ;;  %v16374_v55 = vrot.slane %v4267_v4, %v15678_v6  ;;  %v4298_v26 = vcombine.low %v13641_v43, %v13642_v12 }
  0xcc   : > { %14631 = vmatpush3.bf16.msra.mxu0 %v15266_v51  ;;  %14671 = vmatpush3.bf16.msra.mxu1 %v15267_v42  ;;  %v16383_v18 = vcombine.high %v16368_v17, %v16368_v17  ;;  %v4518_v35 = vcombine.low %v16365_v5, %v16368_v17  ;;  %v4299_v41 = vcombine.high %v13641_v43, %v13642_v12 }
  0xcd   : > { %14632 = vmatprep.subr.bf16.mxu0 %v15268_v52  ;;  %14672 = vmatprep.subr.bf16.mxu1 %v15269_v15  ;;  %v3320_v9 = vcombine.high %v3309_v59, %v3316_v37  ;;  %v3319_v21 = vcombine.low %v3309_v59, %v3316_v37  ;;  %v13526_v28 = vld.sshfl [vmem:[#allocation2 + $0xd8] sm:$0x5 pattern:$0x75316420]  ;;  %v16387_v32 = vcombine.high %v16371_v45, %v16371_v45  ;;  %v4452_v31 = vunpack.i.h.s16 %v16371_v45 }
  0xce   : > { %v3067_v33 = vcombine.low %v13525_v22, %v13526_v28  ;;  %v16391_v39 = vcombine.high %v16374_v55, %v16374_v55  ;;  %v4454_v34 = vunpack.i.h.s16 %v16374_v55  ;;  %v13651_v25 = vpack.i.b16 %v16371_v45, %v16383_v18  ;;  %v13645_v37 = vld.sshfl [vmem:[#allocation2 + $0xa0] sm:$0xff pattern:$0x75316420]  ;;  %v13646_v59 = vld.sshfl [vmem:[#allocation2 + $0xa8] sm:$0xff pattern:$0x75316420] }
  0xcf   : > { %v3348_v8 = vrot.slane %v3320_v9, %v15678_v6  ;;  %v3341_v3 = vrot.slane %v3319_v21, %v15678_v6  ;;  %v4456_v49 = vunpack.i.h.s16 %v16387_v32  ;;  %v16402_v47 = vrot.slane %v4298_v26, %v15678_v6 }
  0xd0   : > { %14633 = vmatpush3.bf16.msra.mxu0 %v15270_v56  ;;  %14673 = vmatpush3.bf16.msra.mxu1 %v15271_v62  ;;  %v3074_v48 = vrot.slane %v3067_v33, %v15678_v6  ;;  %v13652_v27 = vpack.i.b16 %v16374_v55, %v4452_v31  ;;  %v13653_v40 = vpack.i.b16 %v16387_v32, %v4454_v34 }
  0xd1   : > { %v3351_v29 = vcombine.low %v3334_v11, %v3348_v8  ;;  %v3352_v14 = vcombine.high %v3334_v11, %v3348_v8  ;;  %v3349_v63 = vcombine.low %v3327_v30, %v3341_v3  ;;  %v3350_v16 = vcombine.high %v3327_v30, %v3341_v3  ;;  %14698 = vmatprep.subr.bf16.mxu0 %v15272_v13 }
  0xd2   : > { %14738 = vmatprep.subr.bf16.mxu1 %v15273_v38  ;;  %v3123_v44 = vunpack.i.l.s16 %v3074_v48  ;;  %v13654_v46 = vpack.i.b16 %v16391_v39, %v4456_v49  ;;  %v4519_v51 = vcombine.low %v16379_v19, %v13651_v25  ;;  %v4528_v24 = vrot.slane %v4518_v35, %v15678_v6 }
  0xd3   : > { %3633 = vmatprep.mubr.bf16.mxu0 %v3351_v29  ;;  %3697 = vmatprep.mubr.bf16.mxu1 %v3352_v14  ;;  %v4520_v23 = vcombine.low %v13652_v27, %v13653_v40  ;;  %v16412_v42 = vrot.slane %v4299_v41, %v15678_v6  ;;  %v16419_v15 = vcombine.high %v16402_v47, %v16402_v47  ;;  %v5812_v48 = vunpack.i.h.s16 %v16365_v5  ;;  %v214_v40 = vld [vmem:[%s19606_s0 + $0x1c0] sm:$0xff]  ;;  %v215_v41 = vld [vmem:[%s19606_s0 + $0x1c8] sm:$0xff] }
  0xd4   : > { %3634 = vmatmul.mubr.bf16.gmra.mxu0 %v3349_v63  ;;  %3698 = vmatmul.mubr.bf16.gmra.mxu1 %v3350_v16  ;;  %v3359_v50 = vrot.slane %v3123_v44, %v15678_v6  ;;  %v4521_v52 = vcombine.low %v13654_v46, %v16402_v47  ;;  %v4535_v53 = vrot.slane %v4519_v51, %v15678_v6  ;;  %v216_v51 = vld [vmem:[%s19606_s0 + $0x1d0] sm:$0xff] }
  0xd5   : > { %v4542_v56 = vrot.slane %v4520_v23, %v15678_v6  ;;  %v16424_v60 = vcombine.high %v16412_v42, %v16412_v42  ;;  %v4330_v61 = vcombine.low %v13643_v0, %v13644_v54  ;;  %v4331_v62 = vcombine.high %v13643_v0, %v13644_v54 }
  0xd6   : > { %v3360_v7 = vcombine.high %v3359_v50, %v3359_v50  ;;  %v3367_v1 = vrot.slane %v3359_v50, %v15678_v6  ;;  %v4549_v10 = vrot.slane %v4521_v52, %v15678_v6  ;;  %v4550_v9 = vcombine.low %v4528_v24, %v4535_v53  ;;  %v15274_v50 = vld [vmem:[%s15602_s30 + $0x438] sm:$0xff]  }
  0xd7   : > { %v4551_v11 = vcombine.high %v4528_v24, %v4535_v53  ;;  %v16429_v21 = vrot.slane %v4330_v61, %v15678_v6  ;;  %v16432_v30 = vrot.slane %v4331_v62, %v15678_v6  ;;  %v4362_v20 = vcombine.low %v13645_v37, %v13646_v59  ;;  %v217_v24 = vld [vmem:[%s19606_s0 + $0x1d8] sm:$0xff]  ;;  %v15276_v61 = vld [vmem:[%s15602_s30 + $0x470] sm:$0xff]  }
  0xd8   : > { %v3374_v22 = vrot.slane %v3360_v7, %v15678_v6  ;;  %v3375_v43 = vcombine.high %v3367_v1, %v3367_v1  ;;  %v4552_v36 = vcombine.low %v4542_v56, %v4549_v10  ;;  %v4553_v57 = vcombine.high %v4542_v56, %v4549_v10  ;;  %v13647_v56 = vld.sshfl [vmem:[#allocation2 + $0xc0] sm:$0xff pattern:$0x75316420]  ;;  %v13648_v10 = vld.sshfl [vmem:[#allocation2 + $0xc8] sm:$0xff pattern:$0x75316420] }
  0xd9   : > { %v4567_v58 = vrot.slane %v4551_v11, %v15678_v6  ;;  %v16437_v4 = vrot.slane %v4550_v9, %v15678_v6  ;;  %v4346_v8 = vcombine.high %v16429_v21, %v16429_v21  ;;  %v4347_v3 = vcombine.high %v16432_v30, %v16432_v30 }
  0xda   : > { %3641 = vmatprep.mubr.bf16.mxu0 %v3374_v22  ;;  %v3376_v12 = vcombine.high %v3374_v22, %v3374_v22  ;;  %v4581_v13 = vrot.slane %v4553_v57, %v15678_v6  ;;  %v16445_v28 = vrot.slane %v4552_v36, %v15678_v6  ;;  %v4363_v29 = vcombine.high %v13645_v37, %v13646_v59  ;;  %v15275_v59 = vld [vmem:[%s15602_s30 + $0x4b8] sm:$0xff]   ;;  %v15277_v36 = vld [vmem:[%s15602_s30 + $0x4f0] sm:$0xff]  }
  0xdb   : > { %v16448_v14 = vrot.slane %v4362_v20, %v15678_v6  ;;  %v4466_v63 = vunpack.i.h.s16 %v16429_v21  ;;  %v4468_v16 = vunpack.i.h.s16 %v16432_v30  ;;  %v4470_v38 = vunpack.i.h.s16 %v4346_v8 }
  0xdc   : > { %3642 = vmatmul.mubr.bf16.gmra.mxu0 %v3367_v1  ;;  %3705 = vmatprep.mubr.bf16.mxu1 %v3376_v12  ;;  %v4584_v33 = vcombine.low %v4567_v58, %v4581_v13  ;;  %v4585_v26 = vcombine.high %v4567_v58, %v4581_v13  ;;  %v4582_v34 = vcombine.low %v16437_v4, %v16445_v28  ;;  %v286_v23 = vmax.f32 %v214_v40, 0.0  ;;  %v15278_v12 = vld [vmem:[%s15602_s30 + $0x430] sm:$0xff]  }
  0xdd   : > { %3706 = vmatmul.mubr.bf16.gmra.mxu1 %v3375_v43  ;;  %v16456_v49 = vrot.slane %v4363_v29, %v15678_v6  ;;  %v13655_v25 = vpack.i.b16 %v16429_v21, %v16424_v60  ;;  %v13656_v35 = vpack.i.b16 %v16432_v30, %v4466_v63  ;;  %v13657_v27 = vpack.i.b16 %v4346_v8, %v4468_v16  ;;  %v15279_v16 = vld [vmem:[%s15602_s30 + $0x4b0] sm:$0xff]  }
  0xde   : > { %4986 = vmatprep.mubr.bf16.mxu0 %v4584_v33  ;;  %5050 = vmatprep.mubr.bf16.mxu1 %v4585_v26  ;;  %v13658_v44 = vpack.i.b16 %v4347_v3, %v4470_v38  ;;  %v4586_v46 = vcombine.low %v16412_v42, %v16419_v15  ;;  %v287_v0 = vmax.f32 %v215_v41, 0.0  ;;  %v288_v54 = vmax.f32 %v216_v51, 0.0  ;;  %v15281_v51 = vld [vmem:[%s15602_s30 + $0x4e8] sm:$0xff]  }
  0xdf   : > { %v4587_v52 = vcombine.low %v13655_v25, %v13656_v35  ;;  %v4589_v53 = vcombine.low %v16448_v14, %v16456_v49  ;;  %v289_v37 = vmax.f32 %v217_v24, 0.0  ;;  %v5814_v9 = vunpack.i.h.s16 %v16368_v17 }
  0xe0   : > { %v4588_v62 = vcombine.low %v13657_v27, %v13658_v44  ;;  %v4596_v7 = vrot.slane %v4586_v46, %v15678_v6  ;;  %v14370_v1 = vpack.c.bf16 %v287_v0, %v286_v23  ;;  %v4583_v11 = vcombine.high %v16437_v4, %v16445_v28  ;;  %v15280_v27 = vld [vmem:[%s15602_s30 + $0x468] sm:$0xff]  }
  0xe1   : > { %v4603_v20 = vrot.slane %v4587_v52, %v15678_v6  ;;  %v4617_v22 = vrot.slane %v4589_v53, %v15678_v6  ;;  %v14371_v43 = vpack.c.bf16 %v289_v37, %v288_v54  ;;  %v16492_v58 = vcombine.high %v16448_v14, %v16448_v14  ;;  %v15282_v0 = vld [vmem:[%s15602_s30 + $0x428] sm:$0xff]  }
  0xe2   : > { %v4610_v57 = vrot.slane %v4588_v62, %v15678_v6  ;;  %581 = vst [vmem:[#allocation2 + $0xe0] sm:$0xff] %v14370_v1  ;;  %v4394_v8 = vcombine.low %v13647_v56, %v13648_v10  ;;  %v4395_v3 = vcombine.high %v13647_v56, %v13648_v10  ;;  %v16497_v28 = vcombine.high %v16456_v49, %v16456_v49  ;;  %v15284_v56 = vld [vmem:[%s15602_s30 + $0x460] sm:$0xff]  }
  0xe3   : > { %v4619_v4 = vcombine.high %v4596_v7, %v4603_v20  ;;  %v4618_v13 = vcombine.low %v4596_v7, %v4603_v20  ;;  %582 = vst [vmem:[#allocation2 + $0xe8] sm:$0xff] %v14371_v43  ;;  %v5816_v29 = vunpack.i.h.s16 %v16379_v19  ;;  %v5818_v40 = vunpack.i.h.s16 %v16383_v18  ;;  %v15285_v10 = vld [vmem:[%s15602_s30 + $0x4e0] sm:$0xff]  }
  0xe4   : > { %4987 = vmatmul.mubr.bf16.vlgmr.msra.gmra.mxu0 %v4582_v34  ;;  %v4621_v38 = vcombine.high %v4610_v57, %v4617_v22  ;;  %v4620_v33 = vcombine.low %v4610_v57, %v4617_v22  ;;  %v16502_v26 = vrot.slane %v4394_v8, %v15678_v6  ;;  %v16505_v34 = vrot.slane %v4395_v3, %v15678_v6  ;;  %v15286_v3 = vld [vmem:[%s15602_s30 + $0x420] sm:$0xff]  }
  0xe5   : > { %14699 = vmatpush3.bf16.msra.mxu0 %v15274_v50  ;;  %5051 = vmatmul.mubr.bf16.vlgmr.msra.gmra.mxu1 %v4583_v11  ;;  %v4635_v25 = vrot.slane %v4619_v4, %v15678_v6  ;;  %v4628_v35 = vrot.slane %v4618_v13, %v15678_v6  ;;  %v5826_v41 = vunpack.i.h.s16 %v16402_v47  ;;  %v16522_v23 = vpack.i.b16 %v16368_v17, %v5812_v48  ;;  %v15283_v48 = vld [vmem:[%s15602_s30 + $0x4a8] sm:$0xff]   ;;  %v15287_v4 = vld [vmem:[%s15602_s30 + $0x4a0] sm:$0xff]  }
  0xe6   : > { %14700 = vmatprep.subr.bf16.mxu0 %v15276_v61  ;;  %14739 = vmatpush3.bf16.msra.mxu1 %v15275_v59  ;;  %v4649_v44 = vrot.slane %v4621_v38, %v15678_v6  ;;  %v4642_v46 = vrot.slane %v4620_v33, %v15678_v6  ;;  %v16517_v24 = vcombine.high %v16502_v26, %v16502_v26  ;;  %v4480_v50 = vunpack.i.h.s16 %v16502_v26  ;;  %v15289_v38 = vld [vmem:[%s15602_s30 + $0x4d8] sm:$0xff]  }
  0xe7   : > { %14740 = vmatprep.subr.bf16.mxu1 %v15277_v36  ;;  %v16527_v47 = vcombine.high %v16505_v34, %v16505_v34  ;;  %v4482_v52 = vunpack.i.h.s16 %v16505_v34  ;;  %v13659_v53 = vpack.i.b16 %v16502_v26, %v16497_v28  ;;  %v13774_v20 = vpack.i.b16 %v16379_v19, %v5814_v9  ;;  %v15288_v9 = vld [vmem:[%s15602_s30 + $0x458] sm:$0xff]  }
  0xe8   : > { %v4652_v54 = vcombine.low %v4635_v25, %v4649_v44  ;;  %v4653_v5 = vcombine.high %v4635_v25, %v4649_v44  ;;  %v4650_v37 = vcombine.low %v4628_v35, %v4642_v46  ;;  %v4651_v17 = vcombine.high %v4628_v35, %v4642_v46 }
  0xe9   : > { %14701 = vmatpush3.bf16.msra.mxu0 %v15278_v12  ;;  %v13649_v59 = vld.sshfl [vmem:[#allocation2 + $0xe0] sm:$0xff pattern:$0x75316420]  ;;  %v4484_v61 = vunpack.i.h.s16 %v16517_v24  ;;  %v13660_v62 = vpack.i.b16 %v16505_v34, %v4480_v50  ;;  %v13661_v7 = vpack.i.b16 %v16517_v24, %v4482_v52  ;;  %v4654_v1 = vcombine.low %v16492_v58, %v13659_v53  ;;  %v15292_v52 = vld [vmem:[%s15602_s30 + $0x450] sm:$0xff]   ;;  %v15291_v53 = vld [vmem:[%s15602_s30 + $0x498] sm:$0xff]  }
  0xea   : > { %14702 = vmatprep.subr.bf16.mxu0 %v15280_v27  ;;  %14741 = vmatpush3.bf16.msra.mxu1 %v15279_v16  ;;  %v13650_v11 = vld.sshfl [vmem:[#allocation2 + $0xe8] sm:$0xff pattern:$0x75316420]  ;;  %v13775_v22 = vpack.i.b16 %v16383_v18, %v5816_v29  ;;  %v5864_v43 = vpack.i.b16 %v4452_v31, %v5818_v40  ;;  %v13776_v18 = vpack.i.b16 %v16412_v42, %v5826_v41  ;;  %v15290_v27 = vld [vmem:[%s15602_s30 + $0x418] sm:$0xff]  }
  0xeb   : > { %4994 = vmatprep.mubr.bf16.mxu0 %v4652_v54  ;;  %5058 = vmatprep.mubr.bf16.mxu1 %v4653_v5  ;;  %v4426_v36 = vcombine.low %v13649_v59, %v13650_v11  ;;  %v4427_v57 = vcombine.high %v13649_v59, %v13650_v11  ;;  %v13662_v8 = vpack.i.b16 %v16527_v47, %v4484_v61  ;;  %v5828_v54 = vunpack.i.h.s16 %v16412_v42  ;;  %v15294_v59 = vld [vmem:[%s15602_s30 + $0x410] sm:$0xff]   ;;  %v14030_v2 = vld.sshfl [vmem:[#allocation2 + $0xe0] sm:$0xff pattern:$0x75316420] }
  0xec   : > { %4995 = vmatmul.mubr.bf16.gmra.mxu0 %v4650_v37  ;;  %14742 = vmatprep.subr.bf16.mxu1 %v15281_v51  ;;  %v4655_v12 = vcombine.low %v13660_v62, %v13661_v7  ;;  %v4664_v19 = vrot.slane %v4654_v1, %v15678_v6  ;;  %v5886_v25 = vcombine.low %v16522_v23, %v13774_v20  ;;  %v15293_v37 = vld [vmem:[%s15602_s30 + $0x4d0] sm:$0xff]   ;;  %v15296_v20 = vld [vmem:[%s15602_s30 + $0x448] sm:$0xff]  }
  0xed   : > { %14703 = vmatpush3.bf16.msra.mxu0 %v15282_v0  ;;  %5059 = vmatmul.mubr.bf16.gmra.mxu1 %v4651_v17  ;;  %v16551_v45 = vrot.slane %v4426_v36, %v15678_v6  ;;  %v16554_v31 = vrot.slane %v4427_v57, %v15678_v6  ;;  %v5887_v40 = vcombine.low %v13775_v22, %v5864_v43  ;;  %v15295_v22 = vld [vmem:[%s15602_s30 + $0x490] sm:$0xff]  }
  0xee   : > { %14704 = vmatprep.subr.bf16.mxu0 %v15284_v56  ;;  %14743 = vmatpush3.bf16.msra.mxu1 %v15283_v48  ;;  %v4671_v13 = vrot.slane %v4655_v12, %v15678_v6  ;;  %v5888_v41 = vcombine.low %v16374_v55, %v16387_v32  ;;  %v5889_v44 = vcombine.low %v16391_v39, %v13776_v18  ;;  %v5830_v55 = vunpack.i.h.s16 %v16419_v15 }
  0xef   : > { %14744 = vmatprep.subr.bf16.mxu1 %v15285_v10  ;;  %v16561_v29 = vcombine.high %v16551_v45, %v16551_v45  ;;  %v4656_v16 = vcombine.low %v13662_v8, %v16551_v45  ;;  %v16567_v33 = vcombine.high %v16554_v31, %v16554_v31  ;;  %v5832_v32 = vunpack.i.h.s16 %v16424_v60 }
  0xf0   : > { %v4687_v35 = vcombine.high %v4664_v19, %v4671_v13  ;;  %v4686_v0 = vcombine.low %v4664_v19, %v4671_v13  ;;  %v5840_v39 = vunpack.i.h.s16 %v16448_v14  ;;  %v16588_v48 = vrot.slane %v5886_v25, %v15678_v6  ;;  %v15297_v19 = vld [vmem:[%s15602_s30 + $0x4c8] sm:$0xff]  }
  0xf1   : > { %14705 = vmatpush3.bf16.msra.mxu0 %v15286_v3  ;;  %v4657_v46 = vcombine.low %v16554_v31, %v16561_v29  ;;  %v4678_v51 = vrot.slane %v4656_v16, %v15678_v6  ;;  %v4492_v23 = vunpack.i.l.s16 %v16567_v33  ;;  %v5842_v56 = vunpack.i.h.s16 %v16456_v49 }
  0xf2   : > { %14706 = vmatprep.subr.bf16.mxu0 %v15288_v9  ;;  %14745 = vmatpush3.bf16.msra.mxu1 %v15287_v4  ;;  %v4703_v42 = vrot.slane %v4687_v35, %v15678_v6  ;;  %v16594_v61 = vrot.slane %v5887_v40, %v15678_v6  ;;  %v16597_v14 = vrot.slane %v5888_v41, %v15678_v6  ;;  %v15299_v35 = vld [vmem:[%s15602_s30 + $0x488] sm:$0xff]  }
  0xf3   : > { %v4685_v5 = vrot.slane %v4657_v46, %v15678_v6  ;;  %14746 = vmatprep.subr.bf16.mxu1 %v15289_v38  ;;  %v4728_v17 = vrot.slane %v4492_v23, %v15678_v6  ;;  %v16600_v62 = vrot.slane %v5889_v44, %v15678_v6  ;;  %v4696_v10 = vrot.slane %v4686_v0, %v15678_v6  ;;  %v15298_v38 = vld [vmem:[%s15602_s30 + $0x408] sm:$0xff]   ;;  %v15301_v23 = vld [vmem:[%s15602_s30 + $0x4c0] sm:$0xff]  }
  0xf4   : > { %v13777_v43 = vpack.i.b16 %v16419_v15, %v5828_v54  ;;  %v13778_v36 = vpack.i.b16 %v16424_v60, %v5830_v55  ;;  %v5871_v57 = vpack.i.b16 %v4466_v63, %v5832_v32  ;;  %v5919_v18 = vcombine.high %v16588_v48, %v16594_v61 }
  0xf5   : > { %14707 = vmatpush3.bf16.msra.mxu0 %v15290_v27  ;;  %v4689_v7 = vcombine.high %v4678_v51, %v4685_v5  ;;  %v4688_v1 = vcombine.low %v4678_v51, %v4685_v5  ;;  %v4729_v11 = vcombine.high %v4728_v17, %v4728_v17  ;;  %v5921_v15 = vcombine.high %v16597_v14, %v16600_v62 }
  0xf6   : > { %14708 = vmatprep.subr.bf16.mxu0 %v15292_v52  ;;  %14747 = vmatpush3.bf16.msra.mxu1 %v15291_v53  ;;  %v13779_v60 = vpack.i.b16 %v16456_v49, %v5840_v39  ;;  %v13780_v63 = vpack.i.b16 %v16492_v58, %v5842_v56  ;;  %v5954_v27 = vcombine.low %v13777_v43, %v13778_v36  ;;  %v15300_v49 = vld [vmem:[%s15602_s30 + $0x440] sm:$0xff]   ;;  %v5844_v46 = vunpack.i.h.s16 %v16492_v58  ;;  %v15304_v56 = vld [vmem:[%s15602_s30 + $0x578] sm:$0xff]  }
  0xf7   : > { %v4717_v8 = vrot.slane %v4689_v7, %v15678_v6  ;;  %v4710_v3 = vrot.slane %v4688_v1, %v15678_v6  ;;  %14748 = vmatprep.subr.bf16.mxu1 %v15293_v37  ;;  %v4743_v12 = vrot.slane %v4729_v11, %v15678_v6  ;;  %v5955_v40 = vcombine.low %v5871_v57, %v16432_v30  ;;  %v15302_v58 = vld [vmem:[%s15602_s30 + $0x400] sm:$0xff]  }
  0xf8   : > { %v13785_v41 = vcombine.high %v16429_v21, %v16432_v30  ;;  %v5957_v44 = vcombine.low %v13779_v60, %v13780_v63  ;;  %v5846_v51 = vunpack.i.h.s16 %v16497_v28  ;;  %v5854_v0 = vunpack.i.h.s16 %v16551_v45  ;;  %v15303_v39 = vld [vmem:[%s15602_s30 + $0x480] sm:$0xff]   ;;  %v15309_v63 = vld [vmem:[%s15602_s30 + $0x5f0] sm:$0xff]  }
  0xf9   : > { %14709 = vmatpush3.bf16.msra.mxu0 %v15294_v59  ;;  %v4720_v9 = vcombine.low %v4703_v42, %v4717_v8  ;;  %v4721_v4 = vcombine.high %v4703_v42, %v4717_v8  ;;  %v4718_v13 = vcombine.low %v4696_v10, %v4710_v3  ;;  %v4719_v16 = vcombine.high %v4696_v10, %v4710_v3 }
  0xfa   : > { %14710 = vmatprep.subr.bf16.mxu0 %v15296_v20  ;;  %14749 = vmatpush3.bf16.msra.mxu1 %v15295_v22  ;;  %v4745_v25 = vcombine.high %v4743_v12, %v4743_v12  ;;  %v4736_v52 = vrot.slane %v4728_v17, %v15678_v6  ;;  %v5935_v53 = vrot.slane %v5919_v18, %v15678_v6  ;;  %v5856_v30 = vunpack.i.h.s16 %v16554_v31  ;;  %v15307_v18 = vld [vmem:[%s15602_s30 + $0x5b8] sm:$0xff]  }
  0xfb   : > { %5002 = vmatprep.mubr.bf16.mxu0 %v4720_v9  ;;  %5066 = vmatprep.mubr.bf16.mxu1 %v4721_v4  ;;  %v5949_v21 = vrot.slane %v5921_v15, %v15678_v6  ;;  %v16635_v54 = vrot.slane %v5954_v27, %v15678_v6  ;;  %v16638_v45 = vrot.slane %v5955_v40, %v15678_v6  ;;  %v5858_v32 = vunpack.i.h.s16 %v16561_v29  ;;  %v15310_v4 = vld [vmem:[%s15602_s30 + $0x530] sm:$0xff]  }
  0xfc   : > { %5003 = vmatmul.mubr.bf16.gmra.mxu0 %v4718_v13  ;;  %5067 = vmatmul.mubr.bf16.gmra.mxu1 %v4719_v16  ;;  %v16641_v55 = vrot.slane %v13785_v41, %v15678_v6  ;;  %v5985_v5 = vrot.slane %v5957_v44, %v15678_v6  ;;  %v13781_v37 = vpack.i.b16 %v16497_v28, %v5844_v46  ;;  %v15312_v41 = vld [vmem:[%s15602_s30 + $0x568] sm:$0xff]  }
  0xfd   : > { %5010 = vmatprep.mubr.bf16.mxu0 %v4743_v12  ;;  %5074 = vmatprep.mubr.bf16.mxu1 %v4745_v25  ;;  %v5878_v17 = vpack.i.b16 %v4480_v50, %v5846_v51  ;;  %v13782_v42 = vpack.i.b16 %v16554_v31, %v5854_v0  ;;  %v13783_v59 = vpack.i.b16 %v16561_v29, %v5856_v30  ;;  %v15305_v50 = vld [vmem:[%s15602_s30 + $0x5f8] sm:$0xff]   ;;  %v15314_v46 = vld [vmem:[%s15602_s30 + $0x528] sm:$0xff]   ;;  %v15316_v30 = vld [vmem:[%s15602_s30 + $0x560] sm:$0xff]  }
  0xfe   : > { %14750 = vmatprep.subr.bf16.mxu1 %v15297_v19  ;;  %14711 = vmatpush3.bf16.msra.mxu0 %v15298_v38  ;;  %v4744_v7 = vcombine.high %v4736_v52, %v4736_v52  ;;  %v5918_v1 = vcombine.low %v16588_v48, %v16594_v61  ;;  %v5920_v10 = vcombine.low %v16597_v14, %v16600_v62  ;;  %v15315_v51 = vld [vmem:[%s15602_s30 + $0x5a8] sm:$0xff]  }
  0xff   : > { %14751 = vmatpush3.bf16.msra.mxu1 %v15299_v35  ;;  %14712 = vmatprep.subr.bf16.mxu0 %v15300_v49  ;;  %v13784_v28 = vpack.i.b16 %v16567_v33, %v5858_v32  ;;  %v5952_v11 = vcombine.low %v5935_v53, %v5949_v21  ;;  %v5953_v26 = vcombine.high %v5935_v53, %v5949_v21  ;;  %v15311_v35 = vld [vmem:[%s15602_s30 + $0x5b0] sm:$0xff]   ;;  %v15313_v49 = vld [vmem:[%s15602_s30 + $0x5e8] sm:$0xff]  }
 0x100   : > { %14752 = vmatprep.subr.bf16.mxu1 %v15301_v23  ;;  %v5987_v20 = vcombine.high %v16635_v54, %v16638_v45  ;;  %v5989_v31 = vcombine.high %v16641_v55, %v5985_v5  ;;  %v6022_v29 = vcombine.low %v13781_v37, %v5878_v17  ;;  %v6023_v48 = vcombine.low %v16505_v34, %v16517_v24  ;;  %v15318_v17 = vld [vmem:[%s15602_s30 + $0x520] sm:$0xff]  }
 0x101   : > { %v6024_v61 = vcombine.low %v16527_v47, %v13782_v42  ;;  %v6025_v14 = vcombine.low %v13783_v59, %v13784_v28  ;;  %v5928_v62 = vrot.slane %v5918_v1, %v15678_v6  ;;  %v5942_v22 = vrot.slane %v5920_v10, %v15678_v6  ;;  %v15306_v47 = vld [vmem:[%s15602_s30 + $0x538] sm:$0xff]   ;;  %v13886_v28 = vld.sshfl [vmem:[#allocation2 + $0x40] sm:$0xfa pattern:$0x75316420] }
 0x102   : > { %14713 = vmatpush3.bf16.msra.mxu0 %v15302_v58  ;;  %v6003_v43 = vrot.slane %v5987_v20, %v15678_v6  ;;  %v6017_v34 = vrot.slane %v5989_v31, %v15678_v6  ;;  %v5860_v24 = vunpack.i.h.s16 %v16567_v33  ;;  %v6032_v36 = vrot.slane %v6022_v29, %v15678_v6  ;;  %v15308_v33 = vld [vmem:[%s15602_s30 + $0x570] sm:$0xff]   ;;  %v15317_v58 = vld [vmem:[%s15602_s30 + $0x5e0] sm:$0xff]   ;;  %v13885_v1 = vld.sshfl [vmem:[#allocation2 + $0x38] sm:$0x5 pattern:$0x75316420] }
 0x103   : > { %14753 = vmatpush3.bf16.msra.mxu1 %v15303_v39  ;;  %14778 = vmatprep.subr.bf16.mxu0 %v15304_v56  ;;  %v6039_v57 = vrot.slane %v6023_v48, %v15678_v6  ;;  %v6046_v8 = vrot.slane %v6024_v61, %v15678_v6  ;;  %v6053_v3 = vrot.slane %v6025_v14, %v15678_v6  ;;  %v13884_v39 = vld.sshfl [vmem:[#allocation2 + $0x30] sm:$0x5 pattern:$0x75316420]  ;;  %v15319_v56 = vld [vmem:[%s15602_s30 + $0x5a0] sm:$0xff]   ;;  %v15321_v20 = vld [vmem:[%s15602_s30 + $0x5d8] sm:$0xff]  }
 0x104   : > { %5011 = vmatmul.mubr.bf16.gmra.mxu0 %v4736_v52  ;;  %5075 = vmatmul.mubr.bf16.gmra.mxu1 %v4744_v7  ;;  %v5950_v12 = vcombine.low %v5928_v62, %v5942_v22  ;;  %v5951_v19 = vcombine.high %v5928_v62, %v5942_v22  ;;  %v5986_v15 = vcombine.low %v16635_v54, %v16638_v45  ;;  %v13882_v45 = vld.sshfl [vmem:[#allocation2 + $0x20] sm:$0xfa pattern:$0x75316420]  ;;  %v15322_v22 = vld [vmem:[%s15602_s30 + $0x518] sm:$0xff]  }
 0x105   : > { %6354 = vmatprep.mubr.bf16.mxu0 %v5952_v11  ;;  %6418 = vmatprep.mubr.bf16.mxu1 %v5953_v26  ;;  %v5988_v60 = vcombine.low %v16641_v55, %v5985_v5  ;;  %v6096_v9 = vrot.slane %v5860_v24, %v15678_v6  ;;  %v6020_v13 = vcombine.low %v6003_v43, %v6017_v34  ;;  %v13883_v55 = vld.sshfl [vmem:[#allocation2 + $0x28] sm:$0xfa pattern:$0x75316420] }
 0x106   : > { %14818 = vmatprep.subr.bf16.mxu1 %v15305_v50  ;;  %v6021_v16 = vcombine.high %v6003_v43, %v6017_v34  ;;  %v6055_v38 = vcombine.high %v6032_v36, %v6039_v57  ;;  %v6057_v25 = vcombine.high %v6046_v8, %v6053_v3  ;;  %v5996_v27 = vrot.slane %v5986_v15, %v15678_v6  ;;  %v15320_v50 = vld [vmem:[%s15602_s30 + $0x558] sm:$0xff]   ;;  %v13887_v31 = vld.sshfl [vmem:[#allocation2 + $0x48] sm:$0xfa pattern:$0x75316420] }
 0x107   : > { %v6010_v40 = vrot.slane %v5988_v60, %v15678_v6  ;;  %v6097_v44 = vcombine.high %v6096_v9, %v6096_v9  ;;  %v6054_v23 = vcombine.low %v6032_v36, %v6039_v57  ;;  %v6056_v54 = vcombine.low %v6046_v8, %v6053_v3  ;;  %v13888_v14 = vld.sshfl [vmem:[#allocation2 + $0x50] sm:$0x5 pattern:$0x75316420]  ;;  %v15323_v43 = vld [vmem:[%s15602_s30 + $0x598] sm:$0xff]  }
 0x108   : > { %v6071_v0 = vrot.slane %v6055_v38, %v15678_v6  ;;  %v6085_v52 = vrot.slane %v6057_v25, %v15678_v6  ;;  %v6998_v5 = vcombine.low %v13882_v45, %v13883_v55  ;;  %v6999_v37 = vcombine.high %v13882_v45, %v13883_v55  ;;  %v13889_v34 = vld.sshfl [vmem:[#allocation2 + $0x58] sm:$0x5 pattern:$0x75316420]  ;;  %v15324_v3 = vld [vmem:[%s15602_s30 + $0x550] sm:$0xff]   ;;  %v15329_v45 = vld [vmem:[%s15602_s30 + $0x5c8] sm:$0xff]  }
 0x109   : > { %v6018_v53 = vcombine.low %v5996_v27, %v6010_v40  ;;  %v6019_v21 = vcombine.high %v5996_v27, %v6010_v40  ;;  %v16694_v32 = vrot.slane %v6097_v44, %v15678_v6  ;;  %v6064_v7 = vrot.slane %v6054_v23, %v15678_v6  ;;  %v15327_v23 = vld [vmem:[%s15602_s30 + $0x590] sm:$0xff]  }
 0x10a   : > { %v6088_v42 = vcombine.low %v6071_v0, %v6085_v52  ;;  %v6089_v59 = vcombine.high %v6071_v0, %v6085_v52  ;;  %v6078_v10 = vrot.slane %v6056_v54, %v15678_v6  ;;  %v7006_v11 = vrot.slane %v6998_v5, %v15678_v6  ;;  %v15328_v54 = vld [vmem:[%s15602_s30 + $0x548] sm:$0xff]   ;;  %v13892_v55 = vld.sshfl [vmem:[#allocation2 + $0x70] sm:$0x5 pattern:$0x75316420] }
 0x10b   : > { %v7030_v26 = vcombine.low %v13884_v39, %v13885_v1  ;;  %v7013_v29 = vrot.slane %v6999_v37, %v15678_v6  ;;  %v6113_v48 = vcombine.high %v16694_v32, %v16694_v32  ;;  %v16707_v61 = vrot.slane %v6096_v9, %v15678_v6  ;;  %v15330_v37 = vld [vmem:[%s15602_s30 + $0x508] sm:$0xff]  }
 0x10c   : > { %6355 = vmatmul.mubr.bf16.vlgmr.msra.gmra.mxu0 %v5950_v12  ;;  %6419 = vmatmul.mubr.bf16.vlgmr.msra.gmra.mxu1 %v5951_v19  ;;  %v7014_v62 = vcombine.high %v7006_v11, %v7006_v11  ;;  %v7053_v36 = vcombine.high %v13886_v28, %v13887_v31  ;;  %v6086_v57 = vcombine.low %v6064_v7, %v6078_v10  ;;  %v13890_v12 = vld.sshfl [vmem:[#allocation2 + $0x60] sm:$0xfa pattern:$0x75316420] }
 0x10d   : > { %14779 = vmatpush3.bf16.msra.mxu0 %v15306_v47  ;;  %14819 = vmatpush3.bf16.msra.mxu1 %v15307_v18  ;;  %v7037_v24 = vrot.slane %v7030_v26, %v15678_v6  ;;  %v7052_v47 = vcombine.low %v13886_v28, %v13887_v31  ;;  %v6087_v8 = vcombine.high %v6064_v7, %v6078_v10  ;;  %v13893_v7 = vld.sshfl [vmem:[#allocation2 + $0x78] sm:$0x5 pattern:$0x75316420]  ;;  %v15332_v10 = vld [vmem:[%s15602_s30 + $0x540] sm:$0xff]  }
 0x10e   : > { %14780 = vmatprep.subr.bf16.mxu0 %v15308_v33  ;;  %14820 = vmatprep.subr.bf16.mxu1 %v15309_v63  ;;  %v7084_v19 = vcombine.low %v13888_v14, %v13889_v34  ;;  %v7436_v18 = vcombine.low %v7013_v29, %v7014_v62  ;;  %v13891_v33 = vld.sshfl [vmem:[#allocation2 + $0x68] sm:$0xfa pattern:$0x75316420]  ;;  %v7015_v63 = vcombine.high %v7013_v29, %v7013_v29  ;;  %v15333_v28 = vld [vmem:[%s15602_s30 + $0x5c0] sm:$0xff]  }
 0x10f   : > { %6362 = vmatprep.mubr.bf16.mxu0 %v6020_v13  ;;  %6426 = vmatprep.mubr.bf16.mxu1 %v6021_v16  ;;  %v7060_v9 = vrot.slane %v7052_v47, %v15678_v6  ;;  %v15325_v13 = vld [vmem:[%s15602_s30 + $0x5d0] sm:$0xff]   ;;  %v7107_v38 = vcombine.high %v13890_v12, %v13891_v33  ;;  %v7106_v0 = vcombine.low %v13890_v12, %v13891_v33  ;;  %v13894_v11 = vld.sshfl [vmem:[#allocation2 + $0x80] sm:$0xfa pattern:$0x75316420] }
 0x110   : > { %v7091_v16 = vrot.slane %v7084_v19, %v15678_v6  ;;  %v16718_v25 = vrot.slane %v7436_v18, %v15678_v6  ;;  %v6112_v1 = vcombine.high %v16707_v61, %v16707_v61  ;;  %v7138_v26 = vcombine.low %v13892_v55, %v13893_v7  ;;  %v13896_v62 = vld.sshfl [vmem:[#allocation2 + $0x90] sm:$0x5 pattern:$0x75316420]  ;;  %v15334_v34 = vld [vmem:[%s15602_s30 + $0x500] sm:$0xff]   ;;  %v15336_v19 = vld [vmem:[%s15602_s30 + $0x678] sm:$0xff]  }
 0x111   : > { %14781 = vmatpush3.bf16.msra.mxu0 %v15310_v4  ;;  %14821 = vmatpush3.bf16.msra.mxu1 %v15311_v35  ;;  %v7067_v4 = vrot.slane %v7053_v36, %v15678_v6  ;;  %v7068_v27 = vcombine.high %v7060_v9, %v7060_v9  ;;  %v16728_v39 = vrot.slane %v7106_v0, %v15678_v6  ;;  %v13898_v18 = vld.sshfl [vmem:[#allocation2 + $0xa0] sm:$0xfa pattern:$0x75316420]  ;;  %v15343_v7 = vld [vmem:[%s15602_s30 + $0x6b0] sm:$0xff]  }
 0x112   : > { %14782 = vmatprep.subr.bf16.mxu0 %v15312_v41  ;;  %14822 = vmatprep.subr.bf16.mxu1 %v15313_v49  ;;  %v13899_v9 = vld.sshfl [vmem:[#allocation2 + $0xa8] sm:$0xfa pattern:$0x75316420] }
 0x113   : > { %v7069_v40 = vcombine.high %v7067_v4, %v7067_v4  ;;  %v7370_v41 = vunpack.i.h.s16 %v7067_v4  ;;  %v13910_v49 = vpack.i.b16 %v7067_v4, %v7037_v24  ;;  %v15335_v24 = vld [vmem:[%s15602_s30 + $0x580] sm:$0xff]  }
 0x114   : > { %6363 = vmatmul.mubr.bf16.gmra.mxu0 %v6018_v53  ;;  %6427 = vmatmul.mubr.bf16.gmra.mxu1 %v6019_v21  ;;  %v7372_v53 = vunpack.i.h.s16 %v7068_v27 }
 0x115   : > { %14783 = vmatpush3.bf16.msra.mxu0 %v15314_v46  ;;  %14823 = vmatpush3.bf16.msra.mxu1 %v15315_v51  ;;  %v15326_v46 = vld [vmem:[%s15602_s30 + $0x510] sm:$0xff]   ;;  %v16722_v51 = vrot.slane %v7107_v38, %v15678_v6  ;;  %v7374_v21 = vunpack.i.h.s16 %v7069_v40 }
 0x116   : > { %14784 = vmatprep.subr.bf16.mxu0 %v15316_v30  ;;  %14824 = vmatprep.subr.bf16.mxu1 %v15317_v58  ;;  %v13911_v30 = vpack.i.b16 %v7068_v27, %v7370_v41  ;;  %v7437_v58 = vcombine.low %v7015_v63, %v13910_v49  ;;  %v15338_v41 = vld [vmem:[%s15602_s30 + $0x638] sm:$0xff]  }
 0x117   : > { %6370 = vmatprep.mubr.bf16.mxu0 %v6088_v42  ;;  %6434 = vmatprep.mubr.bf16.mxu1 %v6089_v59  ;;  %v13913_v42 = vpack.i.b16 %v7091_v16, %v7374_v21 }
 0x118   : > { %v7453_v59 = vrot.slane %v7437_v58, %v15678_v6 }
 0x119   : > { %14785 = vmatpush3.bf16.msra.mxu0 %v15318_v17  ;;  %14825 = vmatpush3.bf16.msra.mxu1 %v15319_v56  ;;  %v15331_v17 = vld [vmem:[%s15602_s30 + $0x588] sm:$0xff]   ;;  %v13912_v56 = vpack.i.b16 %v7069_v40, %v7372_v53  ;;  %v7439_v31 = vcombine.low %v13913_v42, %v16722_v51 }
 0x11a   : > { %14786 = vmatprep.subr.bf16.mxu0 %v15320_v50  ;;  %14826 = vmatprep.subr.bf16.mxu1 %v15321_v20  ;;  %v7468_v29 = vcombine.low %v16718_v25, %v7453_v59  ;;  %v7469_v14 = vcombine.high %v16718_v25, %v7453_v59  ;;  %v7214_v25 = vcombine.low %v13898_v18, %v13899_v9  ;;  %v15342_v59 = vld [vmem:[%s15602_s30 + $0x630] sm:$0xff]  }
 0x11b   : > { %v7438_v20 = vcombine.low %v13911_v30, %v13912_v56  ;;  %v7467_v36 = vrot.slane %v7439_v31, %v15678_v6  ;;  %v13901_v31 = vld.sshfl [vmem:[#allocation2 + $0xb8] sm:$0x5 pattern:$0x75316420] }
 0x11c   : > { %6371 = vmatmul.mubr.bf16.gmra.mxu0 %v6086_v57  ;;  %6435 = vmatmul.mubr.bf16.gmra.mxu1 %v6087_v8  ;;  %v7478_v57 = vrot.slane %v7468_v29, %v15678_v6  ;;  %v13897_v8 = vld.sshfl [vmem:[#allocation2 + $0x98] sm:$0x5 pattern:$0x75316420]  ;;  %v7485_v12 = vrot.slane %v7469_v14, %v15678_v6  ;;  %v7222_v0 = vrot.slane %v7214_v25, %v15678_v6 }
 0x11d   : > { %14787 = vmatpush3.bf16.msra.mxu0 %v15322_v22  ;;  %14827 = vmatpush3.bf16.msra.mxu1 %v15323_v43  ;;  %v16746_v22 = vrot.slane %v7138_v26, %v15678_v6  ;;  %v7460_v47 = vrot.slane %v7438_v20, %v15678_v6 }
 0x11e   : > { %14788 = vmatprep.subr.bf16.mxu0 %v15324_v3  ;;  %14828 = vmatprep.subr.bf16.mxu1 %v15325_v13  ;;  %v7230_v56 = vcombine.high %v7222_v0, %v7222_v0 }
 0x11f   : > { %6378 = vmatprep.mubr.bf16.mxu0 %v16694_v32  ;;  %6442 = vmatprep.mubr.bf16.mxu1 %v6113_v48  ;;  %v13922_v32 = vcombine.high %v16728_v39, %v16722_v51  ;;  %v13895_v48 = vld.sshfl [vmem:[#allocation2 + $0x88] sm:$0xfa pattern:$0x75316420]  ;;  %v7470_v33 = vcombine.low %v7460_v47, %v7467_v36  ;;  %v7471_v63 = vcombine.high %v7460_v47, %v7467_v36 }
 0x120   : > { %v7160_v43 = vcombine.low %v13894_v11, %v13895_v48  ;;  %v7161_v3 = vcombine.high %v13894_v11, %v13895_v48  ;;  %v13900_v11 = vld.sshfl [vmem:[#allocation2 + $0xb0] sm:$0x5 pattern:$0x75316420] }
 0x121   : > { %14789 = vmatpush3.bf16.msra.mxu0 %v15326_v46  ;;  %14829 = vmatpush3.bf16.msra.mxu1 %v15327_v23  ;;  %v7499_v27 = vrot.slane %v7471_v63, %v15678_v6  ;;  %v7492_v40 = vrot.slane %v7470_v33, %v15678_v6  ;;  %v15339_v46 = vld [vmem:[%s15602_s30 + $0x6b8] sm:$0xff]   ;;  %v7514_v20 = vrot.slane %v13922_v32, %v15678_v6  ;;  %v13903_v47 = vld.sshfl [vmem:[#allocation2 + $0xc8] sm:$0xfa pattern:$0x75316420] }
 0x122   : > { %14790 = vmatprep.subr.bf16.mxu0 %v15328_v54  ;;  %14830 = vmatprep.subr.bf16.mxu1 %v15329_v45  ;;  %v7175_v4 = vrot.slane %v7161_v3, %v15678_v6  ;;  %v15340_v54 = vld [vmem:[%s15602_s30 + $0x670] sm:$0xff]   ;;  %v15347_v3 = vld [vmem:[%s15602_s30 + $0x6a8] sm:$0xff]  }
 0x123   : > { %v7502_v21 = vcombine.low %v7485_v12, %v7499_v27  ;;  %v7503_v30 = vcombine.high %v7485_v12, %v7499_v27  ;;  %v7500_v58 = vcombine.low %v7478_v57, %v7492_v40  ;;  %v13904_v12 = vld.sshfl [vmem:[#allocation2 + $0xd0] sm:$0x5 pattern:$0x75316420]  ;;  %v15349_v27 = vld [vmem:[%s15602_s30 + $0x6e0] sm:$0xff]  }
 0x124   : > { %v14394_v15 = vpop.f32.mrf.mxu0  ;;  %v14434_v60 = vpop.f32.mrf.mxu1  ;;  %6379 = vmatmul.mubr.bf16.gmra.mxu0 %v16707_v61  ;;  %6443 = vmatmul.mubr.bf16.gmra.mxu1 %v6112_v1  ;;  %v15337_v61 = vld [vmem:[%s15602_s30 + $0x6f8] sm:$0xff]   ;;  %v7177_v49 = vcombine.high %v7175_v4, %v7175_v4  ;;  %v13914_v53 = vpack.i.b16 %v7175_v4, %v16746_v22  ;;  %v15345_v22 = vld [vmem:[%s15602_s30 + $0x6e8] sm:$0xff]  }
 0x125   : > { %14791 = vmatpush3.bf16.msra.mxu0 %v15330_v37  ;;  %14831 = vmatpush3.bf16.msra.mxu1 %v15331_v17  ;;  %v15341_v37 = vld [vmem:[%s15602_s30 + $0x6f0] sm:$0xff]  }
 0x126   : > { %v14395_v35 = vpop.f32.mrf.mxu0  ;;  %v14435_v44 = vpop.f32.mrf.mxu1  ;;  %14792 = vmatprep.subr.bf16.mxu0 %v15332_v10  ;;  %14832 = vmatprep.subr.bf16.mxu1 %v15333_v28  ;;  %v7388_v45 = vunpack.i.h.s16 %v7177_v49 }
 0x127   : > { %v14396_v52 = vadd.f32 %v14395_v35, %v14394_v15  ;;  %v14436_v5 = vadd.f32 %v14435_v44, %v14434_v60  ;;  %v7168_v15 = vrot.slane %v7160_v43, %v15678_v6  ;;  %v7192_v60 = vcombine.low %v13896_v62, %v13897_v8  ;;  %7904 = vmatprep.mubr.bf16.mxu0 %v7502_v21  ;;  %v15344_v62 = vld [vmem:[%s15602_s30 + $0x668] sm:$0xff]   ;;  %v13902_v43 = vld.sshfl [vmem:[#allocation2 + $0xc0] sm:$0xfa pattern:$0x75316420] }
 0x128   : > { %v14397_v13 = vpop.f32.mrf.mxu0  ;;  %v14437_v35 = vpop.f32.mrf.mxu1  ;;  %v7215_v44 = vcombine.high %v13898_v18, %v13899_v9  ;;  %7968 = vmatprep.mubr.bf16.mxu1 %v7503_v30  ;;  %v15346_v8 = vld [vmem:[%s15602_s30 + $0x628] sm:$0xff]   ;;  %v13905_v18 = vld.sshfl [vmem:[#allocation2 + $0xd8] sm:$0x5 pattern:$0x75316420]  ;;  %v7269_v33 = vcombine.high %v13902_v43, %v13903_v47 }
 0x129   : > { %v16740_v50 = vadd.f32 %v14436_v5, %v14396_v52  ;;  %v7176_v16 = vcombine.high %v7168_v15, %v7168_v15  ;;  %v7199_v38 = vrot.slane %v7192_v60, %v15678_v6  ;;  %v7384_v52 = vunpack.i.h.s16 %v7175_v4  ;;  %14793 = vmatpush3.bf16.msra.mxu0 %v15334_v34  ;;  %14833 = vmatpush3.bf16.msra.mxu1 %v15335_v24 }
 0x12a   : > { %v14398_v55 = vpop.f32.mrf.mxu0  ;;  %v7501_v5 = vcombine.high %v7478_v57, %v7492_v40  ;;  %14858 = vmatprep.subr.bf16.mxu0 %v15336_v19  ;;  %14898 = vmatprep.subr.bf16.mxu1 %v15337_v61  ;;  %v16769_v17 = vrot.slane %v7215_v44, %v15678_v6  ;;  %v14438_v42 = vpop.f32.mrf.mxu1  ;;  %v7246_v34 = vcombine.low %v13900_v11, %v13901_v31  ;;  %v13907_v40 = vld.sshfl [vmem:[#allocation2 + $0xe8] sm:$0xfa pattern:$0x75316420] }
 0x12b   : > { %v7386_v23 = vunpack.i.h.s16 %v7176_v16  ;;  %v13915_v1 = vpack.i.b16 %v7176_v16, %v7384_v52  ;;  %v13917_v28 = vpack.i.b16 %v7199_v38, %v7388_v45  ;;  %v14399_v29 = vadd.f32 %v14398_v55, %v14397_v13  ;;  %v13906_v38 = vld.sshfl [vmem:[#allocation2 + $0xe0] sm:$0xfa pattern:$0x75316420] }
 0x12c   : > { %7905 = vmatmul.mubr.bf16.vlgmr.msra.gmra.mxu0 %v7500_v58  ;;  %7969 = vmatmul.mubr.bf16.vlgmr.msra.gmra.mxu1 %v7501_v5  ;;  %v7507_v26 = vcombine.low %v16769_v17, %v7230_v56  ;;  %v14439_v36 = vadd.f32 %v14438_v42, %v14437_v35  ;;  %v7268_v19 = vcombine.low %v13902_v43, %v13903_v47  ;;  %v15348_v35 = vld [vmem:[%s15602_s30 + $0x660] sm:$0xff]   ;;  %v219_v47 = vld [vmem:[%s19606_s0 + $0x1e8] sm:$0x1] }
 0x12d   : > { %v13916_v10 = vpack.i.b16 %v7177_v49, %v7386_v23  ;;  %14859 = vmatpush3.bf16.msra.mxu0 %v15338_v41  ;;  %14899 = vmatpush3.bf16.msra.mxu1 %v15339_v46  ;;  %v7505_v48 = vcombine.low %v13914_v53, %v13915_v1  ;;  %v7231_v15 = vcombine.high %v16769_v17, %v16769_v17  ;;  %v15350_v53 = vld [vmem:[%s15602_s30 + $0x620] sm:$0xff]   ;;  %v15358_v17 = vld [vmem:[%s15602_s30 + $0x610] sm:$0xff]  }
 0x12e   : > { %14860 = vmatprep.subr.bf16.mxu0 %v15340_v54  ;;  %14900 = vmatprep.subr.bf16.mxu1 %v15341_v37  ;;  %v7535_v24 = vrot.slane %v7507_v26, %v15678_v6  ;;  %v16792_v60 = vrot.slane %v7246_v34, %v15678_v6  ;;  %v16794_v63 = vadd.f32 %v14439_v36, %v14399_v29  ;;  %v15351_v58 = vld [vmem:[%s15602_s30 + $0x6a0] sm:$0xff]   ;;  %v220_v36 = vld [vmem:[%s19606_s0 + $0x1f0] sm:$0x1] }
 0x12f   : > { %v7506_v14 = vcombine.low %v13916_v10, %v13917_v28  ;;  %v7521_v32 = vrot.slane %v7505_v48, %v15678_v6  ;;  %v7276_v41 = vrot.slane %v7268_v19, %v15678_v6  ;;  %v7283_v49 = vrot.slane %v7269_v33, %v15678_v6  ;;  %v218_v43 = vld [vmem:[%s19606_s0 + $0x1e0] sm:$0x1]  ;;  %v15357_v19 = vld [vmem:[%s15602_s30 + $0x6d0] sm:$0xff]  }
 0x130   : > { %v7300_v21 = vcombine.low %v13904_v12, %v13905_v18  ;;  %v7322_v55 = vcombine.low %v13906_v38, %v13907_v40  ;;  %v7323_v11 = vcombine.high %v13906_v38, %v13907_v40  ;;  %v15356_v12 = vld [vmem:[%s15602_s30 + $0x650] sm:$0xff]   ;;  %v290_v18 = vmax.f32 %v218_v43, 0.0  ;;  %v15364_v43 = vld [vmem:[%s15602_s30 + $0x640] sm:$0xff]  }
 0x131   : > { %v7528_v57 = vrot.slane %v7506_v14, %v15678_v6  ;;  %14861 = vmatpush3.bf16.msra.mxu0 %v15342_v59  ;;  %14901 = vmatpush3.bf16.msra.mxu1 %v15343_v7  ;;  %v7537_v13 = vcombine.high %v7514_v20, %v7521_v32  ;;  %v7536_v16 = vcombine.low %v7514_v20, %v7521_v32  ;;  %v7398_v42 = vunpack.i.h.s16 %v7283_v49  ;;  %v15352_v59 = vld [vmem:[%s15602_s30 + $0x658] sm:$0xff]   ;;  %v583_v33 = vld [vmem:[#allocation2 + $0xf0] sm:$0x11] }
 0x132   : > { %14862 = vmatprep.subr.bf16.mxu0 %v15344_v62  ;;  %14902 = vmatprep.subr.bf16.mxu1 %v15345_v22  ;;  %v7284_v54 = vcombine.high %v7276_v41, %v7276_v41  ;;  %v7285_v45 = vcombine.high %v7283_v49, %v7283_v49  ;;  %v7307_v56 = vrot.slane %v7300_v21, %v15678_v6  ;;  %v15353_v20 = vld [vmem:[%s15602_s30 + $0x6d8] sm:$0xff]  }
 0x133   : > { %v7539_v61 = vcombine.high %v7528_v57, %v7535_v24  ;;  %v7538_v25 = vcombine.low %v7528_v57, %v7535_v24  ;;  %v7553_v0 = vrot.slane %v7537_v13, %v15678_v6  ;;  %v7546_v23 = vrot.slane %v7536_v16, %v15678_v6  ;;  %v15354_v62 = vld [vmem:[%s15602_s30 + $0x618] sm:$0xff]  }
 0x134   : > { %v7400_v26 = vunpack.i.h.s16 %v7284_v54  ;;  %v7330_v31 = vrot.slane %v7322_v55, %v15678_v6  ;;  %v7402_v29 = vunpack.i.h.s16 %v7285_v45  ;;  %v13918_v48 = vpack.i.b16 %v7283_v49, %v16792_v60  ;;  %v15355_v22 = vld [vmem:[%s15602_s30 + $0x698] sm:$0xff]  }
 0x135   : > { %v7567_v52 = vrot.slane %v7539_v61, %v15678_v6  ;;  %v7560_v30 = vrot.slane %v7538_v25, %v15678_v6  ;;  %14863 = vmatpush3.bf16.msra.mxu0 %v15346_v8  ;;  %14903 = vmatpush3.bf16.msra.mxu1 %v15347_v3  ;;  %v13919_v14 = vpack.i.b16 %v7284_v54, %v7398_v42  ;;  %v221_v32 = vld [vmem:[%s19606_s0 + $0x1f8] sm:$0x1]  ;;  %v291_v60 = vmax.f32 %v219_v47, 0.0  ;;  %v15360_v54 = vld [vmem:[%s15602_s30 + $0x648] sm:$0xff]  }
 0x136   : > { %14864 = vmatprep.subr.bf16.mxu0 %v15348_v35  ;;  %14904 = vmatprep.subr.bf16.mxu1 %v15349_v27  ;;  %v7337_v34 = vrot.slane %v7323_v11, %v15678_v6  ;;  %v13920_v24 = vpack.i.b16 %v7285_v45, %v7400_v26  ;;  %v13921_v8 = vpack.i.b16 %v7307_v56, %v7402_v29  ;;  %v586_v27 = vld [vmem:[#allocation2 + $0xf8] sm:$0x11] }
 0x137   : > { %v7570_v5 = vcombine.low %v7553_v0, %v7567_v52  ;;  %v7571_v37 = vcombine.high %v7553_v0, %v7567_v52  ;;  %v7568_v10 = vcombine.low %v7546_v23, %v7560_v30  ;;  %v7569_v28 = vcombine.high %v7546_v23, %v7560_v30  ;;  %v15359_v23 = vld [vmem:[%s15602_s30 + $0x690] sm:$0xff]  }
 0x138   : > { %v16781_v51 = vpop.f32.mrf.mxu0  ;;  %v16783_v39 = vpop.f32.mrf.mxu1  ;;  %v7572_v3 = vcombine.low %v7231_v15, %v13918_v48  ;;  %v7573_v16 = vcombine.low %v13919_v14, %v13920_v24  ;;  %v13923_v38 = vcombine.high %v7330_v31, %v7337_v34  ;;  %v7574_v25 = vcombine.low %v13921_v8, %v7337_v34  ;;  %v15362_v14 = vld [vmem:[%s15602_s30 + $0x608] sm:$0xff]   ;;  %v15365_v34 = vld [vmem:[%s15602_s30 + $0x6c0] sm:$0xff]  }
 0x139   : > { %7912 = vmatprep.mubr.bf16.mxu0 %v7570_v5  ;;  %7976 = vmatprep.mubr.bf16.mxu1 %v7571_v37  ;;  %v14372_v15 = vpack.c.bf16 %v291_v60, %v290_v18  ;;  %v15361_v37 = vld [vmem:[%s15602_s30 + $0x6c8] sm:$0xff]   ;;  %v14020_v24 = vld.sshfl [vmem:[#allocation2 + $0x40] sm:$0xff pattern:$0x75316420] }
 0x13a   : > { %v14401_v9 = vpop.f32.mrf.mxu0  ;;  %v16796_v4 = vpop.f32.mrf.mxu1  ;;  %7913 = vmatmul.mubr.bf16.gmra.mxu0 %v7568_v10  ;;  %7977 = vmatmul.mubr.bf16.gmra.mxu1 %v7569_v28  ;;  %v7582_v35 = vrot.slane %v7572_v3, %v15678_v6  ;;  %v7589_v0 = vrot.slane %v7573_v16, %v15678_v6  ;;  %v7603_v52 = vrot.slane %v13923_v38, %v15678_v6 }
 0x13b   : > { %v14402_v57 = vadd.f32 %v14401_v9, %v16781_v51  ;;  %14865 = vmatpush3.bf16.msra.mxu0 %v15350_v53  ;;  %14905 = vmatpush3.bf16.msra.mxu1 %v15351_v58  ;;  %v292_v51 = vmax.f32 %v220_v36, 0.0  ;;  %v293_v9 = vmax.f32 %v221_v32, 0.0  ;;  %v14442_v40 = vadd.f32 %v16796_v4, %v16783_v39 }
 0x13c   : > { %v16802_v44 = vpop.f32.mrf.mxu0  ;;  %v16804_v46 = vpop.f32.mrf.mxu1  ;;  %14866 = vmatprep.subr.bf16.mxu0 %v15352_v59  ;;  %14906 = vmatprep.subr.bf16.mxu1 %v15353_v20  ;;  %v7596_v30 = vrot.slane %v7574_v25, %v15678_v6  ;;  %v584_v58 = vsel %vm16098_vm6, %v14372_v15, %v583_v33  ;;  %v7605_v55 = vcombine.high %v7582_v35, %v7589_v0  ;;  %v14023_v33 = vld.sshfl [vmem:[#allocation2 + $0x68] sm:$0xff pattern:$0x75316420]  ;;  %v15366_v25 = vld [vmem:[%s15602_s30 + $0x600] sm:$0xff]  }
 0x13d   : > { %v14373_v53 = vpack.c.bf16 %v293_v9, %v292_v51  ;;  %v16852_v39 = vadd.f32 %v14442_v40, %v14402_v57  ;;  %v7604_v5 = vcombine.low %v7582_v35, %v7589_v0  ;;  %585 = vst [vmem:[#allocation2 + $0xf0] sm:$0x11] %v584_v58 }
 0x13e   : > { %v14404_v7 = vpop.f32.mrf.mxu0  ;;  %v16814_v1 = vpop.f32.mrf.mxu1  ;;  %v7607_v56 = vcombine.high %v7596_v30, %v7603_v52  ;;  %v7606_v42 = vcombine.low %v7596_v30, %v7603_v52  ;;  %v7621_v11 = vrot.slane %v7605_v55, %v15678_v6 }
 0x13f   : > { %v14405_v21 = vadd.f32 %v14404_v7, %v16802_v44  ;;  %14867 = vmatpush3.bf16.msra.mxu0 %v15354_v62  ;;  %14907 = vmatpush3.bf16.msra.mxu1 %v15355_v22  ;;  %v587_v44 = vsel %vm16098_vm6, %v14373_v53, %v586_v27  ;;  %v14445_v59 = vadd.f32 %v16814_v1, %v16804_v46  ;;  %v15363_v62 = vld [vmem:[%s15602_s30 + $0x688] sm:$0xff]  }
 0x140   : > { %14868 = vmatprep.subr.bf16.mxu0 %v15356_v12  ;;  %14908 = vmatprep.subr.bf16.mxu1 %v15357_v19  ;;  %588 = vst [vmem:[#allocation2 + $0xf8] sm:$0x11] %v587_v44  ;;  %v7614_v26 = vrot.slane %v7604_v5, %v15678_v6  ;;  %v7635_v29 = vrot.slane %v7607_v56, %v15678_v6  ;;  %v14021_v12 = vld.sshfl [vmem:[#allocation2 + $0x48] sm:$0xff pattern:$0x75316420] }
 0x141   : > { %v7628_v48 = vrot.slane %v7606_v42, %v15678_v6  ;;  %v16865_v46 = vadd.f32 %v14445_v59, %v14405_v21  ;;  %v14022_v19 = vld.sshfl [vmem:[#allocation2 + $0x60] sm:$0xff pattern:$0x75316420]  ;;  %v8522_v16 = vcombine.high %v14020_v24, %v14021_v12  ;;  %v14025_v21 = vld.sshfl [vmem:[#allocation2 + $0x88] sm:$0xff pattern:$0x75316420] }
 0x142   : > { %v7638_v32 = vcombine.low %v7621_v11, %v7635_v29  ;;  %v7639_v57 = vcombine.high %v7621_v11, %v7635_v29  ;;  %v8553_v35 = vcombine.low %v14022_v19, %v14023_v33 }
 0x143   : > { %v14406_v13 = vpop.f32.mrf.mxu0  ;;  %v14446_v61 = vpop.f32.mrf.mxu1  ;;  %14869 = vmatpush3.bf16.msra.mxu0 %v15358_v17  ;;  %14909 = vmatpush3.bf16.msra.mxu1 %v15359_v23  ;;  %v7636_v8 = vcombine.low %v7614_v26, %v7628_v48  ;;  %v7637_v3 = vcombine.high %v7614_v26, %v7628_v48  ;;  %v8554_v17 = vcombine.high %v14022_v19, %v14023_v33  ;;  %v15368_v23 = vld [vmem:[%s15602_s30 + $0x778] sm:$0xff]   ;;  %v14027_v33 = vld.sshfl [vmem:[#allocation2 + $0xa8] sm:$0xff pattern:$0x75316420] }
 0x144   : > { %14870 = vmatprep.subr.bf16.mxu0 %v15360_v54  ;;  %14910 = vmatprep.subr.bf16.mxu1 %v15361_v37  ;;  %v13908_v9 = vld.sshfl [vmem:[#allocation2 + $0xf0] sm:$0x5 pattern:$0x75316420]  ;;  %v16881_v52 = vrot.slane %v8522_v16, %v15678_v6  ;;  %v16885_v30 = vrot.slane %v8553_v35, %v15678_v6  ;;  %v15369_v54 = vld [vmem:[%s15602_s30 + $0x7f8] sm:$0xff]  }
 0x145   : > { %v14407_v41 = vpop.f32.mrf.mxu0  ;;  %v14447_v49 = vpop.f32.mrf.mxu1  ;;  %7920 = vmatprep.mubr.bf16.mxu0 %v7638_v32  ;;  %7984 = vmatprep.mubr.bf16.mxu1 %v7639_v57  ;;  %v16888_v58 = vrot.slane %v8554_v17, %v15678_v6  ;;  %v14028_v35 = vld.sshfl [vmem:[#allocation2 + $0xc0] sm:$0xff pattern:$0x75316420]  ;;  %v14029_v17 = vld.sshfl [vmem:[#allocation2 + $0xc8] sm:$0xff pattern:$0x75316420] }
 0x146   : > { %v14408_v7 = vadd.f32 %v14407_v41, %v14406_v13  ;;  %v14448_v20 = vadd.f32 %v14447_v49, %v14446_v61  ;;  %v14024_v13 = vld.sshfl [vmem:[#allocation2 + $0x80] sm:$0xff pattern:$0x75316420]  ;;  %v8521_v61 = vcombine.low %v14020_v24, %v14021_v12  ;;  %7921 = vmatmul.mubr.bf16.gmra.mxu0 %v7636_v8  ;;  %7985 = vmatmul.mubr.bf16.gmra.mxu1 %v7637_v3  ;;  %v19611_v59 = vunpack.i.h.s16 %v16885_v30 }
 0x147   : > { %v14409_v4 = vpop.f32.mrf.mxu0  ;;  %v14449_v45 = vpop.f32.mrf.mxu1  ;;  %v13909_v41 = vld.sshfl [vmem:[#allocation2 + $0xf8] sm:$0x5 pattern:$0x75316420]  ;;  %v15367_v49 = vld [vmem:[%s15602_s30 + $0x680] sm:$0xff]   ;;  %14871 = vmatpush3.bf16.msra.mxu0 %v15362_v14  ;;  %14911 = vmatpush3.bf16.msra.mxu1 %v15363_v62  ;;  %v16897_v5 = vcombine.high %v16881_v52, %v16881_v52  ;;  %v8585_v44 = vcombine.low %v14024_v13, %v14025_v21  ;;  %v16902_v56 = vcombine.high %v16885_v30, %v16885_v30  ;;  %v8741_v11 = vunpack.i.h.s16 %v16888_v58 }
 0x148   : > { %v16869_v47 = vadd.f32 %v14448_v20, %v14408_v7  ;;  %v16878_v0 = vrot.slane %v8521_v61, %v15678_v6  ;;  %v7354_v53 = vcombine.low %v13908_v9, %v13909_v41  ;;  %14872 = vmatprep.subr.bf16.mxu0 %v15364_v43  ;;  %14912 = vmatprep.subr.bf16.mxu1 %v15365_v34 }
 0x149   : > { %v14410_v10 = vpop.f32.mrf.mxu0  ;;  %v14450_v28 = vpop.f32.mrf.mxu1  ;;  %v16906_v42 = vcombine.high %v16888_v58, %v16888_v58  ;;  %v14034_v26 = vpack.i.b16 %v16885_v30, %v16897_v5  ;;  %v8743_v29 = vunpack.i.h.s16 %v16902_v56  ;;  %v14035_v48 = vpack.i.b16 %v16888_v58, %v19611_v59 }
 0x14a   : > { %v14411_v31 = vadd.f32 %v14410_v10, %v14409_v4  ;;  %19640 = vst [vmem:[#allocation8_spill] sm:$0xff] %v16869_v47  ;;  %v14451_v36 = vadd.f32 %v14450_v28, %v14449_v45  ;;  %v16893_v55 = vcombine.high %v16878_v0, %v16878_v0  ;;  %v7361_v37 = vrot.slane %v7354_v53, %v15678_v6 }
 0x14b   : > { %v14412_v1 = vpop.f32.mrf.mxu0  ;;  %v14452_v22 = vpop.f32.mrf.mxu1  ;;  %v16914_v28 = vrot.slane %v8585_v44, %v15678_v6  ;;  %v8805_v20 = vcombine.low %v16878_v0, %v16881_v52  ;;  %14873 = vmatpush3.bf16.msra.mxu0 %v15366_v25  ;;  %14913 = vmatpush3.bf16.msra.mxu1 %v15367_v49  ;;  %v8586_v14 = vcombine.high %v14024_v13, %v14025_v21 }
 0x14c   : > { %v16871_v38 = vadd.f32 %v14451_v36, %v14411_v31  ;;  %v7410_v31 = vunpack.i.l.s16 %v7361_v37  ;;  %v8806_v43 = vcombine.low %v16893_v55, %v14034_v26  ;;  %14938 = vmatprep.subr.bf16.mxu0 %v15368_v23  ;;  %14978 = vmatprep.subr.bf16.mxu1 %v15369_v54  ;;  %v14037_v32 = vpack.i.b16 %v16906_v42, %v8743_v29 }
 0x14d   : > { %v14413_v18 = vpop.f32.mrf.mxu0  ;;  %v14453_v60 = vpop.f32.mrf.mxu1  ;;  %v8815_v34 = vrot.slane %v8805_v20, %v15678_v6  ;;  %v16936_v57 = vrot.slane %v8586_v14, %v15678_v6  ;;  %v16946_v13 = vcombine.high %v16914_v28, %v16914_v28  ;;  %v8649_v20 = vcombine.low %v14028_v35, %v14029_v17 }
 0x14e   : > { %19641 = vst [vmem:[#allocation9_spill] sm:$0xff] %v16871_v38  ;;  %v16873_v51 = vadd.f32 %v14413_v18, %v14412_v1  ;;  %v14454_v15 = vadd.f32 %v14453_v60, %v14452_v22  ;;  %v14036_v22 = vpack.i.b16 %v16902_v56, %v8741_v11  ;;  %v7646_v36 = vrot.slane %v7410_v31, %v15678_v6  ;;  %v14026_v60 = vld.sshfl [vmem:[#allocation2 + $0xa0] sm:$0xff pattern:$0x75316420] }
 0x14f   : > { %v14415_v27 = vpop.f32.mrf.mxu0  ;;  %v14455_v40 = vpop.f32.mrf.mxu1  ;;  %v8822_v18 = vrot.slane %v8806_v43, %v15678_v6  ;;  %v8808_v25 = vcombine.low %v14037_v32, %v16914_v28  ;;  %v16985_v32 = vrot.slane %v8649_v20, %v15678_v6 }
 0x150   : > { %v8807_v19 = vcombine.low %v14035_v48, %v14036_v22  ;;  %v16949_v61 = vadd.f32 %v14454_v15, %v16873_v51  ;;  %v7647_v16 = vcombine.high %v7646_v36, %v7646_v36  ;;  %v7654_v9 = vrot.slane %v7646_v36, %v15678_v6 }
 0x151   : > { %v14416_v4 = vpop.f32.mrf.mxu0  ;;  %v14456_v45 = vpop.f32.mrf.mxu1  ;;  %v16955_v27 = vcombine.high %v16936_v57, %v16936_v57  ;;  %v8837_v23 = vcombine.low %v8815_v34, %v8822_v18  ;;  %v8838_v51 = vcombine.high %v8815_v34, %v8822_v18  ;;  %v8617_v15 = vcombine.low %v14026_v60, %v14027_v33 }
 0x152   : > { %19642 = vst [vmem:[#allocation10_spill] sm:$0xff] %v16949_v61  ;;  %v8829_v49 = vrot.slane %v8807_v19, %v15678_v6  ;;  %v7661_v53 = vrot.slane %v7647_v16, %v15678_v6  ;;  %v7662_v21 = vcombine.high %v7654_v9, %v7654_v9  ;;  %v8836_v54 = vrot.slane %v8808_v25, %v15678_v6  ;;  %v15373_v61 = vld [vmem:[%s15602_s30 + $0x7f0] sm:$0xff]  }
 0x153   : > { %v16909_v7 = vpop.f32.mrf.mxu0  ;;  %v16911_v10 = vpop.f32.mrf.mxu1  ;;  %v8618_v4 = vcombine.high %v14026_v60, %v14027_v33  ;;  %v8854_v37 = vrot.slane %v8838_v51, %v15678_v6  ;;  %v16970_v11 = vrot.slane %v8837_v23, %v15678_v6  ;;  %v16973_v26 = vrot.slane %v8617_v15, %v15678_v6 }
 0x154   : > { %7928 = vmatprep.mubr.bf16.mxu0 %v7661_v53  ;;  %v7663_v31 = vcombine.high %v7661_v53, %v7661_v53  ;;  %v8839_v29 = vcombine.low %v8829_v49, %v8836_v54  ;;  %v8840_v48 = vcombine.high %v8829_v49, %v8836_v54  ;;  %v8650_v36 = vcombine.high %v14028_v35, %v14029_v17  ;;  %v15370_v54 = vld [vmem:[%s15602_s30 + $0x738] sm:$0xff]  }
 0x155   : > { %v16925_v62 = vpop.f32.mrf.mxu0  ;;  %v16927_v1 = vpop.f32.mrf.mxu1  ;;  %v16976_v14 = vrot.slane %v8618_v4, %v15678_v6  ;;  %7929 = vmatmul.mubr.bf16.gmra.mxu0 %v7654_v9  ;;  %v8633_v34 = vcombine.high %v16973_v26, %v16973_v26  ;;  %v19610_v19 = vunpack.i.h.s16 %v16973_v26  ;;  %v14038_v49 = vpack.i.b16 %v16973_v26, %v16955_v27 }
 0x156   : > { %7992 = vmatprep.mubr.bf16.mxu1 %v7663_v31  ;;  %v8868_v18 = vrot.slane %v8840_v48, %v15678_v6  ;;  %v16990_v60 = vrot.slane %v8839_v29, %v15678_v6  ;;  %v17000_v35 = vrot.slane %v8650_v36, %v15678_v6  ;;  %v15372_v31 = vld [vmem:[%s15602_s30 + $0x770] sm:$0xff]   ;;  %v8873_v36 = vcombine.low %v16936_v57, %v16946_v13 }
 0x157   : > { %v16939_v3 = vpop.f32.mrf.mxu0  ;;  %v16941_v12 = vpop.f32.mrf.mxu1  ;;  %v8634_v33 = vcombine.high %v16976_v14, %v16976_v14  ;;  %v8755_v16 = vunpack.i.h.s16 %v16976_v14  ;;  %7993 = vmatmul.mubr.bf16.gmra.mxu1 %v7662_v21  ;;  %v8757_v17 = vunpack.i.h.s16 %v8633_v34  ;;  %v14039_v23 = vpack.i.b16 %v16976_v14, %v19610_v19 }
 0x158   : > { %v8871_v51 = vcombine.low %v8854_v37, %v8868_v18  ;;  %v8872_v15 = vcombine.high %v8854_v37, %v8868_v18  ;;  %v8869_v53 = vcombine.low %v16970_v11, %v16990_v60  ;;  %v8870_v21 = vcombine.high %v16970_v11, %v16990_v60  ;;  %v222_v37 = vld [vmem:[%s19606_s0 + $0x200] sm:$0xff]  ;;  %v223_v11 = vld [vmem:[%s19606_s0 + $0x208] sm:$0xff]  ;;  %v224_v18 = vld [vmem:[%s19606_s0 + $0x210] sm:$0xff] }
 0x159   : > { %v16957_v40 = vpop.f32.mrf.mxu0  ;;  %v16959_v41 = vpop.f32.mrf.mxu1  ;;  %v14040_v29 = vpack.i.b16 %v8633_v34, %v8755_v16  ;;  %v14041_v48 = vpack.i.b16 %v8634_v33, %v8757_v17  ;;  %v8874_v19 = vcombine.low %v14038_v49, %v14039_v23  ;;  %v15371_v34 = vld [vmem:[%s15602_s30 + $0x7b8] sm:$0xff]   ;;  %v8876_v60 = vcombine.low %v16985_v32, %v17000_v35 }
 0x15a   : > { %9273 = vmatprep.mubr.bf16.mxu0 %v8871_v51  ;;  %9337 = vmatprep.mubr.bf16.mxu1 %v8872_v15  ;;  %v225_v33 = vld [vmem:[%s19606_s0 + $0x218] sm:$0xff]  ;;  %v294_v16 = vmax.f32 %v222_v37, 0.0  ;;  %v295_v17 = vmax.f32 %v223_v11, 0.0  ;;  %v296_v49 = vmax.f32 %v224_v18, 0.0  ;;  %v8883_v51 = vrot.slane %v8873_v36, %v15678_v6 }
 0x15b   : > { %v16964_v45 = vpop.f32.mrf.mxu0  ;;  %v16966_v44 = vpop.f32.mrf.mxu1  ;;  %v8875_v8 = vcombine.low %v14040_v29, %v14041_v48  ;;  %v8890_v15 = vrot.slane %v8874_v19, %v15678_v6  ;;  %v297_v24 = vmax.f32 %v225_v33, 0.0  ;;  %v8904_v38 = vrot.slane %v8876_v60, %v15678_v6  ;;  %v14031_v37 = vld.sshfl [vmem:[#allocation2 + $0xe8] sm:$0xff pattern:$0x75316420]  ;;  %v15374_v19 = vld [vmem:[%s15602_s30 + $0x730] sm:$0xff]  }
 0x15c   : > { %v14374_v47 = vpack.c.bf16 %v295_v17, %v294_v16  ;;  %v17044_v11 = vcombine.high %v16985_v32, %v16985_v32  ;;  %v10103_v18 = vunpack.i.h.s16 %v16893_v55  ;;  %v15375_v16 = vld [vmem:[%s15602_s30 + $0x7b0] sm:$0xff]   ;;  %v17056_v17 = vcombine.high %v17000_v35, %v17000_v35 }
 0x15d   : > { %v16978_v22 = vpop.f32.mrf.mxu0  ;;  %v16980_v43 = vpop.f32.mrf.mxu1  ;;  %9274 = vmatmul.mubr.bf16.vlgmr.msra.gmra.mxu0 %v8869_v53  ;;  %v8897_v48 = vrot.slane %v8875_v8, %v15678_v6  ;;  %v8906_v36 = vcombine.high %v8883_v51, %v8890_v15  ;;  %v8905_v33 = vcombine.low %v8883_v51, %v8890_v15  ;;  %v14375_v60 = vpack.c.bf16 %v297_v24, %v296_v49  ;;  %v15377_v51 = vld [vmem:[%s15602_s30 + $0x7e8] sm:$0xff]  }
 0x15e   : > { %14939 = vmatpush3.bf16.msra.mxu0 %v15370_v54  ;;  %589 = vst [vmem:[#allocation2 + $0x100] sm:$0xff] %v14374_v47  ;;  %v15376_v54 = vld [vmem:[%s15602_s30 + $0x768] sm:$0xff]   ;;  %v10113_v49 = vunpack.i.h.s16 %v16914_v28 }
 0x15f   : > { %v16995_v9 = vpop.f32.mrf.mxu0  ;;  %v16997_v25 = vpop.f32.mrf.mxu1  ;;  %9338 = vmatmul.mubr.bf16.vlgmr.msra.gmra.mxu1 %v8870_v21  ;;  %14940 = vmatprep.subr.bf16.mxu0 %v15372_v31  ;;  %v8908_v8 = vcombine.high %v8897_v48, %v8904_v38  ;;  %v8922_v24 = vrot.slane %v8906_v36, %v15678_v6  ;;  %v8907_v47 = vcombine.low %v8897_v48, %v8904_v38  ;;  %v19652_v31 = vunpack.i.h.s16 %v16878_v0  ;;  %v15378_v36 = vld [vmem:[%s15602_s30 + $0x728] sm:$0xff]  }
 0x160   : > { %19643 = vst [vmem:[#allocation11_spill] sm:$0xff] %v16997_v25  ;;  %590 = vst [vmem:[#allocation2 + $0x108] sm:$0xff] %v14375_v60  ;;  %14979 = vmatpush3.bf16.msra.mxu1 %v15371_v34  ;;  %v17090_v0 = vpack.i.b16 %v16897_v5, %v10103_v18 }
 0x161   : > { %v17012_v4 = vpop.f32.mrf.mxu0  ;;  %v17014_v20 = vpop.f32.mrf.mxu1  ;;  %14980 = vmatprep.subr.bf16.mxu1 %v15373_v61  ;;  %v8936_v28 = vrot.slane %v8908_v8, %v15678_v6  ;;  %v8929_v34 = vrot.slane %v8907_v47, %v15678_v6 }
 0x162   : > { %19644 = vst [vmem:[#allocation12_spill] sm:$0xff] %v17014_v20  ;;  %14941 = vmatpush3.bf16.msra.mxu0 %v15374_v19 }
 0x163   : > { %v17034_v23 = vpop.f32.mrf.mxu0  ;;  %v17036_v59 = vpop.f32.mrf.mxu1  ;;  %v8940_v18 = vcombine.high %v8922_v24, %v8936_v28  ;;  %14942 = vmatprep.subr.bf16.mxu0 %v15376_v54 }
 0x164   : > { %19645 = vst [vmem:[#allocation13_spill] sm:$0xff] %v17034_v23  ;;  %19646 = vst [vmem:[#allocation14_spill] sm:$0xff] %v17036_v59  ;;  %v8681_v23 = vcombine.low %v14030_v2, %v14031_v37  ;;  %14981 = vmatpush3.bf16.msra.mxu1 %v15375_v16  ;;  %v15382_v16 = vld [vmem:[%s15602_s30 + $0x720] sm:$0xff]  }
 0x165   : > { %v17047_v59 = vpop.f32.mrf.mxu0  ;;  %v17049_v29 = vpop.f32.mrf.mxu1  ;;  %9345 = vmatprep.mubr.bf16.mxu1 %v8940_v18  ;;  %v14032_v54 = vld.sshfl [vmem:[#allocation2 + $0x100] sm:$0xff pattern:$0x75316420]  ;;  %14982 = vmatprep.subr.bf16.mxu1 %v15377_v51 }
 0x166   : > { %19647 = vst [vmem:[#allocation15_spill] sm:$0xff] %v17047_v59  ;;  %19648 = vst [vmem:[#allocation16_spill] sm:$0xff] %v17049_v29  ;;  %v8682_v59 = vcombine.high %v14030_v2, %v14031_v37  ;;  %v10105_v29 = vunpack.i.h.s16 %v16897_v5  ;;  %v8915_v2 = vrot.slane %v8905_v33, %v15678_v6  ;;  %v17069_v15 = vrot.slane %v8681_v23, %v15678_v6  ;;  %v15379_v33 = vld [vmem:[%s15602_s30 + $0x7a8] sm:$0xff]  }
 0x167   : > { %v17059_v53 = vpop.f32.mrf.mxu0  ;;  %v17061_v20 = vpop.f32.mrf.mxu1  ;;  %v17077_v37 = vpack.i.b16 %v16881_v52, %v19652_v31  ;;  %v19655_v23 = vunpack.i.h.s16 %v16881_v52  ;;  %v8939_v5 = vcombine.low %v8922_v24, %v8936_v28  ;;  %14943 = vmatpush3.bf16.msra.mxu0 %v15378_v36  ;;  %v10117_v36 = vunpack.i.h.s16 %v16946_v13 }
 0x168   : > { %19649 = vst [vmem:[#allocation17_spill] sm:$0xff] %v17059_v53  ;;  %19650 = vst [vmem:[#allocation18_spill] sm:$0xff] %v17061_v20  ;;  %v17072_v21 = vrot.slane %v8682_v59, %v15678_v6  ;;  %v17095_v60 = vcombine.high %v17069_v15, %v17069_v15  ;;  %v8937_v19 = vcombine.low %v8915_v2, %v8929_v34  ;;  %14983 = vmatpush3.bf16.msra.mxu1 %v15379_v33 }
 0x169   : > { %v17079_v38 = vpop.f32.mrf.mxu0  ;;  %v17081_v48 = vpop.f32.mrf.mxu1  ;;  %v14157_v59 = vpack.i.b16 %v16893_v55, %v19655_v23  ;;  %v8938_v31 = vcombine.high %v8915_v2, %v8929_v34  ;;  %v15380_v23 = vld [vmem:[%s15602_s30 + $0x760] sm:$0xff]   ;;  %v14042_v8 = vpack.i.b16 %v17069_v15, %v17056_v17  ;;  %9281 = vmatprep.mubr.bf16.mxu0 %v8939_v5  ;;  %v19661_v2 = vunpack.i.h.s16 %v16885_v30 }
 0x16a   : > { %19651 = vst [vmem:[#allocation19_spill] sm:$0xff] %v17072_v21  ;;  %19653 = vst [vmem:[#allocation20_spill] sm:$0xff] %v17079_v38  ;;  %v17099_v61 = vcombine.high %v17072_v21, %v17072_v21  ;;  %v8769_v52 = vunpack.i.h.s16 %v17072_v21  ;;  %v8771_v20 = vunpack.i.h.s16 %v17095_v60  ;;  %v19658_v38 = vunpack.i.h.s16 %v17069_v15  ;;  %9282 = vmatmul.mubr.bf16.gmra.mxu0 %v8937_v19  ;;  %14944 = vmatprep.subr.bf16.mxu0 %v15380_v23 }
 0x16b   : > { %19654 = vst [vmem:[#allocation21_spill] sm:$0xff] %v17081_v48  ;;  %v17103_v47 = vpop.f32.mrf.mxu0  ;;  %v17105_v55 = vpop.f32.mrf.mxu1  ;;  %v15381_v48 = vld [vmem:[%s15602_s30 + $0x7e0] sm:$0xff]   ;;  %v10151_v28 = vpack.i.b16 %v19661_v2, %v10105_v29  ;;  %v14159_v34 = vpack.i.b16 %v16936_v57, %v10113_v49  ;;  %v10173_v25 = vcombine.low %v17077_v37, %v14157_v59  ;;  %9346 = vmatmul.mubr.bf16.gmra.mxu1 %v8938_v31  ;;  %v10115_v37 = vunpack.i.h.s16 %v16936_v57  ;;  %v15384_v59 = vld [vmem:[%s15602_s30 + $0x758] sm:$0xff]  }
 0x16c   : > { %19656 = vst [vmem:[#allocation22_spill] sm:$0xff] %v17103_v47  ;;  %19657 = vst [vmem:[#allocation23_spill] sm:$0xff] %v17105_v55  ;;  %v14043_v47 = vpack.i.b16 %v17072_v21, %v19658_v38  ;;  %v14044_v55 = vpack.i.b16 %v17095_v60, %v8769_v52  ;;  %v15383_v38 = vld [vmem:[%s15602_s30 + $0x7a0] sm:$0xff]   ;;  %v14033_v21 = vld.sshfl [vmem:[#allocation2 + $0x108] sm:$0xff pattern:$0x75316420]  ;;  %v14045_v52 = vpack.i.b16 %v17099_v61, %v8771_v20  ;;  %14984 = vmatprep.subr.bf16.mxu1 %v15381_v48 }
 0x16d   : > { %v17116_v53 = vpop.f32.mrf.mxu0  ;;  %v17118_v24 = vpop.f32.mrf.mxu1  ;;  %v8713_v30 = vcombine.low %v14032_v54, %v14033_v21  ;;  %v8714_v29 = vcombine.high %v14032_v54, %v14033_v21  ;;  %v10174_v49 = vcombine.low %v17090_v0, %v10151_v28  ;;  %v10183_v19 = vrot.slane %v10173_v25, %v15678_v6  ;;  %14945 = vmatpush3.bf16.msra.mxu0 %v15382_v16  ;;  %v15387_v2 = vld [vmem:[%s15602_s30 + $0x798] sm:$0xff]  }
 0x16e   : > { %19659 = vst [vmem:[#allocation24_spill] sm:$0xff] %v17116_v53  ;;  %19660 = vst [vmem:[#allocation25_spill] sm:$0xff] %v17118_v24  ;;  %v8941_v24 = vcombine.low %v17044_v11, %v14042_v8  ;;  %v8942_v5 = vcombine.low %v14043_v47, %v14044_v55  ;;  %v15385_v47 = vld [vmem:[%s15602_s30 + $0x7d8] sm:$0xff]   ;;  %v10176_v55 = vcombine.low %v16906_v42, %v14159_v34  ;;  %14985 = vmatpush3.bf16.msra.mxu1 %v15383_v38  ;;  %v15388_v34 = vld [vmem:[%s15602_s30 + $0x750] sm:$0xff]  }
 0x16f   : > { %v14495_v18 = vpop.f32.mrf.mxu0  ;;  %v14535_v53 = vpop.f32.mrf.mxu1  ;;  %v17137_v0 = vrot.slane %v8713_v30, %v15678_v6  ;;  %v17140_v33 = vrot.slane %v8714_v29, %v15678_v6  ;;  %v10190_v23 = vrot.slane %v10174_v49, %v15678_v6  ;;  %14946 = vmatprep.subr.bf16.mxu0 %v15384_v59  ;;  %14986 = vmatprep.subr.bf16.mxu1 %v15385_v47  ;;  %v15389_v29 = vld [vmem:[%s15602_s30 + $0x7d0] sm:$0xff]  }
 0x170   : > { %v8951_v51 = vrot.slane %v8941_v24, %v15678_v6  ;;  %v8958_v20 = vrot.slane %v8942_v5, %v15678_v6  ;;  %v10175_v53 = vcombine.low %v16888_v58, %v16902_v56  ;;  %v15386_v56 = vld [vmem:[%s15602_s30 + $0x718] sm:$0xff]   ;;  %v10204_v25 = vrot.slane %v10176_v55, %v15678_v6  ;;  %v15391_v55 = vld [vmem:[%s15602_s30 + $0x790] sm:$0xff]  }
 0x171   : > { %v14496_v8 = vpop.f32.mrf.mxu0  ;;  %v14536_v21 = vpop.f32.mrf.mxu1  ;;  %v17150_v48 = vcombine.high %v17137_v0, %v17137_v0  ;;  %v8943_v54 = vcombine.low %v14045_v52, %v17137_v0  ;;  %v17156_v42 = vcombine.high %v17140_v33, %v17140_v33  ;;  %v10205_v5 = vcombine.low %v10183_v19, %v10190_v23  ;;  %14947 = vmatpush3.bf16.msra.mxu0 %v15386_v56 }
 0x172   : > { %v8974_v31 = vcombine.high %v8951_v51, %v8958_v20  ;;  %v8973_v58 = vcombine.low %v8951_v51, %v8958_v20  ;;  %v10197_v24 = vrot.slane %v10175_v53, %v15678_v6  ;;  %v10119_v52 = vunpack.i.h.s16 %v16955_v27  ;;  %v15390_v51 = vld [vmem:[%s15602_s30 + $0x710] sm:$0xff]   ;;  %14987 = vmatpush3.bf16.msra.mxu1 %v15387_v2  ;;  %14948 = vmatprep.subr.bf16.mxu0 %v15388_v34 }
 0x173   : > { %v8944_v18 = vcombine.low %v17140_v33, %v17150_v48  ;;  %v8965_v30 = vrot.slane %v8943_v54, %v15678_v6  ;;  %v8779_v38 = vunpack.i.l.s16 %v17156_v42  ;;  %v10206_v49 = vcombine.high %v10183_v19, %v10190_v23  ;;  %14988 = vmatprep.subr.bf16.mxu1 %v15389_v29  ;;  %v17199_v2 = vpop.f32.mrf.mxu0  ;;  %v17201_v34 = vpop.f32.mrf.mxu1 }
 0x174   : > { %v17160_v28 = vrot.slane %v8974_v31, %v15678_v6  ;;  %v17163_v16 = vrot.slane %v8973_v58, %v15678_v6  ;;  %v10207_v20 = vcombine.low %v10197_v24, %v10204_v25  ;;  %v10208_v53 = vcombine.high %v10197_v24, %v10204_v25  ;;  %v15392_v58 = vld [vmem:[%s15602_s30 + $0x748] sm:$0xff]  }
 0x175   : > { %v17174_v59 = vrot.slane %v10205_v5, %v15678_v6  ;;  %v14476_v8 = vadd.f32 %v16925_v62, %v16909_v7  ;;  %v8972_v21 = vrot.slane %v8944_v18, %v15678_v6  ;;  %v9015_v47 = vrot.slane %v8779_v38, %v15678_v6  ;;  %14949 = vmatpush3.bf16.msra.mxu0 %v15390_v51 }
 0x176   : > { %v17182_v31 = vrot.slane %v10206_v49, %v15678_v6  ;;  %v14516_v19 = vadd.f32 %v16927_v1, %v16911_v10  ;;  %v17188_v23 = vrot.slane %v10207_v20, %v15678_v6  ;;  %v17191_v7 = vrot.slane %v10208_v53, %v15678_v6  ;;  %v15393_v1 = vld [vmem:[%s15602_s30 + $0x7c8] sm:$0xff]   ;;  %14989 = vmatpush3.bf16.msra.mxu1 %v15391_v55 }
 0x177   : > { %v2119_v62 = vadd.f32 %v14476_v8, %v16740_v50  ;;  %v10127_v56 = vunpack.i.h.s16 %v16985_v32  ;;  %v8976_v24 = vcombine.high %v8965_v30, %v8972_v21  ;;  %v8975_v54 = vcombine.low %v8965_v30, %v8972_v21  ;;  %14950 = vmatprep.subr.bf16.mxu0 %v15392_v58  ;;  %v15394_v20 = vld [vmem:[%s15602_s30 + $0x708] sm:$0xff]   ;;  %14990 = vmatprep.subr.bf16.mxu1 %v15393_v1 }
 0x178   : > { %v9016_v25 = vcombine.high %v9015_v47, %v9015_v47  ;;  %v17196_v10 = vrot.slane %v9015_v47, %v15678_v6  ;;  %v10237_v5 = vcombine.low %v17174_v59, %v17188_v23  ;;  %v10238_v50 = vcombine.high %v17174_v59, %v17188_v23  ;;  %v15395_v58 = vld [vmem:[%s15602_s30 + $0x788] sm:$0xff]  }
 0x179   : > { %v10239_v32 = vcombine.low %v17182_v31, %v17191_v7  ;;  %v10240_v18 = vcombine.high %v17182_v31, %v17191_v7  ;;  %v9004_v30 = vrot.slane %v8976_v24, %v15678_v6  ;;  %v8997_v29 = vrot.slane %v8975_v54, %v15678_v6  ;;  %14951 = vmatpush3.bf16.msra.mxu0 %v15394_v20  ;;  %v15409_v59 = vld [vmem:[%s15602_s30 + $0x8e8] sm:$0xff]  }
 0x17a   : > { %v9030_v38 = vrot.slane %v9016_v25, %v15678_v6  ;;  %v9031_v49 = vcombine.high %v17196_v10, %v17196_v10  ;;  %v2183_v53 = vadd.f32 %v14516_v19, %v2119_v62  ;;  %v14479_v8 = vadd.f32 %v16957_v40, %v16939_v3  ;;  %v17227_v19 = vpop.f32.mrf.mxu0  ;;  %v17229_v3 = vpop.f32.mrf.mxu1  ;;  %14991 = vmatpush3.bf16.msra.mxu1 %v15395_v58 }
 0x17b   : > { %v14519_v21 = vadd.f32 %v16959_v41, %v16941_v12  ;;  %v10129_v47 = vunpack.i.h.s16 %v17000_v35  ;;  %v9007_v51 = vcombine.low %v17160_v28, %v9004_v30  ;;  %v9008_v24 = vcombine.high %v17160_v28, %v9004_v30  ;;  %v15396_v12 = vld [vmem:[%s15602_s30 + $0x740] sm:$0xff]  }
 0x17c   : > { %v9005_v54 = vcombine.low %v17163_v16, %v8997_v29  ;;  %v9006_v55 = vcombine.high %v17163_v16, %v8997_v29  ;;  %v9032_v40 = vcombine.high %v9030_v38, %v9030_v38  ;;  %v2219_v41 = vcombine.high %v2183_v53, %v2183_v53  ;;  %v15397_v28 = vld [vmem:[%s15602_s30 + $0x7c0] sm:$0xff]   ;;  %14952 = vmatprep.subr.bf16.mxu0 %v15396_v12 }
 0x17d   : > { %v2226_v62 = vrot.slane %v2183_v53, %v15678_v6  ;;  %v2122_v25 = vadd.f32 %v14479_v8, %v16794_v63  ;;  %9289 = vmatprep.mubr.bf16.mxu0 %v9007_v51  ;;  %9353 = vmatprep.mubr.bf16.mxu1 %v9008_v24  ;;  %v14160_v16 = vpack.i.b16 %v16946_v13, %v10115_v37  ;;  %v19662_v30 = vunpack.i.h.s16 %v16973_v26  ;;  %v15398_v63 = vld [vmem:[%s15602_s30 + $0x700] sm:$0xff]   ;;  %v17255_v51 = vpop.f32.mrf.mxu1  ;;  %v15400_v24 = vld [vmem:[%s15602_s30 + $0x878] sm:$0xff]  }
 0x17e   : > { %v14161_v1 = vpack.i.b16 %v16955_v27, %v10117_v36  ;;  %9290 = vmatmul.mubr.bf16.gmra.mxu0 %v9005_v54  ;;  %9354 = vmatmul.mubr.bf16.gmra.mxu1 %v9006_v55  ;;  %v2233_v53 = vrot.slane %v2219_v41, %v15678_v6  ;;  %v15399_v13 = vld [vmem:[%s15602_s30 + $0x780] sm:$0xff]   ;;  %v14162_v27 = vpack.i.b16 %v17000_v35, %v10127_v56  ;;  %v10131_v20 = vunpack.i.h.s16 %v17044_v11 }
 0x17f   : > { %v10158_v29 = vpack.i.b16 %v19662_v30, %v10119_v52  ;;  %v2234_v8 = vcombine.high %v2226_v62, %v2226_v62  ;;  %v17248_v57 = vrot.slane %v2226_v62, %v15678_v6  ;;  %9297 = vmatprep.mubr.bf16.mxu0 %v9030_v38  ;;  %9361 = vmatprep.mubr.bf16.mxu1 %v9032_v40  ;;  %v17253_v52 = vpop.f32.mrf.mxu0 }
 0x180   : > { %v2186_v37 = vadd.f32 %v14519_v21, %v2122_v25  ;;  %v14163_v36 = vpack.i.b16 %v17044_v11, %v10129_v47  ;;  %v2235_v54 = vcombine.high %v2233_v53, %v2233_v53  ;;  %v17259_v55 = vrot.slane %v2233_v53, %v15678_v6  ;;  %14992 = vmatprep.subr.bf16.mxu1 %v15397_v28  ;;  %v15401_v21 = vld [vmem:[%s15602_s30 + $0x8f8] sm:$0xff]   ;;  %v17283_v11 = vpop.f32.mrf.mxu1 }
 0x181   : > { %v17262_v38 = vrot.slane %v2234_v8, %v15678_v6  ;;  %v10241_v12 = vcombine.low %v14160_v16, %v14161_v1  ;;  %v10242_v30 = vcombine.low %v10158_v29, %v16976_v14  ;;  %v17281_v53 = vpop.f32.mrf.mxu0  ;;  %14953 = vmatpush3.bf16.msra.mxu0 %v15398_v63  ;;  %14993 = vmatpush3.bf16.msra.mxu1 %v15399_v13  ;;  %v10141_v63 = vunpack.i.h.s16 %v17137_v0  ;;  %v19677_v8 = vld [vmem:[#allocation8_spill] sm:$0xff] }
 0x182   : > { %v2268_v56 = vcombine.high %v2186_v37, %v2186_v37  ;;  %v2275_v47 = vrot.slane %v2186_v37, %v15678_v6  ;;  %v17270_v58 = vrot.slane %v2235_v54, %v15678_v6  ;;  %v14168_v16 = vcombine.high %v16973_v26, %v16976_v14  ;;  %15018 = vmatprep.subr.bf16.mxu0 %v15400_v24 }
 0x183   : > { %v10244_v1 = vcombine.low %v14162_v27, %v14163_v36  ;;  %v10133_v37 = vunpack.i.h.s16 %v17056_v17  ;;  %15058 = vmatprep.subr.bf16.mxu1 %v15401_v21  ;;  %v10251_v14 = vrot.slane %v10241_v12, %v15678_v6  ;;  %v10258_v13 = vrot.slane %v10242_v30, %v15678_v6  ;;  %v15404_v12 = vld [vmem:[%s15602_s30 + $0x870] sm:$0xff]  }
 0x184   : > { %v2282_v62 = vrot.slane %v2268_v56, %v15678_v6  ;;  %v2283_v25 = vcombine.high %v2275_v47, %v2275_v47  ;;  %v17278_v28 = vrot.slane %v2275_v47, %v15678_v6  ;;  %v10143_v27 = vunpack.i.h.s16 %v17140_v33  ;;  %v15402_v47 = vld [vmem:[%s15602_s30 + $0x838] sm:$0xff]  }
 0x185   : > { %v10145_v36 = vunpack.i.h.s16 %v17150_v48  ;;  %v17320_v24 = vpop.f32.mrf.mxu0  ;;  %v10265_v31 = vrot.slane %v14168_v16, %v15678_v6  ;;  %v10272_v7 = vrot.slane %v10244_v1, %v15678_v6  ;;  %v10273_v21 = vcombine.low %v10251_v14, %v10258_v13 }
 0x186   : > { %v2284_v54 = vcombine.high %v2282_v62, %v2282_v62  ;;  %v17291_v29 = vrot.slane %v2282_v62, %v15678_v6  ;;  %v17294_v56 = vrot.slane %v2283_v25, %v15678_v6  ;;  %9298 = vmatmul.mubr.bf16.gmra.mxu0 %v17196_v10  ;;  %9362 = vmatmul.mubr.bf16.gmra.mxu1 %v9031_v49  ;;  %v19664_v10 = vld [vmem:[#allocation12_spill] sm:$0xff] }
 0x187   : > { %10641 = vmatprep.mubr.bf16.mxu0 %v10239_v32  ;;  %10705 = vmatprep.mubr.bf16.mxu1 %v10240_v18  ;;  %v17322_v32 = vpop.f32.mrf.mxu1  ;;  %v10274_v18 = vcombine.high %v10251_v14, %v10258_v13  ;;  %v14482_v62 = vadd.f32 %v16978_v22, %v16964_v45  ;;  %v14522_v25 = vadd.f32 %v16980_v43, %v16966_v44  ;;  %v19663_v22 = vld [vmem:[#allocation11_spill] sm:$0xff] }
 0x188   : > { %v17313_v0 = vrot.slane %v2284_v54, %v15678_v6  ;;  %v14485_v30 = vadd.f32 %v17012_v4, %v16995_v9  ;;  %v15403_v54 = vld [vmem:[%s15602_s30 + $0x8b8] sm:$0xff]   ;;  %v10276_v16 = vcombine.high %v10265_v31, %v10272_v7  ;;  %v10275_v14 = vcombine.low %v10265_v31, %v10272_v7  ;;  %v17348_v9 = vpop.f32.mrf.mxu0  ;;  %v15405_v31 = vld [vmem:[%s15602_s30 + $0x8f0] sm:$0xff]  }
 0x189   : > { %v10290_v1 = vrot.slane %v10274_v18, %v15678_v6  ;;  %v17338_v13 = vrot.slane %v10273_v21, %v15678_v6  ;;  %v2127_v49 = vadd.f32 %v14482_v62, %v16852_v39  ;;  %v14525_v44 = vadd.f32 %v19664_v10, %v19663_v22  ;;  %v17350_v4 = vpop.f32.mrf.mxu1  ;;  %v15406_v10 = vld [vmem:[%s15602_s30 + $0x830] sm:$0xff]  }
 0x18a   : > { %v2130_v45 = vadd.f32 %v14485_v30, %v16865_v46  ;;  %v17346_v43 = vpack.i.b16 %v17056_v17, %v10131_v20  ;;  %v10304_v7 = vrot.slane %v10276_v16, %v15678_v6  ;;  %v10297_v18 = vrot.slane %v10275_v14, %v15678_v6 }
 0x18b   : > { %v19665_v39 = vunpack.i.h.s16 %v17069_v15  ;;  %v17360_v46 = vpack.i.b16 %v17140_v33, %v10141_v63  ;;  %v2191_v17 = vadd.f32 %v14522_v25, %v2127_v49  ;;  %v17364_v62 = vpack.i.b16 %v17150_v48, %v10143_v27  ;;  %v15407_v15 = vld [vmem:[%s15602_s30 + $0x8b0] sm:$0xff]   ;;  %v15408_v27 = vld [vmem:[%s15602_s30 + $0x868] sm:$0xff]   ;;  %v17380_v25 = vpop.f32.mrf.mxu0 }
 0x18c   : > { %v2194_v20 = vadd.f32 %v14525_v44, %v2130_v45  ;;  %v17367_v30 = vpack.i.b16 %v17156_v42, %v10145_v36  ;;  %v10307_v33 = vcombine.low %v10290_v1, %v10304_v7  ;;  %v10305_v63 = vcombine.low %v17338_v13, %v10297_v18  ;;  %v19666_v45 = vld [vmem:[#allocation19_spill] sm:$0xff]  ;;  %v15410_v44 = vld [vmem:[%s15602_s30 + $0x828] sm:$0xff]  }
 0x18d   : > { %v17357_v21 = vpack.i.b16 %v19665_v39, %v10133_v37  ;;  %v10308_v37 = vcombine.high %v10290_v1, %v10304_v7  ;;  %v10306_v48 = vcombine.high %v17338_v13, %v10297_v18  ;;  %v2317_v49 = vcombine.high %v2191_v17, %v2191_v17  ;;  %v17406_v39 = vpop.f32.mrf.mxu0 }
 0x18e   : > { %10642 = vmatmul.mubr.bf16.vlgmr.msra.gmra.mxu0 %v10237_v5  ;;  %10706 = vmatmul.mubr.bf16.vlgmr.msra.gmra.mxu1 %v10238_v50  ;;  %v2324_v36 = vrot.slane %v2191_v17, %v15678_v6  ;;  %v17382_v5 = vpop.f32.mrf.mxu1  ;;  %v2366_v23 = vcombine.high %v2194_v20, %v2194_v20  ;;  %v2373_v50 = vrot.slane %v2194_v20, %v15678_v6  ;;  %v15413_v17 = vld [vmem:[%s15602_s30 + $0x8e0] sm:$0xff]  }
 0x18f   : > { %15019 = vmatpush3.bf16.msra.mxu0 %v15402_v47  ;;  %15059 = vmatpush3.bf16.msra.mxu1 %v15403_v54  ;;  %v10309_v47 = vcombine.low %v17346_v43, %v17357_v21  ;;  %v2331_v54 = vrot.slane %v2317_v49, %v15678_v6  ;;  %v10310_v22 = vcombine.low %v19666_v45, %v17095_v60  ;;  %v15411_v43 = vld [vmem:[%s15602_s30 + $0x8a8] sm:$0xff]  }
 0x190   : > { %15020 = vmatprep.subr.bf16.mxu0 %v15404_v12  ;;  %15060 = vmatprep.subr.bf16.mxu1 %v15405_v31  ;;  %v2332_v16 = vcombine.high %v2324_v36, %v2324_v36  ;;  %v17390_v1 = vrot.slane %v2324_v36, %v15678_v6  ;;  %v2380_v12 = vrot.slane %v2366_v23, %v15678_v6  ;;  %v17408_v21 = vpop.f32.mrf.mxu1  ;;  %v19668_v23 = vld [vmem:[#allocation13_spill] sm:$0xff]  ;;  %v19675_v60 = vld [vmem:[#allocation18_spill] sm:$0xff] }
 0x191   : > { %10649 = vmatprep.mubr.bf16.mxu0 %v10307_v33  ;;  %10713 = vmatprep.mubr.bf16.mxu1 %v10308_v37  ;;  %v2381_v14 = vcombine.high %v2373_v50, %v2373_v50  ;;  %v17394_v13 = vrot.slane %v2373_v50, %v15678_v6  ;;  %v2333_v31 = vcombine.high %v2331_v54, %v2331_v54  ;;  %v10147_v50 = vunpack.i.h.s16 %v17156_v42 }
 0x192   : > { %v17401_v7 = vrot.slane %v2331_v54, %v15678_v6  ;;  %v17404_v18 = vrot.slane %v2332_v16, %v15678_v6  ;;  %v2382_v20 = vcombine.high %v2380_v12, %v2380_v12  ;;  %v19669_v16 = vld [vmem:[#allocation15_spill] sm:$0xff] }
 0x193   : > { %15021 = vmatpush3.bf16.msra.mxu0 %v15406_v10  ;;  %15061 = vmatpush3.bf16.msra.mxu1 %v15407_v15  ;;  %v15412_v10 = vld [vmem:[%s15602_s30 + $0x860] sm:$0xff]   ;;  %v17415_v15 = vrot.slane %v2380_v12, %v15678_v6  ;;  %v17418_v33 = vrot.slane %v2333_v31, %v15678_v6  ;;  %v17425_v49 = vrot.slane %v2381_v14, %v15678_v6  ;;  %v15416_v31 = vld [vmem:[%s15602_s30 + $0x858] sm:$0xff]  }
 0x194   : > { %15022 = vmatprep.subr.bf16.mxu0 %v15408_v27  ;;  %15062 = vmatprep.subr.bf16.mxu1 %v15409_v59  ;;  %v17428_v36 = vrot.slane %v2382_v20, %v15678_v6  ;;  %v10311_v12 = vcombine.low %v17099_v61, %v17360_v46  ;;  %v17443_v14 = vpop.f32.mrf.mxu0  ;;  %v17445_v45 = vpop.f32.mrf.mxu1  ;;  %v15417_v20 = vld [vmem:[%s15602_s30 + $0x8d8] sm:$0xff]   ;;  %v10326_v61 = vrot.slane %v10310_v22, %v15678_v6  ;;  %v19676_v22 = vld [vmem:[#allocation21_spill] sm:$0xff] }
 0x195   : > { %19667 = vst [vmem:[#allocation11_spill] sm:$0xff] %v17445_v45  ;;  %v19671_v59 = vld [vmem:[#allocation16_spill] sm:$0xff]  ;;  %v14531_v26 = vadd.f32 %v19676_v22, %v19675_v60 }
 0x196   : > { %10650 = vmatmul.mubr.bf16.gmra.mxu0 %v10305_v63  ;;  %10714 = vmatmul.mubr.bf16.gmra.mxu1 %v10306_v48  ;;  %v15414_v63 = vld [vmem:[%s15602_s30 + $0x820] sm:$0xff]   ;;  %v10333_v46 = vrot.slane %v10311_v12, %v15678_v6  ;;  %v17460_v42 = vpop.f32.mrf.mxu0  ;;  %v17462_v37 = vpop.f32.mrf.mxu1  ;;  %v10383_v12 = vrot.slane %v10147_v50, %v15678_v6 }
 0x197   : > { %15023 = vmatpush3.bf16.msra.mxu0 %v15410_v44  ;;  %15063 = vmatpush3.bf16.msra.mxu1 %v15411_v43  ;;  %v15415_v48 = vld [vmem:[%s15602_s30 + $0x8a0] sm:$0xff]   ;;  %v10312_v44 = vcombine.low %v17364_v62, %v17367_v30  ;;  %v10319_v43 = vrot.slane %v10309_v47, %v15678_v6  ;;  %19672 = vst [vmem:[#allocation12_spill] sm:$0xff] %v17462_v37  ;;  %v19674_v47 = vld [vmem:[#allocation20_spill] sm:$0xff] }
 0x198   : > { %15024 = vmatprep.subr.bf16.mxu0 %v15412_v10  ;;  %15064 = vmatprep.subr.bf16.mxu1 %v15413_v17  ;;  %v14488_v10 = vadd.f32 %v19669_v16, %v19668_v23  ;;  %v19670_v17 = vld [vmem:[#allocation14_spill] sm:$0xff]  ;;  %v19673_v30 = vld [vmem:[#allocation17_spill] sm:$0xff]  ;;  %v15418_v16 = vld [vmem:[%s15602_s30 + $0x818] sm:$0xff]   ;;  %v17473_v41 = vpop.f32.mrf.mxu0  ;;  %v17477_v22 = vpop.f32.mrf.mxu1 }
 0x199   : > { %v14528_v54 = vadd.f32 %v19671_v59, %v19670_v17  ;;  %v10340_v62 = vrot.slane %v10312_v44, %v15678_v6  ;;  %v14491_v27 = vadd.f32 %v19674_v47, %v19673_v30  ;;  %v10342_v23 = vcombine.high %v10319_v43, %v10326_v61  ;;  %v15419_v17 = vld [vmem:[%s15602_s30 + $0x898] sm:$0xff]   ;;  %19678 = vst [vmem:[#allocation19_spill] sm:$0xff] %v17473_v41  ;;  %v15420_v30 = vld [vmem:[%s15602_s30 + $0x850] sm:$0xff]   ;;  %v19679_v47 = vld [vmem:[#allocation9_spill] sm:$0xff] }
 0x19a   : > { %v10341_v59 = vcombine.low %v10319_v43, %v10326_v61  ;;  %v2135_v40 = vadd.f32 %v14488_v10, %v19677_v8  ;;  %19680 = vst [vmem:[#allocation13_spill] sm:$0xff] %v17477_v22  ;;  %v15421_v43 = vld [vmem:[%s15602_s30 + $0x8d0] sm:$0xff]   ;;  %v10384_v61 = vcombine.high %v10383_v12, %v10383_v12  ;;  %v14268_v22 = vld.sshfl [vmem:[#allocation2 + $0x58] sm:$0x5 pattern:$0x75316420] }
 0x19b   : > { %15025 = vmatpush3.bf16.msra.mxu0 %v15414_v63  ;;  %15065 = vmatpush3.bf16.msra.mxu1 %v15415_v48  ;;  %v10344_v44 = vcombine.high %v10333_v46, %v10340_v62  ;;  %v10343_v35 = vcombine.low %v10333_v46, %v10340_v62  ;;  %v2138_v60 = vadd.f32 %v14491_v27, %v19679_v47  ;;  %v17487_v27 = vpop.f32.mrf.mxu0  ;;  %v17493_v47 = vpop.f32.mrf.mxu1  ;;  %v19697_v41 = vld [vmem:[#allocation25_spill] sm:$0xff]  ;;  %v14270_v37 = vld.sshfl [vmem:[#allocation2 + $0x68] sm:$0xfa pattern:$0x75316420] }
 0x19c   : > { %15026 = vmatprep.subr.bf16.mxu0 %v15416_v31  ;;  %15066 = vmatprep.subr.bf16.mxu1 %v15417_v20  ;;  %v10358_v50 = vrot.slane %v10342_v23, %v15678_v6  ;;  %v10351_v63 = vrot.slane %v10341_v59, %v15678_v6  ;;  %v2199_v48 = vadd.f32 %v14528_v54, %v2135_v40 }
 0x19d   : > { %v10372_v8 = vrot.slane %v10344_v44, %v15678_v6  ;;  %v10365_v46 = vrot.slane %v10343_v35, %v15678_v6  ;;  %v2202_v31 = vadd.f32 %v14531_v26, %v2138_v60  ;;  %v17485_v20 = vrot.slane %v10383_v12, %v15678_v6  ;;  %19681 = vst [vmem:[#allocation15_spill] sm:$0xff] %v17487_v27  ;;  %v15422_v35 = vld [vmem:[%s15602_s30 + $0x810] sm:$0xff]  }
 0x19e   : > { %v2415_v10 = vcombine.high %v2199_v48, %v2199_v48  ;;  %v2422_v62 = vrot.slane %v2199_v48, %v15678_v6  ;;  %v10398_v40 = vrot.slane %v10384_v61, %v15678_v6  ;;  %v15423_v26 = vld [vmem:[%s15602_s30 + $0x890] sm:$0xff]   ;;  %19682 = vst [vmem:[#allocation14_spill] sm:$0xff] %v17493_v47  ;;  %v15424_v48 = vld [vmem:[%s15602_s30 + $0x848] sm:$0xff]   ;;  %v17503_v61 = vpop.f32.mrf.mxu0 }
 0x19f   : > { %15027 = vmatpush3.bf16.msra.mxu0 %v15418_v16  ;;  %15067 = vmatpush3.bf16.msra.mxu1 %v15419_v17  ;;  %v10375_v54 = vcombine.low %v10358_v50, %v10372_v8  ;;  %v10376_v23 = vcombine.high %v10358_v50, %v10372_v8  ;;  %v10373_v59 = vcombine.low %v10351_v63, %v10365_v46  ;;  %v14267_v47 = vld.sshfl [vmem:[#allocation2 + $0x50] sm:$0x5 pattern:$0x75316420] }
 0x1a0   : > { %v10374_v44 = vcombine.high %v10351_v63, %v10365_v46  ;;  %15028 = vmatprep.subr.bf16.mxu0 %v15420_v30  ;;  %v2429_v12 = vrot.slane %v2415_v10, %v15678_v6  ;;  %v2430_v60 = vcombine.high %v2422_v62, %v2422_v62  ;;  %v17497_v16 = vrot.slane %v2422_v62, %v15678_v6  ;;  %v15425_v10 = vld [vmem:[%s15602_s30 + $0x8c8] sm:$0xff]  }
 0x1a1   : > { %15068 = vmatprep.subr.bf16.mxu1 %v15421_v43  ;;  %v2464_v17 = vcombine.high %v2202_v31, %v2202_v31  ;;  %10657 = vmatprep.mubr.bf16.mxu0 %v10375_v54  ;;  %v2471_v50 = vrot.slane %v2202_v31, %v15678_v6  ;;  %v10400_v63 = vcombine.high %v10398_v40, %v10398_v40  ;;  %v14266_v30 = vld.sshfl [vmem:[#allocation2 + $0x48] sm:$0xfa pattern:$0x75316420] }
 0x1a2   : > { %19683 = vst [vmem:[#allocation16_spill] sm:$0xff] %v17497_v16  ;;  %10721 = vmatprep.mubr.bf16.mxu1 %v10376_v23  ;;  %19684 = vst [vmem:[#allocation17_spill] sm:$0xff] %v17503_v61  ;;  %10658 = vmatmul.mubr.bf16.gmra.mxu0 %v10373_v59  ;;  %v2431_v8 = vcombine.high %v2429_v12, %v2429_v12  ;;  %v17506_v46 = vrot.slane %v2429_v12, %v15678_v6  ;;  %v15426_v23 = vld [vmem:[%s15602_s30 + $0x808] sm:$0xff]   ;;  %v17517_v12 = vpop.f32.mrf.mxu1  ;;  %v17519_v61 = vpop.f32.mrf.mxu0  ;;  %v15429_v16 = vld [vmem:[%s15602_s30 + $0x8c0] sm:$0xff]  }
 0x1a3   : > { %10722 = vmatmul.mubr.bf16.gmra.mxu1 %v10374_v44  ;;  %v17509_v43 = vrot.slane %v2430_v60, %v15678_v6  ;;  %15029 = vmatpush3.bf16.msra.mxu0 %v15422_v35  ;;  %v2478_v62 = vrot.slane %v2464_v17, %v15678_v6  ;;  %v2479_v54 = vcombine.high %v2471_v50, %v2471_v50  ;;  %v15427_v59 = vld [vmem:[%s15602_s30 + $0x888] sm:$0xff]   ;;  %v14265_v44 = vld.sshfl [vmem:[#allocation2 + $0x40] sm:$0xfa pattern:$0x75316420] }
 0x1a4   : > { %19685 = vst [vmem:[#allocation20_spill] sm:$0xff] %v17506_v46  ;;  %15069 = vmatpush3.bf16.msra.mxu1 %v15423_v26  ;;  %19687 = vst [vmem:[#allocation21_spill] sm:$0xff] %v17517_v12  ;;  %v17522_v60 = vrot.slane %v2431_v8, %v15678_v6  ;;  %v17529_v26 = vrot.slane %v2471_v50, %v15678_v6  ;;  %10665 = vmatprep.mubr.bf16.mxu0 %v10398_v40  ;;  %v15428_v17 = vld [vmem:[%s15602_s30 + $0x840] sm:$0xff]   ;;  %v17539_v31 = vpop.f32.mrf.mxu1  ;;  %v14575_v50 = vpop.f32.mrf.mxu0  ;;  %v19695_v46 = vld [vmem:[#allocation24_spill] sm:$0xff] }
 0x1a5   : > { %19686 = vst [vmem:[#allocation18_spill] sm:$0xff] %v17509_v43  ;;  %19688 = vst [vmem:[#allocation8_spill] sm:$0xff] %v17519_v61  ;;  %v2480_v12 = vcombine.high %v2478_v62, %v2478_v62  ;;  %v17534_v61 = vrot.slane %v2478_v62, %v15678_v6  ;;  %v17537_v8 = vrot.slane %v2479_v54, %v15678_v6  ;;  %10729 = vmatprep.mubr.bf16.mxu1 %v10400_v63  ;;  %v14269_v35 = vld.sshfl [vmem:[#allocation2 + $0x60] sm:$0xfa pattern:$0x75316420] }
 0x1a6   : > { %19689 = vst [vmem:[#allocation9_spill] sm:$0xff] %v17522_v60  ;;  %19690 = vst [vmem:[#allocation26_spill] sm:$0xff] %v17529_v26  ;;  %15030 = vmatprep.subr.bf16.mxu0 %v15424_v48  ;;  %15070 = vmatprep.subr.bf16.mxu1 %v15425_v10  ;;  %v19694_v62 = vld [vmem:[#allocation22_spill] sm:$0xff]  ;;  %v19696_v54 = vld [vmem:[#allocation23_spill] sm:$0xff]  ;;  %v11317_v40 = vcombine.low %v14267_v47, %v14268_v22 }
 0x1a7   : > { %19691 = vst [vmem:[#allocation27_spill] sm:$0xff] %v17534_v61  ;;  %19692 = vst [vmem:[#allocation28_spill] sm:$0xff] %v17537_v8  ;;  %v14494_v27 = vadd.f32 %v19695_v46, %v19694_v62  ;;  %v14534_v63 = vadd.f32 %v19697_v41, %v19696_v54  ;;  %v17550_v48 = vrot.slane %v2480_v12, %v15678_v6  ;;  %15031 = vmatpush3.bf16.msra.mxu0 %v15426_v23  ;;  %v15430_v43 = vld [vmem:[%s15602_s30 + $0x800] sm:$0xff]   ;;  %v14576_v46 = vpop.f32.mrf.mxu0  ;;  %v19698_v62 = vld [vmem:[#allocation10_spill] sm:$0xff] }
 0x1a8   : > { %19693 = vst [vmem:[#allocation29_spill] sm:$0xff] %v17539_v31  ;;  %15071 = vmatpush3.bf16.msra.mxu1 %v15427_v59  ;;  %v15431_v10 = vld [vmem:[%s15602_s30 + $0x880] sm:$0xff]   ;;  %v14271_v26 = vld.sshfl [vmem:[#allocation2 + $0x70] sm:$0x5 pattern:$0x75316420]  ;;  %v14615_v31 = vpop.f32.mrf.mxu1  ;;  %15032 = vmatprep.subr.bf16.mxu0 %v15428_v17  ;;  %v11285_v12 = vcombine.low %v14265_v44, %v14266_v30  ;;  %v11286_v54 = vcombine.high %v14265_v44, %v14266_v30 }
 0x1a9   : > { %v2143_v60 = vadd.f32 %v14494_v27, %v19698_v62  ;;  %15072 = vmatprep.subr.bf16.mxu1 %v15429_v16  ;;  %v14272_v41 = vld.sshfl [vmem:[#allocation2 + $0x78] sm:$0x5 pattern:$0x75316420]  ;;  %v11339_v23 = vcombine.low %v14269_v35, %v14270_v37  ;;  %v11340_v59 = vcombine.high %v14269_v35, %v14270_v37  ;;  %v17563_v45 = vpop.f32.mrf.mxu0  ;;  %v19699_v27 = vcombine.high %v17485_v20, %v17485_v20 }
 0x1aa   : > { %v17561_v61 = vld.sshfl [vmem:[#allocation2 + $0x80] sm:$0xfa pattern:$0x75316420]  ;;  %v14616_v8 = vpop.f32.mrf.mxu1  ;;  %10666 = vmatmul.mubr.bf16.gmra.mxu0 %v17485_v20  ;;  %v11293_v30 = vrot.slane %v11285_v12, %v15678_v6  ;;  %v11300_v44 = vrot.slane %v11286_v54, %v15678_v6  ;;  %v11324_v37 = vrot.slane %v11317_v40, %v15678_v6 }
 0x1ab   : > { %10730 = vmatmul.mubr.bf16.gmra.mxu1 %v19699_v27  ;;  %v2207_v16 = vadd.f32 %v14534_v63, %v2143_v60  ;;  %v17569_v31 = vld.sshfl [vmem:[#allocation2 + $0x88] sm:$0xfa pattern:$0x75316420]  ;;  %15033 = vmatpush3.bf16.msra.mxu0 %v15430_v43  ;;  %v11347_v22 = vrot.slane %v11339_v23, %v15678_v6  ;;  %v11354_v47 = vrot.slane %v11340_v59, %v15678_v6  ;;  %v17578_v17 = vpop.f32.mrf.mxu0 }
 0x1ac   : > { %15073 = vmatpush3.bf16.msra.mxu1 %v15431_v10  ;;  %v17576_v35 = vpop.f32.mrf.mxu1  ;;  %v11301_v60 = vcombine.high %v11293_v30, %v11293_v30  ;;  %v11302_v8 = vcombine.high %v11300_v44, %v11300_v44  ;;  %v11371_v63 = vcombine.low %v14271_v26, %v14272_v41  ;;  %v11394_v43 = vcombine.high %v17561_v61, %v17569_v31  ;;  %v17583_v40 = vld.sshfl [vmem:[#allocation2 + $0x90] sm:$0x5 pattern:$0x75316420] }
 0x1ad   : > { %19700 = vst [vmem:[#allocation22_spill] sm:$0xff] %v17576_v35  ;;  %v2519_v20 = vrot.slane %v2207_v16, %v15678_v6  ;;  %v11355_v46 = vcombine.high %v11347_v22, %v11347_v22  ;;  %v11356_v62 = vcombine.high %v11354_v47, %v11354_v47  ;;  %v11657_v10 = vunpack.i.h.s16 %v11354_v47  ;;  %v17587_v54 = vpop.f32.mrf.mxu0  ;;  %v17593_v26 = vld.sshfl [vmem:[#allocation2 + $0x98] sm:$0x5 pattern:$0x75316420] }
 0x1ae   : > { %v17585_v12 = vpop.f32.mrf.mxu1  ;;  %19702 = vst [vmem:[#allocation23_spill] sm:$0xff] %v17587_v54  ;;  %v11378_v59 = vrot.slane %v11371_v63, %v15678_v6  ;;  %v14293_v27 = vpack.i.b16 %v11354_v47, %v11324_v37  ;;  %v11723_v16 = vcombine.low %v11300_v44, %v11301_v60  ;;  %v17596_v41 = vrot.slane %v11394_v43, %v15678_v6  ;;  %v17598_v35 = vld.sshfl [vmem:[#allocation2 + $0xa0] sm:$0xfa pattern:$0x75316420] }
 0x1af   : > { %19701 = vst [vmem:[#allocation24_spill] sm:$0xff] %v17585_v12  ;;  %v17590_v23 = vrot.slane %v2519_v20, %v15678_v6  ;;  %v11659_v30 = vunpack.i.h.s16 %v11355_v46  ;;  %v11661_v22 = vunpack.i.h.s16 %v11356_v62  ;;  %v14294_v50 = vpack.i.b16 %v11355_v46, %v11657_v10  ;;  %v17602_v54 = vpop.f32.mrf.mxu0  ;;  %v17609_v47 = vld.sshfl [vmem:[#allocation2 + $0xa8] sm:$0xfa pattern:$0x75316420] }
 0x1b0   : > { %v17600_v12 = vpop.f32.mrf.mxu1  ;;  %v11724_v20 = vcombine.low %v11302_v8, %v14293_v27  ;;  %v14556_v44 = vadd.f32 %v17227_v19, %v17199_v2  ;;  %v14596_v37 = vadd.f32 %v17229_v3, %v17201_v34  ;;  %v14559_v46 = vadd.f32 %v17281_v53, %v17253_v52 }
 0x1b1   : > { %19703 = vst [vmem:[#allocation25_spill] sm:$0xff] %v17590_v23  ;;  %v11733_v23 = vrot.slane %v11723_v16, %v15678_v6  ;;  %v14295_v60 = vpack.i.b16 %v11356_v62, %v11659_v30  ;;  %v14296_v63 = vpack.i.b16 %v11378_v59, %v11661_v22  ;;  %v14599_v43 = vadd.f32 %v17283_v11, %v17255_v51  ;;  %v17622_v19 = vpop.f32.mrf.mxu0 }
 0x1b2   : > { %v17615_v10 = vpop.f32.mrf.mxu1  ;;  %v11740_v8 = vrot.slane %v11724_v20, %v15678_v6  ;;  %v3684_v27 = vadd.f32 %v14596_v37, %v14556_v44  ;;  %19704 = vst [vmem:[#allocation10_spill] sm:$0xff] %v17622_v19 }
 0x1b3   : > { %v11725_v3 = vcombine.low %v14294_v50, %v14295_v60  ;;  %v11726_v62 = vcombine.low %v14296_v63, %v17596_v41  ;;  %v3687_v52 = vadd.f32 %v14599_v43, %v14559_v46  ;;  %v17636_v43 = vpop.f32.mrf.mxu0 }
 0x1b4   : > { %v17627_v53 = vpop.f32.mrf.mxu1  ;;  %v11755_v11 = vcombine.low %v11733_v23, %v11740_v8  ;;  %v11756_v59 = vcombine.high %v11733_v23, %v11740_v8  ;;  %v3720_v16 = vcombine.high %v3684_v27, %v3684_v27  ;;  %v3727_v30 = vrot.slane %v3684_v27, %v15678_v6  ;;  %19706 = vst [vmem:[#allocation31_spill] sm:$0xff] %v17636_v43 }
 0x1b5   : > { %19705 = vst [vmem:[#allocation30_spill] sm:$0xff] %v17627_v53  ;;  %v11747_v22 = vrot.slane %v11725_v3, %v15678_v6  ;;  %v11754_v20 = vrot.slane %v11726_v62, %v15678_v6  ;;  %v3769_v44 = vcombine.high %v3687_v52, %v3687_v52  ;;  %v3776_v50 = vrot.slane %v3687_v52, %v15678_v6 }
 0x1b6   : > { %v11765_v37 = vrot.slane %v11755_v11, %v15678_v6  ;;  %v11772_v60 = vrot.slane %v11756_v59, %v15678_v6  ;;  %v3734_v63 = vrot.slane %v3720_v16, %v15678_v6  ;;  %v3735_v46 = vcombine.high %v3727_v30, %v3727_v30  ;;  %v17638_v23 = vpop.f32.mrf.mxu1 }
 0x1b7   : > { %19707 = vst [vmem:[#allocation32_spill] sm:$0xff] %v17638_v23  ;;  %v11757_v8 = vcombine.low %v11747_v22, %v11754_v20  ;;  %v11758_v27 = vcombine.high %v11747_v22, %v11754_v20  ;;  %v3743_v3 = vrot.slane %v3727_v30, %v15678_v6  ;;  %v3783_v62 = vrot.slane %v3769_v44, %v15678_v6 }
 0x1b8   : > { %v3736_v51 = vcombine.high %v3734_v63, %v3734_v63  ;;  %v3750_v52 = vrot.slane %v3734_v63, %v15678_v6  ;;  %v3757_v11 = vrot.slane %v3735_v46, %v15678_v6  ;;  %v3784_v34 = vcombine.high %v3776_v50, %v3776_v50  ;;  %v17656_v63 = vld [vmem:[%s19606_s0 + $0x220] sm:$0x1]  ;;  %v17658_v46 = vpop.f32.mrf.mxu0 }
 0x1b9   : > { %v11779_v59 = vrot.slane %v11757_v8, %v15678_v6  ;;  %v11786_v16 = vrot.slane %v11758_v27, %v15678_v6  ;;  %v3765_v2 = vcombine.high %v3743_v3, %v3743_v3  ;;  %v17647_v53 = vadd.f32 %v3743_v3, %v17248_v57  ;;  %19710 = vst [vmem:[#allocation35_spill] sm:$0xff] %v17658_v46  ;;  %v17660_v8 = vpop.f32.mrf.mxu1 }
 0x1ba   : > { %v3764_v22 = vrot.slane %v3736_v51, %v15678_v6  ;;  %v3766_v20 = vcombine.high %v3750_v52, %v3750_v52  ;;  %v3767_v30 = vcombine.high %v3757_v11, %v3757_v11  ;;  %v17651_v44 = vadd.f32 %v3757_v11, %v17262_v38  ;;  %v17665_v51 = vld [vmem:[%s19606_s0 + $0x228] sm:$0x1] }
 0x1bb   : > { %19708 = vst [vmem:[#allocation33_spill] sm:$0xff] %v17647_v53  ;;  %v11787_v27 = vcombine.low %v11765_v37, %v11779_v59  ;;  %v11788_v23 = vcombine.high %v11765_v37, %v11779_v59  ;;  %v11789_v3 = vcombine.low %v11772_v60, %v11786_v16  ;;  %v11790_v53 = vcombine.high %v11772_v60, %v11786_v16 }
 0x1bc   : > { %19709 = vst [vmem:[#allocation34_spill] sm:$0xff] %v17651_v44  ;;  %v3768_v11 = vcombine.high %v3764_v22, %v3764_v22  ;;  %v19711_v44 = vcombine.high %v17248_v57, %v17248_v57  ;;  %v19712_v46 = vcombine.high %v17262_v38, %v17262_v38  ;;  %v17678_v37 = vadd.f32 %v3750_v52, %v17259_v55 }
 0x1bd   : > { %12191 = vmatprep.mubr.bf16.mxu0 %v11789_v3  ;;  %12255 = vmatprep.mubr.bf16.mxu1 %v11790_v53  ;;  %v17681_v60 = vadd.f32 %v3764_v22, %v17270_v58  ;;  %v19713_v59 = vcombine.high %v17259_v55, %v17259_v55  ;;  %v3785_v57 = vcombine.high %v3783_v62, %v3783_v62  ;;  %v14281_v3 = vld.sshfl [vmem:[#allocation2 + $0xc0] sm:$0xfa pattern:$0x75316420] }
 0x1be   : > { %v17670_v43 = vadd.f32 %v3765_v2, %v19711_v44  ;;  %v17675_v19 = vadd.f32 %v3767_v30, %v19712_v46  ;;  %12192 = vmatmul.mubr.bf16.vlgmr.msra.gmra.mxu0 %v11787_v27  ;;  %12256 = vmatmul.mubr.bf16.vlgmr.msra.gmra.mxu1 %v11788_v23  ;;  %v19715_v38 = vcombine.high %v17270_v58, %v17270_v58  ;;  %v14279_v30 = vld.sshfl [vmem:[#allocation2 + $0xb0] sm:$0x5 pattern:$0x75316420]  ;;  %v17699_v46 = vpop.f32.mrf.mxu1 }
 0x1bf   : > { %v17686_v16 = vadd.f32 %v3766_v20, %v19713_v59  ;;  %v3792_v53 = vrot.slane %v3776_v50, %v15678_v6  ;;  %v3799_v22 = vrot.slane %v3783_v62, %v15678_v6  ;;  %v14280_v44 = vld.sshfl [vmem:[#allocation2 + $0xb8] sm:$0x5 pattern:$0x75316420]  ;;  %v17697_v20 = vpop.f32.mrf.mxu0  ;;  %v3806_v27 = vrot.slane %v3784_v34, %v15678_v6 }
 0x1c0   : > { %v17692_v52 = vadd.f32 %v3768_v11, %v19715_v38  ;;  %v3813_v23 = vrot.slane %v3785_v57, %v15678_v6  ;;  %v19717_v58 = vcombine.low %v17561_v61, %v17569_v31  ;;  %v19718_v62 = vcombine.low %v17583_v40, %v17593_v26  ;;  %v14282_v57 = vld.sshfl [vmem:[#allocation2 + $0xc8] sm:$0xfa pattern:$0x75316420] }
 0x1c1   : > { %19714 = vst [vmem:[#allocation36_spill] sm:$0xff] %v17686_v16  ;;  %v3814_v59 = vcombine.high %v3792_v53, %v3792_v53  ;;  %v3815_v38 = vcombine.high %v3799_v22, %v3799_v22  ;;  %v17712_v55 = vadd.f32 %v3792_v53, %v17278_v28  ;;  %v17715_v34 = vadd.f32 %v3799_v22, %v17291_v29 }
 0x1c2   : > { %19716 = vst [vmem:[#allocation37_spill] sm:$0xff] %v17692_v52  ;;  %v11401_v50 = vrot.slane %v19717_v58, %v15678_v6  ;;  %v11432_v11 = vrot.slane %v19718_v62, %v15678_v6  ;;  %v3816_v2 = vcombine.high %v3806_v27, %v3806_v27  ;;  %v3817_v52 = vcombine.high %v3813_v23, %v3813_v23  ;;  %v17741_v62 = vpop.f32.mrf.mxu1 }
 0x1c3   : > { %19719 = vst [vmem:[#allocation38_spill] sm:$0xff] %v17715_v34  ;;  %v17718_v16 = vadd.f32 %v3806_v27, %v17294_v56  ;;  %v17721_v61 = vadd.f32 %v3813_v23, %v17313_v0  ;;  %v19721_v31 = vcombine.high %v17278_v28, %v17278_v28  ;;  %v19723_v26 = vcombine.high %v17291_v29, %v17291_v29  ;;  %v17739_v23 = vpop.f32.mrf.mxu0 }
 0x1c4   : > { %v11448_v22 = vcombine.high %v17598_v35, %v17609_v47  ;;  %v19725_v27 = vcombine.low %v17598_v35, %v17609_v47  ;;  %v19726_v28 = vcombine.high %v17294_v56, %v17294_v56  ;;  %v19728_v29 = vcombine.high %v17313_v0, %v17313_v0  ;;  %v17757_v34 = vpop.f32.mrf.mxu1 }
 0x1c5   : > { %19720 = vst [vmem:[#allocation39_spill] sm:$0xff] %v17721_v61  ;;  %v17726_v40 = vadd.f32 %v3814_v59, %v19721_v31  ;;  %v17731_v53 = vadd.f32 %v3815_v38, %v19723_v26  ;;  %v11479_v31 = vcombine.low %v14279_v30, %v14280_v44  ;;  %v11501_v26 = vcombine.low %v14281_v3, %v14282_v57  ;;  %v17755_v61 = vpop.f32.mrf.mxu0 }
 0x1c6   : > { %v11455_v58 = vrot.slane %v19725_v27, %v15678_v6  ;;  %v17746_v59 = vadd.f32 %v3816_v2, %v19726_v28  ;;  %v17751_v38 = vadd.f32 %v3817_v52, %v19728_v29  ;;  %v11502_v47 = vcombine.high %v14281_v3, %v14282_v57 }
 0x1c7   : > { %19722 = vst [vmem:[#allocation40_spill] sm:$0xff] %v17726_v40  ;;  %19724 = vst [vmem:[#allocation41_spill] sm:$0xff] %v17731_v53  ;;  %v11462_v53 = vrot.slane %v11448_v22, %v15678_v6  ;;  %v14305_v27 = vcombine.high %v11401_v50, %v17596_v41  ;;  %v11486_v56 = vrot.slane %v11479_v31, %v15678_v6  ;;  %v14283_v50 = vld.sshfl [vmem:[#allocation2 + $0xd0] sm:$0x5 pattern:$0x75316420]  ;;  %v17768_v57 = vpop.f32.mrf.mxu0  ;;  %v17770_v22 = vpop.f32.mrf.mxu1 }
 0x1c8   : > { %19727 = vst [vmem:[#allocation42_spill] sm:$0xff] %v17746_v59  ;;  %19729 = vst [vmem:[#allocation43_spill] sm:$0xff] %v17751_v38  ;;  %v11463_v35 = vcombine.high %v11455_v58, %v11455_v58  ;;  %v11509_v2 = vrot.slane %v11501_v26, %v15678_v6  ;;  %v14562_v0 = vadd.f32 %v17348_v9, %v17320_v24  ;;  %v14284_v24 = vld.sshfl [vmem:[#allocation2 + $0xd8] sm:$0x5 pattern:$0x75316420] }
 0x1c9   : > { %v14602_v52 = vadd.f32 %v17350_v4, %v17322_v32  ;;  %v11464_v30 = vcombine.high %v11462_v53, %v11462_v53  ;;  %v17766_v44 = vrot.slane %v11502_v47, %v15678_v6  ;;  %v11671_v3 = vunpack.i.h.s16 %v11462_v53  ;;  %v17775_v47 = vpop.f32.mrf.mxu0  ;;  %v17777_v38 = vpop.f32.mrf.mxu1 }
 0x1ca   : > { %v11673_v41 = vunpack.i.h.s16 %v11463_v35  ;;  %v11517_v58 = vcombine.high %v11509_v2, %v11509_v2  ;;  %v14297_v28 = vpack.i.b16 %v11462_v53, %v11432_v11  ;;  %v11801_v29 = vrot.slane %v14305_v27, %v15678_v6 }
 0x1cb   : > { %v3692_v31 = vadd.f32 %v14602_v52, %v14562_v0  ;;  %v11675_v9 = vunpack.i.h.s16 %v11464_v30  ;;  %v14298_v26 = vpack.i.b16 %v11463_v35, %v11671_v3  ;;  %v14565_v4 = vadd.f32 %v17406_v39, %v17380_v25  ;;  %v17785_v52 = vpop.f32.mrf.mxu0  ;;  %v17787_v25 = vpop.f32.mrf.mxu1 }
 0x1cc   : > { %v14299_v32 = vpack.i.b16 %v11464_v30, %v11673_v41  ;;  %v11794_v59 = vcombine.low %v17766_v44, %v11517_v58  ;;  %v14605_v11 = vadd.f32 %v17408_v21, %v17382_v5  ;;  %v11533_v0 = vcombine.low %v14283_v50, %v14284_v24  ;;  %19730 = vst [vmem:[#allocation44_spill] sm:$0xff] %v17787_v25 }
 0x1cd   : > { %v3818_v40 = vcombine.high %v3692_v31, %v3692_v31  ;;  %v3825_v2 = vrot.slane %v3692_v31, %v15678_v6  ;;  %v14300_v53 = vpack.i.b16 %v11486_v56, %v11675_v9  ;;  %v11792_v27 = vcombine.low %v14297_v28, %v14298_v26  ;;  %v17796_v28 = vpop.f32.mrf.mxu0  ;;  %v17798_v50 = vpop.f32.mrf.mxu1 }
 0x1ce   : > { %v11822_v39 = vrot.slane %v11794_v59, %v15678_v6  ;;  %v3695_v21 = vadd.f32 %v14605_v11, %v14565_v4  ;;  %v17794_v56 = vrot.slane %v11533_v0, %v15678_v6  ;;  %19731 = vst [vmem:[#allocation45_spill] sm:$0xff] %v17798_v50 }
 0x1cf   : > { %v3832_v30 = vrot.slane %v3818_v40, %v15678_v6  ;;  %v3833_v3 = vcombine.high %v3825_v2, %v3825_v2  ;;  %v3841_v41 = vrot.slane %v3825_v2, %v15678_v6  ;;  %v11793_v58 = vcombine.low %v14299_v32, %v14300_v53  ;;  %v14655_v4 = vpop.f32.mrf.mxu0  ;;  %v14695_v11 = vpop.f32.mrf.mxu1 }
 0x1d0   : > { %v11808_v5 = vrot.slane %v11792_v27, %v15678_v6  ;;  %v19734_v4 = vcombine.high %v17390_v1, %v17390_v1 }
 0x1d1   : > { %v3834_v31 = vcombine.high %v3832_v30, %v3832_v30  ;;  %v3848_v24 = vrot.slane %v3832_v30, %v15678_v6  ;;  %v3855_v59 = vrot.slane %v3833_v3, %v15678_v6  ;;  %v3863_v40 = vcombine.high %v3841_v41, %v3841_v41  ;;  %v14285_v30 = vld.sshfl [vmem:[#allocation2 + $0xe0] sm:$0xfa pattern:$0x75316420] }
 0x1d2   : > { %v11815_v9 = vrot.slane %v11793_v58, %v15678_v6  ;;  %v11824_v26 = vcombine.high %v11801_v29, %v11808_v5  ;;  %v11823_v32 = vcombine.low %v11801_v29, %v11808_v5  ;;  %v17804_v2 = vadd.f32 %v3841_v41, %v17390_v1  ;;  %v14286_v29 = vld.sshfl [vmem:[#allocation2 + $0xe8] sm:$0xfa pattern:$0x75316420]  ;;  %v14656_v5 = vpop.f32.mrf.mxu0  ;;  %v14696_v41 = vpop.f32.mrf.mxu1 }
 0x1d3   : > { %v3862_v53 = vrot.slane %v3834_v31, %v15678_v6  ;;  %v3864_v27 = vcombine.high %v3848_v24, %v3848_v24  ;;  %v3865_v0 = vcombine.high %v3855_v59, %v3855_v59  ;;  %v17808_v35 = vadd.f32 %v3855_v59, %v17404_v18 }
 0x1d4   : > { %19732 = vst [vmem:[#allocation46_spill] sm:$0xff] %v17804_v2  ;;  %v11826_v50 = vcombine.high %v11815_v9, %v11822_v39  ;;  %v11840_v3 = vrot.slane %v11824_v26, %v15678_v6  ;;  %v11825_v25 = vcombine.low %v11815_v9, %v11822_v39  ;;  %v11833_v58 = vrot.slane %v11823_v32, %v15678_v6  ;;  %v14287_v39 = vld.sshfl [vmem:[#allocation2 + $0xf0] sm:$0x5 pattern:$0x75316420] }
 0x1d5   : > { %19733 = vst [vmem:[#allocation47_spill] sm:$0xff] %v17808_v35  ;;  %v3866_v2 = vcombine.high %v3862_v53, %v3862_v53  ;;  %v17815_v31 = vadd.f32 %v3863_v40, %v19734_v4  ;;  %v19735_v59 = vcombine.high %v17404_v18, %v17404_v18  ;;  %v17823_v35 = vadd.f32 %v3848_v24, %v17401_v7  ;;  %v14288_v9 = vld.sshfl [vmem:[#allocation2 + $0xf8] sm:$0x5 pattern:$0x75316420]  ;;  %v17839_v24 = vpop.f32.mrf.mxu1 }
 0x1d6   : > { %v11854_v26 = vrot.slane %v11826_v50, %v15678_v6  ;;  %v11847_v32 = vrot.slane %v11825_v25, %v15678_v6  ;;  %v17828_v5 = vadd.f32 %v3862_v53, %v17418_v33  ;;  %v19738_v1 = vcombine.high %v17401_v7, %v17401_v7  ;;  %v17835_v18 = vld.sshfl [vmem:[#allocation2 + $0x100] sm:$0xfa pattern:$0x75316420]  ;;  %19741 = vst [vmem:[#allocation52_spill] sm:$0xff] %v17839_v24 }
 0x1d7   : > { %v17820_v11 = vadd.f32 %v3865_v0, %v19735_v59  ;;  %v17837_v0 = vpop.f32.mrf.mxu0  ;;  %v19742_v41 = vcombine.high %v17418_v33, %v17418_v33  ;;  %v3867_v25 = vcombine.high %v3695_v21, %v3695_v21  ;;  %v3874_v53 = vrot.slane %v3695_v21, %v15678_v6  ;;  %v14290_v4 = vld.sshfl [vmem:[#allocation2 + $0x108] sm:$0xfa pattern:$0x75316420]  ;;  %v17850_v7 = vld [vmem:[%s19606_s0 + $0x230] sm:$0x1] }
 0x1d8   : > { %19737 = vst [vmem:[#allocation49_spill] sm:$0xff] %v17828_v5  ;;  %v17833_v40 = vadd.f32 %v3864_v27, %v19738_v1  ;;  %19740 = vst [vmem:[#allocation51_spill] sm:$0xff] %v17837_v0  ;;  %v11555_v59 = vcombine.low %v14285_v30, %v14286_v29  ;;  %v11857_v27 = vcombine.low %v11840_v3, %v11854_v26  ;;  %v17855_v33 = vld [vmem:[%s19606_s0 + $0x238] sm:$0x1] }
 0x1d9   : > { %19736 = vst [vmem:[#allocation48_spill] sm:$0xff] %v17820_v11  ;;  %v17844_v50 = vadd.f32 %v3866_v2, %v19742_v41  ;;  %v11858_v1 = vcombine.high %v11840_v3, %v11854_v26  ;;  %v11855_v0 = vcombine.low %v11833_v58, %v11847_v32  ;;  %v11856_v11 = vcombine.high %v11833_v58, %v11847_v32  ;;  %v17857_v2 = vpop.f32.mrf.mxu0  ;;  %v17859_v41 = vpop.f32.mrf.mxu1 }
 0x1da   : > { %19739 = vst [vmem:[#allocation50_spill] sm:$0xff] %v17833_v40  ;;  %19744 = vst [vmem:[#allocation54_spill] sm:$0xff] %v17857_v2  ;;  %v3881_v21 = vrot.slane %v3867_v25, %v15678_v6  ;;  %v3882_v24 = vcombine.high %v3874_v53, %v3874_v53  ;;  %v11556_v40 = vcombine.high %v14285_v30, %v14286_v29  ;;  %12199 = vmatprep.mubr.bf16.mxu0 %v11857_v27 }
 0x1db   : > { %19743 = vst [vmem:[#allocation53_spill] sm:$0xff] %v17844_v50  ;;  %19745 = vst [vmem:[#allocation55_spill] sm:$0xff] %v17859_v41  ;;  %v3890_v50 = vrot.slane %v3874_v53, %v15678_v6  ;;  %12263 = vmatprep.mubr.bf16.mxu1 %v11858_v1  ;;  %v11563_v3 = vrot.slane %v11555_v59, %v15678_v6  ;;  %v11587_v58 = vcombine.low %v14287_v39, %v14288_v9  ;;  %v17866_v5 = vpop.f32.mrf.mxu0  ;;  %v17868_v2 = vpop.f32.mrf.mxu1 }
 0x1dc   : > { %v11609_v26 = vcombine.low %v17835_v18, %v14290_v4  ;;  %v300_v32 = vmax.f32 %v17850_v7, 0.0  ;;  %19746 = vst [vmem:[#allocation56_spill] sm:$0xff] %v17866_v5  ;;  %19747 = vst [vmem:[#allocation57_spill] sm:$0xff] %v17868_v2  ;;  %12200 = vmatmul.mubr.bf16.gmra.mxu0 %v11855_v0  ;;  %12264 = vmatmul.mubr.bf16.gmra.mxu1 %v11856_v11  ;;  %v3883_v25 = vcombine.high %v3881_v21, %v3881_v21 }
 0x1dd   : > { %v3897_v41 = vrot.slane %v3881_v21, %v15678_v6  ;;  %v3904_v30 = vrot.slane %v3882_v24, %v15678_v6  ;;  %v301_v29 = vmax.f32 %v17855_v33, 0.0  ;;  %v3912_v53 = vcombine.high %v3890_v50, %v3890_v50  ;;  %v17877_v7 = vpop.f32.mrf.mxu0  ;;  %v17879_v27 = vpop.f32.mrf.mxu1 }
 0x1de   : > { %v17874_v39 = vadd.f32 %v3890_v50, %v17394_v13  ;;  %v11570_v9 = vrot.slane %v11556_v40, %v15678_v6  ;;  %v11571_v59 = vcombine.high %v11563_v3, %v11563_v3  ;;  %19748 = vst [vmem:[#allocation58_spill] sm:$0xff] %v17877_v7  ;;  %19749 = vst [vmem:[#allocation59_spill] sm:$0xff] %v17879_v27 }
 0x1df   : > { %v3911_v11 = vrot.slane %v3883_v25, %v15678_v6  ;;  %v3913_v0 = vcombine.high %v3897_v41, %v3897_v41  ;;  %v3914_v1 = vcombine.high %v3904_v30, %v3904_v30  ;;  %v17883_v21 = vadd.f32 %v3904_v30, %v17425_v49  ;;  %v17894_v2 = vpop.f32.mrf.mxu0  ;;  %v17896_v27 = vpop.f32.mrf.mxu1 }
 0x1e0   : > { %v19750_v24 = vcombine.high %v17394_v13, %v17394_v13  ;;  %v17891_v50 = vadd.f32 %v3897_v41, %v17415_v15  ;;  %v11572_v40 = vcombine.high %v11570_v9, %v11570_v9  ;;  %v11594_v3 = vrot.slane %v11587_v58, %v15678_v6  ;;  %19752 = vst [vmem:[#allocation61_spill] sm:$0xff] %v17894_v2 }
 0x1e1   : > { %19753 = vst [vmem:[#allocation62_spill] sm:$0xff] %v17896_v27  ;;  %v3915_v25 = vcombine.high %v3911_v11, %v3911_v11  ;;  %v19754_v30 = vcombine.high %v17425_v49, %v17425_v49  ;;  %v17904_v13 = vadd.f32 %v3911_v11, %v17428_v36  ;;  %v19756_v41 = vcombine.high %v17415_v15, %v17415_v15  ;;  %v17913_v5 = vpop.f32.mrf.mxu0 }
 0x1e2   : > { %v17888_v33 = vadd.f32 %v3912_v53, %v19750_v24  ;;  %v11610_v58 = vcombine.high %v17835_v18, %v14290_v4  ;;  %v11617_v24 = vrot.slane %v11609_v26, %v15678_v6  ;;  %v11685_v2 = vunpack.i.h.s16 %v11570_v9  ;;  %19757 = vst [vmem:[#allocation64_spill] sm:$0xff] %v17913_v5 }
 0x1e3   : > { %v17901_v7 = vadd.f32 %v3914_v1, %v19754_v30  ;;  %v17909_v53 = vadd.f32 %v3913_v0, %v19756_v41  ;;  %v11687_v27 = vunpack.i.h.s16 %v11571_v59  ;;  %v19759_v49 = vcombine.high %v17428_v36, %v17428_v36  ;;  %v19761_v30 = vld [vmem:[#allocation11_spill] sm:$0xff]  ;;  %v19762_v41 = vld [vmem:[#allocation12_spill] sm:$0xff] }
 0x1e4   : > { %19751 = vst [vmem:[#allocation60_spill] sm:$0xff] %v17888_v33  ;;  %v17915_v33 = vpop.f32.mrf.mxu1  ;;  %v11689_v1 = vunpack.i.h.s16 %v11572_v40  ;;  %v14301_v15 = vpack.i.b16 %v11570_v9, %v17794_v56  ;;  %v14568_v0 = vadd.f32 %v17460_v42, %v17443_v14  ;;  %v11624_v18 = vrot.slane %v11610_v58, %v15678_v6  ;;  %v19766_v56 = vld [vmem:[#allocation19_spill] sm:$0xff]  ;;  %v19768_v14 = vld [vmem:[#allocation13_spill] sm:$0xff]  ;;  %v19769_v42 = vld [vmem:[#allocation14_spill] sm:$0xff] }
 0x1e5   : > { %19755 = vst [vmem:[#allocation63_spill] sm:$0xff] %v17901_v7  ;;  %19758 = vst [vmem:[#allocation65_spill] sm:$0xff] %v17915_v33  ;;  %v17920_v11 = vadd.f32 %v3915_v25, %v19759_v49  ;;  %v14302_v4 = vpack.i.b16 %v11571_v59, %v11685_v2  ;;  %v14303_v26 = vpack.i.b16 %v11572_v40, %v11687_v27  ;;  %v17928_v7 = vpop.f32.mrf.mxu0  ;;  %v19767_v9 = vld [vmem:[#allocation15_spill] sm:$0xff]  ;;  %v19770_v40 = vmax.f32 %v17656_v63, 0.0 }
 0x1e6   : > { %v14608_v5 = vadd.f32 %v19762_v41, %v19761_v30  ;;  %19763 = vst [vmem:[#allocation11_spill] sm:$0xff] %v17928_v7  ;;  %v17930_v33 = vpop.f32.mrf.mxu1  ;;  %v14304_v36 = vpack.i.b16 %v11594_v3, %v11689_v1  ;;  %v19765_v25 = vcombine.high %v17766_v44, %v17766_v44  ;;  %v14611_v58 = vadd.f32 %v19769_v42, %v19768_v14 }
 0x1e7   : > { %19760 = vst [vmem:[#allocation66_spill] sm:$0xff] %v17920_v11  ;;  %19764 = vst [vmem:[#allocation12_spill] sm:$0xff] %v17930_v33  ;;  %v14571_v11 = vadd.f32 %v19767_v9, %v19766_v56  ;;  %v11860_v2 = vcombine.low %v14302_v4, %v14303_v26  ;;  %v14306_v59 = vcombine.high %v11617_v24, %v11624_v18  ;;  %v19771_v30 = vmax.f32 %v17665_v51, 0.0  ;;  %v591_v33 = vld [vmem:[#allocation2 + $0x110] sm:$0x11]  ;;  %v17943_v3 = vpop.f32.mrf.mxu0 }
 0x1e8   : > { %v11859_v49 = vcombine.low %v19765_v25, %v14301_v15  ;;  %v3700_v27 = vadd.f32 %v14608_v5, %v14568_v0  ;;  %19772 = vst [vmem:[#allocation19_spill] sm:$0xff] %v17943_v3  ;;  %v17945_v1 = vpop.f32.mrf.mxu1  ;;  %v11861_v44 = vcombine.low %v14304_v36, %v11624_v18  ;;  %v17948_v56 = vpack.c.bf16 %v301_v29, %v300_v32 }
 0x1e9   : > { %v14376_v41 = vpack.c.bf16 %v19771_v30, %v19770_v40  ;;  %19773 = vst [vmem:[#allocation15_spill] sm:$0xff] %v17945_v1  ;;  %v3703_v25 = vadd.f32 %v14611_v58, %v14571_v11  ;;  %v11876_v4 = vrot.slane %v11860_v2, %v15678_v6  ;;  %v11890_v5 = vrot.slane %v14306_v59, %v15678_v6  ;;  %v17953_v51 = vpop.f32.mrf.mxu0 }
 0x1ea   : > { %v11869_v15 = vrot.slane %v11859_v49, %v15678_v6  ;;  %v3916_v24 = vcombine.high %v3700_v27, %v3700_v27  ;;  %v3923_v63 = vrot.slane %v3700_v27, %v15678_v6  ;;  %19774 = vst [vmem:[#allocation13_spill] sm:$0xff] %v17953_v51  ;;  %v17955_v0 = vpop.f32.mrf.mxu1  ;;  %v11883_v26 = vrot.slane %v11861_v44, %v15678_v6  ;;  %v19785_v51 = vld [vmem:[#allocation18_spill] sm:$0xff] }
 0x1eb   : > { %19775 = vst [vmem:[#allocation14_spill] sm:$0xff] %v17955_v0  ;;  %v3965_v9 = vcombine.high %v3703_v25, %v3703_v25  ;;  %v3972_v18 = vrot.slane %v3703_v25, %v15678_v6  ;;  %v592_v32 = vsel %vm16098_vm6, %v14376_v41, %v591_v33  ;;  %v17962_v42 = vpop.f32.mrf.mxu0 }
 0x1ec   : > { %v11892_v29 = vcombine.high %v11869_v15, %v11876_v4  ;;  %v11891_v11 = vcombine.low %v11869_v15, %v11876_v4  ;;  %v3930_v49 = vrot.slane %v3916_v24, %v15678_v6  ;;  %v3931_v14 = vcombine.high %v3923_v63, %v3923_v63  ;;  %593 = vst [vmem:[#allocation2 + $0x110] sm:$0x11] %v592_v32  ;;  %v17964_v58 = vpop.f32.mrf.mxu1  ;;  %v19781_v32 = vld [vmem:[#allocation16_spill] sm:$0xff] }
 0x1ed   : > { %19777 = vst [vmem:[#allocation7_spill] sm:$0xff] %v17962_v42  ;;  %19778 = vst [vmem:[#allocation67_spill] sm:$0xff] %v17964_v58  ;;  %v11894_v2 = vcombine.high %v11883_v26, %v11890_v5  ;;  %v11893_v59 = vcombine.low %v11883_v26, %v11890_v5  ;;  %v3939_v27 = vrot.slane %v3923_v63, %v15678_v6  ;;  %v17971_v15 = vpop.f32.mrf.mxu0 }
 0x1ee   : > { %v3979_v40 = vrot.slane %v3965_v9, %v15678_v6  ;;  %v11908_v30 = vrot.slane %v11892_v29, %v15678_v6  ;;  %v11901_v33 = vrot.slane %v11891_v11, %v15678_v6  ;;  %v3932_v41 = vcombine.high %v3930_v49, %v3930_v49  ;;  %19779 = vst [vmem:[#allocation68_spill] sm:$0xff] %v17971_v15  ;;  %v17973_v25 = vpop.f32.mrf.mxu1  ;;  %v19782_v11 = vld [vmem:[#allocation20_spill] sm:$0xff] }
 0x1ef   : > { %v3946_v44 = vrot.slane %v3930_v49, %v15678_v6  ;;  %19780 = vst [vmem:[#allocation69_spill] sm:$0xff] %v17973_v25  ;;  %v11922_v4 = vrot.slane %v11894_v2, %v15678_v6  ;;  %v11915_v24 = vrot.slane %v11893_v59, %v15678_v6  ;;  %v3953_v5 = vrot.slane %v3931_v14, %v15678_v6  ;;  %v17985_v49 = vpop.f32.mrf.mxu0 }
 0x1f0   : > { %v3961_v63 = vcombine.high %v3939_v27, %v3939_v27  ;;  %v3960_v26 = vrot.slane %v3932_v41, %v15678_v6  ;;  %v17980_v29 = vadd.f32 %v3939_v27, %v19781_v32  ;;  %19783 = vst [vmem:[#allocation16_spill] sm:$0xff] %v17985_v49  ;;  %v17987_v15 = vpop.f32.mrf.mxu1  ;;  %v19786_v27 = vcombine.high %v19781_v32, %v19781_v32 }
 0x1f1   : > { %v3962_v9 = vcombine.high %v3946_v44, %v3946_v44  ;;  %v17983_v58 = vadd.f32 %v3946_v44, %v19782_v11  ;;  %19784 = vst [vmem:[#allocation20_spill] sm:$0xff] %v17987_v15  ;;  %v11925_v25 = vcombine.low %v11908_v30, %v11922_v4  ;;  %v11926_v2 = vcombine.high %v11908_v30, %v11922_v4  ;;  %v594_v44 = vld [vmem:[#allocation2 + $0x118] sm:$0x11]  ;;  %v17997_v3 = vpop.f32.mrf.mxu0  ;;  %v19789_v30 = vld [vmem:[#allocation9_spill] sm:$0xff]  ;;  %v19799_v15 = vld [vmem:[#allocation26_spill] sm:$0xff] }
 0x1f2   : > { %v11923_v0 = vcombine.low %v11901_v33, %v11915_v24  ;;  %v11924_v59 = vcombine.high %v11901_v33, %v11915_v24  ;;  %v3963_v42 = vcombine.high %v3953_v5, %v3953_v5  ;;  %v3964_v14 = vcombine.high %v3960_v26, %v3960_v26  ;;  %19787 = vst [vmem:[#allocation18_spill] sm:$0xff] %v17997_v3  ;;  %v17999_v49 = vpop.f32.mrf.mxu1 }
 0x1f3   : > { %v17990_v1 = vadd.f32 %v3953_v5, %v19785_v51  ;;  %v17995_v41 = vadd.f32 %v3961_v63, %v19786_v27  ;;  %19788 = vst [vmem:[#allocation70_spill] sm:$0xff] %v17999_v49  ;;  %12207 = vmatprep.mubr.bf16.mxu0 %v11925_v25  ;;  %12271 = vmatprep.mubr.bf16.mxu1 %v11926_v2  ;;  %v18019_v27 = vpop.f32.mrf.mxu0 }
 0x1f4   : > { %v18002_v4 = vadd.f32 %v3960_v26, %v19789_v30  ;;  %v19790_v33 = vcombine.high %v19782_v11, %v19782_v11  ;;  %v3980_v5 = vcombine.high %v3972_v18, %v3972_v18  ;;  %12208 = vmatmul.mubr.bf16.gmra.mxu0 %v11923_v0  ;;  %12272 = vmatmul.mubr.bf16.gmra.mxu1 %v11924_v59  ;;  %v18021_v49 = vpop.f32.mrf.mxu1  ;;  %v19795_v59 = vld [vmem:[#allocation17_spill] sm:$0xff] }
 0x1f5   : > { %v19791_v63 = vcombine.high %v19785_v51, %v19785_v51  ;;  %v19792_v25 = vcombine.high %v19789_v30, %v19789_v30  ;;  %v3981_v26 = vcombine.high %v3979_v40, %v3979_v40  ;;  %19793 = vst [vmem:[#allocation9_spill] sm:$0xff] %v18019_v27  ;;  %19794 = vst [vmem:[#allocation71_spill] sm:$0xff] %v18021_v49  ;;  %v14735_v49 = vpop.f32.mrf.mxu0 }
 0x1f6   : > { %v18007_v24 = vadd.f32 %v3962_v9, %v19790_v33  ;;  %v3988_v9 = vrot.slane %v3972_v18, %v15678_v6  ;;  %v3995_v0 = vrot.slane %v3979_v40, %v15678_v6  ;;  %v4002_v11 = vrot.slane %v3980_v5, %v15678_v6  ;;  %v19797_v33 = vld [vmem:[#allocation21_spill] sm:$0xff]  ;;  %v14775_v40 = vpop.f32.mrf.mxu1 }
 0x1f7   : > { %v18012_v32 = vadd.f32 %v3963_v42, %v19791_v63  ;;  %v18017_v2 = vadd.f32 %v3964_v14, %v19792_v25  ;;  %v595_v51 = vsel %vm16098_vm6, %v17948_v56, %v594_v44  ;;  %v4009_v42 = vrot.slane %v3981_v26, %v15678_v6  ;;  %v19796_v14 = vld [vmem:[#allocation8_spill] sm:$0xff]  ;;  %v19798_v63 = vld [vmem:[#allocation29_spill] sm:$0xff] }
 0x1f8   : > { %596 = vst [vmem:[#allocation2 + $0x118] sm:$0x11] %v595_v51  ;;  %v14574_v30 = vadd.f32 %v19796_v14, %v19795_v59  ;;  %v14614_v25 = vadd.f32 %v19798_v63, %v19797_v33  ;;  %v14636_v18 = vadd.f32 %v17578_v17, %v17563_v45  ;;  %v4010_v27 = vcombine.high %v3988_v9, %v3988_v9  ;;  %v19800_v44 = vld [vmem:[#allocation28_spill] sm:$0xff]  ;;  %v19801_v51 = vld [vmem:[#allocation27_spill] sm:$0xff]  ;;  %v14736_v33 = vpop.f32.mrf.mxu0  ;;  %v14776_v45 = vpop.f32.mrf.mxu1 }
 0x1f9   : > { %v4011_v5 = vcombine.high %v3995_v0, %v3995_v0  ;;  %v4012_v3 = vcombine.high %v4002_v11, %v4002_v11  ;;  %v18037_v36 = vadd.f32 %v3988_v9, %v19799_v15  ;;  %v4013_v56 = vcombine.high %v4009_v42, %v4009_v42  ;;  %v19806_v45 = vld [vmem:[#allocation22_spill] sm:$0xff] }
 0x1fa   : > { %v18040_v26 = vadd.f32 %v4002_v11, %v19800_v44  ;;  %v18043_v59 = vadd.f32 %v3995_v0, %v19801_v51  ;;  %v18046_v14 = vadd.f32 %v4009_v42, %v17550_v48  ;;  %v19802_v17 = vcombine.high %v19799_v15, %v19799_v15  ;;  %v19807_v15 = vld [vmem:[#allocation24_spill] sm:$0xff] }
 0x1fb   : > { %v19803_v9 = vcombine.high %v19800_v44, %v19800_v44  ;;  %v19804_v11 = vcombine.high %v19801_v51, %v19801_v51  ;;  %v3708_v40 = vadd.f32 %v14614_v25, %v14574_v30  ;;  %v19805_v42 = vcombine.high %v17550_v48, %v17550_v48  ;;  %v18074_v44 = vpop.f32.mrf.mxu0  ;;  %v18076_v51 = vpop.f32.mrf.mxu1  ;;  %v19811_v25 = vld [vmem:[#allocation10_spill] sm:$0xff]  ;;  %v19812_v48 = vld [vmem:[#allocation31_spill] sm:$0xff] }
 0x1fc   : > { %v18051_v49 = vadd.f32 %v4010_v27, %v19802_v17  ;;  %v14676_v27 = vadd.f32 %v19807_v15, %v19806_v45  ;;  %v19808_v17 = vld [vmem:[#allocation23_spill] sm:$0xff]  ;;  %19809 = vst [vmem:[#allocation17_spill] sm:$0xff] %v18074_v44  ;;  %19810 = vst [vmem:[#allocation8_spill] sm:$0xff] %v18076_v51 }
 0x1fd   : > { %v18056_v63 = vadd.f32 %v4012_v3, %v19803_v9  ;;  %v18061_v0 = vadd.f32 %v4011_v5, %v19804_v11  ;;  %v18066_v33 = vadd.f32 %v4013_v56, %v19805_v42  ;;  %v14639_v7 = vadd.f32 %v17602_v54, %v19808_v17  ;;  %v14291_v5 = vld.sshfl [vmem:[#allocation2 + $0x110] sm:$0x5 pattern:$0x75316420]  ;;  %v19813_v9 = vld [vmem:[#allocation30_spill] sm:$0xff]  ;;  %v19814_v11 = vld [vmem:[#allocation32_spill] sm:$0xff] }
 0x1fe   : > { %v14679_v3 = vadd.f32 %v17615_v10, %v17600_v12  ;;  %v4020_v30 = vrot.slane %v3708_v40, %v15678_v6  ;;  %v14642_v56 = vadd.f32 %v19812_v48, %v19811_v25  ;;  %v14682_v42 = vadd.f32 %v19814_v11, %v19813_v9  ;;  %v19815_v45 = vld [vmem:[#allocation35_spill] sm:$0xff]  ;;  %v18095_v40 = vpop.f32.mrf.mxu0  ;;  %v18097_v25 = vpop.f32.mrf.mxu1 }
 0x1ff   : > { %v18085_v15 = vadd.f32 %v17697_v20, %v19815_v45  ;;  %v5053_v54 = vadd.f32 %v14676_v27, %v14636_v18  ;;  %v18089_v12 = vadd.f32 %v17699_v46, %v17660_v8  ;;  %v18093_v10 = vadd.f32 %v17755_v61, %v17739_v23  ;;  %19816 = vst [vmem:[#allocation21_spill] sm:$0xff] %v18095_v40  ;;  %v14292_v48 = vld.sshfl [vmem:[#allocation2 + $0x118] sm:$0x5 pattern:$0x75316420] }
 0x200   : > { %v5056_v17 = vadd.f32 %v14679_v3, %v14639_v7  ;;  %19817 = vst [vmem:[#allocation29_spill] sm:$0xff] %v18097_v25  ;;  %v4027_v9 = vrot.slane %v4020_v30, %v15678_v6  ;;  %v5061_v11 = vadd.f32 %v14682_v42, %v14642_v56  ;;  %v18102_v20 = vadd.f32 %v17757_v34, %v17741_v62  ;;  %v18109_v18 = vpop.f32.mrf.mxu0  ;;  %v18111_v27 = vpop.f32.mrf.mxu1  ;;  %v19820_v3 = vld [vmem:[#allocation25_spill] sm:$0xff] }
 0x201   : > { %v18106_v8 = vadd.f32 %v17775_v47, %v17768_v57  ;;  %v11641_v46 = vcombine.low %v14291_v5, %v14292_v48  ;;  %v5089_v7 = vcombine.high %v5053_v54, %v5053_v54  ;;  %v5096_v61 = vrot.slane %v5053_v54, %v15678_v6  ;;  %19818 = vst [vmem:[#allocation26_spill] sm:$0xff] %v18109_v18  ;;  %v19823_v25 = vld [vmem:[#allocation33_spill] sm:$0xff] }
 0x202   : > { %v5138_v23 = vcombine.high %v5056_v17, %v5056_v17  ;;  %19819 = vst [vmem:[#allocation28_spill] sm:$0xff] %v18111_v27  ;;  %v18114_v30 = vadd.f32 %v4027_v9, %v19820_v3  ;;  %v5145_v56 = vrot.slane %v5056_v17, %v15678_v6  ;;  %v5187_v34 = vcombine.high %v5061_v11, %v5061_v11  ;;  %v18128_v18 = vpop.f32.mrf.mxu0 }
 0x203   : > { %v18118_v62 = vrot.slane %v5061_v11, %v15678_v6  ;;  %v11648_v57 = vrot.slane %v11641_v46, %v15678_v6  ;;  %v5103_v47 = vrot.slane %v5089_v7, %v15678_v6  ;;  %v5104_v5 = vcombine.high %v5096_v61, %v5096_v61  ;;  %19821 = vst [vmem:[#allocation27_spill] sm:$0xff] %v18128_v18  ;;  %v18130_v46 = vpop.f32.mrf.mxu1 }
 0x204   : > { %v5112_v42 = vrot.slane %v5096_v61, %v15678_v6  ;;  %v5152_v45 = vrot.slane %v5138_v23, %v15678_v6  ;;  %v5153_v54 = vcombine.high %v5145_v56, %v5145_v56  ;;  %v5161_v48 = vrot.slane %v5145_v56, %v15678_v6  ;;  %19822 = vst [vmem:[#allocation22_spill] sm:$0xff] %v18130_v46 }
 0x205   : > { %v5201_v9 = vrot.slane %v5187_v34, %v15678_v6  ;;  %v11697_v3 = vunpack.i.l.s16 %v11648_v57  ;;  %v5105_v17 = vcombine.high %v5103_v47, %v5103_v47  ;;  %v5119_v27 = vrot.slane %v5103_v47, %v15678_v6  ;;  %v19825_v47 = vld [vmem:[#allocation34_spill] sm:$0xff] }
 0x206   : > { %v5126_v11 = vrot.slane %v5104_v5, %v15678_v6  ;;  %v5134_v7 = vcombine.high %v5112_v42, %v5112_v42  ;;  %v18133_v61 = vadd.f32 %v5112_v42, %v19823_v25  ;;  %v5154_v23 = vcombine.high %v5152_v45, %v5152_v45 }
 0x207   : > { %v5168_v51 = vrot.slane %v5152_v45, %v15678_v6  ;;  %v11933_v56 = vrot.slane %v11697_v3, %v15678_v6  ;;  %v5133_v34 = vrot.slane %v5105_v17, %v15678_v6  ;;  %v5135_v57 = vcombine.high %v5119_v27, %v5119_v27  ;;  %v18152_v17 = vpop.f32.mrf.mxu0 }
 0x208   : > { %19824 = vst [vmem:[#allocation24_spill] sm:$0xff] %v18133_v61  ;;  %v5136_v40 = vcombine.high %v5126_v11, %v5126_v11  ;;  %v18139_v44 = vadd.f32 %v5126_v11, %v19825_v47  ;;  %v18142_v5 = vadd.f32 %v5134_v7, %v17670_v43  ;;  %v18145_v46 = vadd.f32 %v5119_v27, %v17678_v37  ;;  %v18154_v61 = vpop.f32.mrf.mxu1  ;;  %v19830_v43 = vld [vmem:[#allocation36_spill] sm:$0xff]  ;;  %v19831_v47 = vld [vmem:[#allocation37_spill] sm:$0xff] }
 0x209   : > { %v5175_v25 = vrot.slane %v5153_v54, %v15678_v6  ;;  %v11934_v42 = vcombine.high %v11933_v56, %v11933_v56  ;;  %v11941_v45 = vrot.slane %v11933_v56, %v15678_v6  ;;  %v5137_v18 = vcombine.high %v5133_v34, %v5133_v34  ;;  %19828 = vst [vmem:[#allocation31_spill] sm:$0xff] %v18152_v17 }
 0x20a   : > { %19826 = vst [vmem:[#allocation23_spill] sm:$0xff] %v18142_v5  ;;  %v18150_v3 = vadd.f32 %v5136_v40, %v17675_v19  ;;  %19829 = vst [vmem:[#allocation30_spill] sm:$0xff] %v18154_v61  ;;  %v18157_v11 = vadd.f32 %v5133_v34, %v17681_v60  ;;  %v18160_v7 = vadd.f32 %v5135_v57, %v19830_v43  ;;  %v18167_v40 = vpop.f32.mrf.mxu0  ;;  %v18169_v17 = vpop.f32.mrf.mxu1 }
 0x20b   : > { %v5182_v37 = vrot.slane %v5154_v23, %v15678_v6  ;;  %v5183_v27 = vcombine.high %v5161_v48, %v5161_v48  ;;  %v11948_v54 = vrot.slane %v11934_v42, %v15678_v6  ;;  %v11949_v56 = vcombine.high %v11941_v45, %v11941_v45  ;;  %19833 = vst [vmem:[#allocation35_spill] sm:$0xff] %v18167_v40  ;;  %v19835_v42 = vld [vmem:[#allocation40_spill] sm:$0xff] }
 0x20c   : > { %19827 = vst [vmem:[#allocation10_spill] sm:$0xff] %v18150_v3  ;;  %v18165_v5 = vadd.f32 %v5137_v18, %v19831_v47  ;;  %v5184_v19 = vcombine.high %v5168_v51, %v5168_v51  ;;  %19834 = vst [vmem:[#allocation25_spill] sm:$0xff] %v18169_v17  ;;  %v5185_v61 = vcombine.high %v5175_v25, %v5175_v25  ;;  %v19836_v18 = vld [vmem:[#allocation38_spill] sm:$0xff] }
 0x20d   : > { %v5186_v60 = vcombine.high %v5182_v37, %v5182_v37  ;;  %v18172_v34 = vadd.f32 %v5161_v48, %v17712_v55  ;;  %v18175_v57 = vadd.f32 %v5175_v25, %v17718_v16  ;;  %12215 = vmatprep.mubr.bf16.mxu0 %v11948_v54  ;;  %v11950_v23 = vcombine.high %v11948_v54, %v11948_v54  ;;  %v19838_v17 = vld [vmem:[#allocation42_spill] sm:$0xff]  ;;  %v19839_v55 = vld [vmem:[#allocation41_spill] sm:$0xff]  ;;  %v19840_v16 = vld [vmem:[#allocation43_spill] sm:$0xff] }
 0x20e   : > { %19832 = vst [vmem:[#allocation32_spill] sm:$0xff] %v18165_v5  ;;  %v18178_v43 = vadd.f32 %v5183_v27, %v19835_v42  ;;  %v18181_v47 = vadd.f32 %v5168_v51, %v19836_v18  ;;  %v19837_v5 = vld [vmem:[#allocation39_spill] sm:$0xff]  ;;  %12216 = vmatmul.mubr.bf16.gmra.mxu0 %v11941_v45  ;;  %v18187_v3 = vadd.f32 %v5185_v61, %v19838_v17  ;;  %v18202_v45 = vpop.f32.mrf.mxu0  ;;  %v18204_v17 = vpop.f32.mrf.mxu1 }
 0x20f   : > { %v18184_v40 = vadd.f32 %v5182_v37, %v19837_v5  ;;  %v18190_v48 = vadd.f32 %v5184_v19, %v19839_v55  ;;  %v18193_v25 = vadd.f32 %v5186_v60, %v19840_v16  ;;  %v5202_v27 = vcombine.high %v18118_v62, %v18118_v62  ;;  %12279 = vmatprep.mubr.bf16.mxu1 %v11950_v23  ;;  %v19843_v23 = vld [vmem:[#allocation46_spill] sm:$0xff]  ;;  %v19844_v18 = vld [vmem:[#allocation47_spill] sm:$0xff] }
 0x210   : > { %v5203_v54 = vcombine.high %v5201_v9, %v5201_v9  ;;  %v5210_v51 = vrot.slane %v18118_v62, %v15678_v6  ;;  %v5217_v5 = vrot.slane %v5201_v9, %v15678_v6  ;;  %v5064_v61 = vadd.f32 %v18089_v12, %v18085_v15  ;;  %19841 = vst [vmem:[#allocation33_spill] sm:$0xff] %v18202_v45  ;;  %v19846_v16 = vld [vmem:[#allocation50_spill] sm:$0xff] }
 0x211   : > { %19842 = vst [vmem:[#allocation34_spill] sm:$0xff] %v18204_v17  ;;  %12280 = vmatmul.mubr.bf16.gmra.mxu1 %v11949_v56  ;;  %v5224_v37 = vrot.slane %v5202_v27, %v15678_v6  ;;  %v5069_v19 = vadd.f32 %v18102_v20, %v18093_v10  ;;  %v14691_v60 = vadd.f32 %v17777_v38, %v17770_v22 }
 0x212   : > { %v18213_v62 = vadd.f32 %v17796_v28, %v17785_v52  ;;  %v5231_v9 = vrot.slane %v5203_v54, %v15678_v6  ;;  %v5232_v15 = vcombine.high %v5210_v51, %v5210_v51  ;;  %v5233_v12 = vcombine.high %v5217_v5, %v5217_v5  ;;  %v19845_v52 = vld [vmem:[#allocation49_spill] sm:$0xff]  ;;  %v18234_v54 = vpop.f32.mrf.mxu0 }
 0x213   : > { %v18217_v42 = vadd.f32 %v5210_v51, %v19843_v23  ;;  %v5234_v56 = vcombine.high %v5224_v37, %v5224_v37  ;;  %v18220_v55 = vadd.f32 %v5224_v37, %v19844_v18  ;;  %v18223_v10 = vadd.f32 %v5217_v5, %v17823_v35  ;;  %19848 = vst [vmem:[#allocation37_spill] sm:$0xff] %v18234_v54  ;;  %v18236_v51 = vpop.f32.mrf.mxu1  ;;  %v19850_v37 = vld [vmem:[#allocation48_spill] sm:$0xff] }
 0x214   : > { %v5236_v20 = vcombine.high %v5064_v61, %v5064_v61  ;;  %v5235_v38 = vcombine.high %v5231_v9, %v5231_v9  ;;  %v18226_v22 = vadd.f32 %v5232_v15, %v17815_v31  ;;  %v18229_v28 = vadd.f32 %v5231_v9, %v19845_v52  ;;  %19849 = vst [vmem:[#allocation40_spill] sm:$0xff] %v18236_v51  ;;  %v19852_v31 = vld [vmem:[#allocation53_spill] sm:$0xff]  ;;  %v19854_v52 = vld [vmem:[#allocation44_spill] sm:$0xff] }
 0x215   : > { %v18232_v27 = vadd.f32 %v5233_v12, %v19846_v16  ;;  %v18239_v23 = vadd.f32 %v5234_v56, %v19850_v37  ;;  %v5243_v35 = vrot.slane %v5064_v61, %v15678_v6  ;;  %v5285_v18 = vcombine.high %v5069_v19, %v5069_v19  ;;  %v19855_v16 = vld [vmem:[#allocation45_spill] sm:$0xff] }
 0x216   : > { %v5250_v5 = vrot.slane %v5236_v20, %v15678_v6  ;;  %v18244_v15 = vadd.f32 %v5235_v38, %v19852_v31  ;;  %v5292_v9 = vrot.slane %v5069_v19, %v15678_v6  ;;  %v5072_v12 = vadd.f32 %v14691_v60, %v18106_v8  ;;  %v18254_v31 = vpop.f32.mrf.mxu0  ;;  %v18256_v19 = vpop.f32.mrf.mxu1 }
 0x217   : > { %19847 = vst [vmem:[#allocation36_spill] sm:$0xff] %v18232_v27  ;;  %19851 = vst [vmem:[#allocation38_spill] sm:$0xff] %v18239_v23  ;;  %v14694_v17 = vadd.f32 %v19855_v16, %v19854_v52  ;;  %v5251_v54 = vcombine.high %v5243_v35, %v5243_v35  ;;  %v5259_v56 = vrot.slane %v5243_v35, %v15678_v6 }
 0x218   : > { %19853 = vst [vmem:[#allocation39_spill] sm:$0xff] %v18244_v15  ;;  %v5252_v51 = vcombine.high %v5250_v5, %v5250_v5  ;;  %v5266_v37 = vrot.slane %v5250_v5, %v15678_v6  ;;  %v5299_v61 = vrot.slane %v5285_v18, %v15678_v6  ;;  %v5300_v20 = vcombine.high %v5292_v9, %v5292_v9  ;;  %v18267_v15 = vpop.f32.mrf.mxu0 }
 0x219   : > { %v5308_v45 = vrot.slane %v5292_v9, %v15678_v6  ;;  %v5334_v38 = vcombine.high %v5072_v12, %v5072_v12  ;;  %19856 = vst [vmem:[#allocation42_spill] sm:$0xff] %v18254_v31  ;;  %19857 = vst [vmem:[#allocation41_spill] sm:$0xff] %v18256_v19  ;;  %v5273_v8 = vrot.slane %v5251_v54, %v15678_v6  ;;  %v19859_v54 = vld [vmem:[#allocation60_spill] sm:$0xff] }
 0x21a   : > { %v5280_v60 = vrot.slane %v5252_v51, %v15678_v6  ;;  %v5281_v52 = vcombine.high %v5259_v56, %v5259_v56  ;;  %v5282_v16 = vcombine.high %v5266_v37, %v5266_v37  ;;  %v18261_v35 = vadd.f32 %v5259_v56, %v17874_v39  ;;  %19858 = vst [vmem:[#allocation43_spill] sm:$0xff] %v18267_v15 }
 0x21b   : > { %v18264_v5 = vadd.f32 %v5266_v37, %v17891_v50  ;;  %v5301_v18 = vcombine.high %v5299_v61, %v5299_v61  ;;  %v5315_v9 = vrot.slane %v5299_v61, %v15678_v6  ;;  %v5283_v31 = vcombine.high %v5273_v8, %v5273_v8  ;;  %v18283_v37 = vpop.f32.mrf.mxu1  ;;  %v19862_v61 = vld [vmem:[#allocation63_spill] sm:$0xff] }
 0x21c   : > { %v5284_v23 = vcombine.high %v5280_v60, %v5280_v60  ;;  %v18270_v19 = vadd.f32 %v5273_v8, %v17883_v21  ;;  %v18273_v51 = vadd.f32 %v5281_v52, %v19859_v54  ;;  %v18276_v27 = vadd.f32 %v5280_v60, %v17904_v13  ;;  %19861 = vst [vmem:[#allocation47_spill] sm:$0xff] %v18283_v37  ;;  %v19863_v21 = vld [vmem:[#allocation66_spill] sm:$0xff]  ;;  %v19877_v37 = vld [vmem:[#allocation64_spill] sm:$0xff] }
 0x21d   : > { %v18279_v39 = vadd.f32 %v5282_v16, %v17909_v53  ;;  %v5322_v50 = vrot.slane %v5300_v20, %v15678_v6  ;;  %v5329_v56 = vrot.slane %v5301_v18, %v15678_v6  ;;  %v18286_v15 = vadd.f32 %v5283_v31, %v19862_v61  ;;  %v18297_v20 = vpop.f32.mrf.mxu0  ;;  %v19869_v61 = vld [vmem:[#allocation52_spill] sm:$0xff] }
 0x21e   : > { %19860 = vst [vmem:[#allocation46_spill] sm:$0xff] %v18273_v51  ;;  %v18289_v8 = vadd.f32 %v5284_v23, %v19863_v21  ;;  %v5330_v52 = vcombine.high %v5308_v45, %v5308_v45  ;;  %v5331_v54 = vcombine.high %v5315_v9, %v5315_v9  ;;  %v18292_v60 = vadd.f32 %v5308_v45, %v17980_v29 }
 0x21f   : > { %v5332_v51 = vcombine.high %v5322_v50, %v5322_v50  ;;  %v5333_v13 = vcombine.high %v5329_v56, %v5329_v56  ;;  %v18295_v53 = vadd.f32 %v5322_v50, %v17990_v1  ;;  %19864 = vst [vmem:[#allocation49_spill] sm:$0xff] %v18297_v20  ;;  %v18303_v31 = vadd.f32 %v5315_v9, %v17983_v58  ;;  %v18319_v50 = vpop.f32.mrf.mxu1  ;;  %v19867_v9 = vld [vmem:[#allocation51_spill] sm:$0xff] }
 0x220   : > { %v18300_v16 = vadd.f32 %v5330_v52, %v17995_v41  ;;  %v18306_v23 = vadd.f32 %v5329_v56, %v18002_v4  ;;  %v18309_v18 = vadd.f32 %v5331_v54, %v18007_v24  ;;  %v5341_v45 = vrot.slane %v5072_v12, %v15678_v6  ;;  %19866 = vst [vmem:[#allocation48_spill] sm:$0xff] %v18319_v50  ;;  %v19868_v4 = vld [vmem:[#allocation54_spill] sm:$0xff]  ;;  %v19870_v24 = vld [vmem:[#allocation55_spill] sm:$0xff]  ;;  %v19871_v52 = vld [vmem:[#allocation56_spill] sm:$0xff] }
 0x221   : > { %v18312_v29 = vadd.f32 %v5332_v51, %v18012_v32  ;;  %v18315_v1 = vadd.f32 %v5333_v13, %v18017_v2  ;;  %v5348_v41 = vrot.slane %v5334_v38, %v15678_v6  ;;  %v5077_v58 = vadd.f32 %v14694_v17, %v18213_v62  ;;  %v19872_v32 = vld [vmem:[#allocation58_spill] sm:$0xff]  ;;  %v18330_v38 = vpop.f32.mrf.mxu0  ;;  %v19874_v62 = vld [vmem:[#allocation57_spill] sm:$0xff]  ;;  %v19875_v20 = vld [vmem:[#allocation59_spill] sm:$0xff] }
 0x222   : > { %v14716_v56 = vadd.f32 %v19868_v4, %v19867_v9  ;;  %v14756_v21 = vadd.f32 %v19870_v24, %v19869_v61  ;;  %v14719_v51 = vadd.f32 %v19872_v32, %v19871_v52  ;;  %v5349_v54 = vcombine.high %v5341_v45, %v5341_v45  ;;  %19873 = vst [vmem:[#allocation53_spill] sm:$0xff] %v18330_v38  ;;  %v19876_v4 = vld [vmem:[#allocation61_spill] sm:$0xff] }
 0x223   : > { %19865 = vst [vmem:[#allocation50_spill] sm:$0xff] %v18315_v1  ;;  %v5350_v2 = vcombine.high %v5348_v41, %v5348_v41  ;;  %v5357_v13 = vrot.slane %v5341_v45, %v15678_v6  ;;  %v5364_v12 = vrot.slane %v5348_v41, %v15678_v6  ;;  %v5389_v50 = vrot.slane %v5077_v58, %v15678_v6  ;;  %v18339_v45 = vpop.f32.mrf.mxu1 }
 0x224   : > { %v6421_v17 = vadd.f32 %v14756_v21, %v14716_v56  ;;  %v14759_v9 = vadd.f32 %v19875_v20, %v19874_v62  ;;  %v14722_v61 = vadd.f32 %v19877_v37, %v19876_v4  ;;  %v5371_v24 = vrot.slane %v5349_v54, %v15678_v6  ;;  %19878 = vst [vmem:[#allocation44_spill] sm:$0xff] %v18339_v45 }
 0x225   : > { %v5378_v52 = vrot.slane %v5350_v2, %v15678_v6  ;;  %v5379_v32 = vcombine.high %v5357_v13, %v5357_v13  ;;  %v5380_v1 = vcombine.high %v5364_v12, %v5364_v12  ;;  %v18342_v41 = vadd.f32 %v5357_v13, %v18037_v36  ;;  %v18354_v2 = vpop.f32.mrf.mxu0 }
 0x226   : > { %v18345_v58 = vadd.f32 %v5364_v12, %v18043_v59  ;;  %v5396_v56 = vrot.slane %v5389_v50, %v15678_v6  ;;  %v6457_v20 = vcombine.high %v6421_v17, %v6421_v17  ;;  %v5381_v21 = vcombine.high %v5371_v24, %v5371_v24  ;;  %19879 = vst [vmem:[#allocation45_spill] sm:$0xff] %v18354_v2 }
 0x227   : > { %v5382_v62 = vcombine.high %v5378_v52, %v5378_v52  ;;  %v18349_v37 = vadd.f32 %v5371_v24, %v18040_v26  ;;  %v18352_v54 = vadd.f32 %v5379_v32, %v18051_v49  ;;  %v18357_v4 = vadd.f32 %v5378_v52, %v18046_v14  ;;  %v18373_v24 = vpop.f32.mrf.mxu1  ;;  %v18375_v14 = vpop.f32.mrf.mxu0  ;;  %v19883_v52 = vld [vmem:[#allocation65_spill] sm:$0xff] }
 0x228   : > { %v18360_v36 = vadd.f32 %v5380_v1, %v18061_v0  ;;  %v18363_v59 = vadd.f32 %v5396_v56, %v18114_v30  ;;  %v6464_v50 = vrot.slane %v6421_v17, %v15678_v6  ;;  %v18367_v13 = vadd.f32 %v5381_v21, %v18056_v63  ;;  %19880 = vst [vmem:[#allocation60_spill] sm:$0xff] %v18373_v24  ;;  %v19882_v30 = vld [vmem:[#allocation62_spill] sm:$0xff]  ;;  %v19884_v17 = vld [vmem:[#allocation11_spill] sm:$0xff] }
 0x229   : > { %v18370_v26 = vadd.f32 %v5382_v62, %v18066_v33  ;;  %v6471_v49 = vrot.slane %v6457_v20, %v15678_v6  ;;  %v6424_v12 = vadd.f32 %v14759_v9, %v14719_v51  ;;  %19881 = vst [vmem:[#allocation63_spill] sm:$0xff] %v18375_v14  ;;  %v14762_v32 = vadd.f32 %v19883_v52, %v19882_v30  ;;  %v19885_v56 = vld [vmem:[#allocation19_spill] sm:$0xff]  ;;  %v18386_v9 = vpop.f32.mrf.mxu1  ;;  %v14815_v20 = vpop.f32.mrf.mxu0 }
 0x22a   : > { %v6472_v0 = vcombine.high %v6464_v50, %v6464_v50  ;;  %v6480_v1 = vrot.slane %v6464_v50, %v15678_v6  ;;  %v18382_v63 = vadd.f32 %v19885_v56, %v19884_v17  ;;  %19886 = vst [vmem:[#allocation66_spill] sm:$0xff] %v18386_v9  ;;  %v19887_v50 = vld [vmem:[#allocation24_spill] sm:$0xff] }
 0x22b   : > { %v6473_v21 = vcombine.high %v6471_v49, %v6471_v49  ;;  %v6487_v33 = vrot.slane %v6471_v49, %v15678_v6  ;;  %v6506_v62 = vcombine.high %v6424_v12, %v6424_v12  ;;  %v6513_v51 = vrot.slane %v6424_v12, %v15678_v6  ;;  %v14855_v45 = vpop.f32.mrf.mxu1  ;;  %v14816_v12 = vpop.f32.mrf.mxu0 }
 0x22c   : > { %v6494_v24 = vrot.slane %v6472_v0, %v15678_v6  ;;  %v6502_v14 = vcombine.high %v6480_v1, %v6480_v1  ;;  %v18390_v2 = vadd.f32 %v6480_v1, %v19887_v50  ;;  %v6429_v30 = vadd.f32 %v14762_v32, %v14722_v61  ;;  %v19888_v0 = vld [vmem:[#allocation23_spill] sm:$0xff]  ;;  %v19890_v45 = vld [vmem:[#allocation10_spill] sm:$0xff]  ;;  %v19891_v12 = vld [vmem:[#allocation32_spill] sm:$0xff] }
 0x22d   : > { %v6501_v52 = vrot.slane %v6473_v21, %v15678_v6  ;;  %v6503_v17 = vcombine.high %v6487_v33, %v6487_v33  ;;  %v18394_v56 = vadd.f32 %v6487_v33, %v18145_v46  ;;  %v6520_v49 = vrot.slane %v6506_v62, %v15678_v6  ;;  %v14856_v21 = vpop.f32.mrf.mxu1  ;;  %v18409_v33 = vpop.f32.mrf.mxu0 }
 0x22e   : > { %v6504_v38 = vcombine.high %v6494_v24, %v6494_v24  ;;  %v18398_v20 = vadd.f32 %v6494_v24, %v18139_v44  ;;  %v18401_v9 = vadd.f32 %v6502_v14, %v19888_v0  ;;  %v6521_v1 = vcombine.high %v6513_v51, %v6513_v51  ;;  %19889 = vst [vmem:[#allocation51_spill] sm:$0xff] %v18409_v33 }
 0x22f   : > { %v6505_v50 = vcombine.high %v6501_v52, %v6501_v52  ;;  %v18404_v61 = vadd.f32 %v6501_v52, %v18157_v11  ;;  %v18407_v32 = vadd.f32 %v6503_v17, %v18160_v7  ;;  %v6522_v46 = vcombine.high %v6520_v49, %v6520_v49  ;;  %v18422_v17 = vpop.f32.mrf.mxu1  ;;  %v18424_v21 = vpop.f32.mrf.mxu0 }
 0x230   : > { %v18412_v62 = vadd.f32 %v6504_v38, %v19890_v45  ;;  %v6529_v44 = vrot.slane %v6513_v51, %v15678_v6  ;;  %v6536_v24 = vrot.slane %v6520_v49, %v15678_v6  ;;  %v6543_v14 = vrot.slane %v6521_v1, %v15678_v6  ;;  %19892 = vst [vmem:[#allocation54_spill] sm:$0xff] %v18422_v17 }
 0x231   : > { %v18418_v0 = vadd.f32 %v6505_v50, %v19891_v12  ;;  %v6550_v11 = vrot.slane %v6522_v46, %v15678_v6  ;;  %v6555_v7 = vcombine.high %v6429_v30, %v6429_v30  ;;  %v6562_v52 = vrot.slane %v6429_v30, %v15678_v6  ;;  %19893 = vst [vmem:[#allocation52_spill] sm:$0xff] %v18424_v21  ;;  %v18438_v30 = vpop.f32.mrf.mxu1  ;;  %v18440_v12 = vpop.f32.mrf.mxu0  ;;  %v19903_v21 = vld [vmem:[#allocation67_spill] sm:$0xff] }
 0x232   : > { %v6551_v38 = vcombine.high %v6529_v44, %v6529_v44  ;;  %v6552_v45 = vcombine.high %v6536_v24, %v6536_v24  ;;  %v6553_v33 = vcombine.high %v6543_v14, %v6543_v14  ;;  %v18427_v51 = vadd.f32 %v6529_v44, %v18172_v34  ;;  %19894 = vst [vmem:[#allocation55_spill] sm:$0xff] %v18438_v30 }
 0x233   : > { %v6554_v49 = vcombine.high %v6550_v11, %v6550_v11  ;;  %v18430_v1 = vadd.f32 %v6543_v14, %v18175_v57  ;;  %v18433_v50 = vadd.f32 %v6536_v24, %v18181_v47  ;;  %v18436_v46 = vadd.f32 %v6550_v11, %v18184_v40  ;;  %19895 = vst [vmem:[#allocation56_spill] sm:$0xff] %v18440_v12  ;;  %v19897_v14 = vld [vmem:[#allocation12_spill] sm:$0xff]  ;;  %v19898_v11 = vld [vmem:[#allocation15_spill] sm:$0xff]  ;;  %v18458_v30 = vpop.f32.mrf.mxu1 }
 0x234   : > { %v18443_v17 = vadd.f32 %v6551_v38, %v18178_v43  ;;  %v18446_v34 = vadd.f32 %v6553_v33, %v18187_v3  ;;  %v18449_v44 = vadd.f32 %v6552_v45, %v18190_v48  ;;  %v6569_v57 = vrot.slane %v6555_v7, %v15678_v6  ;;  %19899 = vst [vmem:[#allocation57_spill] sm:$0xff] %v18458_v30  ;;  %v19900_v33 = vld [vmem:[#allocation13_spill] sm:$0xff]  ;;  %v19901_v38 = vld [vmem:[#allocation7_spill] sm:$0xff]  ;;  %v19902_v45 = vld [vmem:[#allocation14_spill] sm:$0xff] }
 0x235   : > { %v18453_v47 = vadd.f32 %v6554_v49, %v18193_v25  ;;  %v6570_v40 = vcombine.high %v6562_v52, %v6562_v52  ;;  %v6578_v24 = vrot.slane %v6562_v52, %v15678_v6  ;;  %v14765_v12 = vadd.f32 %v19898_v11, %v19897_v14  ;;  %v18472_v11 = vpop.f32.mrf.mxu1 }
 0x236   : > { %19896 = vst [vmem:[#allocation58_spill] sm:$0xff] %v18446_v34  ;;  %v6571_v43 = vcombine.high %v6569_v57, %v6569_v57  ;;  %v6585_v3 = vrot.slane %v6569_v57, %v15678_v6  ;;  %v14728_v48 = vadd.f32 %v19901_v38, %v19900_v33  ;;  %v14768_v7 = vadd.f32 %v19903_v21, %v19902_v45  ;;  %v18465_v34 = vpop.f32.mrf.mxu0 }
 0x237   : > { %19904 = vst [vmem:[#allocation59_spill] sm:$0xff] %v18465_v34  ;;  %v6592_v25 = vrot.slane %v6570_v40, %v15678_v6  ;;  %v6600_v49 = vcombine.high %v6578_v24, %v6578_v24  ;;  %v18469_v52 = vadd.f32 %v6578_v24, %v18217_v42  ;;  %v6432_v14 = vadd.f32 %v14765_v12, %v18382_v63  ;;  %v19906_v12 = vld [vmem:[#allocation36_spill] sm:$0xff] }
 0x238   : > { %19905 = vst [vmem:[#allocation61_spill] sm:$0xff] %v18472_v11  ;;  %v6599_v57 = vrot.slane %v6571_v43, %v15678_v6  ;;  %v6601_v30 = vcombine.high %v6585_v3, %v6585_v3  ;;  %v18476_v33 = vadd.f32 %v6585_v3, %v18223_v10  ;;  %v6437_v38 = vadd.f32 %v14768_v7, %v14728_v48  ;;  %v18491_v10 = vpop.f32.mrf.mxu0  ;;  %v18493_v3 = vpop.f32.mrf.mxu1  ;;  %v19910_v48 = vld [vmem:[#allocation38_spill] sm:$0xff] }
 0x239   : > { %v6602_v21 = vcombine.high %v6592_v25, %v6592_v25  ;;  %v18479_v45 = vadd.f32 %v6592_v25, %v18220_v55  ;;  %v18482_v40 = vadd.f32 %v6600_v49, %v18226_v22  ;;  %v6604_v42 = vcombine.high %v6432_v14, %v6432_v14  ;;  %19908 = vst [vmem:[#allocation62_spill] sm:$0xff] %v18491_v10  ;;  %v19912_v49 = vld [vmem:[#allocation39_spill] sm:$0xff] }
 0x23a   : > { %v6603_v24 = vcombine.high %v6599_v57, %v6599_v57  ;;  %v18485_v63 = vadd.f32 %v6599_v57, %v18229_v28  ;;  %v18488_v11 = vadd.f32 %v6601_v30, %v19906_v12  ;;  %v6611_v43 = vrot.slane %v6432_v14, %v15678_v6  ;;  %19909 = vst [vmem:[#allocation65_spill] sm:$0xff] %v18493_v3  ;;  %v19914_v12 = vld [vmem:[#allocation68_spill] sm:$0xff] }
 0x23b   : > { %v18496_v55 = vadd.f32 %v6602_v21, %v19910_v48  ;;  %v6618_v22 = vrot.slane %v6604_v42, %v15678_v6  ;;  %v6653_v7 = vcombine.high %v6437_v38, %v6437_v38  ;;  %v6660_v25 = vrot.slane %v6437_v38, %v15678_v6  ;;  %v19915_v14 = vld [vmem:[#allocation16_spill] sm:$0xff] }
 0x23c   : > { %19907 = vst [vmem:[#allocation64_spill] sm:$0xff] %v18488_v11  ;;  %v18501_v28 = vadd.f32 %v6603_v24, %v19912_v49  ;;  %v6619_v57 = vcombine.high %v6611_v43, %v6611_v43  ;;  %v6627_v30 = vrot.slane %v6611_v43, %v15678_v6  ;;  %v14731_v34 = vadd.f32 %v19915_v14, %v19914_v12  ;;  %v18513_v49 = vpop.f32.mrf.mxu0  ;;  %v18515_v43 = vpop.f32.mrf.mxu1  ;;  %v19918_v11 = vld [vmem:[#allocation46_spill] sm:$0xff] }
 0x23d   : > { %19911 = vst [vmem:[#allocation11_spill] sm:$0xff] %v18496_v55  ;;  %v6620_v10 = vcombine.high %v6618_v22, %v6618_v22  ;;  %v6634_v3 = vrot.slane %v6618_v22, %v15678_v6  ;;  %v6667_v21 = vrot.slane %v6653_v7, %v15678_v6  ;;  %v6668_v48 = vcombine.high %v6660_v25, %v6660_v25 }
 0x23e   : > { %19913 = vst [vmem:[#allocation19_spill] sm:$0xff] %v18501_v28  ;;  %v6641_v42 = vrot.slane %v6619_v57, %v15678_v6  ;;  %v6649_v55 = vcombine.high %v6627_v30, %v6627_v30  ;;  %v18510_v38 = vadd.f32 %v6627_v30, %v18261_v35  ;;  %v6676_v24 = vrot.slane %v6660_v25, %v15678_v6 }
 0x23f   : > { %19916 = vst [vmem:[#allocation24_spill] sm:$0xff] %v18513_v49  ;;  %19917 = vst [vmem:[#allocation23_spill] sm:$0xff] %v18515_v43  ;;  %v6648_v12 = vrot.slane %v6620_v10, %v15678_v6  ;;  %v6650_v14 = vcombine.high %v6634_v3, %v6634_v3  ;;  %v18519_v22 = vadd.f32 %v6634_v3, %v18264_v5 }
 0x240   : > { %v6669_v7 = vcombine.high %v6667_v21, %v6667_v21  ;;  %v6651_v28 = vcombine.high %v6641_v42, %v6641_v42  ;;  %v18522_v57 = vadd.f32 %v6641_v42, %v18270_v19  ;;  %v18525_v35 = vadd.f32 %v6649_v55, %v19918_v11  ;;  %v18539_v11 = vpop.f32.mrf.mxu0  ;;  %v18541_v55 = vpop.f32.mrf.mxu1 }
 0x241   : > { %v6683_v25 = vrot.slane %v6667_v21, %v15678_v6  ;;  %v6652_v30 = vcombine.high %v6648_v12, %v6648_v12  ;;  %v18529_v49 = vadd.f32 %v6648_v12, %v18276_v27  ;;  %v18532_v10 = vadd.f32 %v6650_v14, %v18279_v39  ;;  %19919 = vst [vmem:[#allocation10_spill] sm:$0xff] %v18539_v11 }
 0x242   : > { %v6690_v5 = vrot.slane %v6668_v48, %v15678_v6  ;;  %v18536_v3 = vadd.f32 %v6651_v28, %v18286_v15  ;;  %v6697_v19 = vrot.slane %v6669_v7, %v15678_v6  ;;  %v6698_v42 = vcombine.high %v6676_v24, %v6676_v24  ;;  %19920 = vst [vmem:[#allocation32_spill] sm:$0xff] %v18541_v55 }
 0x243   : > { %v6699_v43 = vcombine.high %v6683_v25, %v6683_v25  ;;  %v18544_v21 = vadd.f32 %v6652_v30, %v18289_v8  ;;  %v18547_v39 = vadd.f32 %v6676_v24, %v18292_v60  ;;  %v18556_v12 = vadd.f32 %v6683_v25, %v18303_v31  ;;  %v19928_v60 = vld [vmem:[#allocation69_spill] sm:$0xff]  ;;  %v19929_v24 = vld [vmem:[#allocation20_spill] sm:$0xff]  ;;  %v19930_v30 = vld [vmem:[#allocation18_spill] sm:$0xff] }
 0x244   : > { %v6700_v27 = vcombine.high %v6690_v5, %v6690_v5  ;;  %v18550_v48 = vadd.f32 %v6690_v5, %v18295_v53  ;;  %v6701_v15 = vcombine.high %v6697_v19, %v6697_v19  ;;  %v18553_v28 = vadd.f32 %v6698_v42, %v18300_v16  ;;  %v19931_v5 = vld [vmem:[#allocation9_spill] sm:$0xff]  ;;  %v19932_v16 = vld [vmem:[#allocation50_spill] sm:$0xff]  ;;  %v19935_v25 = vld [vmem:[#allocation71_spill] sm:$0xff] }
 0x245   : > { %19921 = vst [vmem:[#allocation12_spill] sm:$0xff] %v18547_v39  ;;  %19924 = vst [vmem:[#allocation7_spill] sm:$0xff] %v18556_v12  ;;  %v18559_v14 = vadd.f32 %v6697_v19, %v18306_v23  ;;  %v18565_v7 = vadd.f32 %v6699_v43, %v18309_v18  ;;  %v14771_v53 = vadd.f32 %v19929_v24, %v19928_v60  ;;  %v19934_v31 = vld [vmem:[#allocation70_spill] sm:$0xff]  ;;  %v19936_v23 = vld [vmem:[#allocation17_spill] sm:$0xff]  ;;  %v18580_v18 = vpop.f32.mrf.mxu0  ;;  %v18582_v43 = vpop.f32.mrf.mxu1 }
 0x246   : > { %19922 = vst [vmem:[#allocation15_spill] sm:$0xff] %v18550_v48  ;;  %19923 = vst [vmem:[#allocation13_spill] sm:$0xff] %v18553_v28  ;;  %v18562_v8 = vadd.f32 %v6700_v27, %v18312_v29  ;;  %v14734_v55 = vadd.f32 %v19931_v5, %v19930_v30  ;;  %v18572_v42 = vadd.f32 %v6701_v15, %v19932_v16  ;;  %v19937_v19 = vld [vmem:[#allocation21_spill] sm:$0xff]  ;;  %v19938_v29 = vld [vmem:[#allocation8_spill] sm:$0xff] }
 0x247   : > { %19925 = vst [vmem:[#allocation14_spill] sm:$0xff] %v18559_v14  ;;  %19927 = vst [vmem:[#allocation36_spill] sm:$0xff] %v18565_v7  ;;  %v14774_v11 = vadd.f32 %v19935_v25, %v19934_v31  ;;  %v14796_v14 = vadd.f32 %v19937_v19, %v19936_v23  ;;  %v19939_v27 = vld [vmem:[#allocation29_spill] sm:$0xff]  ;;  %v6440_v60 = vadd.f32 %v14771_v53, %v14731_v34  ;;  %v19942_v24 = vld [vmem:[#allocation26_spill] sm:$0xff] }
 0x248   : > { %19926 = vst [vmem:[#allocation67_spill] sm:$0xff] %v18562_v8  ;;  %19933 = vst [vmem:[#allocation38_spill] sm:$0xff] %v18572_v42  ;;  %v14836_v8 = vadd.f32 %v19939_v27, %v19938_v29  ;;  %v19943_v7 = vld [vmem:[#allocation27_spill] sm:$0xff]  ;;  %v19944_v5 = vld [vmem:[#allocation28_spill] sm:$0xff] }
 0x249   : > { %19940 = vst [vmem:[#allocation39_spill] sm:$0xff] %v18580_v18  ;;  %19941 = vst [vmem:[#allocation68_spill] sm:$0xff] %v18582_v43  ;;  %v14799_v30 = vadd.f32 %v19943_v7, %v19942_v24  ;;  %v19945_v15 = vld [vmem:[#allocation22_spill] sm:$0xff]  ;;  %v19946_v42 = vld [vmem:[#allocation31_spill] sm:$0xff]  ;;  %v6445_v25 = vadd.f32 %v14774_v11, %v14734_v55  ;;  %v6702_v43 = vcombine.high %v6440_v60, %v6440_v60 }
 0x24a   : > { %v14839_v16 = vadd.f32 %v19945_v15, %v19944_v5  ;;  %v19947_v28 = vld [vmem:[#allocation35_spill] sm:$0xff]  ;;  %v7971_v12 = vadd.f32 %v14836_v8, %v14796_v14  ;;  %v19948_v23 = vld [vmem:[#allocation30_spill] sm:$0xff]  ;;  %v19949_v19 = vld [vmem:[#allocation25_spill] sm:$0xff]  ;;  %v6709_v34 = vrot.slane %v6440_v60, %v15678_v6  ;;  %v18605_v14 = vpop.f32.mrf.mxu1 }
 0x24b   : > { %v14802_v31 = vadd.f32 %v19947_v28, %v19946_v42  ;;  %v14842_v48 = vadd.f32 %v19949_v19, %v19948_v23  ;;  %v19950_v29 = vld [vmem:[#allocation33_spill] sm:$0xff]  ;;  %v19952_v7 = vld [vmem:[#allocation34_spill] sm:$0xff]  ;;  %v19953_v24 = vld [vmem:[#allocation40_spill] sm:$0xff]  ;;  %v6757_v5 = vrot.slane %v6445_v25, %v15678_v6  ;;  %v18603_v28 = vpop.f32.mrf.mxu0  ;;  %19954 = vst [vmem:[#allocation16_spill] sm:$0xff] %v18605_v14  ;;  %v6716_v8 = vrot.slane %v6702_v43, %v15678_v6 }
 0x24c   : > { %v19951_v27 = vld [vmem:[#allocation37_spill] sm:$0xff]  ;;  %v7974_v53 = vadd.f32 %v14839_v16, %v14799_v30  ;;  %v14845_v39 = vadd.f32 %v19953_v24, %v19952_v7  ;;  %v8007_v15 = vcombine.high %v7971_v12, %v7971_v12  ;;  %v8014_v11 = vrot.slane %v7971_v12, %v15678_v6 }
 0x24d   : > { %v18594_v18 = vadd.f32 %v19951_v27, %v19950_v29  ;;  %v18601_v55 = vadd.f32 %v14842_v48, %v14802_v31  ;;  %v6717_v42 = vcombine.high %v6709_v34, %v6709_v34  ;;  %v6725_v60 = vrot.slane %v6709_v34, %v15678_v6  ;;  %v18612_v12 = vpop.f32.mrf.mxu0  ;;  %v18614_v48 = vpop.f32.mrf.mxu1 }
 0x24e   : > { %v8056_v30 = vcombine.high %v7974_v53, %v7974_v53  ;;  %v6764_v16 = vrot.slane %v6757_v5, %v15678_v6  ;;  %v8021_v23 = vrot.slane %v8007_v15, %v15678_v6  ;;  %v8022_v25 = vcombine.high %v8014_v11, %v8014_v11  ;;  %19955 = vst [vmem:[#allocation46_spill] sm:$0xff] %v18614_v48 }
 0x24f   : > { %v8030_v19 = vrot.slane %v8014_v11, %v15678_v6  ;;  %v6718_v31 = vcombine.high %v6716_v8, %v6716_v8  ;;  %v6732_v29 = vrot.slane %v6716_v8, %v15678_v6  ;;  %v6739_v43 = vrot.slane %v6717_v42, %v15678_v6  ;;  %v18625_v15 = vpop.f32.mrf.mxu0  ;;  %v18627_v11 = vpop.f32.mrf.mxu1 }
 0x250   : > { %v6747_v27 = vcombine.high %v6725_v60, %v6725_v60  ;;  %v18619_v34 = vadd.f32 %v6725_v60, %v18342_v41  ;;  %v18622_v7 = vadd.f32 %v6764_v16, %v18363_v59  ;;  %v8023_v24 = vcombine.high %v8021_v23, %v8021_v23  ;;  %19956 = vst [vmem:[#allocation69_spill] sm:$0xff] %v18625_v15 }
 0x251   : > { %v8037_v5 = vrot.slane %v8021_v23, %v15678_v6  ;;  %19957 = vst [vmem:[#allocation20_spill] sm:$0xff] %v18627_v11  ;;  %v6746_v48 = vrot.slane %v6718_v31, %v15678_v6  ;;  %v6748_v14 = vcombine.high %v6732_v29, %v6732_v29  ;;  %v6749_v8 = vcombine.high %v6739_v43, %v6739_v43  ;;  %v18641_v23 = vpop.f32.mrf.mxu0  ;;  %v18643_v11 = vpop.f32.mrf.mxu1 }
 0x252   : > { %v18631_v42 = vadd.f32 %v6739_v43, %v18349_v37  ;;  %v18634_v41 = vadd.f32 %v6747_v27, %v18352_v54  ;;  %v18637_v59 = vadd.f32 %v6732_v29, %v18345_v58  ;;  %v8044_v60 = vrot.slane %v8022_v25, %v15678_v6  ;;  %19958 = vst [vmem:[#allocation18_spill] sm:$0xff] %v18641_v23 }
 0x253   : > { %v8051_v16 = vrot.slane %v8023_v24, %v15678_v6  ;;  %19959 = vst [vmem:[#allocation9_spill] sm:$0xff] %v18643_v11  ;;  %v6750_v31 = vcombine.high %v6746_v48, %v6746_v48  ;;  %v18646_v15 = vadd.f32 %v6749_v8, %v18367_v13  ;;  %v18649_v37 = vadd.f32 %v6746_v48, %v18357_v4  ;;  %v18654_v27 = vpop.f32.mrf.mxu0  ;;  %v18656_v24 = vpop.f32.mrf.mxu1 }
 0x254   : > { %v18652_v54 = vadd.f32 %v6748_v14, %v18360_v36  ;;  %v8052_v58 = vcombine.high %v8030_v19, %v8030_v19  ;;  %v8053_v29 = vcombine.high %v8037_v5, %v8037_v5  ;;  %v8054_v43 = vcombine.high %v8044_v60, %v8044_v60  ;;  %19960 = vst [vmem:[#allocation50_spill] sm:$0xff] %v18654_v27 }
 0x255   : > { %v8055_v25 = vcombine.high %v8051_v16, %v8051_v16  ;;  %19961 = vst [vmem:[#allocation70_spill] sm:$0xff] %v18656_v24  ;;  %v18659_v11 = vadd.f32 %v6750_v31, %v18370_v26  ;;  %v18662_v13 = vadd.f32 %v8030_v19, %v18390_v2  ;;  %v18665_v4 = vadd.f32 %v8044_v60, %v18398_v20  ;;  %v18682_v2 = vpop.f32.mrf.mxu0  ;;  %v18684_v19 = vpop.f32.mrf.mxu1  ;;  %v19965_v60 = vld [vmem:[#allocation43_spill] sm:$0xff]  ;;  %v19966_v31 = vld [vmem:[#allocation41_spill] sm:$0xff] }
 0x256   : > { %v18668_v36 = vadd.f32 %v8037_v5, %v18394_v56  ;;  %v18671_v14 = vadd.f32 %v8052_v58, %v18401_v9  ;;  %v18674_v48 = vadd.f32 %v8054_v43, %v18412_v62  ;;  %v18677_v8 = vadd.f32 %v8051_v16, %v18404_v61  ;;  %19962 = vst [vmem:[#allocation71_spill] sm:$0xff] %v18682_v2  ;;  %v19964_v5 = vld [vmem:[#allocation42_spill] sm:$0xff]  ;;  %v19967_v58 = vld [vmem:[#allocation47_spill] sm:$0xff] }
 0x257   : > { %v18680_v26 = vadd.f32 %v8053_v29, %v18407_v32  ;;  %19963 = vst [vmem:[#allocation17_spill] sm:$0xff] %v18684_v19  ;;  %v18687_v20 = vadd.f32 %v8055_v25, %v18418_v0  ;;  %v8063_v56 = vrot.slane %v7974_v53, %v15678_v6  ;;  %v8070_v9 = vrot.slane %v8056_v30, %v15678_v6  ;;  %v14895_v0 = vpop.f32.mrf.mxu0  ;;  %v14935_v43 = vpop.f32.mrf.mxu1 }
 0x258   : > { %v8105_v62 = vcombine.high %v18601_v55, %v18601_v55  ;;  %v8112_v61 = vrot.slane %v18601_v55, %v15678_v6  ;;  %v7982_v32 = vadd.f32 %v14845_v39, %v18594_v18  ;;  %v14808_v16 = vadd.f32 %v19965_v60, %v19964_v5 }
 0x259   : > { %v14848_v29 = vadd.f32 %v19967_v58, %v19966_v31  ;;  %v8071_v25 = vcombine.high %v8063_v56, %v8063_v56  ;;  %v8072_v53 = vcombine.high %v8070_v9, %v8070_v9  ;;  %v8079_v30 = vrot.slane %v8063_v56, %v15678_v6  ;;  %v14896_v18 = vpop.f32.mrf.mxu0  ;;  %v14936_v27 = vpop.f32.mrf.mxu1 }
 0x25a   : > { %v8086_v19 = vrot.slane %v8070_v9, %v15678_v6  ;;  %v8119_v24 = vrot.slane %v8105_v62, %v15678_v6  ;;  %v8120_v2 = vcombine.high %v8112_v61, %v8112_v61  ;;  %v8128_v55 = vrot.slane %v8112_v61, %v15678_v6 }
 0x25b   : > { %v8154_v39 = vcombine.high %v7982_v32, %v7982_v32  ;;  %v8093_v5 = vrot.slane %v8071_v25, %v15678_v6  ;;  %v8100_v60 = vrot.slane %v8072_v53, %v15678_v6  ;;  %v8101_v31 = vcombine.high %v8079_v30, %v8079_v30  ;;  %v18713_v43 = vpop.f32.mrf.mxu0  ;;  %v18715_v61 = vpop.f32.mrf.mxu1 }
 0x25c   : > { %v8102_v58 = vcombine.high %v8086_v19, %v8086_v19  ;;  %v18707_v0 = vadd.f32 %v8079_v30, %v18427_v51  ;;  %v18710_v56 = vadd.f32 %v8086_v19, %v18433_v50  ;;  %v8121_v9 = vcombine.high %v8119_v24, %v8119_v24  ;;  %19968 = vst [vmem:[#allocation21_spill] sm:$0xff] %v18713_v43  ;;  %v19972_v43 = vld [vmem:[#allocation58_spill] sm:$0xff] }
 0x25d   : > { %v8135_v62 = vrot.slane %v8119_v24, %v15678_v6  ;;  %19969 = vst [vmem:[#allocation8_spill] sm:$0xff] %v18715_v61  ;;  %v8103_v27 = vcombine.high %v8093_v5, %v8093_v5  ;;  %v8104_v18 = vcombine.high %v8100_v60, %v8100_v60  ;;  %v18718_v25 = vadd.f32 %v8093_v5, %v18430_v1  ;;  %v18731_v30 = vpop.f32.mrf.mxu0  ;;  %v18733_v61 = vpop.f32.mrf.mxu1 }
 0x25e   : > { %v18721_v53 = vadd.f32 %v8101_v31, %v18443_v17  ;;  %v18724_v51 = vadd.f32 %v8100_v60, %v18436_v46  ;;  %v18727_v50 = vadd.f32 %v8102_v58, %v18449_v44  ;;  %v8142_v24 = vrot.slane %v8120_v2, %v15678_v6  ;;  %19970 = vst [vmem:[#allocation29_spill] sm:$0xff] %v18731_v30 }
 0x25f   : > { %v8149_v19 = vrot.slane %v8121_v9, %v15678_v6  ;;  %19971 = vst [vmem:[#allocation26_spill] sm:$0xff] %v18733_v61  ;;  %v18736_v1 = vadd.f32 %v8103_v27, %v19972_v43  ;;  %v18739_v17 = vadd.f32 %v8104_v18, %v18453_v47  ;;  %v8150_v5 = vcombine.high %v8128_v55, %v8128_v55  ;;  %v18747_v58 = vpop.f32.mrf.mxu0  ;;  %v18749_v9 = vpop.f32.mrf.mxu1  ;;  %v19975_v18 = vld [vmem:[#allocation64_spill] sm:$0xff] }
 0x260   : > { %v8151_v46 = vcombine.high %v8135_v62, %v8135_v62  ;;  %v8152_v60 = vcombine.high %v8142_v24, %v8142_v24  ;;  %v18742_v44 = vadd.f32 %v8128_v55, %v18469_v52  ;;  %v18745_v2 = vadd.f32 %v8142_v24, %v18479_v45  ;;  %19973 = vst [vmem:[#allocation27_spill] sm:$0xff] %v18747_v58  ;;  %v19976_v52 = vld [vmem:[#allocation11_spill] sm:$0xff] }
 0x261   : > { %v8153_v31 = vcombine.high %v8149_v19, %v8149_v19  ;;  %19974 = vst [vmem:[#allocation28_spill] sm:$0xff] %v18749_v9  ;;  %v18752_v43 = vadd.f32 %v8150_v5, %v18482_v40  ;;  %v18755_v47 = vadd.f32 %v8135_v62, %v18476_v33  ;;  %v18758_v27 = vadd.f32 %v8149_v19, %v18485_v63  ;;  %v19978_v45 = vld [vmem:[#allocation19_spill] sm:$0xff]  ;;  %v18771_v5 = vpop.f32.mrf.mxu0  ;;  %v18773_v33 = vpop.f32.mrf.mxu1  ;;  %v19982_v63 = vld [vmem:[#allocation49_spill] sm:$0xff] }
 0x262   : > { %v18761_v61 = vadd.f32 %v8151_v46, %v19975_v18  ;;  %v18764_v55 = vadd.f32 %v8152_v60, %v19976_v52  ;;  %v8161_v9 = vrot.slane %v7982_v32, %v15678_v6  ;;  %v8168_v40 = vrot.slane %v8154_v39, %v15678_v6  ;;  %19980 = vst [vmem:[#allocation35_spill] sm:$0xff] %v18771_v5  ;;  %v19983_v19 = vld [vmem:[#allocation53_spill] sm:$0xff]  ;;  %v19984_v46 = vld [vmem:[#allocation48_spill] sm:$0xff]  ;;  %v19987_v52 = vld [vmem:[#allocation63_spill] sm:$0xff] }
 0x263   : > { %v18767_v24 = vadd.f32 %v8153_v31, %v19978_v45  ;;  %19981 = vst [vmem:[#allocation30_spill] sm:$0xff] %v18773_v33  ;;  %v7987_v62 = vadd.f32 %v14848_v29, %v14808_v16  ;;  %v14811_v58 = vadd.f32 %v19983_v19, %v19982_v63  ;;  %v19985_v18 = vld [vmem:[#allocation44_spill] sm:$0xff]  ;;  %v19986_v60 = vld [vmem:[#allocation45_spill] sm:$0xff]  ;;  %v18785_v5 = vpop.f32.mrf.mxu1  ;;  %v19991_v33 = vld [vmem:[#allocation66_spill] sm:$0xff] }
 0x264   : > { %19977 = vst [vmem:[#allocation22_spill] sm:$0xff] %v18764_v55  ;;  %v14851_v30 = vadd.f32 %v19985_v18, %v19984_v46  ;;  %v14814_v23 = vadd.f32 %v19987_v52, %v19986_v60  ;;  %v8169_v31 = vcombine.high %v8161_v9, %v8161_v9  ;;  %v8170_v45 = vcombine.high %v8168_v40, %v8168_v40  ;;  %v19990_v19 = vld [vmem:[#allocation60_spill] sm:$0xff] }
 0x265   : > { %19979 = vst [vmem:[#allocation31_spill] sm:$0xff] %v18767_v24  ;;  %v8177_v32 = vrot.slane %v8161_v9, %v15678_v6  ;;  %v8184_v39 = vrot.slane %v8168_v40, %v15678_v6  ;;  %v18783_v24 = vpop.f32.mrf.mxu0  ;;  %19989 = vst [vmem:[#allocation33_spill] sm:$0xff] %v18785_v5  ;;  %v8203_v16 = vcombine.high %v7987_v62, %v7987_v62  ;;  %v18794_v40 = vpop.f32.mrf.mxu1 }
 0x266   : > { %19988 = vst [vmem:[#allocation25_spill] sm:$0xff] %v18783_v24  ;;  %v8210_v29 = vrot.slane %v7987_v62, %v15678_v6  ;;  %v7990_v63 = vadd.f32 %v14851_v30, %v14811_v58  ;;  %v14854_v46 = vadd.f32 %v19991_v33, %v19990_v19  ;;  %v8191_v18 = vrot.slane %v8169_v31, %v15678_v6 }
 0x267   : > { %v8198_v60 = vrot.slane %v8170_v45, %v15678_v6  ;;  %v8199_v52 = vcombine.high %v8177_v32, %v8177_v32  ;;  %v8200_v55 = vcombine.high %v8184_v39, %v8184_v39  ;;  %v18792_v9 = vpop.f32.mrf.mxu0  ;;  %19993 = vst [vmem:[#allocation34_spill] sm:$0xff] %v18794_v40  ;;  %v18797_v24 = vadd.f32 %v8177_v32, %v18510_v38 }
 0x268   : > { %19992 = vst [vmem:[#allocation37_spill] sm:$0xff] %v18792_v9  ;;  %v18800_v5 = vadd.f32 %v8184_v39, %v18519_v22  ;;  %v8217_v30 = vrot.slane %v8203_v16, %v15678_v6  ;;  %v8218_v58 = vcombine.high %v8210_v29, %v8210_v29  ;;  %v8201_v33 = vcombine.high %v8191_v18, %v8191_v18  ;;  %v18818_v16 = vpop.f32.mrf.mxu1 }
 0x269   : > { %v8202_v62 = vcombine.high %v8198_v60, %v8198_v60  ;;  %v18804_v31 = vadd.f32 %v8191_v18, %v18522_v57  ;;  %v18807_v45 = vadd.f32 %v8199_v52, %v18525_v35  ;;  %v18810_v19 = vadd.f32 %v8198_v60, %v18529_v49  ;;  %v18816_v39 = vpop.f32.mrf.mxu0  ;;  %19995 = vst [vmem:[#allocation42_spill] sm:$0xff] %v18818_v16  ;;  %v19998_v18 = vld [vmem:[#allocation12_spill] sm:$0xff]  ;;  %v20000_v16 = vld [vmem:[#allocation15_spill] sm:$0xff] }
 0x26a   : > { %v18813_v38 = vadd.f32 %v8200_v55, %v18532_v10  ;;  %v8219_v32 = vcombine.high %v8217_v30, %v8217_v30  ;;  %v8226_v22 = vrot.slane %v8210_v29, %v15678_v6  ;;  %19994 = vst [vmem:[#allocation40_spill] sm:$0xff] %v18816_v39  ;;  %v18821_v40 = vadd.f32 %v8201_v33, %v18536_v3  ;;  %v20001_v3 = vld [vmem:[#allocation7_spill] sm:$0xff] }
 0x26b   : > { %v18824_v57 = vadd.f32 %v8202_v62, %v18544_v21  ;;  %v8233_v35 = vrot.slane %v8217_v30, %v15678_v6  ;;  %v8240_v49 = vrot.slane %v8218_v58, %v15678_v6  ;;  %v8252_v29 = vcombine.high %v7990_v63, %v7990_v63  ;;  %v20003_v62 = vld [vmem:[#allocation13_spill] sm:$0xff]  ;;  %v20004_v58 = vld [vmem:[#allocation14_spill] sm:$0xff] }
 0x26c   : > { %19996 = vst [vmem:[#allocation43_spill] sm:$0xff] %v18821_v40  ;;  %v8247_v10 = vrot.slane %v8219_v32, %v15678_v6  ;;  %v8248_v55 = vcombine.high %v8226_v22, %v8226_v22  ;;  %v18830_v60 = vadd.f32 %v8226_v22, %v19998_v18  ;;  %v8259_v32 = vrot.slane %v7990_v63, %v15678_v6  ;;  %v18845_v22 = vpop.f32.mrf.mxu0  ;;  %v18847_v18 = vpop.f32.mrf.mxu1  ;;  %v20012_v63 = vld [vmem:[#allocation51_spill] sm:$0xff] }
 0x26d   : > { %19997 = vst [vmem:[#allocation41_spill] sm:$0xff] %v18824_v57  ;;  %v8249_v52 = vcombine.high %v8233_v35, %v8233_v35  ;;  %v8250_v39 = vcombine.high %v8240_v49, %v8240_v49  ;;  %v18833_v9 = vadd.f32 %v8240_v49, %v20000_v16  ;;  %v18836_v33 = vadd.f32 %v8233_v35, %v20001_v3  ;;  %v20009_v16 = vld [vmem:[#allocation36_spill] sm:$0xff] }
 0x26e   : > { %19999 = vst [vmem:[#allocation47_spill] sm:$0xff] %v18830_v60  ;;  %v8251_v21 = vcombine.high %v8247_v10, %v8247_v10  ;;  %v18839_v30 = vadd.f32 %v8248_v55, %v20003_v62  ;;  %v18842_v57 = vadd.f32 %v8247_v10, %v20004_v58  ;;  %20006 = vst [vmem:[#allocation11_spill] sm:$0xff] %v18845_v22  ;;  %v20008_v60 = vld [vmem:[#allocation67_spill] sm:$0xff]  ;;  %v20010_v55 = vld [vmem:[#allocation38_spill] sm:$0xff] }
 0x26f   : > { %20002 = vst [vmem:[#allocation58_spill] sm:$0xff] %v18836_v33  ;;  %20007 = vst [vmem:[#allocation19_spill] sm:$0xff] %v18847_v18  ;;  %v18850_v40 = vadd.f32 %v8250_v39, %v20008_v60  ;;  %v18853_v49 = vadd.f32 %v8249_v52, %v20009_v16  ;;  %v8266_v35 = vrot.slane %v8252_v29, %v15678_v6  ;;  %v20014_v60 = vld [vmem:[#allocation54_spill] sm:$0xff]  ;;  %v20015_v52 = vld [vmem:[#allocation55_spill] sm:$0xff] }
 0x270   : > { %20005 = vst [vmem:[#allocation64_spill] sm:$0xff] %v18842_v57  ;;  %v7995_v3 = vadd.f32 %v14854_v46, %v14814_v23  ;;  %v18857_v62 = vadd.f32 %v8251_v21, %v20010_v55  ;;  %v8267_v10 = vcombine.high %v8259_v32, %v8259_v32  ;;  %v8275_v58 = vrot.slane %v8259_v32, %v15678_v6  ;;  %v20013_v57 = vld [vmem:[#allocation52_spill] sm:$0xff]  ;;  %v20017_v55 = vld [vmem:[#allocation59_spill] sm:$0xff] }
 0x271   : > { %v14876_v22 = vadd.f32 %v20013_v57, %v20012_v63  ;;  %v8268_v33 = vcombine.high %v8266_v35, %v8266_v35  ;;  %v8282_v18 = vrot.slane %v8266_v35, %v15678_v6  ;;  %v14916_v16 = vadd.f32 %v20015_v52, %v20014_v60  ;;  %v20016_v21 = vld [vmem:[#allocation56_spill] sm:$0xff]  ;;  %v18874_v57 = vpop.f32.mrf.mxu1 }
 0x272   : > { %20011 = vst [vmem:[#allocation49_spill] sm:$0xff] %v18857_v62  ;;  %v8307_v39 = vrot.slane %v7995_v3, %v15678_v6  ;;  %v8289_v29 = vrot.slane %v8267_v10, %v15678_v6  ;;  %v8297_v23 = vcombine.high %v8275_v58, %v8275_v58  ;;  %v18868_v46 = vadd.f32 %v8275_v58, %v18619_v34  ;;  %v18872_v62 = vpop.f32.mrf.mxu0 }
 0x273   : > { %v14879_v32 = vadd.f32 %v20017_v55, %v20016_v21  ;;  %20018 = vst [vmem:[#allocation53_spill] sm:$0xff] %v18872_v62  ;;  %20019 = vst [vmem:[#allocation48_spill] sm:$0xff] %v18874_v57  ;;  %v8296_v35 = vrot.slane %v8268_v33, %v15678_v6  ;;  %v8298_v63 = vcombine.high %v8282_v18, %v8282_v18  ;;  %v18889_v55 = vpop.f32.mrf.mxu1 }
 0x274   : > { %v18878_v3 = vadd.f32 %v8282_v18, %v18637_v59  ;;  %v8314_v60 = vrot.slane %v8307_v39, %v15678_v6  ;;  %v8299_v10 = vcombine.high %v8289_v29, %v8289_v29  ;;  %v18882_v52 = vadd.f32 %v8289_v29, %v18631_v42  ;;  %v18887_v21 = vpop.f32.mrf.mxu0  ;;  %20021 = vst [vmem:[#allocation45_spill] sm:$0xff] %v18889_v55  ;;  %v20023_v39 = vld [vmem:[#allocation57_spill] sm:$0xff] }
 0x275   : > { %v18885_v34 = vadd.f32 %v8297_v23, %v18634_v41  ;;  %v9340_v58 = vadd.f32 %v14916_v16, %v14876_v22  ;;  %20020 = vst [vmem:[#allocation44_spill] sm:$0xff] %v18887_v21  ;;  %v8300_v57 = vcombine.high %v8296_v35, %v8296_v35  ;;  %v18892_v33 = vadd.f32 %v8296_v35, %v18649_v37  ;;  %v20024_v16 = vld [vmem:[#allocation61_spill] sm:$0xff]  ;;  %v18908_v55 = vpop.f32.mrf.mxu1  ;;  %v20029_v35 = vld [vmem:[#allocation24_spill] sm:$0xff]  ;;  %v20033_v21 = vld [vmem:[#allocation39_spill] sm:$0xff] }
 0x276   : > { %v18895_v59 = vadd.f32 %v8298_v63, %v18652_v54  ;;  %v18898_v18 = vadd.f32 %v8314_v60, %v18622_v7  ;;  %v18901_v42 = vadd.f32 %v8299_v10, %v18646_v15  ;;  %v14919_v29 = vadd.f32 %v20024_v16, %v20023_v39  ;;  %v18906_v23 = vpop.f32.mrf.mxu0  ;;  %20026 = vst [vmem:[#allocation66_spill] sm:$0xff] %v18908_v55  ;;  %v20028_v54 = vld [vmem:[#allocation62_spill] sm:$0xff]  ;;  %v20030_v63 = vld [vmem:[#allocation65_spill] sm:$0xff]  ;;  %v20031_v60 = vld [vmem:[#allocation23_spill] sm:$0xff] }
 0x277   : > { %v9376_v41 = vcombine.high %v9340_v58, %v9340_v58  ;;  %v9383_v22 = vrot.slane %v9340_v58, %v15678_v6  ;;  %20025 = vst [vmem:[#allocation60_spill] sm:$0xff] %v18906_v23  ;;  %v18911_v37 = vadd.f32 %v8300_v57, %v18659_v11  ;;  %v14882_v7 = vadd.f32 %v20029_v35, %v20028_v54  ;;  %v20032_v10 = vld [vmem:[#allocation10_spill] sm:$0xff]  ;;  %v18923_v55 = vpop.f32.mrf.mxu1  ;;  %v20036_v57 = vld [vmem:[#allocation32_spill] sm:$0xff] }
 0x278   : > { %20022 = vst [vmem:[#allocation63_spill] sm:$0xff] %v18898_v18  ;;  %v14922_v15 = vadd.f32 %v20031_v60, %v20030_v63  ;;  %v14885_v62 = vadd.f32 %v20033_v21, %v20032_v10  ;;  %v9343_v16 = vadd.f32 %v14919_v29, %v14879_v32  ;;  %v18921_v23 = vpop.f32.mrf.mxu0  ;;  %20035 = vst [vmem:[#allocation7_spill] sm:$0xff] %v18923_v55  ;;  %v20038_v63 = vld [vmem:[#allocation16_spill] sm:$0xff]  ;;  %v20039_v21 = vld [vmem:[#allocation46_spill] sm:$0xff] }
 0x279   : > { %20027 = vst [vmem:[#allocation12_spill] sm:$0xff] %v18911_v37  ;;  %v9390_v58 = vrot.slane %v9376_v41, %v15678_v6  ;;  %v9391_v18 = vcombine.high %v9383_v22, %v9383_v22  ;;  %v9399_v39 = vrot.slane %v9383_v22, %v15678_v6  ;;  %20034 = vst [vmem:[#allocation15_spill] sm:$0xff] %v18921_v23  ;;  %v20037_v37 = vld [vmem:[#allocation68_spill] sm:$0xff] }
 0x27a   : > { %v9348_v11 = vadd.f32 %v14922_v15, %v14882_v7  ;;  %v14925_v54 = vadd.f32 %v20037_v37, %v20036_v57  ;;  %v18929_v35 = vadd.f32 %v18612_v12, %v18603_v28  ;;  %v18933_v60 = vadd.f32 %v20039_v21, %v20038_v63  ;;  %v18937_v10 = vpop.f32.mrf.mxu0  ;;  %v18939_v7 = vpop.f32.mrf.mxu1 }
 0x27b   : > { %v9392_v41 = vcombine.high %v9390_v58, %v9390_v58  ;;  %v9406_v22 = vrot.slane %v9390_v58, %v15678_v6  ;;  %v9413_v32 = vrot.slane %v9391_v18, %v15678_v6  ;;  %v9421_v29 = vcombine.high %v9399_v39, %v9399_v39  ;;  %20040 = vst [vmem:[#allocation13_spill] sm:$0xff] %v18937_v10 }
 0x27c   : > { %20041 = vst [vmem:[#allocation14_spill] sm:$0xff] %v18939_v7  ;;  %v18942_v37 = vadd.f32 %v9399_v39, %v18662_v13  ;;  %v9425_v15 = vcombine.high %v9343_v16, %v9343_v16  ;;  %v9432_v28 = vrot.slane %v9343_v16, %v15678_v6  ;;  %v9474_v12 = vcombine.high %v9348_v11, %v9348_v11  ;;  %v18949_v18 = vpop.f32.mrf.mxu0  ;;  %v18951_v55 = vpop.f32.mrf.mxu1 }
 0x27d   : > { %v9420_v57 = vrot.slane %v9392_v41, %v15678_v6  ;;  %v9422_v63 = vcombine.high %v9406_v22, %v9406_v22  ;;  %v9423_v21 = vcombine.high %v9413_v32, %v9413_v32  ;;  %v18947_v58 = vadd.f32 %v9413_v32, %v18665_v4  ;;  %20042 = vst [vmem:[#allocation67_spill] sm:$0xff] %v18949_v18 }
 0x27e   : > { %20043 = vst [vmem:[#allocation36_spill] sm:$0xff] %v18951_v55  ;;  %v18954_v7 = vadd.f32 %v9421_v29, %v18671_v14  ;;  %v18957_v13 = vadd.f32 %v9406_v22, %v18668_v36  ;;  %v9439_v39 = vrot.slane %v9425_v15, %v15678_v6  ;;  %v9440_v16 = vcombine.high %v9432_v28, %v9432_v28  ;;  %v14975_v55 = vpop.f32.mrf.mxu0  ;;  %v15015_v18 = vpop.f32.mrf.mxu1 }
 0x27f   : > { %v9424_v10 = vcombine.high %v9420_v57, %v9420_v57  ;;  %v18961_v41 = vadd.f32 %v9423_v21, %v18674_v48  ;;  %v18964_v4 = vadd.f32 %v9420_v57, %v18677_v8  ;;  %v18967_v32 = vadd.f32 %v9422_v63, %v18680_v26 }
 0x280   : > { %v9441_v14 = vcombine.high %v9439_v39, %v9439_v39  ;;  %v9448_v29 = vrot.slane %v9432_v28, %v15678_v6  ;;  %v9455_v36 = vrot.slane %v9439_v39, %v15678_v6  ;;  %v9462_v22 = vrot.slane %v9440_v16, %v15678_v6  ;;  %v14976_v21 = vpop.f32.mrf.mxu0  ;;  %v15016_v26 = vpop.f32.mrf.mxu1 }
 0x281   : > { %v18973_v15 = vadd.f32 %v9424_v10, %v18687_v20  ;;  %v9481_v48 = vrot.slane %v9348_v11, %v15678_v6  ;;  %v9488_v8 = vrot.slane %v9474_v12, %v15678_v6  ;;  %v9351_v57 = vadd.f32 %v14925_v54, %v14885_v62 }
 0x282   : > { %v9469_v55 = vrot.slane %v9441_v14, %v15678_v6  ;;  %v9470_v63 = vcombine.high %v9448_v29, %v9448_v29  ;;  %v9471_v18 = vcombine.high %v9455_v36, %v9455_v36  ;;  %v9472_v23 = vcombine.high %v9462_v22, %v9462_v22 }
 0x283   : > { %20044 = vst [vmem:[#allocation38_spill] sm:$0xff] %v18973_v15  ;;  %v18979_v28 = vadd.f32 %v9448_v29, %v18707_v0  ;;  %v18982_v39 = vadd.f32 %v9462_v22, %v18718_v25  ;;  %v18985_v20 = vadd.f32 %v9455_v36, %v18710_v56  ;;  %v9489_v11 = vcombine.high %v9481_v48, %v9481_v48 }
 0x284   : > { %v9473_v10 = vcombine.high %v9469_v55, %v9469_v55  ;;  %v18988_v62 = vadd.f32 %v9470_v63, %v18721_v53  ;;  %v18991_v54 = vadd.f32 %v9472_v23, %v18736_v1  ;;  %v18994_v12 = vadd.f32 %v9469_v55, %v18724_v51 }
 0x285   : > { %v18997_v0 = vadd.f32 %v9471_v18, %v18727_v50  ;;  %v9490_v16 = vcombine.high %v9488_v8, %v9488_v8  ;;  %v9497_v25 = vrot.slane %v9481_v48, %v15678_v6  ;;  %v9504_v56 = vrot.slane %v9488_v8, %v15678_v6 }
 0x286   : > { %v19002_v14 = vadd.f32 %v9473_v10, %v18739_v17  ;;  %v9511_v53 = vrot.slane %v9489_v11, %v15678_v6  ;;  %v9523_v29 = vcombine.high %v9351_v57, %v9351_v57  ;;  %v9530_v1 = vrot.slane %v9351_v57, %v15678_v6  ;;  %v20046_v11 = vld [vmem:[#allocation31_spill] sm:$0xff] }
 0x287   : > { %v9518_v23 = vrot.slane %v9490_v16, %v15678_v6  ;;  %v9519_v51 = vcombine.high %v9497_v25, %v9497_v25  ;;  %v9520_v36 = vcombine.high %v9504_v56, %v9504_v56  ;;  %v19008_v50 = vadd.f32 %v9497_v25, %v18742_v44  ;;  %v20045_v44 = vld [vmem:[#allocation22_spill] sm:$0xff] }
 0x288   : > { %v9521_v22 = vcombine.high %v9511_v53, %v9511_v53  ;;  %v19011_v48 = vadd.f32 %v9511_v53, %v18745_v2  ;;  %v19014_v8 = vadd.f32 %v9504_v56, %v18755_v47  ;;  %v9537_v17 = vrot.slane %v9523_v29, %v15678_v6  ;;  %v20049_v25 = vld [vmem:[#allocation18_spill] sm:$0xff] }
 0x289   : > { %v9522_v21 = vcombine.high %v9518_v23, %v9518_v23  ;;  %v19018_v26 = vadd.f32 %v9519_v51, %v18752_v43  ;;  %v19021_v57 = vadd.f32 %v9518_v23, %v18758_v27  ;;  %v19024_v55 = vadd.f32 %v9520_v36, %v18761_v61  ;;  %v20048_v27 = vld [vmem:[#allocation69_spill] sm:$0xff] }
 0x28a   : > { %v19027_v63 = vadd.f32 %v9521_v22, %v20045_v44  ;;  %v9538_v2 = vcombine.high %v9530_v1, %v9530_v1  ;;  %v9539_v18 = vcombine.high %v9537_v17, %v9537_v17  ;;  %v9546_v47 = vrot.slane %v9530_v1, %v15678_v6 }
 0x28b   : > { %v19031_v10 = vadd.f32 %v9522_v21, %v20046_v11  ;;  %v9553_v16 = vrot.slane %v9537_v17, %v15678_v6  ;;  %v9356_v43 = vadd.f32 %v18933_v60, %v18929_v35  ;;  %v14891_v56 = vadd.f32 %v20049_v25, %v20048_v27  ;;  %v20051_v11 = vld [vmem:[#allocation41_spill] sm:$0xff] }
 0x28c   : > { %v9560_v61 = vrot.slane %v9538_v2, %v15678_v6  ;;  %v9567_v53 = vrot.slane %v9539_v18, %v15678_v6  ;;  %v9568_v29 = vcombine.high %v9546_v47, %v9546_v47  ;;  %v19041_v23 = vadd.f32 %v9546_v47, %v18797_v24  ;;  %v20050_v18 = vld [vmem:[#allocation43_spill] sm:$0xff] }
 0x28d   : > { %20047 = vst [vmem:[#allocation51_spill] sm:$0xff] %v19031_v10  ;;  %v9569_v1 = vcombine.high %v9553_v16, %v9553_v16  ;;  %v19044_v51 = vadd.f32 %v9553_v16, %v18800_v5  ;;  %v9572_v36 = vcombine.high %v9356_v43, %v9356_v43  ;;  %v9579_v22 = vrot.slane %v9356_v43, %v15678_v6  ;;  %v20052_v43 = vld [vmem:[#allocation20_spill] sm:$0xff] }
 0x28e   : > { %v9570_v17 = vcombine.high %v9560_v61, %v9560_v61  ;;  %v9571_v35 = vcombine.high %v9567_v53, %v9567_v53  ;;  %v19048_v60 = vadd.f32 %v9560_v61, %v18804_v31  ;;  %v19051_v21 = vadd.f32 %v9568_v29, %v18807_v45  ;;  %v20053_v45 = vld [vmem:[#allocation9_spill] sm:$0xff]  ;;  %v20054_v61 = vld [vmem:[#allocation50_spill] sm:$0xff] }
 0x28f   : > { %v19054_v44 = vadd.f32 %v9567_v53, %v18810_v19  ;;  %v19057_v24 = vadd.f32 %v9569_v1, %v18813_v38  ;;  %v9586_v5 = vrot.slane %v9572_v36, %v15678_v6  ;;  %v9587_v2 = vcombine.high %v9579_v22, %v9579_v22  ;;  %v20055_v53 = vld [vmem:[#allocation71_spill] sm:$0xff] }
 0x290   : > { %v19061_v47 = vadd.f32 %v9570_v17, %v20050_v18  ;;  %v19064_v16 = vadd.f32 %v9571_v35, %v20051_v11  ;;  %v9595_v31 = vrot.slane %v9579_v22, %v15678_v6  ;;  %v14931_v27 = vadd.f32 %v20053_v45, %v20052_v43  ;;  %v20056_v36 = vld [vmem:[#allocation47_spill] sm:$0xff]  ;;  %v20057_v35 = vld [vmem:[#allocation70_spill] sm:$0xff]  ;;  %v20058_v11 = vld [vmem:[#allocation17_spill] sm:$0xff] }
 0x291   : > { %v9588_v25 = vcombine.high %v9586_v5, %v9586_v5  ;;  %v9602_v19 = vrot.slane %v9586_v5, %v15678_v6  ;;  %v9609_v38 = vrot.slane %v9587_v2, %v15678_v6  ;;  %v14894_v29 = vadd.f32 %v20055_v53, %v20054_v61  ;;  %v20060_v2 = vld [vmem:[#allocation58_spill] sm:$0xff] }
 0x292   : > { %v9617_v1 = vcombine.high %v9595_v31, %v9595_v31  ;;  %v19074_v17 = vadd.f32 %v9595_v31, %v20056_v36  ;;  %v9359_v18 = vadd.f32 %v14931_v27, %v14891_v56  ;;  %v14934_v10 = vadd.f32 %v20058_v11, %v20057_v35  ;;  %v20062_v36 = vld [vmem:[#allocation64_spill] sm:$0xff] }
 0x293   : > { %v9616_v22 = vrot.slane %v9588_v25, %v15678_v6  ;;  %v9618_v15 = vcombine.high %v9602_v19, %v9602_v19  ;;  %v9619_v43 = vcombine.high %v9609_v38, %v9609_v38  ;;  %v19080_v45 = vadd.f32 %v9609_v38, %v18833_v9 }
 0x294   : > { %v19083_v5 = vadd.f32 %v9617_v1, %v18839_v30  ;;  %v19086_v61 = vadd.f32 %v9602_v19, %v20060_v2  ;;  %v9621_v53 = vcombine.high %v9359_v18, %v9359_v18  ;;  %v9628_v31 = vrot.slane %v9359_v18, %v15678_v6  ;;  %v20065_v1 = vld [vmem:[#allocation49_spill] sm:$0xff] }
 0x295   : > { %v9620_v56 = vcombine.high %v9616_v22, %v9616_v22  ;;  %v19090_v27 = vadd.f32 %v9619_v43, %v18850_v40  ;;  %v19093_v25 = vadd.f32 %v9616_v22, %v20062_v36  ;;  %v19096_v35 = vadd.f32 %v9618_v15, %v18853_v49  ;;  %v20067_v18 = vld [vmem:[#allocation21_spill] sm:$0xff]  ;;  %v20069_v40 = vld [vmem:[#allocation8_spill] sm:$0xff]  ;;  %v20070_v43 = vld [vmem:[#allocation26_spill] sm:$0xff] }
 0x296   : > { %20059 = vst [vmem:[#allocation52_spill] sm:$0xff] %v19083_v5  ;;  %v9635_v9 = vrot.slane %v9621_v53, %v15678_v6  ;;  %v9636_v30 = vcombine.high %v9628_v31, %v9628_v31  ;;  %v9644_v38 = vrot.slane %v9628_v31, %v15678_v6  ;;  %v9364_v19 = vadd.f32 %v14934_v10, %v14894_v29  ;;  %v20068_v2 = vld [vmem:[#allocation29_spill] sm:$0xff]  ;;  %v20071_v22 = vld [vmem:[#allocation27_spill] sm:$0xff] }
 0x297   : > { %20061 = vst [vmem:[#allocation54_spill] sm:$0xff] %v19090_v27  ;;  %20063 = vst [vmem:[#allocation55_spill] sm:$0xff] %v19093_v25  ;;  %v19101_v11 = vadd.f32 %v9620_v56, %v20065_v1  ;;  %v14956_v5 = vadd.f32 %v20068_v2, %v20067_v18  ;;  %v14996_v27 = vadd.f32 %v20070_v43, %v20069_v40  ;;  %v20072_v36 = vld [vmem:[#allocation35_spill] sm:$0xff]  ;;  %v20073_v56 = vld [vmem:[#allocation28_spill] sm:$0xff] }
 0x298   : > { %20064 = vst [vmem:[#allocation56_spill] sm:$0xff] %v19096_v35  ;;  %v14959_v25 = vadd.f32 %v20072_v36, %v20071_v22  ;;  %v9637_v49 = vcombine.high %v9635_v9, %v9635_v9  ;;  %v9651_v15 = vrot.slane %v9635_v9, %v15678_v6  ;;  %v9658_v53 = vrot.slane %v9636_v30, %v15678_v6  ;;  %v20074_v1 = vld [vmem:[#allocation30_spill] sm:$0xff] }
 0x299   : > { %20066 = vst [vmem:[#allocation59_spill] sm:$0xff] %v19101_v11  ;;  %v9666_v35 = vcombine.high %v9644_v38, %v9644_v38  ;;  %v19112_v10 = vadd.f32 %v9644_v38, %v18868_v46  ;;  %v9676_v29 = vrot.slane %v9364_v19, %v15678_v6  ;;  %v10708_v31 = vadd.f32 %v14996_v27, %v14956_v5 }
 0x29a   : > { %v14999_v18 = vadd.f32 %v20074_v1, %v20073_v56  ;;  %v9665_v2 = vrot.slane %v9637_v49, %v15678_v6  ;;  %v9667_v40 = vcombine.high %v9651_v15, %v9651_v15  ;;  %v9668_v43 = vcombine.high %v9658_v53, %v9658_v53  ;;  %v20080_v56 = vld [vmem:[#allocation37_spill] sm:$0xff] }
 0x29b   : > { %v19119_v22 = vadd.f32 %v9658_v53, %v18882_v52  ;;  %v19122_v9 = vadd.f32 %v9666_v35, %v18885_v34  ;;  %v19125_v30 = vadd.f32 %v9651_v15, %v18878_v3  ;;  %v9683_v46 = vrot.slane %v9676_v29, %v15678_v6  ;;  %v20075_v52 = vld [vmem:[#allocation63_spill] sm:$0xff]  ;;  %v19142_v15 = vpop.f32.mrf.mxu0  ;;  %v20077_v53 = vld [vmem:[#allocation12_spill] sm:$0xff]  ;;  %v20081_v1 = vld [vmem:[#allocation33_spill] sm:$0xff] }
 0x29c   : > { %v10744_v38 = vcombine.high %v10708_v31, %v10708_v31  ;;  %v9669_v5 = vcombine.high %v9665_v2, %v9665_v2  ;;  %v19129_v27 = vadd.f32 %v9668_v43, %v18901_v42  ;;  %v19132_v19 = vadd.f32 %v9665_v2, %v18892_v33  ;;  %v20079_v42 = vld [vmem:[#allocation25_spill] sm:$0xff]  ;;  %v20082_v2 = vld [vmem:[#allocation34_spill] sm:$0xff]  ;;  %v20084_v43 = vld [vmem:[#allocation11_spill] sm:$0xff] }
 0x29d   : > { %v19135_v36 = vadd.f32 %v9667_v40, %v18895_v59  ;;  %v19138_v49 = vadd.f32 %v9683_v46, %v20075_v52  ;;  %v10751_v34 = vrot.slane %v10708_v31, %v15678_v6  ;;  %v10711_v35 = vadd.f32 %v14999_v18, %v14959_v25  ;;  %v20083_v40 = vld [vmem:[#allocation40_spill] sm:$0xff] }
 0x29e   : > { %v10758_v3 = vrot.slane %v10744_v38, %v15678_v6  ;;  %v19145_v29 = vadd.f32 %v9669_v5, %v20077_v53  ;;  %v14962_v33 = vadd.f32 %v20080_v56, %v20079_v42  ;;  %v15002_v59 = vadd.f32 %v20082_v2, %v20081_v1  ;;  %v20085_v53 = vld [vmem:[#allocation42_spill] sm:$0xff] }
 0x29f   : > { %20076 = vst [vmem:[#allocation57_spill] sm:$0xff] %v19138_v49  ;;  %v14965_v46 = vadd.f32 %v20084_v43, %v20083_v40  ;;  %v10759_v52 = vcombine.high %v10751_v34, %v10751_v34  ;;  %v10767_v31 = vrot.slane %v10751_v34, %v15678_v6  ;;  %v10793_v18 = vcombine.high %v10711_v35, %v10711_v35  ;;  %v20086_v49 = vld [vmem:[#allocation19_spill] sm:$0xff]  ;;  %v19162_v40 = vpop.f32.mrf.mxu0 }
 0x2a0   : > { %20078 = vst [vmem:[#allocation61_spill] sm:$0xff] %v19145_v29  ;;  %v10760_v11 = vcombine.high %v10758_v3, %v10758_v3  ;;  %v10774_v25 = vrot.slane %v10758_v3, %v15678_v6  ;;  %v10800_v38 = vrot.slane %v10711_v35, %v15678_v6  ;;  %v10716_v5 = vadd.f32 %v15002_v59, %v14962_v33 }
 0x2a1   : > { %v15005_v29 = vadd.f32 %v20086_v49, %v20085_v53  ;;  %v10781_v42 = vrot.slane %v10759_v52, %v15678_v6  ;;  %v10789_v1 = vcombine.high %v10767_v31, %v10767_v31  ;;  %v19165_v34 = vadd.f32 %v10767_v31, %v18942_v37  ;;  %v19179_v52 = vpop.f32.mrf.mxu1 }
 0x2a2   : > { %v19160_v56 = vrot.slane %v10760_v11, %v15678_v6  ;;  %v10790_v2 = vcombine.high %v10774_v25, %v10774_v25  ;;  %v19168_v3 = vadd.f32 %v10774_v25, %v18957_v13  ;;  %v10807_v35 = vrot.slane %v10793_v18, %v15678_v6 }
 0x2a3   : > { %v10808_v33 = vcombine.high %v10800_v38, %v10800_v38  ;;  %v10791_v59 = vcombine.high %v10781_v42, %v10781_v42  ;;  %v19174_v11 = vadd.f32 %v10781_v42, %v18947_v58  ;;  %v19177_v43 = vadd.f32 %v10789_v1, %v18954_v7  ;;  %v19194_v42 = vpop.f32.mrf.mxu0 }
 0x2a4   : > { %v19183_v37 = vadd.f32 %v19160_v56, %v18964_v4  ;;  %v19186_v13 = vadd.f32 %v10790_v2, %v18967_v32  ;;  %v10809_v31 = vcombine.high %v10807_v35, %v10807_v35  ;;  %v10816_v25 = vrot.slane %v10800_v38, %v15678_v6 }
 0x2a5   : > { %v19190_v18 = vadd.f32 %v10791_v59, %v18961_v41  ;;  %v10823_v58 = vrot.slane %v10807_v35, %v15678_v6  ;;  %v10830_v7 = vrot.slane %v10808_v33, %v15678_v6  ;;  %v10842_v53 = vcombine.high %v10716_v5, %v10716_v5  ;;  %v19207_v33 = vpop.f32.mrf.mxu1 }
 0x2a6   : > { %20087 = vst [vmem:[#allocation62_spill] sm:$0xff] %v19186_v13  ;;  %v10837_v1 = vrot.slane %v10809_v31, %v15678_v6  ;;  %v10838_v4 = vcombine.high %v10816_v25, %v10816_v25  ;;  %v19198_v49 = vadd.f32 %v10816_v25, %v18979_v28  ;;  %v10849_v32 = vrot.slane %v10716_v5, %v15678_v6 }
 0x2a7   : > { %v10839_v2 = vcombine.high %v10823_v58, %v10823_v58  ;;  %v10840_v38 = vcombine.high %v10830_v7, %v10830_v7  ;;  %v19202_v41 = vadd.f32 %v10830_v7, %v18982_v39  ;;  %v19205_v35 = vadd.f32 %v10823_v58, %v18985_v20  ;;  %v19223_v58 = vpop.f32.mrf.mxu0 }
 0x2a8   : > { %v10841_v59 = vcombine.high %v10837_v1, %v10837_v1  ;;  %v19210_v13 = vadd.f32 %v10838_v4, %v18988_v62  ;;  %v19213_v31 = vadd.f32 %v10837_v1, %v18994_v12  ;;  %v10856_v28 = vrot.slane %v10842_v53, %v15678_v6 }
 0x2a9   : > { %v19217_v5 = vadd.f32 %v10840_v38, %v18991_v54  ;;  %v19220_v39 = vadd.f32 %v10839_v2, %v18997_v0  ;;  %v10857_v25 = vcombine.high %v10849_v32, %v10849_v32  ;;  %v10865_v20 = vrot.slane %v10849_v32, %v15678_v6  ;;  %v20090_v0 = vld [vmem:[#allocation53_spill] sm:$0xff]  ;;  %v20091_v2 = vld [vmem:[#allocation44_spill] sm:$0xff] }
 0x2aa   : > { %v19226_v7 = vadd.f32 %v10841_v59, %v19002_v14  ;;  %v10858_v62 = vcombine.high %v10856_v28, %v10856_v28  ;;  %v10872_v12 = vrot.slane %v10856_v28, %v15678_v6  ;;  %v10719_v1 = vadd.f32 %v15005_v29, %v14965_v46 }
 0x2ab   : > { %20088 = vst [vmem:[#allocation24_spill] sm:$0xff] %v19220_v39  ;;  %v10879_v53 = vrot.slane %v10857_v25, %v15678_v6  ;;  %v10887_v4 = vcombine.high %v10865_v20, %v10865_v20  ;;  %v19231_v54 = vadd.f32 %v10865_v20, %v19008_v50  ;;  %v14968_v38 = vadd.f32 %v20091_v2, %v20090_v0  ;;  %v19235_v39 = vpop.f32.mrf.mxu1  ;;  %v19250_v20 = vpop.f32.mrf.mxu0 }
 0x2ac   : > { %v19238_v32 = vrot.slane %v10858_v62, %v15678_v6  ;;  %v10888_v14 = vcombine.high %v10872_v12, %v10872_v12  ;;  %v19241_v59 = vadd.f32 %v10872_v12, %v19014_v8  ;;  %v10891_v28 = vcombine.high %v10719_v1, %v10719_v1 }
 0x2ad   : > { %20089 = vst [vmem:[#allocation65_spill] sm:$0xff] %v19231_v54  ;;  %v10889_v29 = vcombine.high %v10879_v53, %v10879_v53  ;;  %v19244_v46 = vadd.f32 %v10879_v53, %v19011_v48  ;;  %v19247_v50 = vadd.f32 %v10887_v4, %v19018_v26  ;;  %v10898_v25 = vrot.slane %v10719_v1, %v15678_v6  ;;  %v20098_v53 = vld [vmem:[#allocation48_spill] sm:$0xff]  ;;  %v20099_v4 = vld [vmem:[#allocation45_spill] sm:$0xff] }
 0x2ae   : > { %20092 = vst [vmem:[#allocation23_spill] sm:$0xff] %v19241_v59  ;;  %v19256_v0 = vadd.f32 %v19238_v32, %v19021_v57  ;;  %v19259_v8 = vadd.f32 %v10888_v14, %v19024_v55  ;;  %v10905_v48 = vrot.slane %v10891_v28, %v15678_v6  ;;  %v15008_v2 = vadd.f32 %v20099_v4, %v20098_v53  ;;  %v19268_v59 = vpop.f32.mrf.mxu1  ;;  %v20102_v14 = vld [vmem:[#allocation66_spill] sm:$0xff] }
 0x2af   : > { %20093 = vst [vmem:[#allocation10_spill] sm:$0xff] %v19244_v46  ;;  %20094 = vst [vmem:[#allocation39_spill] sm:$0xff] %v19247_v50  ;;  %v19263_v12 = vadd.f32 %v10889_v29, %v19027_v63  ;;  %v10906_v26 = vcombine.high %v10898_v25, %v10898_v25  ;;  %v10914_v1 = vrot.slane %v10898_v25, %v15678_v6  ;;  %v20101_v50 = vld [vmem:[#allocation15_spill] sm:$0xff]  ;;  %v19279_v46 = vpop.f32.mrf.mxu0 }
 0x2b0   : > { %20095 = vst [vmem:[#allocation32_spill] sm:$0xff] %v19256_v0  ;;  %20096 = vst [vmem:[#allocation68_spill] sm:$0xff] %v19259_v8  ;;  %v10907_v62 = vcombine.high %v10905_v48, %v10905_v48  ;;  %v10921_v57 = vrot.slane %v10905_v48, %v15678_v6  ;;  %v20100_v0 = vld [vmem:[#allocation60_spill] sm:$0xff]  ;;  %v20103_v8 = vld [vmem:[#allocation7_spill] sm:$0xff]  ;;  %v10724_v25 = vadd.f32 %v15008_v2, %v14968_v38 }
 0x2b1   : > { %20097 = vst [vmem:[#allocation16_spill] sm:$0xff] %v19263_v12  ;;  %v14971_v55 = vadd.f32 %v20101_v50, %v20100_v0  ;;  %v15011_v28 = vadd.f32 %v20103_v8, %v20102_v14  ;;  %v10928_v63 = vrot.slane %v10906_v26, %v15678_v6  ;;  %v10936_v29 = vcombine.high %v10914_v1, %v10914_v1 }
 0x2b2   : > { %v19277_v12 = vadd.f32 %v10914_v1, %v19041_v23  ;;  %v10935_v53 = vrot.slane %v10907_v62, %v15678_v6  ;;  %v10937_v4 = vcombine.high %v10921_v57, %v10921_v57  ;;  %v19283_v48 = vadd.f32 %v10921_v57, %v19044_v51  ;;  %v15080_v23 = vpop.f32.mrf.mxu1 }
 0x2b3   : > { %v10727_v54 = vadd.f32 %v15011_v28, %v14971_v55  ;;  %v10938_v50 = vcombine.high %v10928_v63, %v10928_v63  ;;  %v19286_v0 = vadd.f32 %v10928_v63, %v19048_v60  ;;  %v19289_v8 = vadd.f32 %v10936_v29, %v19051_v21  ;;  %v15043_v55 = vpop.f32.mrf.mxu0  ;;  %v20107_v63 = vld [vmem:[#allocation13_spill] sm:$0xff] }
 0x2b4   : > { %v10940_v26 = vcombine.high %v10724_v25, %v10724_v25  ;;  %v10939_v1 = vcombine.high %v10935_v53, %v10935_v53  ;;  %v19292_v38 = vadd.f32 %v10935_v53, %v19054_v44  ;;  %v19295_v62 = vadd.f32 %v10937_v4, %v19057_v24  ;;  %v20108_v24 = vld [vmem:[#allocation67_spill] sm:$0xff] }
 0x2b5   : > { %v10947_v51 = vrot.slane %v10724_v25, %v15678_v6  ;;  %v19299_v2 = vadd.f32 %v10938_v50, %v19061_v47  ;;  %v10989_v57 = vcombine.high %v10727_v54, %v10727_v54  ;;  %v10996_v21 = vrot.slane %v10727_v54, %v15678_v6  ;;  %v15081_v50 = vpop.f32.mrf.mxu1 }
 0x2b6   : > { %20104 = vst [vmem:[#allocation46_spill] sm:$0xff] %v19292_v38  ;;  %20105 = vst [vmem:[#allocation22_spill] sm:$0xff] %v19295_v62  ;;  %v10954_v60 = vrot.slane %v10940_v26, %v15678_v6  ;;  %v19304_v14 = vadd.f32 %v10939_v1, %v19064_v16  ;;  %v14974_v29 = vadd.f32 %v20108_v24, %v20107_v63  ;;  %v15044_v24 = vpop.f32.mrf.mxu0 }
 0x2b7   : > { %v10955_v28 = vcombine.high %v10947_v51, %v10947_v51  ;;  %v10963_v44 = vrot.slane %v10947_v51, %v15678_v6  ;;  %v11003_v47 = vrot.slane %v10989_v57, %v15678_v6  ;;  %v11004_v4 = vcombine.high %v10996_v21, %v10996_v21 }
 0x2b8   : > { %20106 = vst [vmem:[#allocation31_spill] sm:$0xff] %v19304_v14  ;;  %v10956_v53 = vcombine.high %v10954_v60, %v10954_v60  ;;  %v10970_v25 = vrot.slane %v10954_v60, %v15678_v6  ;;  %v11012_v16 = vrot.slane %v10996_v21, %v15678_v6 }
 0x2b9   : > { %v10977_v26 = vrot.slane %v10955_v28, %v15678_v6  ;;  %v10985_v54 = vcombine.high %v10963_v44, %v10963_v44  ;;  %v19313_v62 = vadd.f32 %v10963_v44, %v19074_v17  ;;  %v11005_v60 = vcombine.high %v11003_v47, %v11003_v47  ;;  %v20111_v28 = vld [vmem:[#allocation52_spill] sm:$0xff]  ;;  %v20113_v44 = vld [vmem:[#allocation55_spill] sm:$0xff] }
 0x2ba   : > { %v19317_v1 = vrot.slane %v10956_v53, %v15678_v6  ;;  %v10986_v51 = vcombine.high %v10970_v25, %v10970_v25  ;;  %v19320_v63 = vadd.f32 %v10970_v25, %v19086_v61  ;;  %v11019_v17 = vrot.slane %v11003_v47, %v15678_v6  ;;  %v20114_v61 = vld [vmem:[#allocation56_spill] sm:$0xff] }
 0x2bb   : > { %20109 = vst [vmem:[#allocation69_spill] sm:$0xff] %v19313_v62  ;;  %v10987_v57 = vcombine.high %v10977_v26, %v10977_v26  ;;  %v19323_v14 = vadd.f32 %v10977_v26, %v19080_v45  ;;  %v19326_v38 = vadd.f32 %v10985_v54, %v20111_v28  ;;  %v15083_v62 = vpop.f32.mrf.mxu1  ;;  %v20116_v45 = vld [vmem:[#allocation54_spill] sm:$0xff]  ;;  %v11033_v54 = vrot.slane %v11005_v60, %v15678_v6 }
 0x2bc   : > { %20110 = vst [vmem:[#allocation18_spill] sm:$0xff] %v19320_v63  ;;  %v19333_v53 = vadd.f32 %v19317_v1, %v20113_v44  ;;  %v19336_v25 = vadd.f32 %v10986_v51, %v20114_v61  ;;  %v11026_v63 = vrot.slane %v11004_v4, %v15678_v6  ;;  %v11034_v28 = vcombine.high %v11012_v16, %v11012_v16  ;;  %v15046_v61 = vpop.f32.mrf.mxu0 }
 0x2bd   : > { %20112 = vst [vmem:[#allocation43_spill] sm:$0xff] %v19326_v38  ;;  %v19340_v26 = vadd.f32 %v10987_v57, %v20116_v45  ;;  %v11035_v47 = vcombine.high %v11019_v17, %v11019_v17  ;;  %v19344_v21 = vadd.f32 %v11012_v16, %v19112_v10  ;;  %v19350_v51 = vadd.f32 %v11019_v17, %v19125_v30  ;;  %v20117_v16 = vld [vmem:[#allocation14_spill] sm:$0xff]  ;;  %v20119_v45 = vld [vmem:[#allocation61_spill] sm:$0xff] }
 0x2be   : > { %20115 = vst [vmem:[#allocation41_spill] sm:$0xff] %v19336_v25  ;;  %v11036_v38 = vcombine.high %v11026_v63, %v11026_v63  ;;  %v19347_v44 = vadd.f32 %v11026_v63, %v19119_v22  ;;  %v11037_v4 = vcombine.high %v11033_v54, %v11033_v54  ;;  %v19353_v25 = vadd.f32 %v11034_v28, %v19122_v9  ;;  %v20118_v22 = vld [vmem:[#allocation36_spill] sm:$0xff]  ;;  %v15084_v9 = vpop.f32.mrf.mxu1 }
 0x2bf   : > { %v19356_v57 = vadd.f32 %v11033_v54, %v19132_v19  ;;  %v19359_v60 = vadd.f32 %v11035_v47, %v19135_v36  ;;  %v15014_v63 = vadd.f32 %v20118_v22, %v20117_v16  ;;  %v15036_v30 = vadd.f32 %v19162_v40, %v19142_v15  ;;  %v20120_v36 = vld [vmem:[#allocation38_spill] sm:$0xff]  ;;  %v20122_v22 = vld [vmem:[#allocation51_spill] sm:$0xff] }
 0x2c0   : > { %v19362_v10 = vadd.f32 %v11036_v38, %v19129_v27  ;;  %v15076_v17 = vadd.f32 %v19207_v33, %v19179_v52  ;;  %v19371_v28 = vadd.f32 %v11037_v4, %v20119_v45  ;;  %v15039_v19 = vadd.f32 %v19223_v58, %v19194_v42  ;;  %v15047_v33 = vpop.f32.mrf.mxu0 }
 0x2c1   : > { %v20121_v27 = vcombine.high %v19160_v56, %v19160_v56  ;;  %v15079_v54 = vadd.f32 %v19268_v59, %v19235_v39  ;;  %v10732_v47 = vadd.f32 %v15014_v63, %v14974_v29  ;;  %v15042_v40 = vadd.f32 %v19279_v46, %v19250_v20 }
 0x2c2   : > { %v12258_v15 = vadd.f32 %v15076_v17, %v15036_v30  ;;  %v15082_v52 = vadd.f32 %v15081_v50, %v15080_v23  ;;  %v15045_v16 = vadd.f32 %v15044_v24, %v15043_v55  ;;  %v20123_v42 = vcombine.high %v19238_v32, %v19238_v32 }
 0x2c3   : > { %v11108_v38 = vadd.f32 %v20121_v27, %v20120_v36  ;;  %v12261_v4 = vadd.f32 %v15079_v54, %v15039_v19  ;;  %v15085_v56 = vadd.f32 %v15084_v9, %v15083_v62  ;;  %v11044_v45 = vrot.slane %v10732_v47, %v15678_v6  ;;  %v19405_v9 = vpop.f32.mrf.mxu1  ;;  %v20124_v19 = vld [vmem:[#allocation57_spill] sm:$0xff] }
 0x2c4   : > { %v19387_v58 = vadd.f32 %v20123_v42, %v20122_v22  ;;  %v12294_v36 = vcombine.high %v12258_v15, %v12258_v15  ;;  %v12301_v39 = vrot.slane %v12258_v15, %v15678_v6  ;;  %v19391_v59 = vadd.f32 %v15082_v52, %v15042_v40 }
 0x2c5   : > { %v12343_v29 = vcombine.high %v12261_v4, %v12261_v4  ;;  %v12350_v46 = vrot.slane %v12261_v4, %v15678_v6  ;;  %v19394_v20 = vadd.f32 %v15085_v56, %v15045_v16  ;;  %v19396_v23 = vadd.f32 %v15047_v33, %v15046_v61 }
 0x2c6   : > { %v11051_v55 = vrot.slane %v11044_v45, %v15678_v6  ;;  %v12308_v32 = vrot.slane %v12294_v36, %v15678_v6  ;;  %v12309_v50 = vcombine.high %v12301_v39, %v12301_v39  ;;  %v12317_v62 = vrot.slane %v12301_v39, %v15678_v6 }
 0x2c7   : > { %v12357_v24 = vrot.slane %v12343_v29, %v15678_v6  ;;  %v12358_v63 = vcombine.high %v12350_v46, %v12350_v46  ;;  %v12366_v30 = vrot.slane %v12350_v46, %v15678_v6  ;;  %v12392_v17 = vcombine.high %v19391_v59, %v19391_v59  ;;  %v19420_v29 = vpop.f32.mrf.mxu1 }
 0x2c8   : > { %v19408_v61 = vadd.f32 %v11051_v55, %v20124_v19  ;;  %v12310_v27 = vcombine.high %v12308_v32, %v12308_v32  ;;  %v12324_v54 = vrot.slane %v12308_v32, %v15678_v6  ;;  %v12331_v47 = vrot.slane %v12309_v50, %v15678_v6  ;;  %v20125_v32 = vld [vmem:[#allocation62_spill] sm:$0xff]  ;;  %v19425_v19 = vpop.f32.mrf.mxu0 }
 0x2c9   : > { %v12339_v15 = vcombine.high %v12317_v62, %v12317_v62  ;;  %v12651_v40 = vadd.f32 %v12317_v62, %v19165_v34  ;;  %v12359_v52 = vcombine.high %v12357_v24, %v12357_v24  ;;  %v12373_v33 = vrot.slane %v12357_v24, %v15678_v6 }
 0x2ca   : > { %v12338_v4 = vrot.slane %v12310_v27, %v15678_v6  ;;  %v12340_v16 = vcombine.high %v12324_v54, %v12324_v54  ;;  %v12341_v22 = vcombine.high %v12331_v47, %v12331_v47  ;;  %v12652_v42 = vadd.f32 %v12331_v47, %v19174_v11 }
 0x2cb   : > { %v12653_v56 = vadd.f32 %v12339_v15, %v19177_v43  ;;  %v12655_v45 = vadd.f32 %v12324_v54, %v19168_v3  ;;  %v12380_v36 = vrot.slane %v12358_v63, %v15678_v6  ;;  %v12387_v39 = vrot.slane %v12359_v52, %v15678_v6  ;;  %v19431_v52 = vpop.f32.mrf.mxu1 }
 0x2cc   : > { %v12342_v34 = vcombine.high %v12338_v4, %v12338_v4  ;;  %v12654_v46 = vadd.f32 %v12341_v22, %v19190_v18  ;;  %v12656_v55 = vadd.f32 %v12338_v4, %v19183_v37  ;;  %v12657_v50 = vadd.f32 %v12340_v16, %v20125_v32 }
 0x2cd   : > { %v12749_v62 = vcombine.low %v12651_v40, %v12652_v42  ;;  %v12388_v24 = vcombine.high %v12366_v30, %v12366_v30  ;;  %v12389_v11 = vcombine.high %v12373_v33, %v12373_v33  ;;  %v12390_v43 = vcombine.high %v12380_v36, %v12380_v36 }
 0x2ce   : > { %v12750_v3 = vcombine.low %v12653_v56, %v12654_v46  ;;  %v12751_v63 = vcombine.low %v12655_v45, %v12656_v55  ;;  %v12779_v27 = vrot.slane %v12657_v50, %v15678_v6  ;;  %v12391_v54 = vcombine.high %v12387_v39, %v12387_v39 }
 0x2cf   : > { %v12758_v47 = vrot.slane %v12749_v62, %v15678_v6  ;;  %v12658_v15 = vadd.f32 %v12342_v34, %v11108_v38  ;;  %v12659_v18 = vadd.f32 %v12366_v30, %v19198_v49  ;;  %v12660_v37 = vadd.f32 %v12380_v36, %v19202_v41  ;;  %v20126_v38 = vld [vmem:[#allocation24_spill] sm:$0xff]  ;;  %v19442_v41 = vpop.f32.mrf.mxu0 }
 0x2d0   : > { %v12765_v40 = vrot.slane %v12750_v3, %v15678_v6  ;;  %v12772_v4 = vrot.slane %v12751_v63, %v15678_v6  ;;  %v12661_v16 = vadd.f32 %v12388_v24, %v19210_v13  ;;  %v12662_v22 = vadd.f32 %v12390_v43, %v19217_v5 }
 0x2d1   : > { %v12663_v42 = vadd.f32 %v12373_v33, %v19205_v35  ;;  %v12664_v56 = vadd.f32 %v12387_v39, %v19213_v31  ;;  %v12665_v45 = vadd.f32 %v12389_v11, %v20126_v38  ;;  %v12666_v49 = vadd.f32 %v12391_v54, %v19226_v7  ;;  %v19447_v35 = vpop.f32.mrf.mxu1  ;;  %v19456_v43 = vpop.f32.mrf.mxu0 }
 0x2d2   : > { %v12780_v30 = vcombine.low %v12758_v47, %v12765_v40  ;;  %v12781_v36 = vcombine.low %v12772_v4, %v12779_v27  ;;  %v12797_v34 = vcombine.low %v12658_v15, %v12659_v18  ;;  %v12798_v46 = vcombine.low %v12660_v37, %v12661_v16  ;;  %v20127_v16 = vld [vmem:[#allocation65_spill] sm:$0xff] }
 0x2d3   : > { %v12799_v55 = vcombine.low %v12662_v22, %v12663_v42  ;;  %v12827_v13 = vrot.slane %v12664_v56, %v15678_v6  ;;  %v12845_v32 = vcombine.low %v12665_v45, %v12666_v49  ;;  %v12399_v5 = vrot.slane %v19391_v59, %v15678_v6  ;;  %v19463_v37 = vpop.f32.mrf.mxu1 }
 0x2d4   : > { %v12788_v31 = vrot.slane %v12780_v30, %v15678_v6  ;;  %v12795_v33 = vrot.slane %v12781_v36, %v15678_v6  ;;  %v12806_v7 = vrot.slane %v12797_v34, %v15678_v6  ;;  %v12813_v39 = vrot.slane %v12798_v46, %v15678_v6  ;;  %v20128_v34 = vld [vmem:[#allocation10_spill] sm:$0xff] }
 0x2d5   : > { %v12820_v50 = vrot.slane %v12799_v55, %v15678_v6  ;;  %v12406_v62 = vrot.slane %v12392_v17, %v15678_v6  ;;  %v12407_v24 = vcombine.high %v12399_v5, %v12399_v5  ;;  %v12415_v11 = vrot.slane %v12399_v5, %v15678_v6  ;;  %v19465_v17 = vpop.f32.mrf.mxu0  ;;  %v19478_v30 = vpop.f32.mrf.mxu1  ;;  %v20129_v55 = vld [vmem:[#allocation39_spill] sm:$0xff] }
 0x2d6   : > { %v12796_v59 = vcombine.low %v12788_v31, %v12795_v33  ;;  %v12828_v3 = vcombine.low %v12806_v7, %v12813_v39  ;;  %v12854_v63 = vrot.slane %v12845_v32, %v15678_v6  ;;  %v12441_v27 = vcombine.high %v19394_v20, %v19394_v20  ;;  %v20130_v32 = vld [vmem:[#allocation23_spill] sm:$0xff]  ;;  %v20131_v7 = vld [vmem:[#allocation16_spill] sm:$0xff] }
 0x2d7   : > { %v12829_v54 = vcombine.low %v12820_v50, %v12827_v13  ;;  %v12408_v47 = vcombine.high %v12406_v62, %v12406_v62  ;;  %v12422_v15 = vrot.slane %v12406_v62, %v15678_v6  ;;  %v12429_v18 = vrot.slane %v12407_v24, %v15678_v6  ;;  %v15055_v36 = vpop.f32.mrf.mxu0  ;;  %v20132_v50 = vld [vmem:[#allocation32_spill] sm:$0xff]  ;;  %v15095_v24 = vpop.f32.mrf.mxu1 }
 0x2d8   : > { %13092 = vst [vmem:[%s19469_s28] sm:$0x7f] %v12796_v59  ;;  %v12836_v40 = vrot.slane %v12828_v3, %v15678_v6  ;;  %v12437_v4 = vcombine.high %v12415_v11, %v12415_v11  ;;  %v12667_v22 = vadd.f32 %v12415_v11, %v20127_v16  ;;  %v12448_v42 = vrot.slane %v19394_v20, %v15678_v6  ;;  %v20133_v59 = vld [vmem:[#allocation68_spill] sm:$0xff] }
 0x2d9   : > { %v12843_v56 = vrot.slane %v12829_v54, %v15678_v6  ;;  %v12436_v38 = vrot.slane %v12408_v47, %v15678_v6  ;;  %v12438_v45 = vcombine.high %v12422_v15, %v12422_v15  ;;  %v12439_v49 = vcombine.high %v12429_v18, %v12429_v18  ;;  %v15056_v11 = vpop.f32.mrf.mxu0 }
 0x2da   : > { %v12668_v46 = vadd.f32 %v12429_v18, %v20128_v34  ;;  %v12669_v13 = vadd.f32 %v12437_v4, %v20129_v55  ;;  %v12671_v5 = vadd.f32 %v12422_v15, %v20130_v32  ;;  %v12455_v31 = vrot.slane %v12441_v27, %v15678_v6  ;;  %v20136_v11 = vld [vmem:[#allocation31_spill] sm:$0xff] }
 0x2db   : > { %v12844_v33 = vcombine.low %v12836_v40, %v12843_v56  ;;  %v12440_v20 = vcombine.high %v12436_v38, %v12436_v38  ;;  %v12670_v39 = vadd.f32 %v12439_v49, %v20131_v7  ;;  %v12672_v62 = vadd.f32 %v12436_v38, %v20132_v50  ;;  %v15096_v40 = vpop.f32.mrf.mxu1 }
 0x2dc   : > { %v12673_v3 = vadd.f32 %v12438_v45, %v20133_v59  ;;  %v12846_v54 = vcombine.low %v12667_v22, %v12668_v46  ;;  %v12875_v47 = vrot.slane %v12671_v5, %v15678_v6  ;;  %v12456_v18 = vcombine.high %v12448_v42, %v12448_v42  ;;  %v20137_v40 = vld [vmem:[#allocation59_spill] sm:$0xff] }
 0x2dd   : > { %13093 = vst [vmem:[%s19469_s28 + $0x8] sm:$0x7f] %v12844_v33  ;;  %v12847_v4 = vcombine.low %v12669_v13, %v12670_v39  ;;  %v12457_v16 = vcombine.high %v12455_v31, %v12455_v31  ;;  %v12464_v15 = vrot.slane %v12448_v42, %v15678_v6  ;;  %v12471_v27 = vrot.slane %v12455_v31, %v15678_v6  ;;  %v20134_v39 = vld [vmem:[#allocation46_spill] sm:$0xff] }
 0x2de   : > { %v12861_v56 = vrot.slane %v12846_v54, %v15678_v6  ;;  %v12893_v49 = vcombine.low %v12672_v62, %v12673_v3  ;;  %v12478_v38 = vrot.slane %v12456_v18, %v15678_v6  ;;  %v12674_v36 = vadd.f32 %v12440_v20, %v19387_v58  ;;  %v20135_v62 = vld [vmem:[#allocation22_spill] sm:$0xff] }
 0x2df   : > { %v12868_v22 = vrot.slane %v12847_v4, %v15678_v6  ;;  %v12485_v45 = vrot.slane %v12457_v16, %v15678_v6  ;;  %v12486_v34 = vcombine.high %v12464_v15, %v12464_v15  ;;  %v12487_v46 = vcombine.high %v12471_v27, %v12471_v27 }
 0x2e0   : > { %v12876_v55 = vcombine.low %v12854_v63, %v12861_v56  ;;  %v12488_v13 = vcombine.high %v12478_v38, %v12478_v38  ;;  %v12675_v42 = vadd.f32 %v12464_v15, %v19277_v12  ;;  %v12676_v32 = vadd.f32 %v12478_v38, %v19286_v0 }
 0x2e1   : > { %v12877_v5 = vcombine.low %v12868_v22, %v12875_v47  ;;  %v12489_v31 = vcombine.high %v12485_v45, %v12485_v45  ;;  %v12677_v33 = vadd.f32 %v12486_v34, %v19289_v8  ;;  %v12679_v7 = vadd.f32 %v12471_v27, %v19283_v48 }
 0x2e2   : > { %v12884_v58 = vrot.slane %v12876_v55, %v15678_v6  ;;  %v12678_v20 = vadd.f32 %v12488_v13, %v19299_v2  ;;  %v12680_v50 = vadd.f32 %v12485_v45, %v20134_v39  ;;  %v12681_v24 = vadd.f32 %v12487_v46, %v20135_v62 }
 0x2e3   : > { %v12891_v63 = vrot.slane %v12877_v5, %v15678_v6  ;;  %v12682_v12 = vadd.f32 %v12489_v31, %v20136_v11  ;;  %v12894_v0 = vcombine.low %v12674_v36, %v12675_v42  ;;  %v12895_v59 = vcombine.low %v12676_v32, %v12677_v33  ;;  %v20139_v33 = vld [vmem:[#allocation69_spill] sm:$0xff]  ;;  %v20140_v11 = vld [vmem:[#allocation43_spill] sm:$0xff] }
 0x2e4   : > { %v12902_v3 = vrot.slane %v12893_v49, %v15678_v6  ;;  %v12923_v8 = vrot.slane %v12678_v20, %v15678_v6  ;;  %v12941_v48 = vcombine.low %v12679_v7, %v12680_v50  ;;  %v15088_v54 = vadd.f32 %v19420_v29, %v19405_v9 }
 0x2e5   : > { %v12892_v2 = vcombine.low %v12884_v58, %v12891_v63  ;;  %v12909_v47 = vrot.slane %v12894_v0, %v15678_v6  ;;  %v12916_v18 = vrot.slane %v12895_v59, %v15678_v6  ;;  %v12942_v4 = vcombine.low %v12681_v24, %v12682_v12  ;;  %v20141_v0 = vld [vmem:[#allocation18_spill] sm:$0xff] }
 0x2e6   : > { %v12950_v16 = vrot.slane %v12941_v48, %v15678_v6  ;;  %v12274_v15 = vadd.f32 %v15088_v54, %v19396_v23  ;;  %v15051_v27 = vadd.f32 %v19442_v41, %v19425_v19  ;;  %v20138_v56 = vcombine.high %v19317_v1, %v19317_v1 }
 0x2e7   : > { %13094 = vst [vmem:[%s19469_s28 + $0x10] sm:$0x7f] %v12892_v2  ;;  %v12924_v9 = vcombine.low %v12902_v3, %v12909_v47  ;;  %v12925_v29 = vcombine.low %v12916_v18, %v12923_v8  ;;  %v12957_v38 = vrot.slane %v12942_v4, %v15678_v6  ;;  %v15091_v36 = vadd.f32 %v19447_v35, %v19431_v52  ;;  %v20142_v47 = vld [vmem:[#allocation41_spill] sm:$0xff] }
 0x2e8   : > { %v11140_v49 = vadd.f32 %v20138_v56, %v20137_v40  ;;  %v12490_v22 = vcombine.high %v12274_v15, %v12274_v15  ;;  %v12497_v45 = vrot.slane %v12274_v15, %v15678_v6  ;;  %v15054_v23 = vadd.f32 %v19465_v17, %v19456_v43 }
 0x2e9   : > { %v15094_v19 = vadd.f32 %v19478_v30, %v19463_v37  ;;  %v12932_v1 = vrot.slane %v12924_v9, %v15678_v6  ;;  %v12939_v41 = vrot.slane %v12925_v29, %v15678_v6  ;;  %v12972_v34 = vcombine.low %v12950_v16, %v12957_v38 }
 0x2ea   : > { %v12277_v46 = vadd.f32 %v15091_v36, %v15051_v27  ;;  %v12504_v55 = vrot.slane %v12490_v22, %v15678_v6  ;;  %v12505_v13 = vcombine.high %v12497_v45, %v12497_v45  ;;  %v12513_v52 = vrot.slane %v12497_v45, %v15678_v6 }
 0x2eb   : > { %v12282_v35 = vadd.f32 %v15094_v19, %v15054_v23  ;;  %v12940_v42 = vcombine.low %v12932_v1, %v12939_v41  ;;  %v12980_v32 = vrot.slane %v12972_v34, %v15678_v6 }
 0x2ec   : > { %v12539_v43 = vcombine.high %v12277_v46, %v12277_v46  ;;  %v12546_v17 = vrot.slane %v12277_v46, %v15678_v6  ;;  %v12506_v37 = vcombine.high %v12504_v55, %v12504_v55  ;;  %v12520_v30 = vrot.slane %v12504_v55, %v15678_v6 }
 0x2ed   : > { %v12527_v5 = vrot.slane %v12505_v13, %v15678_v6  ;;  %v12535_v31 = vcombine.high %v12513_v52, %v12513_v52  ;;  %13095 = vst [vmem:[%s19469_s28 + $0x18] sm:$0x7f] %v12940_v42  ;;  %v12683_v7 = vadd.f32 %v12513_v52, %v20139_v33 }
 0x2ee   : > { %v12553_v58 = vrot.slane %v12539_v43, %v15678_v6  ;;  %v12554_v20 = vcombine.high %v12546_v17, %v12546_v17  ;;  %v12562_v39 = vrot.slane %v12546_v17, %v15678_v6  ;;  %v12534_v50 = vrot.slane %v12506_v37, %v15678_v6 }
 0x2ef   : > { %v12536_v62 = vcombine.high %v12520_v30, %v12520_v30  ;;  %v12537_v24 = vcombine.high %v12527_v5, %v12527_v5  ;;  %v12684_v63 = vadd.f32 %v12527_v5, %v19323_v14  ;;  %v12685_v12 = vadd.f32 %v12535_v31, %v20140_v11 }
 0x2f0   : > { %v12687_v59 = vadd.f32 %v12520_v30, %v20141_v0  ;;  %v12555_v3 = vcombine.high %v12553_v58, %v12553_v58  ;;  %v12569_v8 = vrot.slane %v12553_v58, %v15678_v6  ;;  %v12538_v48 = vcombine.high %v12534_v50, %v12534_v50 }
 0x2f1   : > { %v12686_v54 = vadd.f32 %v12537_v24, %v19340_v26  ;;  %v12688_v2 = vadd.f32 %v12534_v50, %v19333_v53  ;;  %v12689_v18 = vadd.f32 %v12536_v62, %v20142_v47  ;;  %v12943_v4 = vcombine.low %v12683_v7, %v12684_v63  ;;  %v13150_v62 = vld [vmem:[%s19469_s28 + $0x8] sm:$0xff] (%p20143_p9)  ;;  %v13152_v24 = vld [vmem:[%s19469_s28 + $0x10] sm:$0xff] (%p20143_p9) }
 0x2f2   : > { %v12971_v16 = vrot.slane %v12685_v12, %v15678_v6  ;;  %v12576_v15 = vrot.slane %v12554_v20, %v15678_v6  ;;  %v12583_v14 = vrot.slane %v12555_v3, %v15678_v6  ;;  %v12584_v56 = vcombine.high %v12562_v39, %v12562_v39  ;;  %13151 = vst [vmem:[%s13107_s4 + $0x20] sm:$0xff] (%p20143_p9), %v13150_v62 }
 0x2f3   : > { %v12989_v27 = vcombine.low %v12686_v54, %v12687_v59  ;;  %v12990_v40 = vcombine.low %v12688_v2, %v12689_v18  ;;  %v12585_v9 = vcombine.high %v12569_v8, %v12569_v8  ;;  %v12964_v29 = vrot.slane %v12943_v4, %v15678_v6  ;;  %13153 = vst [vmem:[%s13107_s4 + $0x40] sm:$0xff] (%p20143_p9), %v13152_v24 }
 0x2f4   : > { %v12586_v38 = vcombine.high %v12576_v15, %v12576_v15  ;;  %v12587_v36 = vcombine.high %v12583_v14, %v12583_v14  ;;  %v12690_v26 = vadd.f32 %v12538_v48, %v11140_v49  ;;  %v12691_v45 = vadd.f32 %v12562_v39, %v19344_v21 }
 0x2f5   : > { %v12998_v53 = vrot.slane %v12989_v27, %v15678_v6  ;;  %v13005_v22 = vrot.slane %v12990_v40, %v15678_v6  ;;  %v12692_v23 = vadd.f32 %v12576_v15, %v19347_v44  ;;  %v12973_v19 = vcombine.low %v12964_v29, %v12971_v16 }
 0x2f6   : > { %v12693_v1 = vadd.f32 %v12584_v56, %v19353_v25  ;;  %v12694_v41 = vadd.f32 %v12586_v38, %v19362_v10  ;;  %v12695_v34 = vadd.f32 %v12569_v8, %v19350_v51  ;;  %v12696_v55 = vadd.f32 %v12583_v14, %v19356_v57 }
 0x2f7   : > { %v13020_v46 = vcombine.low %v12998_v53, %v13005_v22  ;;  %v12697_v49 = vadd.f32 %v12585_v9, %v19359_v60  ;;  %v12698_v13 = vadd.f32 %v12587_v36, %v19371_v28  ;;  %v12987_v52 = vrot.slane %v12973_v19, %v15678_v6 }
 0x2f8   : > { %v12991_v21 = vcombine.low %v12690_v26, %v12691_v45  ;;  %v13037_v42 = vcombine.low %v12693_v1, %v12694_v41  ;;  %v13038_v44 = vcombine.low %v12695_v34, %v12696_v55  ;;  %v12594_v25 = vrot.slane %v12282_v35, %v15678_v6 }
 0x2f9   : > { %v13039_v43 = vcombine.low %v12697_v49, %v12698_v13  ;;  %v12988_v17 = vcombine.low %v12980_v32, %v12987_v52  ;;  %v13019_v10 = vrot.slane %v12692_v23, %v15678_v6  ;;  %v13028_v32 = vrot.slane %v13020_v46, %v15678_v6 }
 0x2fa   : > { %v13012_v51 = vrot.slane %v12991_v21, %v15678_v6  ;;  %v13046_v57 = vrot.slane %v13037_v42, %v15678_v6  ;;  %v13053_v60 = vrot.slane %v13038_v44, %v15678_v6  ;;  %v12601_v28 = vrot.slane %v12594_v25, %v15678_v6 }
 0x2fb   : > { %13096 = vst [vmem:[%s19469_s28 + $0x20] sm:$0x7f] %v12988_v17  ;;  %v13060_v35 = vrot.slane %v13039_v43, %v15678_v6 }
 0x2fc   : > { %v13021_v37 = vcombine.low %v13012_v51, %v13019_v10  ;;  %v13068_v30 = vcombine.low %v13046_v57, %v13053_v60  ;;  %v12699_v5 = vadd.f32 %v12601_v28, %v19408_v61  ;;  %v13148_v61 = vld [vmem:[%s19469_s28] sm:$0xff] (%p20143_p9) }
 0x2fd   : > { %13149 = vst [vmem:[%s13107_s4] sm:$0xff] (%p20143_p9), %v13148_v61 }
 0x2fe   : > { %v13035_v31 = vrot.slane %v13021_v37, %v15678_v6  ;;  %v13067_v33 = vrot.slane %v12699_v5, %v15678_v6  ;;  %v13076_v20 = vrot.slane %v13068_v30, %v15678_v6 }
 0x300   : > { %v13036_v7 = vcombine.low %v13028_v32, %v13035_v31  ;;  %v13069_v58 = vcombine.low %v13060_v35, %v13067_v33 }
 0x302   : > { %13097 = vst [vmem:[%s19469_s28 + $0x28] sm:$0x7f] %v13036_v7  ;;  %v13083_v39 = vrot.slane %v13069_v58, %v15678_v6  ;;  %13105 = sbr.rel (!%p20143_p9) target bundleno = 783 (0x30f), region = 36  ;;  %v13154_v6 = vld [vmem:[%s19469_s28 + $0x18] sm:$0xff] (%p20143_p9)  ;;  %v13156_v63 = vld [vmem:[%s19469_s28 + $0x20] sm:$0xff] (%p20143_p9) }
 0x303   : > { %13155 = vst [vmem:[%s13107_s4 + $0x60] sm:$0xff] (%p20143_p9), %v13154_v6  ;;  %13157 = vst [vmem:[%s13107_s4 + $0x80] sm:$0xff] (%p20143_p9), %v13156_v63 }
 0x304   : > { %v13084_v50 = vcombine.low %v13076_v20, %v13083_v39 }
 0x306   : > { %13098 = vst [vmem:[%s19469_s28 + $0x30] sm:$0x7f] %v13084_v50 }
 0x309   : > { %v13158_v11 = vld [vmem:[%s19469_s28 + $0x28] sm:$0xff] }
 0x30a   : > { %13159 = vst [vmem:[%s13107_s4 + $0xa0] sm:$0xff] %v13158_v11 }
 0x30d   : > { %v13160_v12 = vld [vmem:[%s19469_s28 + $0x30] sm:$0xff] }
 0x30e   : > { %13161 = vst [vmem:[%s13107_s4 + $0xc0] sm:$0xff] %v13160_v12 }
 0x30f PF: > { %p12_p10 = scmp.ge.s32.totalorder %s15538_s14, 6   ;;  %s20144_s9 = smov %s15486_s10 }
 0x310   : > { %s20145_s10 = smov %s15490_s11  ;;  %s20146_s11 = smov %s15548_s17 }
 0x311   : > { %s20147_s12 = smov %s15538_s14  ;;  %14 = sbr.rel (!%p12_p10) target bundleno = 3 (0x3), region = 116 }
 0x316   :  { %13177 = vsyncpa [#allocation4], 1 }
 0x317   :  { %13179 = vsyncpa [#allocation4 + $0x1], 1 }

</bundles_post_ra>
